<compile_context>
chip_gen: v7x
topology: tpu7x:2x2x1
jax: 0.10.0
libtpu: 0.0.40
codegen_flags: <defaults>
</compile_context>

<pallas_src>
import jax
import jax.numpy as jnp
from jax.experimental import pallas as pl
from jax.experimental.pallas import tpu as pltpu

NEG_SLOPE = 0.2      # nn.LeakyReLU(0.2)
CSRA_LAM = 0.1       # CSRA residual-attention weight (approximation)

HIDDEN = 512         # hidden_channels (hardcoded in the module)
OUT_CHANNELS = 250   # out_channels
OUT_PAD = 256        # lane-dense padded output width (sliced back on host)
MDIM = 64            # mdim constructor arg (kept small for the demo)
NUM_LAYERS = 4

EXP_IN = MDIM + 250  # 314 raw example-feature width
EXP_IN_PAD = 384     # padded to a multiple of 128
WIN_IN = MDIM        # 64 raw window-feature width
WIN_IN_PAD = 128     # padded to a multiple of 128

H = HIDDEN
# Per-layer fused weight slab rows: [wl_ww ; wl_ew ; (wr_ww + wr_ew) ; wl_ee ; wr_ee]
SLAB_ROWS = 5 * H


def _leaky(v):
    return jnp.where(v > 0, v, NEG_SLOPE * v)


# ---------------------------------------------------------------------------
# Fused Pallas kernel: one grid step == one HeteroConv layer.
#   step 0  also runs pretransform_{exp,win} + post_transform
#   last step also runs CSRA pooling + final linear
# h_e / h_w are VMEM scratch carried across grid steps; the only per-step HBM
# traffic is the (double-buffered) 2.5 MiB per-layer weight slab.
# ---------------------------------------------------------------------------
def _fused_kernel(x_e_ref, x_w_ref, w_exp_ref, w_win_ref, w_post_ref,
                  a_ww_ref, a_ee_ref, a_ew_ref,
                  w_slab_ref, b_rel_ref,
                  w_lin_ref, b_lin_ref,
                  out_ref,
                  h_e, h_w):
    layer = pl.program_id(0)

    @pl.when(layer == 0)
    def _prologue():
        # x_dict['example'] = post_transform(pretransform_exp(x_example))
        #   = leaky(leaky(x @ w_exp) @ w_post)
        he = jnp.dot(x_e_ref[...], w_exp_ref[...],
                     preferred_element_type=jnp.float32)
        he = jnp.dot(_leaky(he).astype(jnp.bfloat16), w_post_ref[...],
                     preferred_element_type=jnp.float32)
        h_e[...] = _leaky(he).astype(jnp.bfloat16)
        # x_dict['window'] = post_transform(pretransform_win(x_window))
        hw = jnp.dot(x_w_ref[...], w_win_ref[...],
                     preferred_element_type=jnp.float32)
        hw = jnp.dot(_leaky(hw).astype(jnp.bfloat16), w_post_ref[...],
                     preferred_element_type=jnp.float32)
        h_w[...] = _leaky(hw).astype(jnp.bfloat16)
        # TODO(synk): pretransform_ey / x_dict['example_y'] is dead in the
        # reference forward (HeteroConv drops the key); omitted here.

    he = h_e[...]                      # (ne, H) bf16
    hw = h_w[...]                      # (nw, H) bf16
    b = b_rel_ref[layer]               # (2, H) f32 — resident, dynamic layer index

    # --- mean aggregation via row-normalized dense adjacency (f32, tiny) ---
    he_f = he.astype(jnp.float32)
    hw_f = hw.astype(jnp.float32)
    agg_ww = jnp.dot(a_ww_ref[...], hw_f,
                     preferred_element_type=jnp.float32).astype(jnp.bfloat16)
    agg_ew = jnp.dot(a_ew_ref[...], he_f,
                     preferred_element_type=jnp.float32).astype(jnp.bfloat16)
    agg_ee = jnp.dot(a_ee_ref[...], he_f,
                     preferred_element_type=jnp.float32).astype(jnp.bfloat16)

    # --- fused window-target relations (SAGE ww + EGB-approx ew), no concat ---
    # out_ww + out_ew = agg_ww@wl_ww + agg_ew@wl_ew + hw@(wr_ww+wr_ew) + (b_ww+b_ew)
    # TODO(synk): EGBBlock is not defined in the reference source; approximated
    # as a bipartite mean-aggregation SAGE conv (example -> window).
    out_win = (jnp.dot(agg_ww, w_slab_ref[0, 0 * H:1 * H, :],
                       preferred_element_type=jnp.float32)
               + jnp.dot(agg_ew, w_slab_ref[0, 1 * H:2 * H, :],
                         preferred_element_type=jnp.float32)
               + jnp.dot(hw, w_slab_ref[0, 2 * H:3 * H, :],
                         preferred_element_type=jnp.float32)
               + b[0:1])

    # --- example<-example SAGE conv, no concat ---
    out_ee = (jnp.dot(agg_ee, w_slab_ref[0, 3 * H:4 * H, :],
                      preferred_element_type=jnp.float32)
              + jnp.dot(he, w_slab_ref[0, 4 * H:5 * H, :],
                        preferred_element_type=jnp.float32)
              + b[1:2])

    # HeteroConv aggr='mean' over the two window-target relations + LeakyReLU
    h_w[...] = _leaky(0.5 * out_win).astype(jnp.bfloat16)
    h_e[...] = _leaky(out_ee).astype(jnp.bfloat16)

    @pl.when(layer == pl.num_programs(0) - 1)
    def _epilogue():
        # TODO(synk): CSRA is not defined in the reference source; approximated
        # as mean-pool + lam * max-pool over the 'window' nodes.
        hwf = h_w[...].astype(jnp.float32)
        pooled = (jnp.mean(hwf, axis=0, keepdims=True)
                  + CSRA_LAM * jnp.max(hwf, axis=0, keepdims=True))
        logits = jnp.dot(pooled.astype(jnp.bfloat16), w_lin_ref[...],
                         preferred_element_type=jnp.float32)
        out_ref[...] = logits + b_lin_ref[...]


# ---------------------------------------------------------------------------
# Host-side wrapper
# ---------------------------------------------------------------------------
def hetero_gnn_forward(params, x_example, x_window, a_ww, a_ee, a_ew):
    ne = x_example.shape[0]
    nw = x_window.shape[0]

    # Pad feature dims lane-dense; cast only what the big matmuls see to bf16.
    xe = jnp.pad(x_example, ((0, 0), (0, EXP_IN_PAD - EXP_IN))).astype(jnp.bfloat16)
    xw = jnp.pad(x_window, ((0, 0), (0, WIN_IN_PAD - WIN_IN))).astype(jnp.bfloat16)
    a_ww = a_ww.astype(jnp.float32)   # keep 1/deg weights exact (tiny matrices)
    a_ee = a_ee.astype(jnp.float32)
    a_ew = a_ew.astype(jnp.float32)

    def resident(shape):
        # Constant block index across the grid => DMA'd once, never re-fetched.
        return pl.BlockSpec(shape, lambda l, n=len(shape): (0,) * n)

    grid_spec = pltpu.PrefetchScalarGridSpec(
        num_scalar_prefetch=0,
        grid=(NUM_LAYERS,),
        in_specs=[
            resident((ne, EXP_IN_PAD)),             # x_example (padded)
            resident((nw, WIN_IN_PAD)),             # x_window  (padded)
            resident((EXP_IN_PAD, HIDDEN)),         # w_exp
            resident((WIN_IN_PAD, HIDDEN)),         # w_win
            resident((HIDDEN, HIDDEN)),             # w_post
            resident((nw, nw)),                     # A_norm window<-window (f32)
            resident((ne, ne)),                     # A_norm example<-example (f32)
            resident((nw, ne)),                     # A_norm window<-example (f32)
            pl.BlockSpec((1, SLAB_ROWS, HIDDEN),    # per-layer fused weight slab
                         lambda l: (l, 0, 0)),      #   (double-buffered stream)
            resident((NUM_LAYERS, 2, HIDDEN)),      # all biases resident (tiny)
            resident((HIDDEN, OUT_PAD)),            # w_lin (padded)
            resident((1, OUT_PAD)),                 # b_lin (padded)
        ],
        out_specs=pl.BlockSpec((1, OUT_PAD), lambda l: (0, 0)),
        scratch_shapes=[
            pltpu.VMEM((ne, HIDDEN), jnp.bfloat16),   # h_e carried across layers
            pltpu.VMEM((nw, HIDDEN), jnp.bfloat16),   # h_w carried across layers
        ],
    )

    out = pl.pallas_call(
        _fused_kernel,
        out_shape=jax.ShapeDtypeStruct((1, OUT_PAD), jnp.float32),
        grid_spec=grid_spec,
        compiler_params=pltpu.CompilerParams(
            dimension_semantics=("arbitrary",),       # state carried across layers
            vmem_limit_bytes=32 * 1024 * 1024),       # explicit headroom (v5e default is 16 MiB)
    )(xe, xw, params["w_exp"], params["w_win"], params["w_post"],
      a_ww, a_ee, a_ew,
      params["w_slab"], params["b_rel"],
      params["w_lin"], params["b_lin"])

    return out[:, :OUT_CHANNELS]


# ---------------------------------------------------------------------------
# Graph -> dense normalized adjacency, parameter init (with weight packing)
# ---------------------------------------------------------------------------
def mean_adjacency(edge_index, n_src, n_dst):
    """Row-normalized dense adjacency A[dst, src] for mean aggregation."""
    src, dst = edge_index
    a = jnp.zeros((n_dst, n_src), jnp.float32).at[dst, src].add(1.0)
    deg = a.sum(axis=1, keepdims=True)
    return a / jnp.maximum(deg, 1.0)


def _glorot(key, shape):
    return jax.random.normal(key, shape, jnp.float32) / jnp.sqrt(shape[0])


def init_params(key):
    keys = iter(jax.random.split(key, 64))

    def pad_rows(w, rows):
        return jnp.pad(w, ((0, rows - w.shape[0]), (0, 0)))

    w_exp = _glorot(next(keys), (EXP_IN, HIDDEN))      # pretransform_exp (no bias)
    w_win = _glorot(next(keys), (WIN_IN, HIDDEN))      # pretransform_win (no bias)
    w_post = _glorot(next(keys), (HIDDEN, HIDDEN))     # post_transform linear (no bias)
    w_lin = _glorot(next(keys), (HIDDEN, OUT_CHANNELS))
    b_lin = 0.01 * jax.random.normal(next(keys), (1, OUT_CHANNELS), jnp.float32)

    slabs, biases = [], []
    for _ in range(NUM_LAYERS):
        # SAGEConv weights: lin_l (aggregated msgs) / lin_r (root, x_dst)
        wl_ww = _glorot(next(keys), (HIDDEN, HIDDEN))
        wr_ww = _glorot(next(keys), (HIDDEN, HIDDEN))
        wl_ee = _glorot(next(keys), (HIDDEN, HIDDEN))
        wr_ee = _glorot(next(keys), (HIDDEN, HIDDEN))
        wl_ew = _glorot(next(keys), (HIDDEN, HIDDEN))
        wr_ew = _glorot(next(keys), (HIDDEN, HIDDEN))
        b_ww = 0.01 * jax.random.normal(next(keys), (HIDDEN,), jnp.float32)
        b_ee = 0.01 * jax.random.normal(next(keys), (HIDDEN,), jnp.float32)
        b_ew = 0.01 * jax.random.normal(next(keys), (HIDDEN,), jnp.float32)
        # Fold the two window-target root weights (and biases): both relations
        # see the same x_dst = h_w and HeteroConv 'mean' sums them.
        slab = jnp.concatenate(
            [wl_ww, wl_ew, wr_ww + wr_ew, wl_ee, wr_ee], axis=0)   # (5H, H)
        slabs.append(slab)
        biases.append(jnp.stack([b_ww + b_ew, b_ee]))              # (2, H)

    return {
        "w_exp": pad_rows(w_exp, EXP_IN_PAD).astype(jnp.bfloat16),
        "w_win": pad_rows(w_win, WIN_IN_PAD).astype(jnp.bfloat16),
        "w_post": w_post.astype(jnp.bfloat16),
        "w_slab": jnp.stack(slabs).astype(jnp.bfloat16),   # (L, 5H, H) bf16
        "b_rel": jnp.stack(biases),                        # (L, 2, H) f32
        "w_lin": jnp.pad(w_lin, ((0, 0), (0, OUT_PAD - OUT_CHANNELS))).astype(jnp.bfloat16),
        "b_lin": jnp.pad(b_lin, ((0, 0), (0, OUT_PAD - OUT_CHANNELS))),
    }


if __name__ == "__main__":
    key = jax.random.PRNGKey(0)
    k_param, k_xe, k_xw, k_e1, k_e2, k_e3 = jax.random.split(key, 6)

    n_example, n_window = 16, 32
    x_example = jax.random.normal(k_xe, (n_example, EXP_IN), jnp.float32)
    x_window = jax.random.normal(k_xw, (n_window, WIN_IN), jnp.float32)

    # Deterministic random edge_index_dict (src row, dst row), like PyG COO edges.
    e_ww = jax.random.randint(k_e1, (2, 64), 0, n_window)
    e_ee = jax.random.randint(k_e2, (2, 32), 0, n_example)
    e_ew = jnp.stack([jax.random.randint(k_e3, (48,), 0, n_example),
                      jax.random.randint(jax.random.fold_in(k_e3, 1), (48,), 0, n_window)])

    a_ww = mean_adjacency(e_ww, n_window, n_window)    # (n_window, n_window)
    a_ee = mean_adjacency(e_ee, n_example, n_example)  # (n_example, n_example)
    a_ew = mean_adjacency(e_ew, n_example, n_window)   # (n_window, n_example)

    params = init_params(k_param)

    fwd = jax.jit(hetero_gnn_forward)
    out = jax.block_until_ready(fwd(params, x_example, x_window, a_ww, a_ee, a_ew))

    assert out.shape == (1, OUT_CHANNELS), out.shape
    assert bool(jnp.all(jnp.isfinite(out)))
    print("KERNEL_OK")
</pallas_src>

<mosaic_0001>
module attributes {stable_mosaic.version = 11 : i64} {
  func.func @_fused_kernel(%arg0: i32, %arg1: memref<16x384xbf16, #tpu.memory_space<vmem>>, %arg2: memref<32x128xbf16, #tpu.memory_space<vmem>>, %arg3: memref<384x512xbf16, #tpu.memory_space<vmem>>, %arg4: memref<128x512xbf16, #tpu.memory_space<vmem>>, %arg5: memref<512x512xbf16, #tpu.memory_space<vmem>>, %arg6: memref<32x32xf32, #tpu.memory_space<vmem>>, %arg7: memref<16x16xf32, #tpu.memory_space<vmem>>, %arg8: memref<32x16xf32, #tpu.memory_space<vmem>>, %arg9: memref<1x2560x512xbf16, #tpu.memory_space<vmem>>, %arg10: memref<4x2x512xf32, #tpu.memory_space<vmem>>, %arg11: memref<512x256xbf16, #tpu.memory_space<vmem>>, %arg12: memref<1x256xf32, #tpu.memory_space<vmem>>, %arg13: memref<1x256xf32, #tpu.memory_space<vmem>>, %arg14: memref<16x512xbf16, #tpu.memory_space<vmem>>, %arg15: memref<32x512xbf16, #tpu.memory_space<vmem>>) attributes {dimension_semantics = [#tpu.dimension_semantics<arbitrary>], iteration_bounds = array<i64: 4>, scalar_prefetch = 0 : i64, scratch_operands = 2 : i64, tpu.core_type = #tpu.core_type<tc>, window_params = [{pipeline_mode = #tpu.pipeline_mode<synchronous>, transform_indices = @transform_0, window_bounds = array<i64: 16, 384>}, {pipeline_mode = #tpu.pipeline_mode<synchronous>, transform_indices = @transform_1, window_bounds = array<i64: 32, 128>}, {pipeline_mode = #tpu.pipeline_mode<synchronous>, transform_indices = @transform_2, window_bounds = array<i64: 384, 512>}, {pipeline_mode = #tpu.pipeline_mode<synchronous>, transform_indices = @transform_3, window_bounds = array<i64: 128, 512>}, {pipeline_mode = #tpu.pipeline_mode<synchronous>, transform_indices = @transform_4, window_bounds = array<i64: 512, 512>}, {pipeline_mode = #tpu.pipeline_mode<synchronous>, transform_indices = @transform_5, window_bounds = array<i64: 32, 32>}, {pipeline_mode = #tpu.pipeline_mode<synchronous>, transform_indices = @transform_6, window_bounds = array<i64: 16, 16>}, {pipeline_mode = #tpu.pipeline_mode<synchronous>, transform_indices = @transform_7, window_bounds = array<i64: 32, 16>}, {transform_indices = @transform_8, window_bounds = array<i64: 1, 2560, 512>}, {pipeline_mode = #tpu.pipeline_mode<synchronous>, transform_indices = @transform_9, window_bounds = array<i64: 4, 2, 512>}, {pipeline_mode = #tpu.pipeline_mode<synchronous>, transform_indices = @transform_10, window_bounds = array<i64: 512, 256>}, {pipeline_mode = #tpu.pipeline_mode<synchronous>, transform_indices = @transform_11, window_bounds = array<i64: 1, 256>}, {pipeline_mode = #tpu.pipeline_mode<synchronous>, transform_indices = @transform_12, window_bounds = array<i64: 1, 256>}]} {
    %c0_i32 = arith.constant 0 : i32
    %0 = arith.cmpi eq, %arg0, %c0_i32 : i32
    %1 = arith.extui %0 : i1 to i32
    %c0_i32_0 = arith.constant 0 : i32
    %2 = arith.cmpi ne, %1, %c0_i32_0 : i32
    scf.if %2 {
      %c0_40 = arith.constant 0 : index
      %c0_41 = arith.constant 0 : index
      %62 = vector.load %arg1[%c0_40, %c0_41] : memref<16x384xbf16, #tpu.memory_space<vmem>>, vector<16x384xbf16>
      %c0_42 = arith.constant 0 : index
      %c0_43 = arith.constant 0 : index
      %63 = vector.load %arg3[%c0_42, %c0_43] : memref<384x512xbf16, #tpu.memory_space<vmem>>, vector<384x512xbf16>
      %cst_44 = arith.constant dense<0.000000e+00> : vector<16x512xf32>
      %64 = tpu.matmul %62, %63, %cst_44 {dimension_numbers = #tpu.dot_dimension_numbers<[1], [0], [0], [1], [0, 0, 1, 1], [], []>} : vector<16x384xbf16>, vector<384x512xbf16>, vector<16x512xf32> -> vector<16x512xf32>
      %cst_45 = arith.constant 0.000000e+00 : f32
      %65 = vector.broadcast %cst_45 : f32 to vector<16x512xf32>
      %66 = arith.cmpf ogt, %64, %65 : vector<16x512xf32>
      %cst_46 = arith.constant 2.000000e-01 : f32
      %67 = vector.broadcast %cst_46 : f32 to vector<16x512xf32>
      %68 = arith.mulf %67, %64 : vector<16x512xf32>
      %69 = arith.select %66, %64, %68 : vector<16x512xi1>, vector<16x512xf32>
      %70 = arith.truncf %69 : vector<16x512xf32> to vector<16x512xbf16>
      %c0_47 = arith.constant 0 : index
      %c0_48 = arith.constant 0 : index
      %71 = vector.load %arg5[%c0_47, %c0_48] : memref<512x512xbf16, #tpu.memory_space<vmem>>, vector<512x512xbf16>
      %cst_49 = arith.constant dense<0.000000e+00> : vector<16x512xf32>
      %72 = tpu.matmul %70, %71, %cst_49 {dimension_numbers = #tpu.dot_dimension_numbers<[1], [0], [0], [1], [0, 0, 1, 1], [], []>} : vector<16x512xbf16>, vector<512x512xbf16>, vector<16x512xf32> -> vector<16x512xf32>
      %cst_50 = arith.constant 0.000000e+00 : f32
      %73 = vector.broadcast %cst_50 : f32 to vector<16x512xf32>
      %74 = arith.cmpf ogt, %72, %73 : vector<16x512xf32>
      %cst_51 = arith.constant 2.000000e-01 : f32
      %75 = vector.broadcast %cst_51 : f32 to vector<16x512xf32>
      %76 = arith.mulf %75, %72 : vector<16x512xf32>
      %77 = arith.select %74, %72, %76 : vector<16x512xi1>, vector<16x512xf32>
      %78 = arith.truncf %77 : vector<16x512xf32> to vector<16x512xbf16>
      %c0_52 = arith.constant 0 : index
      %c0_53 = arith.constant 0 : index
      %79 = vector.load %arg14[%c0_52, %c0_53] : memref<16x512xbf16, #tpu.memory_space<vmem>>, vector<16x512xbf16>
      tpu.vector_store %arg14[%c0_52, %c0_53], %78 {strides = array<i32>} : memref<16x512xbf16, #tpu.memory_space<vmem>>, vector<16x512xbf16>,
      %c0_54 = arith.constant 0 : index
      %c0_55 = arith.constant 0 : index
      %80 = vector.load %arg2[%c0_54, %c0_55] : memref<32x128xbf16, #tpu.memory_space<vmem>>, vector<32x128xbf16>
      %c0_56 = arith.constant 0 : index
      %c0_57 = arith.constant 0 : index
      %81 = vector.load %arg4[%c0_56, %c0_57] : memref<128x512xbf16, #tpu.memory_space<vmem>>, vector<128x512xbf16>
      %cst_58 = arith.constant dense<0.000000e+00> : vector<32x512xf32>
      %82 = tpu.matmul %80, %81, %cst_58 {dimension_numbers = #tpu.dot_dimension_numbers<[1], [0], [0], [1], [0, 0, 1, 1], [], []>} : vector<32x128xbf16>, vector<128x512xbf16>, vector<32x512xf32> -> vector<32x512xf32>
      %cst_59 = arith.constant 0.000000e+00 : f32
      %83 = vector.broadcast %cst_59 : f32 to vector<32x512xf32>
      %84 = arith.cmpf ogt, %82, %83 : vector<32x512xf32>
      %cst_60 = arith.constant 2.000000e-01 : f32
      %85 = vector.broadcast %cst_60 : f32 to vector<32x512xf32>
      %86 = arith.mulf %85, %82 : vector<32x512xf32>
      %87 = arith.select %84, %82, %86 : vector<32x512xi1>, vector<32x512xf32>
      %88 = arith.truncf %87 : vector<32x512xf32> to vector<32x512xbf16>
      %c0_61 = arith.constant 0 : index
      %c0_62 = arith.constant 0 : index
      %89 = vector.load %arg5[%c0_61, %c0_62] : memref<512x512xbf16, #tpu.memory_space<vmem>>, vector<512x512xbf16>
      %cst_63 = arith.constant dense<0.000000e+00> : vector<32x512xf32>
      %90 = tpu.matmul %88, %89, %cst_63 {dimension_numbers = #tpu.dot_dimension_numbers<[1], [0], [0], [1], [0, 0, 1, 1], [], []>} : vector<32x512xbf16>, vector<512x512xbf16>, vector<32x512xf32> -> vector<32x512xf32>
      %cst_64 = arith.constant 0.000000e+00 : f32
      %91 = vector.broadcast %cst_64 : f32 to vector<32x512xf32>
      %92 = arith.cmpf ogt, %90, %91 : vector<32x512xf32>
      %cst_65 = arith.constant 2.000000e-01 : f32
      %93 = vector.broadcast %cst_65 : f32 to vector<32x512xf32>
      %94 = arith.mulf %93, %90 : vector<32x512xf32>
      %95 = arith.select %92, %90, %94 : vector<32x512xi1>, vector<32x512xf32>
      %96 = arith.truncf %95 : vector<32x512xf32> to vector<32x512xbf16>
      %c0_66 = arith.constant 0 : index
      %c0_67 = arith.constant 0 : index
      %97 = vector.load %arg15[%c0_66, %c0_67] : memref<32x512xbf16, #tpu.memory_space<vmem>>, vector<32x512xbf16>
      tpu.vector_store %arg15[%c0_66, %c0_67], %96 {strides = array<i32>} : memref<32x512xbf16, #tpu.memory_space<vmem>>, vector<32x512xbf16>,
    } else {
    }
    %c0 = arith.constant 0 : index
    %c0_1 = arith.constant 0 : index
    %3 = vector.load %arg14[%c0, %c0_1] : memref<16x512xbf16, #tpu.memory_space<vmem>>, vector<16x512xbf16>
    %c0_2 = arith.constant 0 : index
    %c0_3 = arith.constant 0 : index
    %4 = vector.load %arg15[%c0_2, %c0_3] : memref<32x512xbf16, #tpu.memory_space<vmem>>, vector<32x512xbf16>
    %5 = arith.index_cast %arg0 : i32 to index
    %c0_4 = arith.constant 0 : index
    %c0_5 = arith.constant 0 : index
    %6 = vector.load %arg10[%5, %c0_4, %c0_5] : memref<4x2x512xf32, #tpu.memory_space<vmem>>, vector<1x2x512xf32>
    %7 = vector.shape_cast %6 : vector<1x2x512xf32> to vector<2x512xf32>
    %8 = arith.extf %3 : vector<16x512xbf16> to vector<16x512xf32>
    %9 = arith.extf %4 : vector<32x512xbf16> to vector<32x512xf32>
    %c0_6 = arith.constant 0 : index
    %c0_7 = arith.constant 0 : index
    %10 = vector.load %arg6[%c0_6, %c0_7] : memref<32x32xf32, #tpu.memory_space<vmem>>, vector<32x32xf32>
    %cst = arith.constant dense<0.000000e+00> : vector<32x512xf32>
    %11 = tpu.matmul %10, %9, %cst {dimension_numbers = #tpu.dot_dimension_numbers<[1], [0], [0], [1], [0, 0, 1, 1], [], []>} : vector<32x32xf32>, vector<32x512xf32>, vector<32x512xf32> -> vector<32x512xf32>
    %12 = arith.truncf %11 : vector<32x512xf32> to vector<32x512xbf16>
    %c0_8 = arith.constant 0 : index
    %c0_9 = arith.constant 0 : index
    %13 = vector.load %arg8[%c0_8, %c0_9] : memref<32x16xf32, #tpu.memory_space<vmem>>, vector<32x16xf32>
    %cst_10 = arith.constant dense<0.000000e+00> : vector<32x512xf32>
    %14 = tpu.matmul %13, %8, %cst_10 {dimension_numbers = #tpu.dot_dimension_numbers<[1], [0], [0], [1], [0, 0, 1, 1], [], []>} : vector<32x16xf32>, vector<16x512xf32>, vector<32x512xf32> -> vector<32x512xf32>
    %15 = arith.truncf %14 : vector<32x512xf32> to vector<32x512xbf16>
    %c0_11 = arith.constant 0 : index
    %c0_12 = arith.constant 0 : index
    %16 = vector.load %arg7[%c0_11, %c0_12] : memref<16x16xf32, #tpu.memory_space<vmem>>, vector<16x16xf32>
    %cst_13 = arith.constant dense<0.000000e+00> : vector<16x512xf32>
    %17 = tpu.matmul %16, %8, %cst_13 {dimension_numbers = #tpu.dot_dimension_numbers<[1], [0], [0], [1], [0, 0, 1, 1], [], []>} : vector<16x16xf32>, vector<16x512xf32>, vector<16x512xf32> -> vector<16x512xf32>
    %18 = arith.truncf %17 : vector<16x512xf32> to vector<16x512xbf16>
    %c0_14 = arith.constant 0 : index
    %c0_15 = arith.constant 0 : index
    %c0_16 = arith.constant 0 : index
    %19 = vector.load %arg9[%c0_14, %c0_15, %c0_16] : memref<1x2560x512xbf16, #tpu.memory_space<vmem>>, vector<1x512x512xbf16>
    %20 = vector.shape_cast %19 : vector<1x512x512xbf16> to vector<512x512xbf16>
    %cst_17 = arith.constant dense<0.000000e+00> : vector<32x512xf32>
    %21 = tpu.matmul %12, %20, %cst_17 {dimension_numbers = #tpu.dot_dimension_numbers<[1], [0], [0], [1], [0, 0, 1, 1], [], []>} : vector<32x512xbf16>, vector<512x512xbf16>, vector<32x512xf32> -> vector<32x512xf32>
    %c0_18 = arith.constant 0 : index
    %c512 = arith.constant 512 : index
    %c0_19 = arith.constant 0 : index
    %22 = vector.load %arg9[%c0_18, %c512, %c0_19] : memref<1x2560x512xbf16, #tpu.memory_space<vmem>>, vector<1x512x512xbf16>
    %23 = vector.shape_cast %22 : vector<1x512x512xbf16> to vector<512x512xbf16>
    %cst_20 = arith.constant dense<0.000000e+00> : vector<32x512xf32>
    %24 = tpu.matmul %15, %23, %cst_20 {dimension_numbers = #tpu.dot_dimension_numbers<[1], [0], [0], [1], [0, 0, 1, 1], [], []>} : vector<32x512xbf16>, vector<512x512xbf16>, vector<32x512xf32> -> vector<32x512xf32>
    %25 = arith.addf %21, %24 : vector<32x512xf32>
    %c0_21 = arith.constant 0 : index
    %c1024 = arith.constant 1024 : index
    %c0_22 = arith.constant 0 : index
    %26 = vector.load %arg9[%c0_21, %c1024, %c0_22] : memref<1x2560x512xbf16, #tpu.memory_space<vmem>>, vector<1x512x512xbf16>
    %27 = vector.shape_cast %26 : vector<1x512x512xbf16> to vector<512x512xbf16>
    %cst_23 = arith.constant dense<0.000000e+00> : vector<32x512xf32>
    %28 = tpu.matmul %4, %27, %cst_23 {dimension_numbers = #tpu.dot_dimension_numbers<[1], [0], [0], [1], [0, 0, 1, 1], [], []>} : vector<32x512xbf16>, vector<512x512xbf16>, vector<32x512xf32> -> vector<32x512xf32>
    %29 = arith.addf %25, %28 : vector<32x512xf32>
    %30 = vector.extract_strided_slice %7 {offsets = [0, 0], sizes = [1, 512], strides = [1, 1]} : vector<2x512xf32> to vector<1x512xf32>
    %31 = vector.broadcast %30 : vector<1x512xf32> to vector<32x512xf32>
    %32 = arith.addf %29, %31 : vector<32x512xf32>
    %c0_24 = arith.constant 0 : index
    %c1536 = arith.constant 1536 : index
    %c0_25 = arith.constant 0 : index
    %33 = vector.load %arg9[%c0_24, %c1536, %c0_25] : memref<1x2560x512xbf16, #tpu.memory_space<vmem>>, vector<1x512x512xbf16>
    %34 = vector.shape_cast %33 : vector<1x512x512xbf16> to vector<512x512xbf16>
    %cst_26 = arith.constant dense<0.000000e+00> : vector<16x512xf32>
    %35 = tpu.matmul %18, %34, %cst_26 {dimension_numbers = #tpu.dot_dimension_numbers<[1], [0], [0], [1], [0, 0, 1, 1], [], []>} : vector<16x512xbf16>, vector<512x512xbf16>, vector<16x512xf32> -> vector<16x512xf32>
    %c0_27 = arith.constant 0 : index
    %c2048 = arith.constant 2048 : index
    %c0_28 = arith.constant 0 : index
    %36 = vector.load %arg9[%c0_27, %c2048, %c0_28] : memref<1x2560x512xbf16, #tpu.memory_space<vmem>>, vector<1x512x512xbf16>
    %37 = vector.shape_cast %36 : vector<1x512x512xbf16> to vector<512x512xbf16>
    %cst_29 = arith.constant dense<0.000000e+00> : vector<16x512xf32>
    %38 = tpu.matmul %3, %37, %cst_29 {dimension_numbers = #tpu.dot_dimension_numbers<[1], [0], [0], [1], [0, 0, 1, 1], [], []>} : vector<16x512xbf16>, vector<512x512xbf16>, vector<16x512xf32> -> vector<16x512xf32>
    %39 = arith.addf %35, %38 : vector<16x512xf32>
    %40 = vector.extract_strided_slice %7 {offsets = [1, 0], sizes = [1, 512], strides = [1, 1]} : vector<2x512xf32> to vector<1x512xf32>
    %41 = vector.broadcast %40 : vector<1x512xf32> to vector<16x512xf32>
    %42 = arith.addf %39, %41 : vector<16x512xf32>
    %cst_30 = arith.constant 5.000000e-01 : f32
    %43 = vector.broadcast %cst_30 : f32 to vector<32x512xf32>
    %44 = arith.mulf %43, %32 : vector<32x512xf32>
    %cst_31 = arith.constant 0.000000e+00 : f32
    %45 = vector.broadcast %cst_31 : f32 to vector<32x512xf32>
    %46 = arith.cmpf ogt, %44, %45 : vector<32x512xf32>
    %cst_32 = arith.constant 2.000000e-01 : f32
    %47 = vector.broadcast %cst_32 : f32 to vector<32x512xf32>
    %48 = arith.mulf %47, %44 : vector<32x512xf32>
    %49 = arith.select %46, %44, %48 : vector<32x512xi1>, vector<32x512xf32>
    %50 = arith.truncf %49 : vector<32x512xf32> to vector<32x512xbf16>
    %c0_33 = arith.constant 0 : index
    %c0_34 = arith.constant 0 : index
    %51 = vector.load %arg15[%c0_33, %c0_34] : memref<32x512xbf16, #tpu.memory_space<vmem>>, vector<32x512xbf16>
    tpu.vector_store %arg15[%c0_33, %c0_34], %50 {strides = array<i32>} : memref<32x512xbf16, #tpu.memory_space<vmem>>, vector<32x512xbf16>,
    %cst_35 = arith.constant 0.000000e+00 : f32
    %52 = vector.broadcast %cst_35 : f32 to vector<16x512xf32>
    %53 = arith.cmpf ogt, %42, %52 : vector<16x512xf32>
    %cst_36 = arith.constant 2.000000e-01 : f32
    %54 = vector.broadcast %cst_36 : f32 to vector<16x512xf32>
    %55 = arith.mulf %54, %42 : vector<16x512xf32>
    %56 = arith.select %53, %42, %55 : vector<16x512xi1>, vector<16x512xf32>
    %57 = arith.truncf %56 : vector<16x512xf32> to vector<16x512xbf16>
    %c0_37 = arith.constant 0 : index
    %c0_38 = arith.constant 0 : index
    %58 = vector.load %arg14[%c0_37, %c0_38] : memref<16x512xbf16, #tpu.memory_space<vmem>>, vector<16x512xbf16>
    tpu.vector_store %arg14[%c0_37, %c0_38], %57 {strides = array<i32>} : memref<16x512xbf16, #tpu.memory_space<vmem>>, vector<16x512xbf16>,
    %c3_i32 = arith.constant 3 : i32
    %59 = arith.cmpi eq, %arg0, %c3_i32 : i32
    %60 = arith.extui %59 : i1 to i32
    %c0_i32_39 = arith.constant 0 : i32
    %61 = arith.cmpi ne, %60, %c0_i32_39 : i32
    scf.if %61 {
      %c0_40 = arith.constant 0 : index
      %c0_41 = arith.constant 0 : index
      %62 = vector.load %arg15[%c0_40, %c0_41] : memref<32x512xbf16, #tpu.memory_space<vmem>>, vector<32x512xbf16>
      %63 = arith.extf %62 : vector<32x512xbf16> to vector<32x512xf32>
      %cst_42 = arith.constant dense<0.000000e+00> : vector<512xf32>
      %64 = vector.multi_reduction <add>, %63, %cst_42 [0] : vector<32x512xf32> to vector<512xf32>
      %65 = vector.shape_cast %64 : vector<512xf32> to vector<1x512xf32>
      %cst_43 = arith.constant 3.200000e+01 : f32
      %66 = vector.broadcast %cst_43 : f32 to vector<1x512xf32>
      %67 = arith.divf %65, %66 : vector<1x512xf32>
      %cst_44 = arith.constant dense<0xFF800000> : vector<512xf32>
      %68 = vector.multi_reduction <maximumf>, %63, %cst_44 [0] : vector<32x512xf32> to vector<512xf32>
      %69 = vector.shape_cast %68 : vector<512xf32> to vector<1x512xf32>
      %cst_45 = arith.constant 1.000000e-01 : f32
      %70 = vector.broadcast %cst_45 : f32 to vector<1x512xf32>
      %71 = arith.mulf %70, %69 : vector<1x512xf32>
      %72 = arith.addf %67, %71 : vector<1x512xf32>
      %73 = arith.truncf %72 : vector<1x512xf32> to vector<1x512xbf16>
      %c0_46 = arith.constant 0 : index
      %c0_47 = arith.constant 0 : index
      %74 = vector.load %arg11[%c0_46, %c0_47] : memref<512x256xbf16, #tpu.memory_space<vmem>>, vector<512x256xbf16>
      %cst_48 = arith.constant dense<0.000000e+00> : vector<1x256xf32>
      %75 = tpu.matmul %73, %74, %cst_48 {dimension_numbers = #tpu.dot_dimension_numbers<[1], [0], [0], [1], [0, 0, 1, 1], [], []>} : vector<1x512xbf16>, vector<512x256xbf16>, vector<1x256xf32> -> vector<1x256xf32>
      %c0_49 = arith.constant 0 : index
      %c0_50 = arith.constant 0 : index
      %76 = vector.load %arg12[%c0_49, %c0_50] : memref<1x256xf32, #tpu.memory_space<vmem>>, vector<1x256xf32>
      %77 = arith.addf %75, %76 : vector<1x256xf32>
      %c0_51 = arith.constant 0 : index
      %c0_52 = arith.constant 0 : index
      %78 = vector.load %arg13[%c0_51, %c0_52] : memref<1x256xf32, #tpu.memory_space<vmem>>, vector<1x256xf32>
      tpu.vector_store %arg13[%c0_51, %c0_52], %77 {strides = array<i32>} : memref<1x256xf32, #tpu.memory_space<vmem>>, vector<1x256xf32>,
    } else {
    }
    return
  }
  func.func @transform_0(%arg0: i32) -> (i32, i32) {
    %c0_i32 = arith.constant 0 : i32
    %c0_i32_0 = arith.constant 0 : i32
    %c0_i32_1 = arith.constant 0 : i32
    return %c0_i32, %c0_i32_0 : i32, i32
  }
  func.func @transform_1(%arg0: i32) -> (i32, i32) {
    %c0_i32 = arith.constant 0 : i32
    %c0_i32_0 = arith.constant 0 : i32
    %c0_i32_1 = arith.constant 0 : i32
    return %c0_i32, %c0_i32_0 : i32, i32
  }
  func.func @transform_2(%arg0: i32) -> (i32, i32) {
    %c0_i32 = arith.constant 0 : i32
    %c0_i32_0 = arith.constant 0 : i32
    %c0_i32_1 = arith.constant 0 : i32
    return %c0_i32, %c0_i32_0 : i32, i32
  }
  func.func @transform_3(%arg0: i32) -> (i32, i32) {
    %c0_i32 = arith.constant 0 : i32
    %c0_i32_0 = arith.constant 0 : i32
    %c0_i32_1 = arith.constant 0 : i32
    return %c0_i32, %c0_i32_0 : i32, i32
  }
  func.func @transform_4(%arg0: i32) -> (i32, i32) {
    %c0_i32 = arith.constant 0 : i32
    %c0_i32_0 = arith.constant 0 : i32
    %c0_i32_1 = arith.constant 0 : i32
    return %c0_i32, %c0_i32_0 : i32, i32
  }
  func.func @transform_5(%arg0: i32) -> (i32, i32) {
    %c0_i32 = arith.constant 0 : i32
    %c0_i32_0 = arith.constant 0 : i32
    %c0_i32_1 = arith.constant 0 : i32
    return %c0_i32, %c0_i32_0 : i32, i32
  }
  func.func @transform_6(%arg0: i32) -> (i32, i32) {
    %c0_i32 = arith.constant 0 : i32
    %c0_i32_0 = arith.constant 0 : i32
    %c0_i32_1 = arith.constant 0 : i32
    return %c0_i32, %c0_i32_0 : i32, i32
  }
  func.func @transform_7(%arg0: i32) -> (i32, i32) {
    %c0_i32 = arith.constant 0 : i32
    %c0_i32_0 = arith.constant 0 : i32
    %c0_i32_1 = arith.constant 0 : i32
    return %c0_i32, %c0_i32_0 : i32, i32
  }
  func.func @transform_8(%arg0: i32) -> (i32, i32, i32) {
    %c0_i32 = arith.constant 0 : i32
    %c0_i32_0 = arith.constant 0 : i32
    %c0_i32_1 = arith.constant 0 : i32
    return %arg0, %c0_i32, %c0_i32_0 : i32, i32, i32
  }
  func.func @transform_9(%arg0: i32) -> (i32, i32, i32) {
    %c0_i32 = arith.constant 0 : i32
    %c0_i32_0 = arith.constant 0 : i32
    %c0_i32_1 = arith.constant 0 : i32
    %c0_i32_2 = arith.constant 0 : i32
    return %c0_i32, %c0_i32_0, %c0_i32_1 : i32, i32, i32
  }
  func.func @transform_10(%arg0: i32) -> (i32, i32) {
    %c0_i32 = arith.constant 0 : i32
    %c0_i32_0 = arith.constant 0 : i32
    %c0_i32_1 = arith.constant 0 : i32
    return %c0_i32, %c0_i32_0 : i32, i32
  }
  func.func @transform_11(%arg0: i32) -> (i32, i32) {
    %c0_i32 = arith.constant 0 : i32
    %c0_i32_0 = arith.constant 0 : i32
    %c0_i32_1 = arith.constant 0 : i32
    return %c0_i32, %c0_i32_0 : i32, i32
  }
  func.func @transform_12(%arg0: i32) -> (i32, i32) {
    %c0_i32 = arith.constant 0 : i32
    %c0_i32_0 = arith.constant 0 : i32
    %c0_i32_1 = arith.constant 0 : i32
    return %c0_i32, %c0_i32_0 : i32, i32
  }
}

</mosaic_0001>

<bundles_post_ra>
// kernel: hetero_gnn_forward.1
= control target key start
LH: loop header
LB: loop body
LE: loop exit
PB: predicated region body
PF: predicated region fallthrough
CT: control target
= control target key end

     0   :  { %s14896_s0 = inlined_call_operand.vmem [shape: bf16[16,384], index: 0, kind: input, shape index: {}]   ;;  %s14897_s1 = inlined_call_operand.vmem [shape: bf16[32,128], index: 1, kind: input, shape index: {}]   ;;  %s14898_s2 = inlined_call_operand.hbm [shape: bf16[384,512], index: 2, kind: input, shape index: {}]   ;;  %s14899_s3 = inlined_call_operand.hbm [shape: bf16[128,512], index: 3, kind: input, shape index: {}]   ;;  %s14900_s4 = inlined_call_operand.hbm [shape: bf16[512,512], index: 4, kind: input, shape index: {}]   ;;  %s14901_s5 = inlined_call_operand.hbm [shape: f32[32,32], index: 5, kind: input, shape index: {}]   ;;  %s14902_s6 = inlined_call_operand.hbm [shape: f32[16,16], index: 6, kind: input, shape index: {}]   ;;  %s14903_s7 = inlined_call_operand.vmem [shape: f32[32,16], index: 7, kind: input, shape index: {}]   ;;  %s14904_s8 = inlined_call_operand.hbm [shape: bf16[4,2560,512], index: 8, kind: input, shape index: {}]   ;;  %s14905_s9 = inlined_call_operand.hbm [shape: f32[4,2,512], index: 9, kind: input, shape index: {}]   ;;  %s14906_s10 = inlined_call_operand.hbm [shape: bf16[512,256], index: 10, kind: input, shape index: {}]   ;;  %s14907_s11 = inlined_call_operand.hbm [shape: f32[1,256], index: 11, kind: input, shape index: {}]   ;;  %s14908_s12 = inlined_call_operand.hbm [shape: f32[1,256], index: 12, kind: output, shape index: {}]  }
   0x1   :  { %14921 = sst [smem:[#allocation27_spill]] %s14896_s0 }
   0x2   :  { %14922 = sst [smem:[#allocation28_spill]] %s14897_s1 }
   0x3   :  { %14923 = sst [smem:[#allocation29_spill]] %s14898_s2 }
   0x4   :  { %14924 = sst [smem:[#allocation30_spill]] %s14899_s3 }
   0x5   :  { %14925 = sst [smem:[#allocation31_spill]] %s14903_s7 }
   0x6   :  { %14926 = sst [smem:[#allocation32_spill]] %s14908_s12 }
   0x7   :  { %17 = vsyncpa [#allocation5], 0 }
   0x8   :  { %18 = vsyncpa [#allocation8], 0 }
   0x9   :  { %19 = vsyncpa [#allocation11], 0 }
   0xa   :  { %20 = vsyncpa [#allocation14], 0 }
   0xb   :  { %22 = vsyncpa [#allocation14 + $0x1], 0 }
   0xc   :  { %23 = vsyncpa [#allocation17], 0 }
   0xd   :  { %24 = vsyncpa [#allocation6], 0  ;;  %s13657_s21 = smov 0   ;;  %s13659_s22 = smov 0  }
   0xe   :  { %s13661_s23 = smov 0   ;;  %s13663_s24 = smov 0  }
   0xf LB: > { %s13678_s25 = sadd.s32 4294967295, %s13573_s24   ;;  %p10134_p0 = scmp.ge.s32.totalorder %s13573_s24, 1  ;;  %s13573_s24 = sphi %s13663_s24, %s14958_s24   ;;  %s13569_s23 = sphi %s13661_s23, %s14957_s23   ;;  %s13565_s22 = sphi %s13659_s22, %s14956_s22   ;;  %s13561_s21 = sphi %s13657_s21, %s14955_s21  }
  0x10   : > { %p14915_p1 = scmp.eq.s32.totalorder %s13678_s25, 0  ;;  %p313_p2 = scmp.lt.s32.totalorder %s13573_s24, 5 }
  0x11   : > { %s13575_s27 = smov [#allocation7]   ;;  %s13576_s29 = smov [#allocation10]  }
  0x12   : > { %p13684_p4 = pnand %p10134_p0, %p313_p2  ;;  %s344_s28 = sshll.u32 %s13575_s27, 4  ;;  %s13688_s28 = int_to_ptr.vmem [resolvable:$true] %s344_s28 }
  0x13   : > { %s370_s30 = sshll.u32 %s13576_s29, 4  ;;  %s13577_s14 = smov [#allocation15]   ;;  %s13698_s30 = int_to_ptr.vmem [resolvable:$true] %s370_s30 }
  0x14   : > { %s14927_s26 = scalar_select %p13684_p4, 1, 0 }
  0x15   : > { %p11489_p5 = pneg %p13684_p4  ;;  %s13700_s15 = sshll.u32 %s13577_s14, 4  ;;  %s400_s15 = int_to_ptr.vmem [resolvable:$true] %s13700_s15 }
  0x16   : > { %s14929_s3 = sld [smem:[#allocation30_spill]] }
  0x17   : > { %p13694_p6 = pnand %p11489_p5, %p14915_p1 }
  0x19   : > { %p13710_p8 = pneg %p13694_p6 }
  0x1c   : > { %s13235_s18 = scalar_lea.hbm %s14929_s3, 4096 }
  0x1d   : > { %p13236_p7 = scmp.ne.s32.totalorder %s14929_s3, %s13235_s18  ;;  %p13242_p11 = scmp.lt.u32.totalorder %s13235_s18, %s14929_s3 }
  0x1f   : > { %p13238_p9 = pnand %p13710_p8, %p13236_p7 }
  0x21   : > { %p13239_p10 = pneg %p13238_p9 }
  0x23   : > { %p13244_p12 = pnand %p13242_p11, %p13239_p10 }
  0x25   : > { %13247 = shalt.err (!%p13244_p12)
}
  0x26   : > { %s13248_s16 = scalar_lea.vmem %s13688_s28, 4096  ;;  %p13256_p5 = scmp.lt.s32.totalorder %s13688_s28, %s13688_s28 }
  0x27   : > { %p13249_p13 = scmp.ne.s32.totalorder %s13688_s28, %s13248_s16  ;;  %p13257_p3 = scmp.lt.s32.totalorder %s13248_s16, %s13248_s16 }
  0x29   : > { %p13251_p0 = pnand %p13249_p13, %p13710_p8  ;;  %p13258_p7 = por %p13257_p3, %p13256_p5 }
  0x2b   : > { %p13252_p2 = pneg %p13251_p0 }
  0x2d   : > { %p13259_p9 = pnand %p13258_p7, %p13252_p2 }
  0x2f   : > { %13262 = shalt.err (!%p13259_p9)
}
  0x30   : > { %s14913_s17 = smov 256   ;;  %s14917_s18 = smov 16  }
  0x31   : > { %11495 = dma.hbm_to_vmem [thread:$0]  (!%p13694_p6), %s14929_s3, 4096, %s13688_s28, [#allocation8], %s14913_s17, %s14913_s17, %s14917_s18  }
  0x32   : > { %s13263_s16 = scalar_lea.hbm %s14901_s5, 512 }
  0x33   : > { %p13264_p3 = scmp.ne.s32.totalorder %s14901_s5, %s13263_s16  ;;  %p13270_p12 = scmp.lt.u32.totalorder %s13263_s16, %s14901_s5 }
  0x35   : > { %p13266_p10 = pnand %p13264_p3, %p13710_p8 }
  0x37   : > { %p13267_p11 = pneg %p13266_p10 }
  0x39   : > { %p13272_p13 = pnand %p13270_p12, %p13267_p11 }
  0x3b   : > { %13275 = shalt.err (!%p13272_p13)
}
  0x3c   : > { %s13276_s28 = scalar_lea.vmem %s13698_s30, 512  ;;  %p13284_p7 = scmp.lt.s32.totalorder %s13698_s30, %s13698_s30 }
  0x3d   : > { %p13277_p0 = scmp.ne.s32.totalorder %s13698_s30, %s13276_s28  ;;  %p13285_p9 = scmp.lt.s32.totalorder %s13276_s28, %s13276_s28 }
  0x3f   : > { %p13279_p2 = pnand %p13277_p0, %p13710_p8  ;;  %p13286_p3 = por %p13285_p9, %p13284_p7 }
  0x41   : > { %p13280_p5 = pneg %p13279_p2 }
  0x43   : > { %p13287_p10 = pnand %p13286_p3, %p13280_p5 }
  0x45   : > { %13290 = shalt.err (!%p13287_p10)
}
  0x46   : > { %s14919_s7 = smov 128   ;;  %s14920_s0 = smov 8  }
  0x47   : > { %11501 = dma.hbm_to_vmem [thread:$0]  (!%p13694_p6), %s14901_s5, 512, %s13698_s30, [#allocation11], %s14919_s7, %s14919_s7, %s14920_s0  }
  0x48   : > { %s13291_s29 = scalar_lea.hbm %s14905_s9, 512 }
  0x49   : > { %p13292_p11 = scmp.ne.s32.totalorder %s14905_s9, %s13291_s29  ;;  %p13298_p0 = scmp.lt.u32.totalorder %s13291_s29, %s14905_s9 }
  0x4b   : > { %p13294_p12 = pnand %p13292_p11, %p13710_p8 }
  0x4d   : > { %p13295_p13 = pneg %p13294_p12 }
  0x4f   : > { %p13300_p2 = pnand %p13298_p0, %p13295_p13 }
  0x51   : > { %13303 = shalt.err (!%p13300_p2)
}
  0x52   : > { %s13304_s1 = scalar_lea.vmem %s400_s15, 512  ;;  %p13312_p3 = scmp.lt.s32.totalorder %s400_s15, %s400_s15 }
  0x53   : > { %p13305_p5 = scmp.ne.s32.totalorder %s400_s15, %s13304_s1  ;;  %p13313_p10 = scmp.lt.s32.totalorder %s13304_s1, %s13304_s1 }
  0x55   : > { %p13307_p7 = pnand %p13305_p5, %p13710_p8  ;;  %p13314_p1 = por %p13313_p10, %p13312_p3 }
  0x57   : > { %p13308_p9 = pneg %p13307_p7 }
  0x59   : > { %p13315_p4 = pnand %p13314_p1, %p13308_p9 }
  0x5b   : > { %13318 = shalt.err (!%p13315_p4)
}
  0x5c   : > { %11507 = dma.hbm_to_vmem [thread:$0]  (!%p13694_p6), %s14905_s9, 512, %s400_s15, [#allocation14], %s14919_s7, %s14919_s7, %s14920_s0  }
  0x5d   : > { %s13582_s12 = smov [#allocation16]   ;;  %s13583_s20 = smov [#allocation4]  }
  0x5e   : > { %s412_s19 = sshll.u32 %s13582_s12, 4  ;;  %s331_s29 = sshll.u32 %s13583_s20, 4  ;;  %s413_s19 = int_to_ptr.vmem [resolvable:$true] %s412_s19  ;;  %s332_s29 = int_to_ptr.vmem [resolvable:$true] %s331_s29 }
  0x5f   : > { %s13319_s28 = scalar_lea.hbm %s14906_s10, 8192 }
  0x60   : > { %p13320_p1 = scmp.ne.s32.totalorder %s14906_s10, %s13319_s28  ;;  %p13326_p12 = scmp.lt.u32.totalorder %s13319_s28, %s14906_s10 }
  0x62   : > { %p13322_p4 = pnand %p13320_p1, %p13710_p8 }
  0x64   : > { %p13323_p11 = pneg %p13322_p4 }
  0x66   : > { %p13328_p13 = pnand %p13326_p12, %p13323_p11 }
  0x68   : > { %13331 = shalt.err (!%p13328_p13)
}
  0x69   : > { %s13332_s15 = scalar_lea.vmem %s413_s19, 8192  ;;  %p13340_p7 = scmp.lt.s32.totalorder %s413_s19, %s413_s19 }
  0x6a   : > { %p13333_p0 = scmp.ne.s32.totalorder %s413_s19, %s13332_s15  ;;  %p13341_p9 = scmp.lt.s32.totalorder %s13332_s15, %s13332_s15 }
  0x6c   : > { %p13335_p2 = pnand %p13333_p0, %p13710_p8  ;;  %p13342_p3 = por %p13341_p9, %p13340_p7 }
  0x6e   : > { %p13336_p5 = pneg %p13335_p2 }
  0x70   : > { %p13343_p10 = pnand %p13342_p3, %p13336_p5 }
  0x72   : > { %13346 = shalt.err (!%p13343_p10)
}
  0x73   : > { %11510 = dma.hbm_to_vmem [thread:$0]  (!%p13694_p6), %s14906_s10, 8192, %s413_s19, [#allocation17], %s14919_s7, %s14919_s7, %s14920_s0  }
  0x74   : > { %s14931_s2 = sld [smem:[#allocation29_spill]] }
  0x7a   : > { %s13347_s20 = scalar_lea.hbm %s14931_s2, 12288 }
  0x7b   : > { %p13348_p1 = scmp.ne.s32.totalorder %s14931_s2, %s13347_s20  ;;  %p13354_p12 = scmp.lt.u32.totalorder %s13347_s20, %s14931_s2 }
  0x7d   : > { %p13350_p4 = pnand %p13348_p1, %p13710_p8 }
  0x7f   : > { %p13351_p11 = pneg %p13350_p4 }
  0x81   : > { %p13356_p13 = pnand %p13354_p12, %p13351_p11 }
  0x83   : > { %13359 = shalt.err (!%p13356_p13)
}
  0x84   : > { %s13360_s30 = scalar_lea.vmem %s332_s29, 12288  ;;  %p13368_p7 = scmp.lt.s32.totalorder %s332_s29, %s332_s29 }
  0x85   : > { %p13361_p0 = scmp.ne.s32.totalorder %s332_s29, %s13360_s30  ;;  %p13369_p9 = scmp.lt.s32.totalorder %s13360_s30, %s13360_s30 }
  0x87   : > { %p13363_p2 = pnand %p13361_p0, %p13710_p8  ;;  %p13370_p3 = por %p13369_p9, %p13368_p7 }
  0x89   : > { %p13364_p5 = pneg %p13363_p2 }
  0x8b   : > { %p13371_p10 = pnand %p13370_p3, %p13364_p5 }
  0x8d   : > { %13374 = shalt.err (!%p13371_p10)
}
  0x8e   : > { %s14932_s19 = smov 16   ;;  %s14933_s15 = smov 256  }
  0x8f   : > { %11492 = dma.hbm_to_vmem [thread:$0]  (!%p13694_p6), %s14931_s2, 12288, %s332_s29, [#allocation5], %s14933_s15, %s14933_s15, %s14932_s19  }
  0x90   : > { %s13584_s17 = smov [#allocation9]   ;;  %s13585_s20 = smov [#allocation12]  }
  0x91   : > { %s357_s12 = sshll.u32 %s13584_s17, 4  ;;  %s383_s14 = sshll.u32 %s13585_s20, 4  ;;  %s358_s12 = int_to_ptr.vmem [resolvable:$true] %s357_s12  ;;  %s384_s14 = int_to_ptr.vmem [resolvable:$true] %s383_s14 }
  0x92   : > { %s13375_s1 = scalar_lea.hbm %s14900_s4, 16384 }
  0x93   : > { %p13376_p1 = scmp.ne.s32.totalorder %s14900_s4, %s13375_s1  ;;  %p13382_p12 = scmp.lt.u32.totalorder %s13375_s1, %s14900_s4 }
  0x95   : > { %p13378_p4 = pnand %p13376_p1, %p13710_p8 }
  0x97   : > { %p13379_p11 = pneg %p13378_p4 }
  0x99   : > { %p13384_p13 = pnand %p13382_p12, %p13379_p11 }
  0x9b   : > { %13387 = shalt.err (!%p13384_p13)
}
  0x9c   : > { %s13388_s29 = scalar_lea.vmem %s358_s12, 16384  ;;  %p13396_p7 = scmp.lt.s32.totalorder %s358_s12, %s358_s12 }
  0x9d   : > { %p13389_p0 = scmp.ne.s32.totalorder %s358_s12, %s13388_s29  ;;  %p13397_p9 = scmp.lt.s32.totalorder %s13388_s29, %s13388_s29 }
  0x9f   : > { %p13391_p2 = pnand %p13389_p0, %p13710_p8  ;;  %p13398_p3 = por %p13397_p9, %p13396_p7 }
  0xa1   : > { %p13392_p5 = pneg %p13391_p2 }
  0xa3   : > { %p13399_p10 = pnand %p13398_p3, %p13392_p5 }
  0xa5   : > { %13402 = shalt.err (!%p13399_p10)
}
  0xa6   : > { %11498 = dma.hbm_to_vmem [thread:$0]  (!%p13694_p6), %s14900_s4, 16384, %s358_s12, [#allocation8], %s14933_s15, %s14933_s15, %s14932_s19  }
  0xa7   : > { %s13403_s20 = scalar_lea.hbm %s14902_s6, 256 }
  0xa8   : > { %p13404_p1 = scmp.ne.s32.totalorder %s14902_s6, %s13403_s20  ;;  %p13410_p12 = scmp.lt.u32.totalorder %s13403_s20, %s14902_s6 }
  0xaa   : > { %p13406_p4 = pnand %p13404_p1, %p13710_p8 }
  0xac   : > { %p13407_p11 = pneg %p13406_p4 }
  0xae   : > { %p13412_p13 = pnand %p13410_p12, %p13407_p11 }
  0xb0   : > { %13415 = shalt.err (!%p13412_p13)
}
  0xb1   : > { %s13416_s3 = scalar_lea.vmem %s384_s14, 256  ;;  %p13424_p7 = scmp.lt.s32.totalorder %s384_s14, %s384_s14 }
  0xb2   : > { %p13417_p0 = scmp.ne.s32.totalorder %s384_s14, %s13416_s3  ;;  %p13425_p9 = scmp.lt.s32.totalorder %s13416_s3, %s13416_s3 }
  0xb4   : > { %p13419_p2 = pnand %p13417_p0, %p13710_p8  ;;  %p13426_p3 = por %p13425_p9, %p13424_p7 }
  0xb6   : > { %p13420_p5 = pneg %p13419_p2 }
  0xb8   : > { %p13427_p10 = pnand %p13426_p3, %p13420_p5 }
  0xba   : > { %13430 = shalt.err (!%p13427_p10)
}
  0xbb   : > { %s14934_s12 = smov 8   ;;  %s14935_s29 = smov 128  }
  0xbc   : > { %11504 = dma.hbm_to_vmem [thread:$0]  (!%p13694_p6), %s14902_s6, 256, %s384_s14, [#allocation11], %s14935_s29, %s14935_s29, %s14934_s12  }
  0xbd   : > { %s13586_s18 = smov [#allocation18]   ;;  %s13431_s28 = scalar_lea.hbm %s14907_s11, 32 }
  0xbe   : > { %s426_s17 = sshll.u32 %s13586_s18, 4  ;;  %p13432_p1 = scmp.ne.s32.totalorder %s14907_s11, %s13431_s28  ;;  %s427_s17 = int_to_ptr.vmem [resolvable:$true] %s426_s17 }
  0xbf   : > { %p13438_p12 = scmp.lt.u32.totalorder %s13431_s28, %s14907_s11 }
  0xc0   : > { %p13434_p4 = pnand %p13432_p1, %p13710_p8 }
  0xc2   : > { %p13435_p11 = pneg %p13434_p4 }
  0xc4   : > { %p13440_p13 = pnand %p13438_p12, %p13435_p11 }
  0xc6   : > { %13443 = shalt.err (!%p13440_p13)
}
  0xc7   : > { %s13444_s14 = scalar_lea.vmem %s427_s17, 32  ;;  %p13452_p7 = scmp.lt.s32.totalorder %s427_s17, %s427_s17 }
  0xc8   : > { %p13445_p0 = scmp.ne.s32.totalorder %s427_s17, %s13444_s14  ;;  %p13453_p9 = scmp.lt.s32.totalorder %s13444_s14, %s13444_s14 }
  0xca   : > { %p13447_p2 = pnand %p13445_p0, %p13710_p8  ;;  %p13454_p3 = por %p13453_p9, %p13452_p7 }
  0xcc   : > { %p13448_p5 = pneg %p13447_p2 }
  0xce   : > { %p13455_p10 = pnand %p13454_p3, %p13448_p5 }
  0xd0   : > { %13458 = shalt.err (!%p13455_p10)
}
  0xd1   : > { %11513 = dma.hbm_to_vmem [thread:$0]  (!%p13694_p6), %s14907_s11, 32, %s427_s17, [#allocation17]  }
  0xd2   : > { %s13885_s2 = sadd.s32 1, %s13573_s24   ;;  %s205_s13 = sadd.s32 1, %s13569_s23 }
  0xd3   : > { %s202_s27 = ssub.s32 %s13573_s24, %s13885_s2  ;;  %p212_p8 = scmp.ne.s32.totalorder %s13569_s23, %s13565_s22 }
  0xd4   : > { %p203_p1 = scmp.eq.s32.totalorder %s202_s27, 0  ;;  %p213_p4 = scmp.eq.s32.totalorder %s13573_s24, 0 }
  0xd5   : > { %p218_p11 = scmp.ne.s32.totalorder %s13565_s22, %s13561_s21  ;;  %p11526_p12 = scmp.lt.s32.totalorder %s13573_s24, 4 }
  0xd6   : > { %s13897_s7 = scalar_select %p203_p1, %s13569_s23, %s205_s13  }
  0xd7   : > { %p214_p13 = por %p213_p4, %p212_p8  ;;  %p14936_p0 = scmp.eq.s32.totalorder %s13678_s25, 0 }
  0xd8   : > { %s437_s18 = sand.u32 1, %s13573_s24   ;;  %s439_s17 = sand.u32 1, %s13569_s23  }
  0xd9   : > { %p13901_p2 = por %p14936_p0, %p218_p11  ;;  %s11448_s20 = smul.u32 5120, %s439_s17 }
  0xda   : > { %s11449_s16 = smul.u32 81920, %s13573_s24  ;;  %p13908_p6 = pnand %p11526_p12, %p214_p13 }
  0xdb   : > { %s441_s3 = scalar_lea.vmem [#allocation13], %s11448_s20  ;;  %s13919_s24 = scalar_lea.sflag [#allocation14], %s437_s18 }
  0xdc   : > { %s13915_s21 = scalar_lea.hbm %s14904_s8, %s11449_s16  ;;  %s448_s14 = sshll.u32 %s441_s3, 4  ;;  %s13917_s14 = int_to_ptr.vmem [resolvable:$true] %s448_s14 }
  0xdd   : > { %s13459_s12 = scalar_lea.hbm %s13915_s21, 81920  ;;  %p13461_p7 = pneg %p13908_p6 }
  0xde   : > { %p13460_p5 = scmp.ne.s32.totalorder %s13915_s21, %s13459_s12  ;;  %s13464_s27 = scalar_lea.hbm %s14904_s8, 327680 }
  0xdf   : > { %p13465_p10 = scmp.lt.u32.totalorder %s13915_s21, %s14904_s8  ;;  %p13466_p8 = scmp.lt.u32.totalorder %s13464_s27, %s13459_s12 }
  0xe0   : > { %p13462_p9 = pnand %p13461_p7, %p13460_p5  ;;  %p13468_p4 = scmp.lt.u32.totalorder %s13459_s12, %s13915_s21 }
  0xe1   : > { %p13467_p1 = por %p13466_p8, %p13465_p10 }
  0xe2   : > { %p13463_p3 = pneg %p13462_p9 }
  0xe3   : > { %p13469_p11 = por %p13468_p4, %p13467_p1 }
  0xe5   : > { %p13470_p12 = pnand %p13469_p11, %p13463_p3 }
  0xe7   : > { %13473 = shalt.err (!%p13470_p12)
}
  0xe8   : > { %s13474_s18 = scalar_lea.vmem %s13917_s14, 81920  ;;  %s13587_s20 = smov [#allocation13]  }
  0xe9   : > { %p13475_p13 = scmp.ne.s32.totalorder %s13917_s14, %s13474_s18  ;;  %s13479_s1 = sshll.u32 %s13587_s20, 4  ;;  %s13480_s1 = int_to_ptr.vmem [resolvable:$false] %s13479_s1 }
  0xea   : > { %s13481_s30 = scalar_lea.vmem %s13480_s1, 163840  ;;  %p13482_p9 = scmp.lt.s32.totalorder %s13917_s14, %s13480_s1 }
  0xeb   : > { %p13477_p0 = pnand %p13475_p13, %p13461_p7  ;;  %p13483_p10 = scmp.lt.s32.totalorder %s13481_s30, %s13474_s18 }
  0xed   : > { %p13478_p5 = pneg %p13477_p0  ;;  %p13484_p8 = por %p13483_p10, %p13482_p9 }
  0xef   : > { %p13485_p1 = pnand %p13484_p8, %p13478_p5 }
  0xf1   : > { %13488 = shalt.err (!%p13485_p1)
}
  0xf2   : > { %11517 = dma.hbm_to_vmem [thread:$0]  (!%p13908_p6), %s13915_s21, 81920, %s13917_s14, %s13919_s24, %s14933_s15, %s14933_s15, %s14932_s19  }
  0xf3   : > { %p14939_p7 = scmp.ne.s32.totalorder %s14927_s26, 0 }
  0xf4   : > { %p14940_p3 = scmp.eq.s32.totalorder (!%p14939_p7), %s13678_s25, 0 }
  0xf5   : > { %460 = sbr.rel (%p14939_p7) target bundleno = 2546 (0x9f2), region = 68 }
  0xfc   : > { %13532 = dma.done.wait (%p14940_p3), [#allocation5], 12288   ;;  %p14941_p4 = pmov %p14940_p3 }
  0xfd   : > { %p14942_p11 = pmov %p14940_p3 }
  0xfe   : > { %13534 = vsyncadd (%p14941_p4), [#allocation5], 4294955008 }
  0xff   : > { %13536 = dma.done.wait (%p14942_p11), [#allocation8], 20480   ;;  %p14943_p12 = pmov %p14940_p3 }
 0x100   : > { %p14944_p13 = pmov %p14940_p3 }
 0x101   : > { %13538 = vsyncadd (%p14943_p12), [#allocation8], 4294946816 }
 0x102   : > { %13540 = dma.done.wait (%p14944_p13), [#allocation11], 768   ;;  %p14945_p6 = pmov %p14940_p3 }
 0x103   : > { %s482_s26 = sand.u32 1, %s13678_s25   ;;  %s484_s19 = sand.u32 1, %s13565_s22  }
 0x104   : > { %13542 = vsyncadd (%p14945_p6), [#allocation11], 4294966528  ;;  %s11450_s15 = smul.u32 5120, %s484_s19  ;;  %s483_s28 = scalar_lea.sflag [#allocation14], %s482_s26 }
 0x106   : > { %s13966_s21 = scalar_lea.vmem [#allocation13], %s11450_s15 }
 0x107   : > { %13544 = dma.done.wait (%p13901_p2), %s483_s28, 81920  }
 0x108   : > { %13546 = vsyncadd (%p13901_p2), %s483_s28, 4294885376  ;;  %p14946_p0 = pmov %p14940_p3 }
 0x10a   : > { %13548 = dma.done.wait (%p14946_p0), [#allocation14], 512   ;;  %p14947_p5 = pmov %p14946_p0 }
 0x10b   : > { %p14948_p9 = pmov %p14946_p0 }
 0x10c   : > { %13550 = vsyncadd (%p14947_p5), [#allocation14], 4294966784 }
 0x10d   : > { %13552 = dma.done.wait (%p14948_p9), [#allocation17], 8224   ;;  %p14949_p10 = pmov %p14946_p0 }
 0x10e   : > { %p14950_p8 = scmp.ne.s32.totalorder %s13678_s25, 0 }
 0x10f   : > { %13554 = vsyncadd (%p14949_p10), [#allocation17], 4294959072  ;;  %v11585_v0 = vld [vmem:[#allocation4 + $0x4] ss:$16 sps:$4 sm:$0xff] (!%p14950_p8)   ;;  %v11587_v1 = vld [vmem:[#allocation4] ss:$16 sps:$4 sm:$0xff] (!%p14950_p8)  }
 0x110   : > { %538 = sbr.rel (%p14950_p8) target bundleno = 1201 (0x4b1), region = 108  ;;  %1135 = vmatprep.subr.bf16.mxu0 (!%p14950_p8), %v11585_v0  ;;  %v11588_v2 = vld [vmem:[#allocation4 + $0x24] ss:$16 sps:$4 sm:$0xff] (!%p14950_p8)   ;;  %v11590_v3 = vld [vmem:[#allocation4 + $0x20] ss:$16 sps:$4 sm:$0xff] (!%p14950_p8)   ;;  %s14951_s14 = sld [smem:[#allocation27_spill]] (!%p14950_p8) }
 0x111   : > { %1136 = vmatpush1.bf16.msra.mxu0 (!%p14950_p8), %v11587_v1  ;;  %v11591_v4 = vld [vmem:[#allocation4 + $0x44] ss:$16 sps:$4 sm:$0xff] (!%p14950_p8)   ;;  %v11593_v5 = vld [vmem:[#allocation4 + $0x40] ss:$16 sps:$4 sm:$0xff] (!%p14950_p8)   ;;  %v11608_v8 = vld [vmem:[#allocation4 + $0xc] ss:$16 sps:$4 sm:$0xff] (!%p14950_p8)  }
 0x112   : > { %1137 = vmatprep.subr.bf16.mxu0 (!%p14950_p8), %v11588_v2  ;;  %v11594_v6 = vld [vmem:[#allocation4 + $0x64] ss:$16 sps:$4 sm:$0xff] (!%p14950_p8)   ;;  %v11596_v7 = vld [vmem:[#allocation4 + $0x60] ss:$16 sps:$4 sm:$0xff] (!%p14950_p8)   ;;  %v11611_v9 = vld [vmem:[#allocation4 + $0x8] ss:$16 sps:$4 sm:$0xff] (!%p14950_p8)   ;;  %1221 = vmatprep.subr.bf16.mxu1 (!%p14950_p8), %v11608_v8 }
 0x113   : > { %v11597_v10 = vld [vmem:[#allocation4 + $0x84] ss:$16 sps:$4 sm:$0xff] (!%p14950_p8)   ;;  %v11614_v11 = vld [vmem:[#allocation4 + $0x2c] ss:$16 sps:$4 sm:$0xff] (!%p14950_p8)   ;;  %1222 = vmatpush1.bf16.msra.mxu1 (!%p14950_p8), %v11611_v9  ;;  %v11617_v12 = vld [vmem:[#allocation4 + $0x28] ss:$16 sps:$4 sm:$0xff] (!%p14950_p8)  }
 0x114   : > { %v11599_v13 = vld [vmem:[#allocation4 + $0x80] ss:$16 sps:$4 sm:$0xff] (!%p14950_p8)   ;;  %1223 = vmatprep.subr.bf16.mxu1 (!%p14950_p8), %v11614_v11  ;;  %v11600_v14 = vld [vmem:[#allocation4 + $0xa4] ss:$16 sps:$4 sm:$0xff] (!%p14950_p8)   ;;  %v11620_v15 = vld [vmem:[#allocation4 + $0x4c] ss:$16 sps:$4 sm:$0xff] (!%p14950_p8)  }
 0x115   : > { %1138 = vmatpush1.bf16.msra.mxu0 (!%p14950_p8), %v11590_v3  ;;  %v11623_v16 = vld [vmem:[#allocation4 + $0x48] ss:$16 sps:$4 sm:$0xff] (!%p14950_p8)   ;;  %v11602_v17 = vld [vmem:[#allocation4 + $0xa0] ss:$16 sps:$4 sm:$0xff] (!%p14950_p8)   ;;  %v11626_v18 = vld [vmem:[#allocation4 + $0x6c] ss:$16 sps:$4 sm:$0xff] (!%p14950_p8)  }
 0x116   : > { %1139 = vmatprep.subr.bf16.mxu0 (!%p14950_p8), %v11591_v4  ;;  %v11603_v19 = vld [vmem:[#allocation4 + $0xc4] ss:$16 sps:$4 sm:$0xff] (!%p14950_p8)   ;;  %v11605_v20 = vld [vmem:[#allocation4 + $0xc0] ss:$16 sps:$4 sm:$0xff] (!%p14950_p8)   ;;  %v11629_v21 = vld [vmem:[#allocation4 + $0x68] ss:$16 sps:$4 sm:$0xff] (!%p14950_p8)  }
 0x117   : > { %1224 = vmatpush1.bf16.msra.mxu1 %v11617_v12  ;;  %v11632_v22 = vld [vmem:[#allocation4 + $0x8c] ss:$16 sps:$4 sm:$0xff]   ;;  %v11606_v23 = vld [vmem:[#allocation4 + $0xe4] ss:$16 sps:$4 sm:$0xff]   ;;  %v11635_v24 = vld [vmem:[#allocation4 + $0x88] ss:$16 sps:$4 sm:$0xff]  }
 0x118   : > { %1225 = vmatprep.subr.bf16.mxu1 %v11620_v15  ;;  %v11610_v25 = vld [vmem:[#allocation4 + $0xe0] ss:$16 sps:$4 sm:$0xff]   ;;  %v11638_v26 = vld [vmem:[#allocation4 + $0xac] ss:$16 sps:$4 sm:$0xff]   ;;  %v11612_v27 = vld [vmem:[#allocation4 + $0x104] ss:$16 sps:$4 sm:$0xff]  }
 0x119   : > { %1140 = vmatpush1.bf16.msra.mxu0 %v11593_v5  ;;  %v11616_v28 = vld [vmem:[#allocation4 + $0x100] ss:$16 sps:$4 sm:$0xff]   ;;  %v11641_v29 = vld [vmem:[#allocation4 + $0xa8] ss:$16 sps:$4 sm:$0xff]   ;;  %v11644_v30 = vld [vmem:[#allocation4 + $0xcc] ss:$16 sps:$4 sm:$0xff]  }
 0x11a   : > { %1141 = vmatprep.subr.bf16.mxu0 %v11594_v6  ;;  %v11618_v31 = vld [vmem:[#allocation4 + $0x124] ss:$16 sps:$4 sm:$0xff]   ;;  %v11647_v32 = vld [vmem:[#allocation4 + $0xc8] ss:$16 sps:$4 sm:$0xff]   ;;  %v11622_v34 = vld [vmem:[#allocation4 + $0x120] ss:$16 sps:$4 sm:$0xff]  }
 0x11b   : > { %1226 = vmatpush1.bf16.msra.mxu1 %v11623_v16  ;;  %v11662_v33 = vld [vmem:[%s14951_s14 + $0x4] ss:$12 sps:$4 sm:$0xff]   ;;  %v11650_v35 = vld [vmem:[#allocation4 + $0xec] ss:$16 sps:$4 sm:$0xff]   ;;  %v11653_v37 = vld [vmem:[#allocation4 + $0xe8] ss:$16 sps:$4 sm:$0xff]  }
 0x11c   : > { %1227 = vmatprep.subr.bf16.mxu1 %v11626_v18  ;;  %v11624_v36 = vld [vmem:[#allocation4 + $0x144] ss:$16 sps:$4 sm:$0xff]   ;;  %1167 = vmatprep.mubr.bf16.mxu0 %v11662_v33  ;;  %v11628_v38 = vld [vmem:[#allocation4 + $0x140] ss:$16 sps:$4 sm:$0xff]   ;;  %v11656_v39 = vld [vmem:[#allocation4 + $0x10c] ss:$16 sps:$4 sm:$0xff]  }
 0x11d   : > { %1142 = vmatpush1.bf16.msra.mxu0 %v11596_v7  ;;  %1253 = vmatprep.mubr.bf16.mxu1 %v11662_v33  ;;  %v11630_v40 = vld [vmem:[#allocation4 + $0x164] ss:$16 sps:$4 sm:$0xff]   ;;  %v11659_v41 = vld [vmem:[#allocation4 + $0x108] ss:$16 sps:$4 sm:$0xff]   ;;  %v11634_v42 = vld [vmem:[#allocation4 + $0x160] ss:$16 sps:$4 sm:$0xff]  }
 0x11e   : > { %1143 = vmatprep.subr.bf16.mxu0 %v11597_v10  ;;  %v11666_v43 = vld [vmem:[#allocation4 + $0x12c] ss:$16 sps:$4 sm:$0xff]   ;;  %v11636_v44 = vld [vmem:[#allocation4 + $0x184] ss:$16 sps:$4 sm:$0xff]   ;;  %v11668_v45 = vld [vmem:[#allocation4 + $0x128] ss:$16 sps:$4 sm:$0xff]  }
 0x11f   : > { %1228 = vmatpush1.bf16.msra.mxu1 %v11629_v21  ;;  %v11640_v46 = vld [vmem:[#allocation4 + $0x180] ss:$16 sps:$4 sm:$0xff]   ;;  %v11672_v47 = vld [vmem:[#allocation4 + $0x14c] ss:$16 sps:$4 sm:$0xff]   ;;  %v11642_v48 = vld [vmem:[#allocation4 + $0x1a4] ss:$16 sps:$4 sm:$0xff]  }
 0x120   : > { %1229 = vmatprep.subr.bf16.mxu1 %v11632_v22  ;;  %v11674_v49 = vld [vmem:[#allocation4 + $0x148] ss:$16 sps:$4 sm:$0xff]   ;;  %v11646_v50 = vld [vmem:[#allocation4 + $0x1a0] ss:$16 sps:$4 sm:$0xff]   ;;  %v11678_v51 = vld [vmem:[#allocation4 + $0x16c] ss:$16 sps:$4 sm:$0xff]  }
 0x121   : > { %1144 = vmatpush1.bf16.msra.mxu0 %v11599_v13  ;;  %v11648_v52 = vld [vmem:[#allocation4 + $0x1c4] ss:$16 sps:$4 sm:$0xff]   ;;  %v11680_v53 = vld [vmem:[#allocation4 + $0x168] ss:$16 sps:$4 sm:$0xff]   ;;  %v11652_v54 = vld [vmem:[#allocation4 + $0x1c0] ss:$16 sps:$4 sm:$0xff]  }
 0x122   : > { %1145 = vmatprep.subr.bf16.mxu0 %v11600_v14  ;;  %v11684_v55 = vld [vmem:[#allocation4 + $0x18c] ss:$16 sps:$4 sm:$0xff]   ;;  %v11654_v56 = vld [vmem:[#allocation4 + $0x1e4] ss:$16 sps:$4 sm:$0xff]   ;;  %v11686_v57 = vld [vmem:[#allocation4 + $0x188] ss:$16 sps:$4 sm:$0xff]  }
 0x123   : > { %1230 = vmatpush1.bf16.msra.mxu1 %v11635_v24  ;;  %v11658_v58 = vld [vmem:[#allocation4 + $0x1e0] ss:$16 sps:$4 sm:$0xff]   ;;  %v11690_v59 = vld [vmem:[#allocation4 + $0x1ac] ss:$16 sps:$4 sm:$0xff]   ;;  %v11665_v60 = vld [vmem:[#allocation4 + $0x204] ss:$16 sps:$4 sm:$0xff]  }
 0x124   : > { %1231 = vmatprep.subr.bf16.mxu1 %v11638_v26  ;;  %v11660_v61 = vld [vmem:[%s14951_s14] ss:$12 sps:$4 sm:$0xff]   ;;  %v11692_v62 = vld [vmem:[#allocation4 + $0x1a8] ss:$16 sps:$4 sm:$0xff]   ;;  %v11671_v1 = vld [vmem:[#allocation4 + $0x224] ss:$16 sps:$4 sm:$0xff]  }
 0x125   : > { %1146 = vmatpush1.bf16.msra.mxu0 %v11602_v17  ;;  %v11663_v63 = vld [vmem:[#allocation4 + $0x200] ss:$16 sps:$4 sm:$0xff]   ;;  %v11696_v0 = vld [vmem:[#allocation4 + $0x1cc] ss:$16 sps:$4 sm:$0xff]   ;;  %v11698_v2 = vld [vmem:[#allocation4 + $0x1c8] ss:$16 sps:$4 sm:$0xff]  }
 0x126   : > { %1147 = vmatprep.subr.bf16.mxu0 %v11603_v19  ;;  %v11669_v3 = vld [vmem:[#allocation4 + $0x220] ss:$16 sps:$4 sm:$0xff]   ;;  %v11702_v4 = vld [vmem:[#allocation4 + $0x1ec] ss:$16 sps:$4 sm:$0xff]   ;;  %v11677_v5 = vld [vmem:[#allocation4 + $0x244] ss:$16 sps:$4 sm:$0xff]  }
 0x127   : > { %1232 = vmatpush1.bf16.msra.mxu1 %v11641_v29  ;;  %v13588_v6 = vmov 0   ;;  %v11704_v7 = vld [vmem:[#allocation4 + $0x1e8] ss:$16 sps:$4 sm:$0xff]   ;;  %v11675_v8 = vld [vmem:[#allocation4 + $0x240] ss:$16 sps:$4 sm:$0xff]   ;;  %s14952_s16 = sld [smem:[#allocation28_spill]] }
 0x128   : > { %1233 = vmatprep.subr.bf16.mxu1 %v11644_v30  ;;  %v11710_v9 = vld [vmem:[#allocation4 + $0x20c] ss:$16 sps:$4 sm:$0xff]   ;;  %v11683_v10 = vld [vmem:[#allocation4 + $0x264] ss:$16 sps:$4 sm:$0xff]   ;;  %v11708_v11 = vld [vmem:[#allocation4 + $0x208] ss:$16 sps:$4 sm:$0xff]  }
 0x129   : > { %1148 = vmatpush1.bf16.msra.mxu0 %v11605_v20  ;;  %v11681_v12 = vld [vmem:[#allocation4 + $0x260] ss:$16 sps:$4 sm:$0xff]   ;;  %v11714_v13 = vld [vmem:[#allocation4 + $0x22c] ss:$16 sps:$4 sm:$0xff]   ;;  %v11689_v14 = vld [vmem:[#allocation4 + $0x284] ss:$16 sps:$4 sm:$0xff]  }
 0x12a   : > { %1149 = vmatprep.subr.bf16.mxu0 %v11606_v23  ;;  %v11712_v15 = vld [vmem:[#allocation4 + $0x228] ss:$16 sps:$4 sm:$0xff]   ;;  %v11687_v16 = vld [vmem:[#allocation4 + $0x280] ss:$16 sps:$4 sm:$0xff]   ;;  %v11717_v17 = vld [vmem:[#allocation4 + $0x24c] ss:$16 sps:$4 sm:$0xff]  }
 0x12b   : > { %1234 = vmatpush1.bf16.msra.mxu1 %v11647_v32  ;;  %v11695_v18 = vld [vmem:[#allocation4 + $0x2a4] ss:$16 sps:$4 sm:$0xff]   ;;  %v11715_v19 = vld [vmem:[#allocation4 + $0x248] ss:$16 sps:$4 sm:$0xff]   ;;  %v11693_v20 = vld [vmem:[#allocation4 + $0x2a0] ss:$16 sps:$4 sm:$0xff]  }
 0x12c   : > { %1235 = vmatprep.subr.bf16.mxu1 %v11650_v35  ;;  %v11720_v21 = vld [vmem:[#allocation4 + $0x26c] ss:$16 sps:$4 sm:$0xff]   ;;  %v11701_v22 = vld [vmem:[#allocation4 + $0x2c4] ss:$16 sps:$4 sm:$0xff]   ;;  %v11718_v23 = vld [vmem:[#allocation4 + $0x268] ss:$16 sps:$4 sm:$0xff]  }
 0x12d   : > { %1150 = vmatpush1.bf16.msra.mxu0 %v11610_v25  ;;  %v11699_v24 = vld [vmem:[#allocation4 + $0x2c0] ss:$16 sps:$4 sm:$0xff]   ;;  %v11723_v25 = vld [vmem:[#allocation4 + $0x28c] ss:$16 sps:$4 sm:$0xff]   ;;  %v11707_v26 = vld [vmem:[#allocation4 + $0x2e4] ss:$16 sps:$4 sm:$0xff]  }
 0x12e   : > { %1151 = vmatprep.subr.bf16.mxu0 %v11612_v27  ;;  %v11721_v27 = vld [vmem:[#allocation4 + $0x288] ss:$16 sps:$4 sm:$0xff]   ;;  %v11726_v29 = vld [vmem:[#allocation4 + $0x2ac] ss:$16 sps:$4 sm:$0xff]   ;;  %v11735_v30 = vld [vmem:[#allocation9 + $0x4] ss:$16 sps:$4 sm:$0xff]  }
 0x12f   : > { %1236 = vmatpush1.bf16.msra.mxu1 %v11653_v37  ;;  %v11724_v32 = vld [vmem:[#allocation4 + $0x2a8] ss:$16 sps:$4 sm:$0xff]   ;;  %v11729_v33 = vld [vmem:[#allocation4 + $0x2cc] ss:$16 sps:$4 sm:$0xff]   ;;  %v11741_v35 = vld [vmem:[#allocation9 + $0x24] ss:$16 sps:$4 sm:$0xff]  }
 0x130   : > { %1237 = vmatprep.subr.bf16.mxu1 %v11656_v39  ;;  %v11732_v37 = vld [vmem:[#allocation4 + $0x2ec] ss:$16 sps:$4 sm:$0xff]   ;;  %v11747_v39 = vld [vmem:[#allocation9 + $0x44] ss:$16 sps:$4 sm:$0xff]  }
 0x131   : > { %1152 = vmatpush1.bf16.msra.mxu0 %v11616_v28  ;;  %v11705_v28 = vld [vmem:[#allocation4 + $0x2e0] ss:$16 sps:$4 sm:$0xff]  }
 0x132   : > { %1153 = vmatprep.subr.bf16.mxu0 %v11618_v31  ;;  %v11711_v31 = vld [vmem:[%s14951_s14 + $0x8] ss:$12 sps:$4 sm:$0xff]  }
 0x133   : > { %1238 = vmatpush1.bf16.msra.mxu1 %v11659_v41  ;;  %v11738_v41 = vld [vmem:[#allocation9 + $0xc] ss:$16 sps:$4 sm:$0xff]  }
 0x134   : > { %1239 = vmatprep.subr.bf16.mxu1 %v11666_v43  ;;  %v11753_v43 = vld [vmem:[#allocation9 + $0x64] ss:$16 sps:$4 sm:$0xff]  }
 0x135   : > { %1154 = vmatpush1.bf16.msra.mxu0 %v11622_v34  ;;  %v11733_v34 = vld [vmem:[#allocation9] ss:$16 sps:$4 sm:$0xff]  }
 0x136   : > { %1155 = vmatprep.subr.bf16.mxu0 %v11624_v36  ;;  %v11727_v36 = vld [vmem:[#allocation4 + $0x2c8] ss:$16 sps:$4 sm:$0xff]  }
 0x137   : > { %1240 = vmatpush1.bf16.msra.mxu1 %v11668_v45  ;;  %v11744_v45 = vld [vmem:[#allocation9 + $0x2c] ss:$16 sps:$4 sm:$0xff]  }
 0x138   : > { %1241 = vmatprep.subr.bf16.mxu1 %v11672_v47  ;;  %v11759_v47 = vld [vmem:[#allocation9 + $0x84] ss:$16 sps:$4 sm:$0xff]  }
 0x139   : > { %1156 = vmatpush1.bf16.msra.mxu0 %v11628_v38  ;;  %v11739_v38 = vld [vmem:[#allocation9 + $0x20] ss:$16 sps:$4 sm:$0xff]  }
 0x13a   : > { %1157 = vmatprep.subr.bf16.mxu0 %v11630_v40  ;;  %v11730_v40 = vld [vmem:[#allocation4 + $0x2e8] ss:$16 sps:$4 sm:$0xff]  }
 0x13b   : > { %1242 = vmatpush1.bf16.msra.mxu1 %v11674_v49  ;;  %v11750_v49 = vld [vmem:[#allocation9 + $0x4c] ss:$16 sps:$4 sm:$0xff]  }
 0x13c   : > { %1243 = vmatprep.subr.bf16.mxu1 %v11678_v51  ;;  %v11765_v51 = vld [vmem:[#allocation9 + $0xa4] ss:$16 sps:$4 sm:$0xff]  }
 0x13d   : > { %1158 = vmatpush1.bf16.msra.mxu0 %v11634_v42  ;;  %v11745_v42 = vld [vmem:[#allocation9 + $0x40] ss:$16 sps:$4 sm:$0xff]  }
 0x13e   : > { %1159 = vmatprep.subr.bf16.mxu0 %v11636_v44  ;;  %v11736_v44 = vld [vmem:[#allocation9 + $0x8] ss:$16 sps:$4 sm:$0xff]  }
 0x13f   : > { %1244 = vmatpush1.bf16.msra.mxu1 %v11680_v53  ;;  %v11756_v53 = vld [vmem:[#allocation9 + $0x6c] ss:$16 sps:$4 sm:$0xff]  }
 0x140   : > { %1245 = vmatprep.subr.bf16.mxu1 %v11684_v55  ;;  %v11771_v55 = vld [vmem:[#allocation9 + $0xc4] ss:$16 sps:$4 sm:$0xff]  }
 0x141   : > { %1160 = vmatpush1.bf16.msra.mxu0 %v11640_v46  ;;  %v11751_v46 = vld [vmem:[#allocation9 + $0x60] ss:$16 sps:$4 sm:$0xff]  }
 0x142   : > { %1161 = vmatprep.subr.bf16.mxu0 %v11642_v48  ;;  %v11742_v48 = vld [vmem:[#allocation9 + $0x28] ss:$16 sps:$4 sm:$0xff]  }
 0x143   : > { %1246 = vmatpush1.bf16.msra.mxu1 %v11686_v57  ;;  %v11762_v57 = vld [vmem:[#allocation9 + $0x8c] ss:$16 sps:$4 sm:$0xff]  }
 0x144   : > { %1247 = vmatprep.subr.bf16.mxu1 %v11690_v59  ;;  %v11777_v59 = vld [vmem:[#allocation9 + $0xe4] ss:$16 sps:$4 sm:$0xff]  }
 0x145   : > { %1162 = vmatpush1.bf16.msra.mxu0 %v11646_v50  ;;  %v11757_v50 = vld [vmem:[#allocation9 + $0x80] ss:$16 sps:$4 sm:$0xff]  }
 0x146   : > { %1163 = vmatprep.subr.bf16.mxu0 %v11648_v52  ;;  %v11748_v52 = vld [vmem:[#allocation9 + $0x48] ss:$16 sps:$4 sm:$0xff]  }
 0x147   : > { %1248 = vmatpush1.bf16.msra.mxu1 %v11692_v62  ;;  %v11775_v62 = vld [vmem:[#allocation9 + $0xe0] ss:$16 sps:$4 sm:$0xff]  }
 0x148   : > { %1249 = vmatprep.subr.bf16.mxu1 %v11696_v0  ;;  %v11766_v0 = vld [vmem:[#allocation9 + $0xa8] ss:$16 sps:$4 sm:$0xff]  }
 0x149   : > { %1164 = vmatpush1.bf16.msra.mxu0 %v11652_v54  ;;  %v11763_v54 = vld [vmem:[#allocation9 + $0xa0] ss:$16 sps:$4 sm:$0xff]  }
 0x14a   : > { %1165 = vmatprep.subr.bf16.mxu0 %v11654_v56  ;;  %v11754_v56 = vld [vmem:[#allocation9 + $0x68] ss:$16 sps:$4 sm:$0xff]  }
 0x14b   : > { %1250 = vmatpush1.bf16.msra.mxu1 %v11698_v2  ;;  %v11781_v2 = vld [vmem:[#allocation9 + $0x100] ss:$16 sps:$4 sm:$0xff]  }
 0x14c   : > { %1251 = vmatprep.subr.bf16.mxu1 %v11702_v4  ;;  %v11772_v4 = vld [vmem:[#allocation9 + $0xc8] ss:$16 sps:$4 sm:$0xff]  }
 0x14d   : > { %1166 = vmatpush1.bf16.msra.mxu0 %v11658_v58  ;;  %v11769_v58 = vld [vmem:[#allocation9 + $0xc0] ss:$16 sps:$4 sm:$0xff]  }
 0x14e   : > { %1178 = vmatprep.subr.bf16.mxu0 %v11665_v60  ;;  %v11760_v60 = vld [vmem:[#allocation9 + $0x88] ss:$16 sps:$4 sm:$0xff]  }
 0x14f   : > { %1252 = vmatpush1.bf16.msra.mxu1 %v11704_v7  ;;  %v11787_v7 = vld [vmem:[#allocation9 + $0x120] ss:$16 sps:$4 sm:$0xff]  }
 0x150   : > { %1168 = vmatmul.mubr.bf16.vlgmr.msra.gmra.mrb[0].mxu0 %v11660_v61  ;;  %1264 = vmatprep.subr.bf16.mxu1 %v11710_v9  ;;  %v11778_v9 = vld [vmem:[#allocation9 + $0xe8] ss:$16 sps:$4 sm:$0xff]  }
 0x151   : > { %1179 = vmatpush1.bf16.msra.mxu0 %v11663_v63  ;;  %1210 = vmatprep.mubr.bf16.mxu0 %v13588_v6  ;;  %v11783_v63 = vld [vmem:[#allocation9 + $0x104] ss:$16 sps:$4 sm:$0xff]  }
 0x152   : > { %1180 = vmatprep.subr.bf16.mxu0 %v11671_v1  ;;  %1254 = vmatmul.mubr.bf16.vlgmr.msra.gmra.mrb[0].mxu1 %v11660_v61  ;;  %v11768_v61 = vld [vmem:[#allocation9 + $0xac] ss:$16 sps:$4 sm:$0xff]  }
 0x153   : > { %1265 = vmatpush1.bf16.msra.mxu1 %v11708_v11  ;;  %1296 = vmatprep.mubr.bf16.mxu1 %v13588_v6  ;;  %v11774_v1 = vld [vmem:[#allocation9 + $0xcc] ss:$16 sps:$4 sm:$0xff]   ;;  %v11793_v11 = vld [vmem:[#allocation9 + $0x140] ss:$16 sps:$4 sm:$0xff]  }
 0x154   : > { %1266 = vmatprep.subr.bf16.mxu1 %v11714_v13  ;;  %v11784_v13 = vld [vmem:[#allocation9 + $0x108] ss:$16 sps:$4 sm:$0xff]  }
 0x155   : > { %1181 = vmatpush1.bf16.msra.mxu0 %v11669_v3  ;;  %v11789_v3 = vld [vmem:[#allocation9 + $0x124] ss:$16 sps:$4 sm:$0xff]  }
 0x156   : > { %1182 = vmatprep.subr.bf16.mxu0 %v11677_v5  ;;  %v11780_v5 = vld [vmem:[#allocation9 + $0xec] ss:$16 sps:$4 sm:$0xff]  }
 0x157   : > { %1267 = vmatpush1.bf16.msra.mxu1 %v11712_v15  ;;  %v11799_v15 = vld [vmem:[#allocation9 + $0x160] ss:$16 sps:$4 sm:$0xff]  }
 0x158   : > { %1268 = vmatprep.subr.bf16.mxu1 %v11717_v17  ;;  %v11790_v17 = vld [vmem:[#allocation9 + $0x128] ss:$16 sps:$4 sm:$0xff]  }
 0x159   : > { %1183 = vmatpush1.bf16.msra.mxu0 %v11675_v8  ;;  %v11795_v8 = vld [vmem:[#allocation9 + $0x144] ss:$16 sps:$4 sm:$0xff]  }
 0x15a   : > { %1184 = vmatprep.subr.bf16.mxu0 %v11683_v10  ;;  %v11786_v10 = vld [vmem:[#allocation9 + $0x10c] ss:$16 sps:$4 sm:$0xff]  }
 0x15b   : > { %1269 = vmatpush1.bf16.msra.mxu1 %v11715_v19  ;;  %v11805_v19 = vld [vmem:[#allocation9 + $0x180] ss:$16 sps:$4 sm:$0xff]  }
 0x15c   : > { %1270 = vmatprep.subr.bf16.mxu1 %v11720_v21  ;;  %v11796_v21 = vld [vmem:[#allocation9 + $0x148] ss:$16 sps:$4 sm:$0xff]  }
 0x15d   : > { %1185 = vmatpush1.bf16.msra.mxu0 %v11681_v12  ;;  %v11801_v12 = vld [vmem:[#allocation9 + $0x164] ss:$16 sps:$4 sm:$0xff]  }
 0x15e   : > { %1186 = vmatprep.subr.bf16.mxu0 %v11689_v14  ;;  %v11792_v14 = vld [vmem:[#allocation9 + $0x12c] ss:$16 sps:$4 sm:$0xff]  }
 0x15f   : > { %1271 = vmatpush1.bf16.msra.mxu1 %v11718_v23  ;;  %v11811_v23 = vld [vmem:[#allocation9 + $0x1a0] ss:$16 sps:$4 sm:$0xff]  }
 0x160   : > { %1272 = vmatprep.subr.bf16.mxu1 %v11723_v25  ;;  %v11810_v25 = vld [vmem:[#allocation9 + $0x18c] ss:$16 sps:$4 sm:$0xff]  }
 0x161   : > { %1187 = vmatpush1.bf16.msra.mxu0 %v11687_v16  ;;  %v11807_v16 = vld [vmem:[#allocation9 + $0x184] ss:$16 sps:$4 sm:$0xff]  }
 0x162   : > { %1188 = vmatprep.subr.bf16.mxu0 %v11695_v18  ;;  %v11798_v18 = vld [vmem:[#allocation9 + $0x14c] ss:$16 sps:$4 sm:$0xff]  }
 0x163   : > { %1273 = vmatpush1.bf16.msra.mxu1 %v11721_v27  ;;  %v11816_v27 = vld [vmem:[#allocation9 + $0x1ac] ss:$16 sps:$4 sm:$0xff]  }
 0x164   : > { %1274 = vmatprep.subr.bf16.mxu1 %v11726_v29  ;;  %v11819_v29 = vld [vmem:[#allocation9 + $0x1c4] ss:$16 sps:$4 sm:$0xff]  }
 0x165   : > { %1189 = vmatpush1.bf16.msra.mxu0 %v11693_v20  ;;  %v11813_v20 = vld [vmem:[#allocation9 + $0x1a4] ss:$16 sps:$4 sm:$0xff]  }
 0x166   : > { %1190 = vmatprep.subr.bf16.mxu0 %v11701_v22  ;;  %v11804_v22 = vld [vmem:[#allocation9 + $0x16c] ss:$16 sps:$4 sm:$0xff]  }
 0x167   : > { %1275 = vmatpush1.bf16.msra.mxu1 %v11724_v32  ;;  %v11820_v32 = vld [vmem:[#allocation9 + $0x1c8] ss:$16 sps:$4 sm:$0xff]  }
 0x168   : > { %1276 = vmatprep.subr.bf16.mxu1 %v11729_v33  ;;  %v11825_v33 = vld [vmem:[#allocation9 + $0x1e4] ss:$16 sps:$4 sm:$0xff]  }
 0x169   : > { %1191 = vmatpush1.bf16.msra.mxu0 %v11699_v24  ;;  %v11802_v24 = vld [vmem:[#allocation9 + $0x168] ss:$16 sps:$4 sm:$0xff]  }
 0x16a   : > { %1192 = vmatprep.subr.bf16.mxu0 %v11707_v26  ;;  %v11808_v26 = vld [vmem:[#allocation9 + $0x188] ss:$16 sps:$4 sm:$0xff]  }
 0x16b   : > { %1277 = vmatpush1.bf16.msra.mxu1 %v11727_v36  ;;  %v11826_v36 = vld [vmem:[#allocation9 + $0x1e8] ss:$16 sps:$4 sm:$0xff]  }
 0x16c   : > { %1278 = vmatprep.subr.bf16.mxu1 %v11732_v37  ;;  %v11831_v37 = vld [vmem:[#allocation9 + $0x204] ss:$16 sps:$4 sm:$0xff]  }
 0x16d   : > { %1193 = vmatpush1.bf16.msra.mxu0 %v11705_v28  ;;  %v11814_v28 = vld [vmem:[#allocation9 + $0x1a8] ss:$16 sps:$4 sm:$0xff]  }
 0x16e   : > { %2103 = vmatprep.subr.bf16.mxu0 %v11735_v30  ;;  %v11822_v30 = vld [vmem:[#allocation9 + $0x1cc] ss:$16 sps:$4 sm:$0xff]  }
 0x16f   : > { %1279 = vmatpush1.bf16.msra.mxu1 %v11730_v40 }
 0x170   : > { %1211 = vmatmul.mubr.bf16.vlgmr.msra.gmra.mrb[0].mxu0 %v11711_v31  ;;  %2189 = vmatprep.subr.bf16.mxu1 %v11738_v41 }
 0x171   : > { %2104 = vmatpush1.bf16.msra.mxu0 %v11733_v34  ;;  %v11828_v34 = vld [vmem:[#allocation9 + $0x1ec] ss:$16 sps:$4 sm:$0xff]  }
 0x172   : > { %2105 = vmatprep.subr.bf16.mxu0 %v11741_v35  ;;  %1297 = vmatmul.mubr.bf16.vlgmr.msra.gmra.mrb[0].mxu1 %v11711_v31  ;;  %v11817_v31 = vld [vmem:[#allocation9 + $0x1c0] ss:$16 sps:$4 sm:$0xff]  }
 0x173   : > { %2190 = vmatpush1.bf16.msra.mxu1 %v11736_v44  ;;  %v11823_v35 = vld [vmem:[#allocation9 + $0x1e0] ss:$16 sps:$4 sm:$0xff]  }
 0x174   : > { %2191 = vmatprep.subr.bf16.mxu1 %v11744_v45 }
 0x175   : > { %2106 = vmatpush1.bf16.msra.mxu0 %v11739_v38  ;;  %v11834_v38 = vld [vmem:[#allocation9 + $0x20c] ss:$16 sps:$4 sm:$0xff]  }
 0x176   : > { %2107 = vmatprep.subr.bf16.mxu0 %v11747_v39 }
 0x177   : > { %2192 = vmatpush1.bf16.msra.mxu1 %v11742_v48 }
 0x178   : > { %2193 = vmatprep.subr.bf16.mxu1 %v11750_v49 }
 0x179   : > { %2108 = vmatpush1.bf16.msra.mxu0 %v11745_v42 }
 0x17a   : > { %2109 = vmatprep.subr.bf16.mxu0 %v11753_v43 }
 0x17b   : > { %2194 = vmatpush1.bf16.msra.mxu1 %v11748_v52 }
 0x17c   : > { %2195 = vmatprep.subr.bf16.mxu1 %v11756_v53  ;;  %v11829_v53 = vld [vmem:[#allocation9 + $0x200] ss:$16 sps:$4 sm:$0xff]  }
 0x17d   : > { %2110 = vmatpush1.bf16.msra.mxu0 %v11751_v46 }
 0x17e   : > { %2111 = vmatprep.subr.bf16.mxu0 %v11759_v47 }
 0x17f   : > { %2196 = vmatpush1.bf16.msra.mxu1 %v11754_v56  ;;  %v11840_v56 = vld [vmem:[#allocation9 + $0x22c] ss:$16 sps:$4 sm:$0xff]  }
 0x180   : > { %2197 = vmatprep.subr.bf16.mxu1 %v11762_v57  ;;  %v11835_v57 = vld [vmem:[#allocation9 + $0x220] ss:$16 sps:$4 sm:$0xff]  }
 0x181   : > { %2112 = vmatpush1.bf16.msra.mxu0 %v11757_v50 }
 0x182   : > { %2113 = vmatprep.subr.bf16.mxu0 %v11765_v51 }
 0x183   : > { %2198 = vmatpush1.bf16.msra.mxu1 %v11760_v60 }
 0x184   : > { %2199 = vmatprep.subr.bf16.mxu1 %v11768_v61  ;;  %v11846_v61 = vld [vmem:[#allocation9 + $0x24c] ss:$16 sps:$4 sm:$0xff]  }
 0x185   : > { %2114 = vmatpush1.bf16.msra.mxu0 %v11763_v54  ;;  %v11832_v54 = vld [vmem:[#allocation9 + $0x208] ss:$16 sps:$4 sm:$0xff]  }
 0x186   : > { %2115 = vmatprep.subr.bf16.mxu0 %v11771_v55  ;;  %v11837_v55 = vld [vmem:[#allocation9 + $0x224] ss:$16 sps:$4 sm:$0xff]  }
 0x187   : > { %2200 = vmatpush1.bf16.msra.mxu1 %v11766_v0 }
 0x188   : > { %2201 = vmatprep.subr.bf16.mxu1 %v11774_v1 }
 0x189   : > { %2116 = vmatpush1.bf16.msra.mxu0 %v11769_v58  ;;  %v11838_v58 = vld [vmem:[#allocation9 + $0x228] ss:$16 sps:$4 sm:$0xff]  }
 0x18a   : > { %2117 = vmatprep.subr.bf16.mxu0 %v11777_v59  ;;  %v11843_v59 = vld [vmem:[#allocation9 + $0x244] ss:$16 sps:$4 sm:$0xff]  }
 0x18b   : > { %2202 = vmatpush1.bf16.msra.mxu1 %v11772_v4 }
 0x18c   : > { %2203 = vmatprep.subr.bf16.mxu1 %v11780_v5 }
 0x18d   : > { %2118 = vmatpush1.bf16.msra.mxu0 %v11775_v62 }
 0x18e   : > { %2119 = vmatprep.subr.bf16.mxu0 %v11783_v63 }
 0x18f   : > { %2204 = vmatpush1.bf16.msra.mxu1 %v11778_v9 }
 0x190   : > { %2205 = vmatprep.subr.bf16.mxu1 %v11786_v10  ;;  %v11849_v10 = vld [vmem:[#allocation9 + $0x264] ss:$16 sps:$4 sm:$0xff]  }
 0x191   : > { %2120 = vmatpush1.bf16.msra.mxu0 %v11781_v2  ;;  %v11841_v2 = vld [vmem:[#allocation9 + $0x240] ss:$16 sps:$4 sm:$0xff]  }
 0x192   : > { %2121 = vmatprep.subr.bf16.mxu0 %v11789_v3 }
 0x193   : > { %2206 = vmatpush1.bf16.msra.mxu1 %v11784_v13 }
 0x194   : > { %2207 = vmatprep.subr.bf16.mxu1 %v11792_v14 }
 0x195   : > { %2122 = vmatpush1.bf16.msra.mxu0 %v11787_v7  ;;  %v11844_v7 = vld [vmem:[#allocation9 + $0x248] ss:$16 sps:$4 sm:$0xff]  }
 0x196   : > { %2123 = vmatprep.subr.bf16.mxu0 %v11795_v8 }
 0x197   : > { %2208 = vmatpush1.bf16.msra.mxu1 %v11790_v17  ;;  %v11850_v17 = vld [vmem:[#allocation9 + $0x268] ss:$16 sps:$4 sm:$0xff]  }
 0x198   : > { %2209 = vmatprep.subr.bf16.mxu1 %v11798_v18  ;;  %v11855_v18 = vld [vmem:[#allocation9 + $0x284] ss:$16 sps:$4 sm:$0xff]  }
 0x199   : > { %2124 = vmatpush1.bf16.msra.mxu0 %v11793_v11  ;;  %v11852_v11 = vld [vmem:[#allocation9 + $0x26c] ss:$16 sps:$4 sm:$0xff]  }
 0x19a   : > { %2125 = vmatprep.subr.bf16.mxu0 %v11801_v12 }
 0x19b   : > { %2210 = vmatpush1.bf16.msra.mxu1 %v11796_v21  ;;  %v11856_v21 = vld [vmem:[#allocation9 + $0x288] ss:$16 sps:$4 sm:$0xff]  }
 0x19c   : > { %2211 = vmatprep.subr.bf16.mxu1 %v11804_v22  ;;  %v11861_v22 = vld [vmem:[#allocation9 + $0x2a4] ss:$16 sps:$4 sm:$0xff]  }
 0x19d   : > { %2126 = vmatpush1.bf16.msra.mxu0 %v11799_v15 }
 0x19e   : > { %2127 = vmatprep.subr.bf16.mxu0 %v11807_v16  ;;  %v11847_v16 = vld [vmem:[#allocation9 + $0x260] ss:$16 sps:$4 sm:$0xff]  }
 0x19f   : > { %2212 = vmatpush1.bf16.msra.mxu1 %v11802_v24  ;;  %v11859_v24 = vld [vmem:[#allocation9 + $0x2a0] ss:$16 sps:$4 sm:$0xff]  }
 0x1a0   : > { %2213 = vmatprep.subr.bf16.mxu1 %v11810_v25  ;;  %v11862_v25 = vld [vmem:[#allocation9 + $0x2a8] ss:$16 sps:$4 sm:$0xff]  }
 0x1a1   : > { %2128 = vmatpush1.bf16.msra.mxu0 %v11805_v19  ;;  %v11858_v19 = vld [vmem:[#allocation9 + $0x28c] ss:$16 sps:$4 sm:$0xff]  }
 0x1a2   : > { %2129 = vmatprep.subr.bf16.mxu0 %v11813_v20  ;;  %v11853_v20 = vld [vmem:[#allocation9 + $0x280] ss:$16 sps:$4 sm:$0xff]  }
 0x1a3   : > { %2214 = vmatpush1.bf16.msra.mxu1 %v11808_v26  ;;  %v11867_v26 = vld [vmem:[#allocation9 + $0x2c4] ss:$16 sps:$4 sm:$0xff]  }
 0x1a4   : > { %2215 = vmatprep.subr.bf16.mxu1 %v11816_v27  ;;  %v11870_v27 = vld [vmem:[#allocation9 + $0x2cc] ss:$16 sps:$4 sm:$0xff]  }
 0x1a5   : > { %2130 = vmatpush1.bf16.msra.mxu0 %v11811_v23  ;;  %v11864_v23 = vld [vmem:[#allocation9 + $0x2ac] ss:$16 sps:$4 sm:$0xff]  }
 0x1a6   : > { %2131 = vmatprep.subr.bf16.mxu0 %v11819_v29  ;;  %v11868_v29 = vld [vmem:[#allocation9 + $0x2c8] ss:$16 sps:$4 sm:$0xff]  }
 0x1a7   : > { %2216 = vmatpush1.bf16.msra.mxu1 %v11814_v28  ;;  %v11865_v28 = vld [vmem:[#allocation9 + $0x2c0] ss:$16 sps:$4 sm:$0xff]  }
 0x1a8   : > { %2217 = vmatprep.subr.bf16.mxu1 %v11822_v30  ;;  %v11873_v30 = vld [vmem:[#allocation9 + $0x2e4] ss:$16 sps:$4 sm:$0xff]  }
 0x1a9   : > { %2132 = vmatpush1.bf16.msra.mxu0 %v11817_v31  ;;  %v11876_v31 = vld [vmem:[#allocation9 + $0x2ec] ss:$16 sps:$4 sm:$0xff]  }
 0x1aa   : > { %2133 = vmatprep.subr.bf16.mxu0 %v11825_v33  ;;  %v11874_v33 = vld [vmem:[#allocation9 + $0x2e8] ss:$16 sps:$4 sm:$0xff]  }
 0x1ab   : > { %2218 = vmatpush1.bf16.msra.mxu1 %v11820_v32  ;;  %v11871_v32 = vld [vmem:[#allocation9 + $0x2e0] ss:$16 sps:$4 sm:$0xff]  }
 0x1ac   : > { %2219 = vmatprep.subr.bf16.mxu1 %v11828_v34  ;;  %v11879_v34 = vld [vmem:[#allocation9 + $0x304] ss:$16 sps:$4 sm:$0xff]  }
 0x1ad   : > { %2134 = vmatpush1.bf16.msra.mxu0 %v11823_v35  ;;  %v11882_v35 = vld [vmem:[#allocation9 + $0x30c] ss:$16 sps:$4 sm:$0xff]  }
 0x1ae   : > { %2146 = vmatprep.subr.bf16.mxu0 %v11831_v37  ;;  %v11880_v37 = vld [vmem:[#allocation9 + $0x308] ss:$16 sps:$4 sm:$0xff]  }
 0x1af   : > { %2220 = vmatpush1.bf16.msra.mxu1 %v11826_v36  ;;  %v11877_v36 = vld [vmem:[#allocation9 + $0x300] ss:$16 sps:$4 sm:$0xff]  }
 0x1b0   : > { %2232 = vmatprep.subr.bf16.mxu1 %v11834_v38  ;;  %v11885_v38 = vld [vmem:[#allocation9 + $0x324] ss:$16 sps:$4 sm:$0xff]  }
 0x243   : > { %v1212_v39 = vpop.f32.mrb[0].mxu0 }
 0x244   : > { %v1315_v40 = vmul.f32 0.2, %v1212_v39  ;;  %v1214_v41 = vpop.f32.mrb[1].mxu0  ;;  %vm1307_vm0 = vcmp.gt.f32.partialorder %v1212_v39, 0.0 }
 0x245   : > { %v1316_v42 = vmul.f32 0.2, %v1214_v41  ;;  %v1216_v43 = vpop.f32.mrb[2].mxu0  ;;  %vm1308_vm1 = vcmp.gt.f32.partialorder %v1214_v41, 0.0  ;;  %v1298_v60 = vpop.f32.mrb[0].mxu1 }
 0x246   : > { %vm1311_vm2 = vcmp.gt.f32.partialorder %v1216_v43, 0.0  ;;  %v1319_v44 = vmul.f32 0.2, %v1216_v43  ;;  %v1218_v45 = vpop.f32.mrb[3].mxu0  ;;  %v1323_v47 = vsel %vm1307_vm0, %v1212_v39, %v1315_v40  ;;  %vm1309_vm4 = vcmp.gt.f32.partialorder %v1298_v60, 0.0  ;;  %v1300_v63 = vpop.f32.mrb[1].mxu1 }
 0x247   : > { %vm1312_vm3 = vcmp.gt.f32.partialorder %v1218_v45, 0.0  ;;  %v1320_v46 = vmul.f32 0.2, %v1218_v45  ;;  %v1324_v49 = vsel %vm1308_vm1, %v1214_v41, %v1316_v42  ;;  %v1317_v62 = vmul.f32 0.2, %v1298_v60  ;;  %v1302_v1 = vpop.f32.mrb[2].mxu1 }
 0x248   : > { %v1327_v48 = vsel %vm1311_vm2, %v1216_v43, %v1319_v44  ;;  %vm1310_vm5 = vcmp.gt.f32.partialorder %v1300_v63, 0.0  ;;  %v1318_v0 = vmul.f32 0.2, %v1300_v63  ;;  %vm1313_vm6 = vcmp.gt.f32.partialorder %v1302_v1, 0.0  ;;  %v1304_v5 = vpop.f32.mrb[3].mxu1 }
 0x249   : > { %v1331_v50 = vpack.c.bf16 %v1327_v48, %v1323_v47  ;;  %v1328_v51 = vsel %vm1312_vm3, %v1218_v45, %v1320_v46  ;;  %v1325_v3 = vsel %vm1309_vm4, %v1298_v60, %v1317_v62  ;;  %v1321_v4 = vmul.f32 0.2, %v1302_v1  ;;  %v11888_v39 = vld [vmem:[#allocation9 + $0x32c] ss:$16 sps:$4 sm:$0xff]   ;;  %v11883_v40 = vld [vmem:[#allocation9 + $0x320] ss:$16 sps:$4 sm:$0xff]  }
 0x24a   : > { %v1332_v52 = vpack.c.bf16 %v1328_v51, %v1324_v49  ;;  %v1326_v8 = vsel %vm1310_vm5, %v1300_v63, %v1318_v0  ;;  %vm1314_vm7 = vcmp.gt.f32.partialorder %v1304_v5, 0.0  ;;  %v1322_v9 = vmul.f32 0.2, %v1304_v5  ;;  %v11886_v41 = vld [vmem:[#allocation9 + $0x328] ss:$16 sps:$4 sm:$0xff]  }
 0x24b   : > { %v1329_v12 = vsel %vm1313_vm6, %v1302_v1, %v1321_v4  ;;  %v11891_v42 = vld [vmem:[#allocation9 + $0x344] ss:$16 sps:$4 sm:$0xff]   ;;  %v11894_v43 = vld [vmem:[#allocation9 + $0x34c] ss:$16 sps:$4 sm:$0xff]   ;;  %v11889_v44 = vld [vmem:[#allocation9 + $0x340] ss:$16 sps:$4 sm:$0xff]  }
 0x24c   : > { %2135 = vmatprep.mubr.bf16.mxu0 %v1332_v52  ;;  %2221 = vmatprep.mubr.bf16.mxu1 %v1332_v52  ;;  %v13993_v13 = vpack.c.bf16 %v1329_v12, %v1325_v3  ;;  %v1330_v14 = vsel %vm1314_vm7, %v1304_v5, %v1322_v9  ;;  %v11892_v45 = vld [vmem:[#allocation9 + $0x348] ss:$16 sps:$4 sm:$0xff]   ;;  %v11897_v46 = vld [vmem:[#allocation9 + $0x364] ss:$16 sps:$4 sm:$0xff]   ;;  %v11900_v47 = vld [vmem:[#allocation9 + $0x36c] ss:$16 sps:$4 sm:$0xff]  }
 0x24d   : > { %2136 = vmatmul.mubr.bf16.vlgmr.msra.gmra.mrb[4].mxu0 %v1331_v50  ;;  %2222 = vmatmul.mubr.bf16.vlgmr.msra.gmra.mrb[4].mxu1 %v1331_v50  ;;  %v1334_v15 = vpack.c.bf16 %v1330_v14, %v1326_v8  ;;  %v11895_v48 = vld [vmem:[#allocation9 + $0x360] ss:$16 sps:$4 sm:$0xff]   ;;  %v11898_v49 = vld [vmem:[#allocation9 + $0x368] ss:$16 sps:$4 sm:$0xff]   ;;  %v11903_v50 = vld [vmem:[#allocation9 + $0x384] ss:$16 sps:$4 sm:$0xff]  }
 0x24e   : > { %2147 = vmatpush1.bf16.msra.mxu0 %v11829_v53  ;;  %2233 = vmatpush1.bf16.msra.mxu1 %v11832_v54  ;;  %v11906_v51 = vld [vmem:[#allocation9 + $0x38c] ss:$16 sps:$4 sm:$0xff]   ;;  %v11901_v52 = vld [vmem:[#allocation9 + $0x380] ss:$16 sps:$4 sm:$0xff]   ;;  %v11904_v53 = vld [vmem:[#allocation9 + $0x388] ss:$16 sps:$4 sm:$0xff]  }
 0x24f   : > { %2148 = vmatprep.subr.bf16.mxu0 %v11837_v55  ;;  %2234 = vmatprep.subr.bf16.mxu1 %v11840_v56  ;;  %v11909_v54 = vld [vmem:[#allocation9 + $0x3a4] ss:$16 sps:$4 sm:$0xff]   ;;  %v11912_v55 = vld [vmem:[#allocation9 + $0x3ac] ss:$16 sps:$4 sm:$0xff]   ;;  %v11907_v56 = vld [vmem:[#allocation9 + $0x3a0] ss:$16 sps:$4 sm:$0xff]  }
 0x250   : > { %2178 = vmatprep.mubr.bf16.mxu0 %v1334_v15  ;;  %2264 = vmatprep.mubr.bf16.mxu1 %v1334_v15  ;;  %v11913_v60 = vld [vmem:[#allocation9 + $0x3c0] ss:$16 sps:$4 sm:$0xff]   ;;  %v11921_v62 = vld [vmem:[#allocation9 + $0x3e4] ss:$16 sps:$4 sm:$0xff]   ;;  %v11924_v63 = vld [vmem:[#allocation9 + $0x3ec] ss:$16 sps:$4 sm:$0xff]  }
 0x251   : > { %v11919_v0 = vld [vmem:[#allocation9 + $0x3e0] ss:$16 sps:$4 sm:$0xff]   ;;  %v11922_v1 = vld [vmem:[#allocation9 + $0x3e8] ss:$16 sps:$4 sm:$0xff]   ;;  %v11952_v3 = vld [vmem:[#allocation7 + $0xc] ss:$16 sps:$4 sm:$0xff]  }
 0x252   : > { %2149 = vmatpush1.bf16.msra.mxu0 %v11835_v57  ;;  %2235 = vmatpush1.bf16.msra.mxu1 %v11838_v58  ;;  %v11910_v57 = vld [vmem:[#allocation9 + $0x3a8] ss:$16 sps:$4 sm:$0xff]   ;;  %v11915_v58 = vld [vmem:[#allocation9 + $0x3c4] ss:$16 sps:$4 sm:$0xff]   ;;  %v11925_v4 = vld [vmem:[#allocation7] ss:$16 sps:$4 sm:$0xff]  }
 0x253   : > { %2150 = vmatprep.subr.bf16.mxu0 %v11843_v59  ;;  %2236 = vmatprep.subr.bf16.mxu1 %v11846_v61  ;;  %v11918_v59 = vld [vmem:[#allocation9 + $0x3cc] ss:$16 sps:$4 sm:$0xff]   ;;  %v11916_v61 = vld [vmem:[#allocation9 + $0x3c8] ss:$16 sps:$4 sm:$0xff]   ;;  %v11930_v5 = vld [vmem:[#allocation7 + $0x24] ss:$16 sps:$4 sm:$0xff]  }
 0x254   : > { %v11955_v8 = vld [vmem:[#allocation7 + $0x2c] ss:$16 sps:$4 sm:$0xff]   ;;  %v11928_v9 = vld [vmem:[#allocation7 + $0x20] ss:$16 sps:$4 sm:$0xff]   ;;  %v11936_v15 = vld [vmem:[#allocation7 + $0x64] ss:$16 sps:$4 sm:$0xff]  }
 0x255   : > { %v11958_v12 = vld [vmem:[#allocation7 + $0x4c] ss:$16 sps:$4 sm:$0xff]   ;;  %v11931_v14 = vld [vmem:[#allocation7 + $0x40] ss:$16 sps:$4 sm:$0xff]  }
 0x256   : > { %2151 = vmatpush1.bf16.msra.mxu0 %v11841_v2  ;;  %2237 = vmatpush1.bf16.msra.mxu1 %v11844_v7  ;;  %v11927_v2 = vld [vmem:[#allocation7 + $0x4] ss:$16 sps:$4 sm:$0xff]   ;;  %v11950_v7 = vld [vmem:[#allocation7 + $0x8] ss:$16 sps:$4 sm:$0xff]  }
 0x257   : > { %2152 = vmatprep.subr.bf16.mxu0 %v11849_v10  ;;  %2238 = vmatprep.subr.bf16.mxu1 %v11852_v11  ;;  %v11933_v10 = vld [vmem:[#allocation7 + $0x44] ss:$16 sps:$4 sm:$0xff]   ;;  %v11953_v11 = vld [vmem:[#allocation7 + $0x28] ss:$16 sps:$4 sm:$0xff]  }
 0x25a   : > { %2153 = vmatpush1.bf16.msra.mxu0 %v11847_v16  ;;  %2239 = vmatpush1.bf16.msra.mxu1 %v11850_v17  ;;  %v11956_v16 = vld [vmem:[#allocation7 + $0x48] ss:$16 sps:$4 sm:$0xff]   ;;  %v11934_v17 = vld [vmem:[#allocation7 + $0x60] ss:$16 sps:$4 sm:$0xff]  }
 0x25b   : > { %2154 = vmatprep.subr.bf16.mxu0 %v11855_v18  ;;  %2240 = vmatprep.subr.bf16.mxu1 %v11858_v19  ;;  %v11939_v18 = vld [vmem:[#allocation7 + $0x84] ss:$16 sps:$4 sm:$0xff]   ;;  %v11959_v19 = vld [vmem:[#allocation7 + $0x68] ss:$16 sps:$4 sm:$0xff]  }
 0x25e   : > { %2155 = vmatpush1.bf16.msra.mxu0 %v11853_v20  ;;  %2241 = vmatpush1.bf16.msra.mxu1 %v11856_v21  ;;  %v11964_v20 = vld [vmem:[#allocation7 + $0x8c] ss:$16 sps:$4 sm:$0xff]   ;;  %v11937_v21 = vld [vmem:[#allocation7 + $0x80] ss:$16 sps:$4 sm:$0xff]  }
 0x25f   : > { %2156 = vmatprep.subr.bf16.mxu0 %v11861_v22  ;;  %2242 = vmatprep.subr.bf16.mxu1 %v11864_v23  ;;  %v11942_v22 = vld [vmem:[#allocation7 + $0xa4] ss:$16 sps:$4 sm:$0xff]   ;;  %v11962_v23 = vld [vmem:[#allocation7 + $0x88] ss:$16 sps:$4 sm:$0xff]  }
 0x262   : > { %2157 = vmatpush1.bf16.msra.mxu0 %v11859_v24  ;;  %2243 = vmatpush1.bf16.msra.mxu1 %v11862_v25  ;;  %v11967_v24 = vld [vmem:[#allocation7 + $0xac] ss:$16 sps:$4 sm:$0xff]   ;;  %v11940_v25 = vld [vmem:[#allocation7 + $0xa0] ss:$16 sps:$4 sm:$0xff]  }
 0x263   : > { %2158 = vmatprep.subr.bf16.mxu0 %v11867_v26  ;;  %2244 = vmatprep.subr.bf16.mxu1 %v11870_v27  ;;  %v11945_v26 = vld [vmem:[#allocation7 + $0xc4] ss:$16 sps:$4 sm:$0xff]   ;;  %v11965_v27 = vld [vmem:[#allocation7 + $0xa8] ss:$16 sps:$4 sm:$0xff]  }
 0x266   : > { %2159 = vmatpush1.bf16.msra.mxu0 %v11865_v28  ;;  %2245 = vmatpush1.bf16.msra.mxu1 %v11868_v29  ;;  %v11971_v28 = vld [vmem:[#allocation7 + $0xcc] ss:$16 sps:$4 sm:$0xff]   ;;  %v11943_v29 = vld [vmem:[#allocation7 + $0xc0] ss:$16 sps:$4 sm:$0xff]  }
 0x267   : > { %2160 = vmatprep.subr.bf16.mxu0 %v11873_v30  ;;  %2246 = vmatprep.subr.bf16.mxu1 %v11876_v31  ;;  %v11948_v30 = vld [vmem:[#allocation7 + $0xe4] ss:$16 sps:$4 sm:$0xff]   ;;  %v11969_v31 = vld [vmem:[#allocation7 + $0xc8] ss:$16 sps:$4 sm:$0xff]  }
 0x26a   : > { %2161 = vmatpush1.bf16.msra.mxu0 %v11871_v32  ;;  %2247 = vmatpush1.bf16.msra.mxu1 %v11874_v33  ;;  %v11974_v32 = vld [vmem:[#allocation7 + $0xec] ss:$16 sps:$4 sm:$0xff]   ;;  %v11946_v33 = vld [vmem:[#allocation7 + $0xe0] ss:$16 sps:$4 sm:$0xff]  }
 0x26b   : > { %2162 = vmatprep.subr.bf16.mxu0 %v11879_v34  ;;  %2248 = vmatprep.subr.bf16.mxu1 %v11882_v35  ;;  %v11972_v34 = vld [vmem:[#allocation7 + $0xe8] ss:$16 sps:$4 sm:$0xff]   ;;  %v11977_v35 = vld [vmem:[#allocation9 + $0x4] ss:$16 sps:$4 sm:$0xff]  }
 0x26e   : > { %2163 = vmatpush1.bf16.msra.mxu0 %v11877_v36  ;;  %2249 = vmatpush1.bf16.msra.mxu1 %v11880_v37  ;;  %v11980_v36 = vld [vmem:[#allocation9 + $0xc] ss:$16 sps:$4 sm:$0xff]   ;;  %v11949_v37 = vld [vmem:[%s14952_s16] sm:$0xff]  }
 0x26f   : > { %2164 = vmatprep.subr.bf16.mxu0 %v11885_v38  ;;  %2250 = vmatprep.subr.bf16.mxu1 %v11888_v39  ;;  %v11975_v38 = vld [vmem:[#allocation9] ss:$16 sps:$4 sm:$0xff]   ;;  %v11978_v39 = vld [vmem:[#allocation9 + $0x8] ss:$16 sps:$4 sm:$0xff]  }
 0x272   : > { %2165 = vmatpush1.bf16.msra.mxu0 %v11883_v40  ;;  %2251 = vmatpush1.bf16.msra.mxu1 %v11886_v41  ;;  %v11983_v40 = vld [vmem:[#allocation9 + $0x24] ss:$16 sps:$4 sm:$0xff]   ;;  %v11986_v41 = vld [vmem:[#allocation9 + $0x2c] ss:$16 sps:$4 sm:$0xff]  }
 0x273   : > { %2166 = vmatprep.subr.bf16.mxu0 %v11891_v42  ;;  %2252 = vmatprep.subr.bf16.mxu1 %v11894_v43  ;;  %v11981_v42 = vld [vmem:[#allocation9 + $0x20] ss:$16 sps:$4 sm:$0xff]   ;;  %v11984_v43 = vld [vmem:[#allocation9 + $0x28] ss:$16 sps:$4 sm:$0xff]  }
 0x276   : > { %2167 = vmatpush1.bf16.msra.mxu0 %v11889_v44  ;;  %2253 = vmatpush1.bf16.msra.mxu1 %v11892_v45  ;;  %v11989_v44 = vld [vmem:[#allocation9 + $0x44] ss:$16 sps:$4 sm:$0xff]   ;;  %v11968_v45 = vld [vmem:[%s14952_s16 + $0x8] sm:$0xff]  }
 0x277   : > { %2168 = vmatprep.subr.bf16.mxu0 %v11897_v46  ;;  %2254 = vmatprep.subr.bf16.mxu1 %v11900_v47  ;;  %v11992_v46 = vld [vmem:[#allocation9 + $0x4c] ss:$16 sps:$4 sm:$0xff]   ;;  %v11987_v47 = vld [vmem:[#allocation9 + $0x40] ss:$16 sps:$4 sm:$0xff]  }
 0x27a   : > { %2169 = vmatpush1.bf16.msra.mxu0 %v11895_v48  ;;  %2255 = vmatpush1.bf16.msra.mxu1 %v11898_v49  ;;  %v11990_v48 = vld [vmem:[#allocation9 + $0x48] ss:$16 sps:$4 sm:$0xff]   ;;  %v11995_v49 = vld [vmem:[#allocation9 + $0x64] ss:$16 sps:$4 sm:$0xff]  }
 0x27b   : > { %2170 = vmatprep.subr.bf16.mxu0 %v11903_v50  ;;  %2256 = vmatprep.subr.bf16.mxu1 %v11906_v51  ;;  %v11993_v50 = vld [vmem:[#allocation9 + $0x60] ss:$16 sps:$4 sm:$0xff]   ;;  %v11996_v51 = vld [vmem:[#allocation9 + $0x68] ss:$16 sps:$4 sm:$0xff]  }
 0x27e   : > { %2171 = vmatpush1.bf16.msra.mxu0 %v11901_v52  ;;  %2257 = vmatpush1.bf16.msra.mxu1 %v11904_v53  ;;  %v12001_v52 = vld [vmem:[#allocation9 + $0x84] ss:$16 sps:$4 sm:$0xff]   ;;  %v12004_v53 = vld [vmem:[#allocation9 + $0x8c] ss:$16 sps:$4 sm:$0xff]  }
 0x27f   : > { %2172 = vmatprep.subr.bf16.mxu0 %v11909_v54  ;;  %2258 = vmatprep.subr.bf16.mxu1 %v11912_v55  ;;  %v11999_v54 = vld [vmem:[#allocation9 + $0x80] ss:$16 sps:$4 sm:$0xff]   ;;  %v12002_v55 = vld [vmem:[#allocation9 + $0x88] ss:$16 sps:$4 sm:$0xff]  }
 0x282   : > { %2173 = vmatpush1.bf16.msra.mxu0 %v11907_v56  ;;  %2259 = vmatpush1.bf16.msra.mxu1 %v11910_v57  ;;  %v12007_v56 = vld [vmem:[#allocation9 + $0xa4] ss:$16 sps:$4 sm:$0xff]   ;;  %v12010_v57 = vld [vmem:[#allocation9 + $0xac] ss:$16 sps:$4 sm:$0xff]  }
 0x283   : > { %2174 = vmatprep.subr.bf16.mxu0 %v11915_v58  ;;  %2260 = vmatprep.subr.bf16.mxu1 %v11918_v59  ;;  %v12005_v58 = vld [vmem:[#allocation9 + $0xa0] ss:$16 sps:$4 sm:$0xff]   ;;  %v12008_v59 = vld [vmem:[#allocation9 + $0xa8] ss:$16 sps:$4 sm:$0xff]  }
 0x286   : > { %2175 = vmatpush1.bf16.msra.mxu0 %v11913_v60  ;;  %2261 = vmatpush1.bf16.msra.mxu1 %v11916_v61  ;;  %v12013_v60 = vld [vmem:[#allocation9 + $0xc4] ss:$16 sps:$4 sm:$0xff]   ;;  %v12016_v61 = vld [vmem:[#allocation9 + $0xcc] ss:$16 sps:$4 sm:$0xff]  }
 0x287   : > { %2176 = vmatprep.subr.bf16.mxu0 %v11921_v62  ;;  %2262 = vmatprep.subr.bf16.mxu1 %v11924_v63  ;;  %v12011_v62 = vld [vmem:[#allocation9 + $0xc0] ss:$16 sps:$4 sm:$0xff]   ;;  %v12014_v63 = vld [vmem:[#allocation9 + $0xc8] ss:$16 sps:$4 sm:$0xff]  }
 0x28a   : > { %2177 = vmatpush1.bf16.msra.mxu0 %v11919_v0  ;;  %2263 = vmatpush1.bf16.msra.mxu1 %v11922_v1  ;;  %v12019_v0 = vld [vmem:[#allocation9 + $0xe4] ss:$16 sps:$4 sm:$0xff]   ;;  %v12022_v1 = vld [vmem:[#allocation9 + $0xec] ss:$16 sps:$4 sm:$0xff]  }
 0x28b   : > { %2515 = vmatprep.subr.bf16.mxu0 %v11927_v2  ;;  %2568 = vmatprep.subr.bf16.mxu1 %v11952_v3  ;;  %v12017_v2 = vld [vmem:[#allocation9 + $0xe0] ss:$16 sps:$4 sm:$0xff]   ;;  %v12020_v3 = vld [vmem:[#allocation9 + $0xe8] ss:$16 sps:$4 sm:$0xff]  }
 0x28d   : > { %2179 = vmatmul.mubr.bf16.vlgmr.msra.gmra.mrb[4].mxu0 %v13993_v13  ;;  %2265 = vmatmul.mubr.bf16.vlgmr.msra.gmra.mrb[4].mxu1 %v13993_v13  ;;  %v11961_v13 = vld [vmem:[#allocation7 + $0x6c] ss:$16 sps:$4 sm:$0xff]  }
 0x28e   : > { %2516 = vmatpush1.bf16.msra.mxu0 %v11925_v4  ;;  %2547 = vmatprep.mubr.bf16.mxu0 %v13588_v6  ;;  %v12025_v4 = vld [vmem:[#allocation9 + $0x104] ss:$16 sps:$4 sm:$0xff]  }
 0x28f   : > { %2517 = vmatprep.subr.bf16.mxu0 %v11930_v5  ;;  %2569 = vmatpush1.bf16.msra.mxu1 %v11950_v7  ;;  %v12028_v5 = vld [vmem:[#allocation9 + $0x10c] ss:$16 sps:$4 sm:$0xff]   ;;  %v12023_v7 = vld [vmem:[#allocation9 + $0x100] ss:$16 sps:$4 sm:$0xff]  }
 0x290   : > { %2570 = vmatprep.subr.bf16.mxu1 %v11955_v8  ;;  %2600 = vmatprep.mubr.bf16.mxu1 %v13588_v6  ;;  %v12026_v8 = vld [vmem:[#allocation9 + $0x108] ss:$16 sps:$4 sm:$0xff]  }
 0x292   : > { %2518 = vmatpush1.bf16.msra.mxu0 %v11928_v9  ;;  %v12031_v9 = vld [vmem:[#allocation9 + $0x124] ss:$16 sps:$4 sm:$0xff]  }
 0x293   : > { %2519 = vmatprep.subr.bf16.mxu0 %v11933_v10  ;;  %2571 = vmatpush1.bf16.msra.mxu1 %v11953_v11  ;;  %v12029_v10 = vld [vmem:[#allocation9 + $0x120] ss:$16 sps:$4 sm:$0xff]   ;;  %v12032_v11 = vld [vmem:[#allocation9 + $0x128] ss:$16 sps:$4 sm:$0xff]  }
 0x294   : > { %2572 = vmatprep.subr.bf16.mxu1 %v11958_v12  ;;  %v12034_v12 = vld [vmem:[#allocation9 + $0x12c] ss:$16 sps:$4 sm:$0xff]  }
 0x296   : > { %2520 = vmatpush1.bf16.msra.mxu0 %v11931_v14  ;;  %v12037_v14 = vld [vmem:[#allocation9 + $0x144] ss:$16 sps:$4 sm:$0xff]  }
 0x297   : > { %2521 = vmatprep.subr.bf16.mxu0 %v11936_v15  ;;  %2573 = vmatpush1.bf16.msra.mxu1 %v11956_v16  ;;  %v12040_v15 = vld [vmem:[#allocation9 + $0x14c] ss:$16 sps:$4 sm:$0xff]   ;;  %v12035_v16 = vld [vmem:[#allocation9 + $0x140] ss:$16 sps:$4 sm:$0xff]  }
 0x298   : > { %2574 = vmatprep.subr.bf16.mxu1 %v11961_v13  ;;  %v12038_v13 = vld [vmem:[#allocation9 + $0x148] ss:$16 sps:$4 sm:$0xff]  }
 0x29a   : > { %2522 = vmatpush1.bf16.msra.mxu0 %v11934_v17  ;;  %v12043_v17 = vld [vmem:[#allocation9 + $0x164] ss:$16 sps:$4 sm:$0xff]  }
 0x29b   : > { %2523 = vmatprep.subr.bf16.mxu0 %v11939_v18  ;;  %2575 = vmatpush1.bf16.msra.mxu1 %v11959_v19  ;;  %v12046_v18 = vld [vmem:[#allocation9 + $0x16c] ss:$16 sps:$4 sm:$0xff]   ;;  %v12041_v19 = vld [vmem:[#allocation9 + $0x160] ss:$16 sps:$4 sm:$0xff]  }
 0x29c   : > { %2576 = vmatprep.subr.bf16.mxu1 %v11964_v20  ;;  %v12044_v20 = vld [vmem:[#allocation9 + $0x168] ss:$16 sps:$4 sm:$0xff]  }
 0x29e   : > { %2524 = vmatpush1.bf16.msra.mxu0 %v11937_v21  ;;  %v12049_v21 = vld [vmem:[#allocation9 + $0x184] ss:$16 sps:$4 sm:$0xff]  }
 0x29f   : > { %2525 = vmatprep.subr.bf16.mxu0 %v11942_v22  ;;  %2577 = vmatpush1.bf16.msra.mxu1 %v11962_v23  ;;  %v12052_v22 = vld [vmem:[#allocation9 + $0x18c] ss:$16 sps:$4 sm:$0xff]   ;;  %v12047_v23 = vld [vmem:[#allocation9 + $0x180] ss:$16 sps:$4 sm:$0xff]  }
 0x2a0   : > { %2578 = vmatprep.subr.bf16.mxu1 %v11967_v24  ;;  %v12050_v24 = vld [vmem:[#allocation9 + $0x188] ss:$16 sps:$4 sm:$0xff]  }
 0x2a2   : > { %2526 = vmatpush1.bf16.msra.mxu0 %v11940_v25  ;;  %v12055_v25 = vld [vmem:[#allocation9 + $0x1a4] ss:$16 sps:$4 sm:$0xff]  }
 0x2a3   : > { %2527 = vmatprep.subr.bf16.mxu0 %v11945_v26  ;;  %2579 = vmatpush1.bf16.msra.mxu1 %v11965_v27  ;;  %v12058_v26 = vld [vmem:[#allocation9 + $0x1ac] ss:$16 sps:$4 sm:$0xff]   ;;  %v12053_v27 = vld [vmem:[#allocation9 + $0x1a0] ss:$16 sps:$4 sm:$0xff]  }
 0x2a4   : > { %2580 = vmatprep.subr.bf16.mxu1 %v11971_v28  ;;  %v12056_v28 = vld [vmem:[#allocation9 + $0x1a8] ss:$16 sps:$4 sm:$0xff]  }
 0x2a6   : > { %2528 = vmatpush1.bf16.msra.mxu0 %v11943_v29  ;;  %v12061_v29 = vld [vmem:[#allocation9 + $0x1c4] ss:$16 sps:$4 sm:$0xff]  }
 0x2a7   : > { %2529 = vmatprep.subr.bf16.mxu0 %v11948_v30  ;;  %2581 = vmatpush1.bf16.msra.mxu1 %v11969_v31  ;;  %v12064_v30 = vld [vmem:[#allocation9 + $0x1cc] ss:$16 sps:$4 sm:$0xff]   ;;  %v12059_v31 = vld [vmem:[#allocation9 + $0x1c0] ss:$16 sps:$4 sm:$0xff]  }
 0x2a8   : > { %2582 = vmatprep.subr.bf16.mxu1 %v11974_v32  ;;  %v12062_v32 = vld [vmem:[#allocation9 + $0x1c8] ss:$16 sps:$4 sm:$0xff]  }
 0x2aa   : > { %2530 = vmatpush1.bf16.msra.mxu0 %v11946_v33  ;;  %v12065_v33 = vld [vmem:[#allocation9 + $0x1e0] ss:$16 sps:$4 sm:$0xff]  }
 0x2ab   : > { %2583 = vmatpush1.bf16.msra.mxu1 %v11972_v34  ;;  %3445 = vmatprep.subr.bf16.mxu0 %v11977_v35  ;;  %v12067_v34 = vld [vmem:[#allocation9 + $0x1e4] ss:$16 sps:$4 sm:$0xff]   ;;  %v12068_v35 = vld [vmem:[#allocation9 + $0x1e8] ss:$16 sps:$4 sm:$0xff]  }
 0x2ac   : > { %3551 = vmatprep.subr.bf16.mxu1 %v11980_v36  ;;  %v12070_v36 = vld [vmem:[#allocation9 + $0x1ec] ss:$16 sps:$4 sm:$0xff]  }
 0x2ad   : > { %2548 = vmatmul.mubr.bf16.vlgmr.msra.gmra.mrb[8].mxu0 %v11949_v37 }
 0x2ae   : > { %2557 = vmatprep.mubr.bf16.mxu0 %v13588_v6  ;;  %2601 = vmatmul.mubr.bf16.vlgmr.msra.gmra.mrb[8].mxu1 %v11949_v37  ;;  %v12073_v37 = vld [vmem:[#allocation9 + $0x204] ss:$16 sps:$4 sm:$0xff]  }
 0x2af   : > { %2610 = vmatprep.mubr.bf16.mxu1 %v13588_v6  ;;  %3446 = vmatpush1.bf16.msra.mxu0 %v11975_v38  ;;  %v11998_v6 = vld [vmem:[#allocation9 + $0x6c] ss:$16 sps:$4 sm:$0xff]  }
 0x2b0   : > { %3552 = vmatpush1.bf16.msra.mxu1 %v11978_v39  ;;  %3447 = vmatprep.subr.bf16.mxu0 %v11983_v40  ;;  %v12076_v38 = vld [vmem:[#allocation9 + $0x20c] ss:$16 sps:$4 sm:$0xff]  }
 0x2b1   : > { %3553 = vmatprep.subr.bf16.mxu1 %v11986_v41 }
 0x2b3   : > { %3448 = vmatpush1.bf16.msra.mxu0 %v11981_v42 }
 0x2b4   : > { %3554 = vmatpush1.bf16.msra.mxu1 %v11984_v43  ;;  %3449 = vmatprep.subr.bf16.mxu0 %v11989_v44 }
 0x2b5   : > { %2558 = vmatmul.mubr.bf16.gmra.mrb[12].mxu0 %v11968_v45  ;;  %3555 = vmatprep.subr.bf16.mxu1 %v11992_v46 }
 0x2b6   : > { %2611 = vmatmul.mubr.bf16.gmra.mrb[12].mxu1 %v11968_v45 }
 0x2b7   : > { %3450 = vmatpush1.bf16.msra.mxu0 %v11987_v47 }
 0x2b8   : > { %3556 = vmatpush1.bf16.msra.mxu1 %v11990_v48  ;;  %3451 = vmatprep.subr.bf16.mxu0 %v11995_v49 }
 0x2b9   : > { %3557 = vmatprep.subr.bf16.mxu1 %v11998_v6 }
 0x2bb   : > { %3452 = vmatpush1.bf16.msra.mxu0 %v11993_v50 }
 0x2bc   : > { %3558 = vmatpush1.bf16.msra.mxu1 %v11996_v51  ;;  %3453 = vmatprep.subr.bf16.mxu0 %v12001_v52 }
 0x2bd   : > { %3559 = vmatprep.subr.bf16.mxu1 %v12004_v53 }
 0x2bf   : > { %3454 = vmatpush1.bf16.msra.mxu0 %v11999_v54 }
 0x2c0   : > { %3560 = vmatpush1.bf16.msra.mxu1 %v12002_v55  ;;  %3455 = vmatprep.subr.bf16.mxu0 %v12007_v56 }
 0x2c1   : > { %3561 = vmatprep.subr.bf16.mxu1 %v12010_v57 }
 0x2c3   : > { %3456 = vmatpush1.bf16.msra.mxu0 %v12005_v58 }
 0x2c4   : > { %3562 = vmatpush1.bf16.msra.mxu1 %v12008_v59  ;;  %3457 = vmatprep.subr.bf16.mxu0 %v12013_v60 }
 0x2c5   : > { %3563 = vmatprep.subr.bf16.mxu1 %v12016_v61 }
 0x2c7   : > { %3458 = vmatpush1.bf16.msra.mxu0 %v12011_v62 }
 0x2c8   : > { %3564 = vmatpush1.bf16.msra.mxu1 %v12014_v63  ;;  %3459 = vmatprep.subr.bf16.mxu0 %v12019_v0 }
 0x2c9   : > { %3565 = vmatprep.subr.bf16.mxu1 %v12022_v1 }
 0x2cb   : > { %3460 = vmatpush1.bf16.msra.mxu0 %v12017_v2 }
 0x2cc   : > { %3566 = vmatpush1.bf16.msra.mxu1 %v12020_v3  ;;  %3461 = vmatprep.subr.bf16.mxu0 %v12025_v4 }
 0x2cd   : > { %3567 = vmatprep.subr.bf16.mxu1 %v12028_v5 }
 0x2cf   : > { %3462 = vmatpush1.bf16.msra.mxu0 %v12023_v7 }
 0x2d0   : > { %3568 = vmatpush1.bf16.msra.mxu1 %v12026_v8  ;;  %3463 = vmatprep.subr.bf16.mxu0 %v12031_v9 }
 0x2d1   : > { %3569 = vmatprep.subr.bf16.mxu1 %v12034_v12 }
 0x2d3   : > { %3464 = vmatpush1.bf16.msra.mxu0 %v12029_v10 }
 0x2d4   : > { %3570 = vmatpush1.bf16.msra.mxu1 %v12032_v11  ;;  %3465 = vmatprep.subr.bf16.mxu0 %v12037_v14 }
 0x2d5   : > { %3571 = vmatprep.subr.bf16.mxu1 %v12040_v15 }
 0x2d7   : > { %3466 = vmatpush1.bf16.msra.mxu0 %v12035_v16 }
 0x2d8   : > { %3572 = vmatpush1.bf16.msra.mxu1 %v12038_v13  ;;  %3467 = vmatprep.subr.bf16.mxu0 %v12043_v17 }
 0x2d9   : > { %3573 = vmatprep.subr.bf16.mxu1 %v12046_v18 }
 0x2db   : > { %3468 = vmatpush1.bf16.msra.mxu0 %v12041_v19 }
 0x2dc   : > { %3574 = vmatpush1.bf16.msra.mxu1 %v12044_v20  ;;  %3469 = vmatprep.subr.bf16.mxu0 %v12049_v21 }
 0x2dd   : > { %3575 = vmatprep.subr.bf16.mxu1 %v12052_v22 }
 0x2df   : > { %3470 = vmatpush1.bf16.msra.mxu0 %v12047_v23 }
 0x2e0   : > { %3576 = vmatpush1.bf16.msra.mxu1 %v12050_v24  ;;  %3471 = vmatprep.subr.bf16.mxu0 %v12055_v25  ;;  %v12071_v25 = vld [vmem:[#allocation9 + $0x200] ss:$16 sps:$4 sm:$0xff]  }
 0x2e1   : > { %3577 = vmatprep.subr.bf16.mxu1 %v12058_v26  ;;  %v12074_v26 = vld [vmem:[#allocation9 + $0x208] ss:$16 sps:$4 sm:$0xff]  }
 0x2e3   : > { %3472 = vmatpush1.bf16.msra.mxu0 %v12053_v27 }
 0x2e4   : > { %3578 = vmatpush1.bf16.msra.mxu1 %v12056_v28  ;;  %3473 = vmatprep.subr.bf16.mxu0 %v12061_v29  ;;  %v12079_v29 = vld [vmem:[#allocation9 + $0x224] ss:$16 sps:$4 sm:$0xff]  }
 0x2e5   : > { %3579 = vmatprep.subr.bf16.mxu1 %v12064_v30  ;;  %v12082_v30 = vld [vmem:[#allocation9 + $0x22c] ss:$16 sps:$4 sm:$0xff]  }
 0x2e7   : > { %3474 = vmatpush1.bf16.msra.mxu0 %v12059_v31 }
 0x2e8   : > { %3580 = vmatpush1.bf16.msra.mxu1 %v12062_v32  ;;  %3475 = vmatprep.subr.bf16.mxu0 %v12067_v34  ;;  %v12080_v34 = vld [vmem:[#allocation9 + $0x228] ss:$16 sps:$4 sm:$0xff]  }
 0x2e9   : > { %3581 = vmatprep.subr.bf16.mxu1 %v12070_v36 }
 0x2eb   : > { %3476 = vmatpush1.bf16.msra.mxu0 %v12065_v33  ;;  %v12077_v33 = vld [vmem:[#allocation9 + $0x220] ss:$16 sps:$4 sm:$0xff]  }
 0x2ec   : > { %3582 = vmatpush1.bf16.msra.mxu1 %v12068_v35  ;;  %3498 = vmatprep.subr.bf16.mxu0 %v12073_v37 }
 0x2ed   : > { %3604 = vmatprep.subr.bf16.mxu1 %v12076_v38 }
 0x360   : > { %v2180_v39 = vpop.f32.mrb[4].mxu0  ;;  %v2266_v40 = vpop.f32.mrb[4].mxu1 }
 0x361   : > { %vm2275_vm8 = vcmp.gt.f32.partialorder %v2180_v39, 0.0  ;;  %v2283_v41 = vmul.f32 0.2, %v2180_v39  ;;  %v2285_v42 = vmul.f32 0.2, %v2266_v40  ;;  %vm2277_vm9 = vcmp.gt.f32.partialorder %v2266_v40, 0.0 }
 0x362   : > { %v2182_v43 = vpop.f32.mrb[5].mxu0  ;;  %v2268_v44 = vpop.f32.mrb[5].mxu1 }
 0x363   : > { %v2284_v45 = vmul.f32 0.2, %v2182_v43  ;;  %v2184_v46 = vpop.f32.mrb[6].mxu0  ;;  %v2270_v47 = vpop.f32.mrb[6].mxu1  ;;  %v2291_v48 = vsel %vm2275_vm8, %v2180_v39, %v2283_v41  ;;  %v2286_v49 = vmul.f32 0.2, %v2268_v44  ;;  %v2293_v50 = vsel %vm2277_vm9, %v2266_v40, %v2285_v42 }
 0x364   : > { %vm2279_vm10 = vcmp.gt.f32.partialorder %v2184_v46, 0.0  ;;  %v2287_v6 = vmul.f32 0.2, %v2184_v46  ;;  %vm2276_vm11 = vcmp.gt.f32.partialorder %v2182_v43, 0.0  ;;  %vm2281_vm12 = vcmp.gt.f32.partialorder %v2270_v47, 0.0  ;;  %v2186_v52 = vpop.f32.mrb[7].mxu0 }
 0x365   : > { %v2289_v51 = vmul.f32 0.2, %v2270_v47  ;;  %v2272_v53 = vpop.f32.mrb[7].mxu1  ;;  %vm2278_vm13 = vcmp.gt.f32.partialorder %v2268_v44, 0.0  ;;  %vm2280_vm14 = vcmp.gt.f32.partialorder %v2186_v52, 0.0  ;;  %v2292_v59 = vsel %vm2276_vm11, %v2182_v43, %v2284_v45 }
 0x366   : > { %v2295_v54 = vsel %vm2279_vm10, %v2184_v46, %v2287_v6  ;;  %v2288_v55 = vmul.f32 0.2, %v2186_v52  ;;  %vm2282_vm15 = vcmp.gt.f32.partialorder %v2272_v53, 0.0  ;;  %v2290_v58 = vmul.f32 0.2, %v2272_v53 }
 0x367   : > { %v2299_v56 = vpack.c.bf16 %v2295_v54, %v2291_v48  ;;  %v2297_v57 = vsel %vm2281_vm12, %v2270_v47, %v2289_v51  ;;  %v2294_v62 = vsel %vm2278_vm13, %v2268_v44, %v2286_v49  ;;  %v12085_v40 = vld [vmem:[#allocation9 + $0x244] ss:$16 sps:$4 sm:$0xff]   ;;  %v12088_v41 = vld [vmem:[#allocation9 + $0x24c] ss:$16 sps:$4 sm:$0xff]  }
 0x368   : > { %v2301_v60 = vpack.c.bf16 %v2297_v57, %v2293_v50  ;;  %v2296_v61 = vsel %vm2280_vm14, %v2186_v52, %v2288_v55  ;;  %v2298_v0 = vsel %vm2282_vm15, %v2272_v53, %v2290_v58 }
 0x369   : > { %2303 = vst [vmem:[#allocation2] sm:$0xff] %v2299_v56  ;;  %v2300_v63 = vpack.c.bf16 %v2296_v61, %v2292_v59  ;;  %v2302_v1 = vpack.c.bf16 %v2298_v0, %v2294_v62  ;;  %v12083_v59 = vld [vmem:[#allocation9 + $0x240] ss:$16 sps:$4 sm:$0xff]   ;;  %v12091_v0 = vld [vmem:[#allocation9 + $0x264] ss:$16 sps:$4 sm:$0xff]  }
 0x36a   : > { %2305 = vst [vmem:[#allocation2 + $0x10] sm:$0xff] %v2301_v60  ;;  %v12086_v60 = vld [vmem:[#allocation9 + $0x248] ss:$16 sps:$4 sm:$0xff]  }
 0x36b   : > { %2304 = vst [vmem:[#allocation2 + $0x8] sm:$0xff] %v2300_v63  ;;  %2306 = vst [vmem:[#allocation2 + $0x18] sm:$0xff] %v2302_v1  ;;  %v12094_v1 = vld [vmem:[#allocation9 + $0x26c] ss:$16 sps:$4 sm:$0xff]  }
 0x380   : > { %v2549_v2 = vpop.f32.mrb[8].mxu0 }
 0x381   : > { %vm2621_vm0 = vcmp.gt.f32.partialorder %v2549_v2, 0.0  ;;  %v2637_v3 = vmul.f32 0.2, %v2549_v2  ;;  %v2551_v4 = vpop.f32.mrb[9].mxu0  ;;  %v2602_v5 = vpop.f32.mrb[8].mxu1 }
 0x382   : > { %vm2622_vm1 = vcmp.gt.f32.partialorder %v2551_v4, 0.0  ;;  %v2638_v7 = vmul.f32 0.2, %v2551_v4  ;;  %v2553_v8 = vpop.f32.mrb[10].mxu0  ;;  %vm2623_vm2 = vcmp.gt.f32.partialorder %v2602_v5, 0.0  ;;  %v2604_v9 = vpop.f32.mrb[9].mxu1 }
 0x383   : > { %v2653_v10 = vsel %vm2621_vm0, %v2549_v2, %v2637_v3  ;;  %vm2625_vm3 = vcmp.gt.f32.partialorder %v2553_v8, 0.0  ;;  %v2641_v11 = vmul.f32 0.2, %v2553_v8  ;;  %v2555_v12 = vpop.f32.mrb[11].mxu0  ;;  %v2639_v14 = vmul.f32 0.2, %v2602_v5 }
 0x384   : > { %v2654_v15 = vsel %vm2622_vm1, %v2551_v4, %v2638_v7  ;;  %vm2626_vm4 = vcmp.gt.f32.partialorder %v2555_v12, 0.0  ;;  %v2642_v16 = vmul.f32 0.2, %v2555_v12  ;;  %vm2624_vm5 = vcmp.gt.f32.partialorder %v2604_v9, 0.0  ;;  %v2606_v13 = vpop.f32.mrb[10].mxu1 }
 0x385   : > { %v2657_v17 = vsel %vm2625_vm3, %v2553_v8, %v2641_v11  ;;  %v2655_v18 = vsel %vm2623_vm2, %v2602_v5, %v2639_v14  ;;  %v2640_v19 = vmul.f32 0.2, %v2604_v9  ;;  %vm2627_vm6 = vcmp.gt.f32.partialorder %v2606_v13, 0.0  ;;  %v2608_v20 = vpop.f32.mrb[11].mxu1  ;;  %v12089_v7 = vld [vmem:[#allocation9 + $0x260] ss:$16 sps:$4 sm:$0xff]  }
 0x386   : > { %v2669_v21 = vpack.c.bf16 %v2657_v17, %v2653_v10  ;;  %v2658_v22 = vsel %vm2626_vm4, %v2555_v12, %v2642_v16  ;;  %v2643_v23 = vmul.f32 0.2, %v2606_v13  ;;  %vm2628_vm7 = vcmp.gt.f32.partialorder %v2608_v20, 0.0  ;;  %v12092_v8 = vld [vmem:[#allocation9 + $0x268] ss:$16 sps:$4 sm:$0xff]  }
 0x387   : > { %v2670_v24 = vpack.c.bf16 %v2658_v22, %v2654_v15  ;;  %v2656_v27 = vsel %vm2624_vm5, %v2604_v9, %v2640_v19  ;;  %v2644_v28 = vmul.f32 0.2, %v2608_v20  ;;  %v12097_v9 = vld [vmem:[#allocation9 + $0x284] ss:$16 sps:$4 sm:$0xff]   ;;  %v12100_v10 = vld [vmem:[#allocation9 + $0x28c] ss:$16 sps:$4 sm:$0xff]  }
 0x388   : > { %v2559_v31 = vpop.f32.mrb[12].mxu0  ;;  %v2659_v32 = vsel %vm2627_vm6, %v2606_v13, %v2643_v23  ;;  %v12095_v11 = vld [vmem:[#allocation9 + $0x280] ss:$16 sps:$4 sm:$0xff]   ;;  %v12098_v12 = vld [vmem:[#allocation9 + $0x288] ss:$16 sps:$4 sm:$0xff]  }
 0x389   : > { %3477 = vmatprep.mubr.bf16.mxu0 %v2670_v24  ;;  %3583 = vmatprep.mubr.bf16.mxu1 %v2670_v24  ;;  %vm2629_vm8 = vcmp.gt.f32.partialorder %v2559_v31, 0.0  ;;  %v2645_v35 = vmul.f32 0.2, %v2559_v31  ;;  %v2561_v36 = vpop.f32.mrb[13].mxu0  ;;  %v14007_v37 = vpack.c.bf16 %v2659_v32, %v2655_v18  ;;  %v2660_v38 = vsel %vm2628_vm7, %v2608_v20, %v2644_v28  ;;  %v2612_v39 = vpop.f32.mrb[12].mxu1 }
 0x38a   : > { %3478 = vmatmul.mubr.bf16.vlgmr.msra.gmra.mrb[16].mxu0 %v2669_v21  ;;  %3584 = vmatmul.mubr.bf16.vlgmr.msra.gmra.mrb[16].mxu1 %v2669_v21  ;;  %vm2630_vm9 = vcmp.gt.f32.partialorder %v2561_v36, 0.0  ;;  %v2646_v42 = vmul.f32 0.2, %v2561_v36  ;;  %v2563_v43 = vpop.f32.mrb[14].mxu0  ;;  %vm2631_vm10 = vcmp.gt.f32.partialorder %v2612_v39, 0.0  ;;  %v2614_v44 = vpop.f32.mrb[13].mxu1  ;;  %v2672_v45 = vpack.c.bf16 %v2660_v38, %v2656_v27 }
 0x38b   : > { %3499 = vmatpush1.bf16.msra.mxu0 %v12071_v25  ;;  %3605 = vmatpush1.bf16.msra.mxu1 %v12074_v26  ;;  %v2661_v46 = vsel %vm2629_vm8, %v2559_v31, %v2645_v35  ;;  %vm2633_vm11 = vcmp.gt.f32.partialorder %v2563_v43, 0.0  ;;  %v2649_v47 = vmul.f32 0.2, %v2563_v43  ;;  %v2565_v48 = vpop.f32.mrb[15].mxu0  ;;  %v2647_v49 = vmul.f32 0.2, %v2612_v39 }
 0x38c   : > { %3500 = vmatprep.subr.bf16.mxu0 %v12079_v29  ;;  %3606 = vmatprep.subr.bf16.mxu1 %v12082_v30  ;;  %v2662_v6 = vsel %vm2630_vm9, %v2561_v36, %v2646_v42  ;;  %vm2634_vm12 = vcmp.gt.f32.partialorder %v2565_v48, 0.0  ;;  %v2650_v50 = vmul.f32 0.2, %v2565_v48  ;;  %vm2632_vm13 = vcmp.gt.f32.partialorder %v2614_v44, 0.0  ;;  %v2616_v51 = vpop.f32.mrb[14].mxu1 }
 0x38d   : > { %v2665_v52 = vsel %vm2633_vm11, %v2563_v43, %v2649_v47  ;;  %v2663_v53 = vsel %vm2631_vm10, %v2612_v39, %v2647_v49  ;;  %v2648_v54 = vmul.f32 0.2, %v2614_v44  ;;  %vm2635_vm14 = vcmp.gt.f32.partialorder %v2616_v51, 0.0  ;;  %v2618_v55 = vpop.f32.mrb[15].mxu1  ;;  %v12103_v14 = vld [vmem:[#allocation9 + $0x2a4] ss:$16 sps:$4 sm:$0xff]  }
 0x38e   : > { %v2666_v56 = vsel %vm2634_vm12, %v2565_v48, %v2650_v50  ;;  %v2673_v57 = vpack.c.bf16 %v2665_v52, %v2661_v46  ;;  %v2651_v58 = vmul.f32 0.2, %v2616_v51  ;;  %vm2636_vm15 = vcmp.gt.f32.partialorder %v2618_v55, 0.0  ;;  %v12106_v15 = vld [vmem:[#allocation9 + $0x2ac] ss:$16 sps:$4 sm:$0xff]  }
 0x38f   : > { %3501 = vmatpush1.bf16.msra.mxu0 %v12077_v33  ;;  %3607 = vmatpush1.bf16.msra.mxu1 %v12080_v34  ;;  %v2674_v61 = vpack.c.bf16 %v2666_v56, %v2662_v6  ;;  %v2664_v62 = vsel %vm2632_vm13, %v2614_v44, %v2648_v54  ;;  %v2652_v63 = vmul.f32 0.2, %v2618_v55  ;;  %v12101_v16 = vld [vmem:[#allocation9 + $0x2a0] ss:$16 sps:$4 sm:$0xff]   ;;  %v12104_v13 = vld [vmem:[#allocation9 + $0x2a8] ss:$16 sps:$4 sm:$0xff]  }
 0x390   : > { %3502 = vmatprep.subr.bf16.mxu0 %v12085_v40  ;;  %3608 = vmatprep.subr.bf16.mxu1 %v12088_v41  ;;  %v2667_v2 = vsel %vm2635_vm14, %v2616_v51, %v2651_v58  ;;  %v12109_v17 = vld [vmem:[#allocation9 + $0x2c4] ss:$16 sps:$4 sm:$0xff]   ;;  %v12112_v18 = vld [vmem:[#allocation9 + $0x2cc] ss:$16 sps:$4 sm:$0xff]   ;;  %v12107_v19 = vld [vmem:[#allocation9 + $0x2c0] ss:$16 sps:$4 sm:$0xff]  }
 0x391   : > { %3487 = vmatprep.mubr.bf16.mxu0 %v2674_v61  ;;  %3593 = vmatprep.mubr.bf16.mxu1 %v2674_v61  ;;  %v2668_v3 = vsel %vm2636_vm15, %v2618_v55, %v2652_v63  ;;  %v14014_v4 = vpack.c.bf16 %v2667_v2, %v2663_v53  ;;  %v12110_v20 = vld [vmem:[#allocation9 + $0x2c8] ss:$16 sps:$4 sm:$0xff]   ;;  %v12115_v21 = vld [vmem:[#allocation9 + $0x2e4] ss:$16 sps:$4 sm:$0xff]   ;;  %v12118_v22 = vld [vmem:[#allocation9 + $0x2ec] ss:$16 sps:$4 sm:$0xff]  }
 0x392   : > { %3488 = vmatmul.mubr.bf16.gmra.mrb[20].mxu0 %v2673_v57  ;;  %3594 = vmatmul.mubr.bf16.gmra.mrb[20].mxu1 %v2673_v57  ;;  %v14016_v5 = vpack.c.bf16 %v2668_v3, %v2664_v62  ;;  %v12113_v23 = vld [vmem:[#allocation9 + $0x2e0] ss:$16 sps:$4 sm:$0xff]   ;;  %v12116_v24 = vld [vmem:[#allocation9 + $0x2e8] ss:$16 sps:$4 sm:$0xff]   ;;  %v12121_v25 = vld [vmem:[#allocation9 + $0x304] ss:$16 sps:$4 sm:$0xff]  }
 0x393   : > { %3503 = vmatpush1.bf16.msra.mxu0 %v12083_v59  ;;  %3609 = vmatpush1.bf16.msra.mxu1 %v12086_v60  ;;  %v12124_v26 = vld [vmem:[#allocation9 + $0x30c] ss:$16 sps:$4 sm:$0xff]   ;;  %v12119_v27 = vld [vmem:[#allocation9 + $0x300] ss:$16 sps:$4 sm:$0xff]   ;;  %v12122_v28 = vld [vmem:[#allocation9 + $0x308] ss:$16 sps:$4 sm:$0xff]  }
 0x394   : > { %3504 = vmatprep.subr.bf16.mxu0 %v12091_v0  ;;  %3610 = vmatprep.subr.bf16.mxu1 %v12094_v1  ;;  %v12127_v29 = vld [vmem:[#allocation9 + $0x324] ss:$16 sps:$4 sm:$0xff]   ;;  %v12130_v30 = vld [vmem:[#allocation9 + $0x32c] ss:$16 sps:$4 sm:$0xff]   ;;  %v12125_v31 = vld [vmem:[#allocation9 + $0x320] ss:$16 sps:$4 sm:$0xff]  }
 0x395   : > { %3530 = vmatprep.mubr.bf16.mxu0 %v2672_v45  ;;  %3636 = vmatprep.mubr.bf16.mxu1 %v2672_v45  ;;  %v12128_v32 = vld [vmem:[#allocation9 + $0x328] ss:$16 sps:$4 sm:$0xff]   ;;  %v12133_v33 = vld [vmem:[#allocation9 + $0x344] ss:$16 sps:$4 sm:$0xff]   ;;  %v12136_v34 = vld [vmem:[#allocation9 + $0x34c] ss:$16 sps:$4 sm:$0xff]  }
 0x396   : > { %v12131_v35 = vld [vmem:[#allocation9 + $0x340] ss:$16 sps:$4 sm:$0xff]   ;;  %v12134_v36 = vld [vmem:[#allocation9 + $0x348] ss:$16 sps:$4 sm:$0xff]   ;;  %v12139_v38 = vld [vmem:[#allocation9 + $0x364] ss:$16 sps:$4 sm:$0xff]  }
 0x397   : > { %3505 = vmatpush1.bf16.msra.mxu0 %v12089_v7  ;;  %3611 = vmatpush1.bf16.msra.mxu1 %v12092_v8  ;;  %v12142_v39 = vld [vmem:[#allocation9 + $0x36c] ss:$16 sps:$4 sm:$0xff]   ;;  %v12137_v40 = vld [vmem:[#allocation9 + $0x360] ss:$16 sps:$4 sm:$0xff]   ;;  %v12140_v41 = vld [vmem:[#allocation9 + $0x368] ss:$16 sps:$4 sm:$0xff]  }
 0x398   : > { %3506 = vmatprep.subr.bf16.mxu0 %v12097_v9  ;;  %3612 = vmatprep.subr.bf16.mxu1 %v12100_v10  ;;  %v12145_v42 = vld [vmem:[#allocation9 + $0x384] ss:$16 sps:$4 sm:$0xff]   ;;  %v12148_v43 = vld [vmem:[#allocation9 + $0x38c] ss:$16 sps:$4 sm:$0xff]   ;;  %v12143_v44 = vld [vmem:[#allocation9 + $0x380] ss:$16 sps:$4 sm:$0xff]  }
 0x399   : > { %v12146_v45 = vld [vmem:[#allocation9 + $0x388] ss:$16 sps:$4 sm:$0xff]   ;;  %v12151_v46 = vld [vmem:[#allocation9 + $0x3a4] ss:$16 sps:$4 sm:$0xff]   ;;  %v12154_v47 = vld [vmem:[#allocation9 + $0x3ac] ss:$16 sps:$4 sm:$0xff]  }
 0x39a   : > { %v12149_v48 = vld [vmem:[#allocation9 + $0x3a0] ss:$16 sps:$4 sm:$0xff]   ;;  %v12152_v49 = vld [vmem:[#allocation9 + $0x3a8] ss:$16 sps:$4 sm:$0xff]   ;;  %v12157_v6 = vld [vmem:[#allocation9 + $0x3c4] ss:$16 sps:$4 sm:$0xff]  }
 0x39b   : > { %3507 = vmatpush1.bf16.msra.mxu0 %v12095_v11  ;;  %3613 = vmatpush1.bf16.msra.mxu1 %v12098_v12  ;;  %v12160_v50 = vld [vmem:[#allocation9 + $0x3cc] ss:$16 sps:$4 sm:$0xff]   ;;  %v12155_v51 = vld [vmem:[#allocation9 + $0x3c0] ss:$16 sps:$4 sm:$0xff]   ;;  %v12158_v52 = vld [vmem:[#allocation9 + $0x3c8] ss:$16 sps:$4 sm:$0xff]  }
 0x39c   : > { %3508 = vmatprep.subr.bf16.mxu0 %v12103_v14  ;;  %3614 = vmatprep.subr.bf16.mxu1 %v12106_v15  ;;  %v12163_v53 = vld [vmem:[#allocation9 + $0x3e4] ss:$16 sps:$4 sm:$0xff]   ;;  %v12166_v54 = vld [vmem:[#allocation9 + $0x3ec] ss:$16 sps:$4 sm:$0xff]   ;;  %v12161_v55 = vld [vmem:[#allocation9 + $0x3e0] ss:$16 sps:$4 sm:$0xff]  }
 0x39d   : > { %v12164_v56 = vld [vmem:[#allocation9 + $0x3e8] ss:$16 sps:$4 sm:$0xff]  }
 0x39f   : > { %3509 = vmatpush1.bf16.msra.mxu0 %v12101_v16  ;;  %3615 = vmatpush1.bf16.msra.mxu1 %v12104_v13 }
 0x3a0   : > { %3510 = vmatprep.subr.bf16.mxu0 %v12109_v17  ;;  %3616 = vmatprep.subr.bf16.mxu1 %v12112_v18 }
 0x3a3   : > { %3511 = vmatpush1.bf16.msra.mxu0 %v12107_v19  ;;  %3617 = vmatpush1.bf16.msra.mxu1 %v12110_v20 }
 0x3a4   : > { %3512 = vmatprep.subr.bf16.mxu0 %v12115_v21  ;;  %3618 = vmatprep.subr.bf16.mxu1 %v12118_v22 }
 0x3a7   : > { %3513 = vmatpush1.bf16.msra.mxu0 %v12113_v23  ;;  %3619 = vmatpush1.bf16.msra.mxu1 %v12116_v24 }
 0x3a8   : > { %3514 = vmatprep.subr.bf16.mxu0 %v12121_v25  ;;  %3620 = vmatprep.subr.bf16.mxu1 %v12124_v26 }
 0x3ab   : > { %3515 = vmatpush1.bf16.msra.mxu0 %v12119_v27  ;;  %3621 = vmatpush1.bf16.msra.mxu1 %v12122_v28 }
 0x3ac   : > { %3516 = vmatprep.subr.bf16.mxu0 %v12127_v29  ;;  %3622 = vmatprep.subr.bf16.mxu1 %v12130_v30 }
 0x3af   : > { %3517 = vmatpush1.bf16.msra.mxu0 %v12125_v31  ;;  %3623 = vmatpush1.bf16.msra.mxu1 %v12128_v32 }
 0x3b0   : > { %3518 = vmatprep.subr.bf16.mxu0 %v12133_v33  ;;  %3624 = vmatprep.subr.bf16.mxu1 %v12136_v34 }
 0x3b3   : > { %3519 = vmatpush1.bf16.msra.mxu0 %v12131_v35  ;;  %3625 = vmatpush1.bf16.msra.mxu1 %v12134_v36 }
 0x3b4   : > { %3520 = vmatprep.subr.bf16.mxu0 %v12139_v38  ;;  %3626 = vmatprep.subr.bf16.mxu1 %v12142_v39 }
 0x3b7   : > { %3521 = vmatpush1.bf16.msra.mxu0 %v12137_v40  ;;  %3627 = vmatpush1.bf16.msra.mxu1 %v12140_v41 }
 0x3b8   : > { %3522 = vmatprep.subr.bf16.mxu0 %v12145_v42  ;;  %3628 = vmatprep.subr.bf16.mxu1 %v12148_v43 }
 0x3bb   : > { %3523 = vmatpush1.bf16.msra.mxu0 %v12143_v44  ;;  %3629 = vmatpush1.bf16.msra.mxu1 %v12146_v45 }
 0x3bc   : > { %3524 = vmatprep.subr.bf16.mxu0 %v12151_v46  ;;  %3630 = vmatprep.subr.bf16.mxu1 %v12154_v47 }
 0x3bf   : > { %3525 = vmatpush1.bf16.msra.mxu0 %v12149_v48  ;;  %3631 = vmatpush1.bf16.msra.mxu1 %v12152_v49 }
 0x3c0   : > { %3526 = vmatprep.subr.bf16.mxu0 %v12157_v6  ;;  %3632 = vmatprep.subr.bf16.mxu1 %v12160_v50 }
 0x3c3   : > { %3527 = vmatpush1.bf16.msra.mxu0 %v12155_v51  ;;  %3633 = vmatpush1.bf16.msra.mxu1 %v12158_v52 }
 0x3c4   : > { %3528 = vmatprep.subr.bf16.mxu0 %v12163_v53  ;;  %3634 = vmatprep.subr.bf16.mxu1 %v12166_v54 }
 0x3c7   : > { %3529 = vmatpush1.bf16.msra.mxu0 %v12161_v55  ;;  %3635 = vmatpush1.bf16.msra.mxu1 %v12164_v56 }
 0x3ca   : > { %3531 = vmatmul.mubr.bf16.vlgmr.msra.gmra.mrb[16].mxu0 %v14007_v37  ;;  %3637 = vmatmul.mubr.bf16.vlgmr.msra.gmra.mrb[16].mxu1 %v14007_v37 }
 0x3cb   : > { %3540 = vmatprep.mubr.bf16.mxu0 %v14016_v5  ;;  %3646 = vmatprep.mubr.bf16.mxu1 %v14016_v5 }
 0x3d2   : > { %3541 = vmatmul.mubr.bf16.gmra.mrb[20].mxu0 %v14014_v4  ;;  %3647 = vmatmul.mubr.bf16.gmra.mrb[20].mxu1 %v14014_v4 }
 0x49d   : > { %v3532_v57 = vpop.f32.mrb[16].mxu0  ;;  %v3638_v58 = vpop.f32.mrb[16].mxu1 }
 0x49e   : > { %vm3657_vm0 = vcmp.gt.f32.partialorder %v3532_v57, 0.0  ;;  %v3673_v59 = vmul.f32 0.2, %v3532_v57  ;;  %v3675_v60 = vmul.f32 0.2, %v3638_v58  ;;  %vm3659_vm1 = vcmp.gt.f32.partialorder %v3638_v58, 0.0 }
 0x49f   : > { %v3534_v61 = vpop.f32.mrb[17].mxu0  ;;  %v3640_v62 = vpop.f32.mrb[17].mxu1 }
 0x4a0   : > { %v3674_v63 = vmul.f32 0.2, %v3534_v61  ;;  %v3536_v0 = vpop.f32.mrb[18].mxu0  ;;  %v3642_v1 = vpop.f32.mrb[18].mxu1  ;;  %v3689_v37 = vsel %vm3657_vm0, %v3532_v57, %v3673_v59  ;;  %v3676_v2 = vmul.f32 0.2, %v3640_v62  ;;  %v3691_v5 = vsel %vm3659_vm1, %v3638_v58, %v3675_v60 }
 0x4a1   : > { %vm3661_vm2 = vcmp.gt.f32.partialorder %v3536_v0, 0.0  ;;  %v3677_v3 = vmul.f32 0.2, %v3536_v0  ;;  %vm3658_vm3 = vcmp.gt.f32.partialorder %v3534_v61, 0.0  ;;  %vm3663_vm4 = vcmp.gt.f32.partialorder %v3642_v1, 0.0  ;;  %v3538_v4 = vpop.f32.mrb[19].mxu0 }
 0x4a2   : > { %v3679_v7 = vmul.f32 0.2, %v3642_v1  ;;  %v3644_v8 = vpop.f32.mrb[19].mxu1  ;;  %vm3660_vm5 = vcmp.gt.f32.partialorder %v3640_v62, 0.0  ;;  %vm3662_vm6 = vcmp.gt.f32.partialorder %v3538_v4, 0.0  ;;  %v3690_v15 = vsel %vm3658_vm3, %v3534_v61, %v3674_v63 }
 0x4a3   : > { %v3693_v9 = vsel %vm3661_vm2, %v3536_v0, %v3677_v3  ;;  %v3678_v10 = vmul.f32 0.2, %v3538_v4  ;;  %vm3664_vm7 = vcmp.gt.f32.partialorder %v3644_v8, 0.0  ;;  %v3680_v14 = vmul.f32 0.2, %v3644_v8 }
 0x4a4   : > { %v3705_v11 = vpack.c.bf16 %v3693_v9, %v3689_v37  ;;  %v3695_v12 = vsel %vm3663_vm4, %v3642_v1, %v3679_v7  ;;  %v3692_v19 = vsel %vm3660_vm5, %v3640_v62, %v3676_v2 }
 0x4a5   : > { %v3707_v16 = vpack.c.bf16 %v3695_v12, %v3691_v5  ;;  %v3694_v13 = vsel %vm3662_vm6, %v3538_v4, %v3678_v10  ;;  %v3542_v17 = vpop.f32.mrb[20].mxu0  ;;  %v3648_v18 = vpop.f32.mrb[20].mxu1  ;;  %v3696_v21 = vsel %vm3664_vm7, %v3644_v8, %v3680_v14 }
 0x4a6   : > { %3713 = vst [vmem:[#allocation3] sm:$0xff] %v3705_v11  ;;  %v3706_v20 = vpack.c.bf16 %v3694_v13, %v3690_v15  ;;  %v3681_v22 = vmul.f32 0.2, %v3542_v17  ;;  %v3544_v23 = vpop.f32.mrb[21].mxu0  ;;  %v3650_v24 = vpop.f32.mrb[21].mxu1  ;;  %v3708_v25 = vpack.c.bf16 %v3696_v21, %v3692_v19  ;;  %vm3665_vm8 = vcmp.gt.f32.partialorder %v3542_v17, 0.0 }
 0x4a7   : > { %3715 = vst [vmem:[#allocation3 + $0x10] sm:$0xff] %v3707_v16  ;;  %v3683_v26 = vmul.f32 0.2, %v3648_v18  ;;  %v3546_v27 = vpop.f32.mrb[22].mxu0  ;;  %v3652_v28 = vpop.f32.mrb[22].mxu1  ;;  %vm3667_vm9 = vcmp.gt.f32.partialorder %v3648_v18, 0.0 }
 0x4a8   : > { %3714 = vst [vmem:[#allocation3 + $0x8] sm:$0xff] %v3706_v20  ;;  %v3682_v29 = vmul.f32 0.2, %v3544_v23  ;;  %v3684_v30 = vmul.f32 0.2, %v3650_v24  ;;  %v3548_v31 = vpop.f32.mrb[23].mxu0  ;;  %v3697_v34 = vsel %vm3665_vm8, %v3542_v17, %v3681_v22 }
 0x4a9   : > { %3716 = vst [vmem:[#allocation3 + $0x18] sm:$0xff] %v3708_v25  ;;  %vm3666_vm10 = vcmp.gt.f32.partialorder %v3544_v23, 0.0  ;;  %vm3669_vm11 = vcmp.gt.f32.partialorder %v3546_v27, 0.0  ;;  %v3685_v32 = vmul.f32 0.2, %v3546_v27  ;;  %vm3671_vm12 = vcmp.gt.f32.partialorder %v3652_v28, 0.0 }
 0x4aa   : > { %v3654_v33 = vpop.f32.mrb[23].mxu1  ;;  %vm3668_vm13 = vcmp.gt.f32.partialorder %v3650_v24, 0.0  ;;  %v3687_v35 = vmul.f32 0.2, %v3652_v28  ;;  %vm3670_vm14 = vcmp.gt.f32.partialorder %v3548_v31, 0.0  ;;  %v3699_v40 = vsel %vm3667_vm9, %v3648_v18, %v3683_v26 }
 0x4ab   : > { %v3701_v36 = vsel %vm3669_vm11, %v3546_v27, %v3685_v32  ;;  %v3686_v38 = vmul.f32 0.2, %v3548_v31  ;;  %vm3672_vm15 = vcmp.gt.f32.partialorder %v3654_v33, 0.0  ;;  %v3688_v39 = vmul.f32 0.2, %v3654_v33 }
 0x4ac   : > { %v3698_v41 = vsel %vm3666_vm10, %v3544_v23, %v3682_v29  ;;  %v3709_v42 = vpack.c.bf16 %v3701_v36, %v3697_v34  ;;  %v3703_v43 = vsel %vm3671_vm12, %v3652_v28, %v3687_v35  ;;  %v3700_v44 = vsel %vm3668_vm13, %v3650_v24, %v3684_v30 }
 0x4ad   : > { %v3711_v45 = vpack.c.bf16 %v3703_v43, %v3699_v40  ;;  %v3702_v46 = vsel %vm3670_vm14, %v3548_v31, %v3686_v38  ;;  %v3704_v47 = vsel %vm3672_vm15, %v3654_v33, %v3688_v39 }
 0x4ae   : > { %3717 = vst [vmem:[#allocation3 + $0x20] sm:$0xff] %v3709_v42  ;;  %v3710_v48 = vpack.c.bf16 %v3702_v46, %v3698_v41  ;;  %v3712_v49 = vpack.c.bf16 %v3704_v47, %v3700_v44 }
 0x4af   : > { %3719 = vst [vmem:[#allocation3 + $0x30] sm:$0xff] %v3711_v45 }
 0x4b0   : > { %3718 = vst [vmem:[#allocation3 + $0x28] sm:$0xff] %v3710_v48  ;;  %3720 = vst [vmem:[#allocation3 + $0x38] sm:$0xff] %v3712_v49 }
 0x4b1 PF: > { %v3726_v6 = vld [vmem:[#allocation3 + $0x8] sm:$0xff]  ;;  %v3725_v50 = vld [vmem:[#allocation3] sm:$0xff]  ;;  %v13589_v52 = vmov 0.0   ;;  %v3728_v55 = vld [vmem:[#allocation3 + $0x18] sm:$0xff]  ;;  %vm3765_vm0 = vcmask 261120   ;;  %s14953_s26 = sld [smem:[#allocation31_spill]] }
 0x4b2   : > { %11277 = vmatprep.subr.bf16.mxu0 %v3726_v6  ;;  %3842 = vmatprep.mubr.f32.mxu0 %v13589_v52  ;;  %v3722_v54 = vld [vmem:[#allocation2 + $0x8] sm:$0xff]  ;;  %v3727_v56 = vld [vmem:[#allocation3 + $0x10] sm:$0xff]  ;;  %v3761_v58 = vld [vmem:[#allocation10] sm:$0xff]  ;;  %vm3968_vm1 = vcmask 130048   ;;  %s11275_s12 = sshll.u32 %s13678_s25, 3  ;;  %p11206_p2 = scmp.ne.s32.totalorder %s13678_s25, 3 }
 0x4b3   : > { %11279 = vmatpush1.bf16.msra.mxu0 %v3725_v50  ;;  %3931 = vmatprep.mubr.f32.mxu1 %v13589_v52  ;;  %v3721_v59 = vld [vmem:[#allocation2] sm:$0xff]  ;;  %v3724_v61 = vld [vmem:[#allocation2 + $0x18] sm:$0xff]  ;;  %v3762_v62 = vld [vmem:[#allocation10 + $0x8] sm:$0xff]  ;;  %s3735_s29 = scalar_lea.vmem [#allocation15], %s11275_s12 }
 0x4b4   : > { %11285 = vmatprep.subr.bf16.mxu1 %v3728_v55  ;;  %v3723_v63 = vld [vmem:[#allocation2 + $0x10] sm:$0xff]  ;;  %v3764_v1 = vld [vmem:[#allocation10 + $0x18] sm:$0xff]  ;;  %v4167_v8 = vld [vmem:[#allocation12] sm:$0xff] }
 0x4b5   : > { %v3729_v53 = vld [vmem:[#allocation3 + $0x20] sm:$0xff]  ;;  %11287 = vmatpush1.bf16.msra.mxu1 %v3727_v56  ;;  %v3763_v0 = vld [vmem:[#allocation10 + $0x10] sm:$0xff]  ;;  %v12172_v5 = vld [vmem:[%s13966_s21 + $0x40c] ss:$16 sps:$4 sm:$0xff]  }
 0x4b6   : > { %v3731_v60 = vld [vmem:[#allocation3 + $0x30] sm:$0xff]  ;;  %v4168_v11 = vld [vmem:[#allocation12 + $0x8] sm:$0xff] }
 0x4b7   : > { %v3730_v51 = vld [vmem:[#allocation3 + $0x28] sm:$0xff]  ;;  %v3732_v57 = vld [vmem:[#allocation3 + $0x38] sm:$0xff]  ;;  %v3964_v37 = vld [vmem:[%s14953_s26] sm:$0xff] }
 0x4b8   : > { %11281 = vmatprep.subr.bf16.mxu0 %v3730_v51  ;;  %11289 = vmatprep.subr.bf16.mxu1 %v3732_v57  ;;  %v12169_v2 = vld [vmem:[%s13966_s21 + $0x404] ss:$16 sps:$4 sm:$0xff]   ;;  %v3965_v3 = vld [vmem:[%s14953_s26 + $0x8] sm:$0xff]  ;;  %v3967_v4 = vld [vmem:[%s14953_s26 + $0x18] sm:$0xff] }
 0x4b9   : > { %11283 = vmatpush1.bf16.msra.mxu0 %v3729_v53  ;;  %11291 = vmatpush1.bf16.msra.mxu1 %v3731_v60  ;;  %v3966_v7 = vld [vmem:[%s14953_s26 + $0x10] sm:$0xff]  ;;  %v12170_v12 = vld [vmem:[%s13966_s21 + $0x408] ss:$16 sps:$4 sm:$0xff]   ;;  %v12178_v15 = vld [vmem:[%s13966_s21 + $0x42c] ss:$16 sps:$4 sm:$0xff]  }
 0x4ba   : > { %11293 = vmatprep.subr.bf16.mxu0 %v3722_v54  ;;  %11297 = vmatprep.subr.bf16.mxu1 %v3724_v61  ;;  %v12167_v9 = vld [vmem:[%s13966_s21 + $0x400] ss:$16 sps:$4 sm:$0xff]   ;;  %v12175_v10 = vld [vmem:[%s13966_s21 + $0x424] ss:$16 sps:$4 sm:$0xff]   ;;  %v12176_v13 = vld [vmem:[%s13966_s21 + $0x428] ss:$16 sps:$4 sm:$0xff]  }
 0x4bb   : > { %v12173_v14 = vld [vmem:[%s13966_s21 + $0x420] ss:$16 sps:$4 sm:$0xff]   ;;  %v12181_v16 = vld [vmem:[%s13966_s21 + $0x444] ss:$16 sps:$4 sm:$0xff]   ;;  %v12184_v18 = vld [vmem:[%s13966_s21 + $0x44c] ss:$16 sps:$4 sm:$0xff]  }
 0x4bc   : > { %10546 = vmatmul.mubr.msk.f32.vlgmr.msra.gmra.mrb[0].mxu0 %vm3765_vm0, %v3761_v58  ;;  %10550 = vmatmul.mubr.msk.f32.vlgmr.msra.gmra.mrb[0].mxu1 %vm3765_vm0, %v3761_v58  ;;  %v12179_v17 = vld [vmem:[%s13966_s21 + $0x440] ss:$16 sps:$4 sm:$0xff]   ;;  %v12187_v19 = vld [vmem:[%s13966_s21 + $0x464] ss:$16 sps:$4 sm:$0xff]   ;;  %v12182_v20 = vld [vmem:[%s13966_s21 + $0x448] ss:$16 sps:$4 sm:$0xff]  }
 0x4bd   : > { %11295 = vmatpush1.bf16.msra.mxu0 %v3721_v59  ;;  %3848 = vmatprep.mubr.f32.mxu0 %v13589_v52  ;;  %v12185_v21 = vld [vmem:[%s13966_s21 + $0x460] ss:$16 sps:$4 sm:$0xff]   ;;  %v12190_v22 = vld [vmem:[%s13966_s21 + $0x46c] ss:$16 sps:$4 sm:$0xff]   ;;  %v12193_v23 = vld [vmem:[%s13966_s21 + $0x484] ss:$16 sps:$4 sm:$0xff]  }
 0x4be   : > { %11301 = vmatprep.subr.bf16.mxu0 %v3722_v54  ;;  %3937 = vmatprep.mubr.f32.mxu1 %v13589_v52  ;;  %v12188_v24 = vld [vmem:[%s13966_s21 + $0x468] ss:$16 sps:$4 sm:$0xff]   ;;  %v12191_v25 = vld [vmem:[%s13966_s21 + $0x480] ss:$16 sps:$4 sm:$0xff]   ;;  %v12196_v26 = vld [vmem:[%s13966_s21 + $0x48c] ss:$16 sps:$4 sm:$0xff]  }
 0x4bf   : > { %11299 = vmatpush1.bf16.msra.mxu1 %v3723_v63  ;;  %v12199_v27 = vld [vmem:[%s13966_s21 + $0x4a4] ss:$16 sps:$4 sm:$0xff]   ;;  %v12194_v28 = vld [vmem:[%s13966_s21 + $0x488] ss:$16 sps:$4 sm:$0xff]   ;;  %v12197_v29 = vld [vmem:[%s13966_s21 + $0x4a0] ss:$16 sps:$4 sm:$0xff]  }
 0x4c0   : > { %10547 = vmatmul.mubr.msk.f32.gmra.mrb[2].mxu0 %vm3765_vm0, %v3762_v62  ;;  %11305 = vmatprep.subr.bf16.mxu1 %v3724_v61  ;;  %v12202_v30 = vld [vmem:[%s13966_s21 + $0x4ac] ss:$16 sps:$4 sm:$0xff]   ;;  %v12205_v31 = vld [vmem:[%s13966_s21 + $0x4c4] ss:$16 sps:$4 sm:$0xff]   ;;  %v12200_v32 = vld [vmem:[%s13966_s21 + $0x4a8] ss:$16 sps:$4 sm:$0xff]  }
 0x4c1   : > { %3854 = vmatprep.mubr.f32.mxu0 %v13589_v52  ;;  %10551 = vmatmul.mubr.msk.f32.gmra.mrb[2].mxu1 %vm3765_vm0, %v3762_v62  ;;  %v12203_v33 = vld [vmem:[%s13966_s21 + $0x4c0] ss:$16 sps:$4 sm:$0xff]   ;;  %v12208_v34 = vld [vmem:[%s13966_s21 + $0x4cc] ss:$16 sps:$4 sm:$0xff]   ;;  %v12211_v35 = vld [vmem:[%s13966_s21 + $0x4e4] ss:$16 sps:$4 sm:$0xff]  }
 0x4c2   : > { %3943 = vmatprep.mubr.f32.mxu1 %v13589_v52  ;;  %v12206_v36 = vld [vmem:[%s13966_s21 + $0x4c8] ss:$16 sps:$4 sm:$0xff]   ;;  %v12209_v38 = vld [vmem:[%s13966_s21 + $0x4e0] ss:$16 sps:$4 sm:$0xff]   ;;  %v12214_v39 = vld [vmem:[%s13966_s21 + $0x4ec] ss:$16 sps:$4 sm:$0xff]  }
 0x4c3   : > { %v12217_v40 = vld [vmem:[%s13966_s21 + $0x504] ss:$16 sps:$4 sm:$0xff]   ;;  %v12212_v41 = vld [vmem:[%s13966_s21 + $0x4e8] ss:$16 sps:$4 sm:$0xff]   ;;  %v12215_v42 = vld [vmem:[%s13966_s21 + $0x500] ss:$16 sps:$4 sm:$0xff]  }
 0x4c4   : > { %10548 = vmatmul.mubr.msk.f32.gmra.mrb[4].mxu0 %vm3765_vm0, %v3763_v0  ;;  %v12220_v43 = vld [vmem:[%s13966_s21 + $0x50c] ss:$16 sps:$4 sm:$0xff]   ;;  %v12223_v44 = vld [vmem:[%s13966_s21 + $0x524] ss:$16 sps:$4 sm:$0xff]   ;;  %v12218_v45 = vld [vmem:[%s13966_s21 + $0x508] ss:$16 sps:$4 sm:$0xff]  }
 0x4c5   : > { %3860 = vmatprep.mubr.f32.mxu0 %v13589_v52  ;;  %10552 = vmatmul.mubr.msk.f32.gmra.mrb[4].mxu1 %vm3765_vm0, %v3763_v0  ;;  %v12221_v46 = vld [vmem:[%s13966_s21 + $0x520] ss:$16 sps:$4 sm:$0xff]   ;;  %v12226_v47 = vld [vmem:[%s13966_s21 + $0x52c] ss:$16 sps:$4 sm:$0xff]   ;;  %v12224_v48 = vld [vmem:[%s13966_s21 + $0x528] ss:$16 sps:$4 sm:$0xff]  }
 0x4c6   : > { %3949 = vmatprep.mubr.f32.mxu1 %v13589_v52  ;;  %v12229_v49 = vld [vmem:[%s13966_s21 + $0x544] ss:$16 sps:$4 sm:$0xff]   ;;  %v12232_v6 = vld [vmem:[%s13966_s21 + $0x54c] ss:$16 sps:$4 sm:$0xff]   ;;  %v12227_v50 = vld [vmem:[%s13966_s21 + $0x540] ss:$16 sps:$4 sm:$0xff]  }
 0x4c7   : > { %v12230_v51 = vld [vmem:[%s13966_s21 + $0x548] ss:$16 sps:$4 sm:$0xff]   ;;  %v12238_v53 = vld [vmem:[%s13966_s21 + $0x56c] ss:$16 sps:$4 sm:$0xff]   ;;  %v12233_v54 = vld [vmem:[%s13966_s21 + $0x560] ss:$16 sps:$4 sm:$0xff]  }
 0x4c8   : > { %10549 = vmatmul.mubr.msk.f32.gmra.mrb[6].mxu0 %vm3765_vm0, %v3764_v1  ;;  %v12236_v55 = vld [vmem:[%s13966_s21 + $0x568] ss:$16 sps:$4 sm:$0xff]   ;;  %v12241_v56 = vld [vmem:[%s13966_s21 + $0x584] ss:$16 sps:$4 sm:$0xff]   ;;  %v12244_v57 = vld [vmem:[%s13966_s21 + $0x58c] ss:$16 sps:$4 sm:$0xff]  }
 0x4c9   : > { %4045 = vmatprep.mubr.f32.mxu0 %v13589_v52  ;;  %10553 = vmatmul.mubr.msk.f32.gmra.mrb[6].mxu1 %vm3765_vm0, %v3764_v1  ;;  %v12239_v58 = vld [vmem:[%s13966_s21 + $0x580] ss:$16 sps:$4 sm:$0xff]   ;;  %v12247_v60 = vld [vmem:[%s13966_s21 + $0x5a4] ss:$16 sps:$4 sm:$0xff]   ;;  %v12250_v61 = vld [vmem:[%s13966_s21 + $0x5ac] ss:$16 sps:$4 sm:$0xff]  }
 0x4ca   : > { %4134 = vmatprep.mubr.f32.mxu1 %v13589_v52  ;;  %v12245_v62 = vld [vmem:[%s13966_s21 + $0x5a0] ss:$16 sps:$4 sm:$0xff]   ;;  %v12253_v0 = vld [vmem:[%s13966_s21 + $0x5c4] ss:$16 sps:$4 sm:$0xff]   ;;  %v12256_v1 = vld [vmem:[%s13966_s21 + $0x5cc] ss:$16 sps:$4 sm:$0xff]  }
 0x4cc   : > { %10554 = vmatmul.mubr.msk.f32.vlgmr.msra.gmra.mrb[8].mxu0 %vm3968_vm1, %v3964_v37 }
 0x4cd   : > { %4051 = vmatprep.mubr.f32.mxu0 %v13589_v52  ;;  %11303 = vmatpush1.bf16.msra.mxu0 %v3721_v59  ;;  %v12242_v59 = vld [vmem:[%s13966_s21 + $0x588] ss:$16 sps:$4 sm:$0xff]  }
 0x4ce   : > { %5229 = vmatprep.subr.bf16.mxu0 %v12169_v2  ;;  %10558 = vmatmul.mubr.msk.f32.vlgmr.msra.gmra.mrb[8].mxu1 %vm3968_vm1, %v3964_v37  ;;  %v12251_v37 = vld [vmem:[%s13966_s21 + $0x5c0] ss:$16 sps:$4 sm:$0xff]   ;;  %v12254_v2 = vld [vmem:[%s13966_s21 + $0x5c8] ss:$16 sps:$4 sm:$0xff]  }
 0x4cf   : > { %4140 = vmatprep.mubr.f32.mxu1 %v13589_v52  ;;  %11307 = vmatpush1.bf16.msra.mxu1 %v3723_v63  ;;  %v12248_v63 = vld [vmem:[%s13966_s21 + $0x5a8] ss:$16 sps:$4 sm:$0xff]  }
 0x4d0   : > { %10555 = vmatmul.mubr.msk.f32.gmra.mrb[10].mxu0 %vm3968_vm1, %v3965_v3  ;;  %5335 = vmatprep.subr.bf16.mxu1 %v12172_v5  ;;  %v12262_v5 = vld [vmem:[%s13966_s21 + $0x5ec] ss:$16 sps:$4 sm:$0xff]  }
 0x4d1   : > { %4057 = vmatprep.mubr.f32.mxu0 %v13589_v52 }
 0x4d2   : > { %10559 = vmatmul.mubr.msk.f32.gmra.mrb[10].mxu1 %vm3968_vm1, %v3965_v3  ;;  %v12259_v3 = vld [vmem:[%s13966_s21 + $0x5e4] ss:$16 sps:$4 sm:$0xff]  }
 0x4d3   : > { %4146 = vmatprep.mubr.f32.mxu1 %v13589_v52 }
 0x4d4   : > { %10556 = vmatmul.mubr.msk.f32.gmra.mrb[12].mxu0 %vm3968_vm1, %v3966_v7 }
 0x4d5   : > { %4063 = vmatprep.mubr.f32.mxu0 %v13589_v52 }
 0x4d6   : > { %10560 = vmatmul.mubr.msk.f32.gmra.mrb[12].mxu1 %vm3968_vm1, %v3966_v7  ;;  %v12257_v7 = vld [vmem:[%s13966_s21 + $0x5e0] ss:$16 sps:$4 sm:$0xff]  }
 0x4d7   : > { %4152 = vmatprep.mubr.f32.mxu1 %v13589_v52 }
 0x4d8   : > { %10557 = vmatmul.mubr.msk.f32.gmra.mrb[14].mxu0 %vm3968_vm1, %v3967_v4 }
 0x4d9   : > { %4239 = vmatprep.mubr.f32.mxu0 %v13589_v52 }
 0x4da   : > { %10561 = vmatmul.mubr.msk.f32.gmra.mrb[14].mxu1 %vm3968_vm1, %v3967_v4  ;;  %v12260_v4 = vld [vmem:[%s13966_s21 + $0x5e8] ss:$16 sps:$4 sm:$0xff]  }
 0x4db   : > { %4316 = vmatprep.mubr.f32.mxu1 %v13589_v52 }
 0x4dc   : > { %10562 = vmatmul.mubr.msk.f32.vlgmr.msra.gmra.mrb[16].mxu0 %vm3968_vm1, %v4167_v8 }
 0x4dd   : > { %4245 = vmatprep.mubr.f32.mxu0 %v13589_v52  ;;  %5230 = vmatpush1.bf16.msra.mxu0 %v12167_v9  ;;  %v12268_v9 = vld [vmem:[%s13966_s21 + $0x60c] ss:$16 sps:$4 sm:$0xff]  }
 0x4de   : > { %5231 = vmatprep.subr.bf16.mxu0 %v12175_v10  ;;  %10564 = vmatmul.mubr.msk.f32.vlgmr.msra.gmra.mrb[16].mxu1 %vm3968_vm1, %v4167_v8  ;;  %v12265_v8 = vld [vmem:[%s13966_s21 + $0x604] ss:$16 sps:$4 sm:$0xff]  }
 0x4df   : > { %4322 = vmatprep.mubr.f32.mxu1 %v13589_v52  ;;  %5336 = vmatpush1.bf16.msra.mxu1 %v12170_v12  ;;  %v12235_v52 = vld [vmem:[%s13966_s21 + $0x564] ss:$16 sps:$4 sm:$0xff]  }
 0x4e0   : > { %10563 = vmatmul.mubr.msk.f32.gmra.mrb[18].mxu0 %vm3968_vm1, %v4168_v11  ;;  %5337 = vmatprep.subr.bf16.mxu1 %v12178_v15 }
 0x4e1   : > { %5232 = vmatpush1.bf16.msra.mxu0 %v12173_v14 }
 0x4e2   : > { %5233 = vmatprep.subr.bf16.mxu0 %v12181_v16  ;;  %10565 = vmatmul.mubr.msk.f32.gmra.mrb[18].mxu1 %vm3968_vm1, %v4168_v11 }
 0x4e3   : > { %5338 = vmatpush1.bf16.msra.mxu1 %v12176_v13 }
 0x4e4   : > { %5339 = vmatprep.subr.bf16.mxu1 %v12184_v18 }
 0x4e5   : > { %5234 = vmatpush1.bf16.msra.mxu0 %v12179_v17 }
 0x4e6   : > { %5235 = vmatprep.subr.bf16.mxu0 %v12187_v19 }
 0x4e7   : > { %5340 = vmatpush1.bf16.msra.mxu1 %v12182_v20 }
 0x4e8   : > { %5341 = vmatprep.subr.bf16.mxu1 %v12190_v22 }
 0x4e9   : > { %5236 = vmatpush1.bf16.msra.mxu0 %v12185_v21 }
 0x4ea   : > { %5237 = vmatprep.subr.bf16.mxu0 %v12193_v23 }
 0x4eb   : > { %5342 = vmatpush1.bf16.msra.mxu1 %v12188_v24 }
 0x4ec   : > { %5343 = vmatprep.subr.bf16.mxu1 %v12196_v26 }
 0x4ed   : > { %5238 = vmatpush1.bf16.msra.mxu0 %v12191_v25 }
 0x4ee   : > { %5239 = vmatprep.subr.bf16.mxu0 %v12199_v27 }
 0x4ef   : > { %5344 = vmatpush1.bf16.msra.mxu1 %v12194_v28 }
 0x4f0   : > { %5345 = vmatprep.subr.bf16.mxu1 %v12202_v30 }
 0x4f1   : > { %5240 = vmatpush1.bf16.msra.mxu0 %v12197_v29 }
 0x4f2   : > { %5241 = vmatprep.subr.bf16.mxu0 %v12205_v31 }
 0x4f3   : > { %5346 = vmatpush1.bf16.msra.mxu1 %v12200_v32 }
 0x4f4   : > { %5347 = vmatprep.subr.bf16.mxu1 %v12208_v34 }
 0x4f5   : > { %5242 = vmatpush1.bf16.msra.mxu0 %v12203_v33 }
 0x4f6   : > { %5243 = vmatprep.subr.bf16.mxu0 %v12211_v35 }
 0x4f7   : > { %5348 = vmatpush1.bf16.msra.mxu1 %v12206_v36 }
 0x4f8   : > { %5349 = vmatprep.subr.bf16.mxu1 %v12214_v39  ;;  %v12266_v39 = vld [vmem:[%s13966_s21 + $0x608] ss:$16 sps:$4 sm:$0xff]  }
 0x4f9   : > { %5244 = vmatpush1.bf16.msra.mxu0 %v12209_v38  ;;  %v12263_v38 = vld [vmem:[%s13966_s21 + $0x600] ss:$16 sps:$4 sm:$0xff]  }
 0x4fa   : > { %5245 = vmatprep.subr.bf16.mxu0 %v12217_v40 }
 0x4fb   : > { %5350 = vmatpush1.bf16.msra.mxu1 %v12212_v41 }
 0x4fc   : > { %5351 = vmatprep.subr.bf16.mxu1 %v12220_v43  ;;  %v12274_v43 = vld [vmem:[%s13966_s21 + $0x62c] ss:$16 sps:$4 sm:$0xff]  }
 0x4fd   : > { %5246 = vmatpush1.bf16.msra.mxu0 %v12215_v42  ;;  %v12271_v42 = vld [vmem:[%s13966_s21 + $0x624] ss:$16 sps:$4 sm:$0xff]  }
 0x4fe   : > { %5247 = vmatprep.subr.bf16.mxu0 %v12223_v44 }
 0x4ff   : > { %5352 = vmatpush1.bf16.msra.mxu1 %v12218_v45 }
 0x500   : > { %5353 = vmatprep.subr.bf16.mxu1 %v12226_v47  ;;  %v12269_v47 = vld [vmem:[%s13966_s21 + $0x620] ss:$16 sps:$4 sm:$0xff]  }
 0x501   : > { %5248 = vmatpush1.bf16.msra.mxu0 %v12221_v46 }
 0x502   : > { %5249 = vmatprep.subr.bf16.mxu0 %v12229_v49 }
 0x503   : > { %5354 = vmatpush1.bf16.msra.mxu1 %v12224_v48  ;;  %v12272_v48 = vld [vmem:[%s13966_s21 + $0x628] ss:$16 sps:$4 sm:$0xff]  }
 0x504   : > { %5355 = vmatprep.subr.bf16.mxu1 %v12232_v6  ;;  %v12277_v6 = vld [vmem:[%s13966_s21 + $0x644] ss:$16 sps:$4 sm:$0xff]  }
 0x505   : > { %5250 = vmatpush1.bf16.msra.mxu0 %v12227_v50  ;;  %v12280_v50 = vld [vmem:[%s13966_s21 + $0x64c] ss:$16 sps:$4 sm:$0xff]  }
 0x506   : > { %5251 = vmatprep.subr.bf16.mxu0 %v12235_v52 }
 0x507   : > { %5356 = vmatpush1.bf16.msra.mxu1 %v12230_v51 }
 0x508   : > { %5357 = vmatprep.subr.bf16.mxu1 %v12238_v53 }
 0x509   : > { %5252 = vmatpush1.bf16.msra.mxu0 %v12233_v54 }
 0x50a   : > { %5253 = vmatprep.subr.bf16.mxu0 %v12241_v56  ;;  %v12275_v56 = vld [vmem:[%s13966_s21 + $0x640] ss:$16 sps:$4 sm:$0xff]  }
 0x50b   : > { %5358 = vmatpush1.bf16.msra.mxu1 %v12236_v55 }
 0x50c   : > { %5359 = vmatprep.subr.bf16.mxu1 %v12244_v57  ;;  %v12278_v57 = vld [vmem:[%s13966_s21 + $0x648] ss:$16 sps:$4 sm:$0xff]  }
 0x50d   : > { %5254 = vmatpush1.bf16.msra.mxu0 %v12239_v58 }
 0x50e   : > { %5255 = vmatprep.subr.bf16.mxu0 %v12247_v60  ;;  %v12286_v60 = vld [vmem:[%s13966_s21 + $0x66c] ss:$16 sps:$4 sm:$0xff]  }
 0x50f   : > { %5360 = vmatpush1.bf16.msra.mxu1 %v12242_v59  ;;  %v12283_v59 = vld [vmem:[%s13966_s21 + $0x664] ss:$16 sps:$4 sm:$0xff]  }
 0x510   : > { %5361 = vmatprep.subr.bf16.mxu1 %v12250_v61 }
 0x511   : > { %5256 = vmatpush1.bf16.msra.mxu0 %v12245_v62 }
 0x512   : > { %5257 = vmatprep.subr.bf16.mxu0 %v12253_v0 }
 0x513   : > { %5362 = vmatpush1.bf16.msra.mxu1 %v12248_v63 }
 0x514   : > { %5363 = vmatprep.subr.bf16.mxu1 %v12256_v1 }
 0x515   : > { %5258 = vmatpush1.bf16.msra.mxu0 %v12251_v37  ;;  %v12281_v37 = vld [vmem:[%s13966_s21 + $0x660] ss:$16 sps:$4 sm:$0xff]  }
 0x516   : > { %5259 = vmatprep.subr.bf16.mxu0 %v12259_v3 }
 0x517   : > { %5364 = vmatpush1.bf16.msra.mxu1 %v12254_v2  ;;  %v12284_v2 = vld [vmem:[%s13966_s21 + $0x668] ss:$16 sps:$4 sm:$0xff]  }
 0x518   : > { %5365 = vmatprep.subr.bf16.mxu1 %v12262_v5  ;;  %v12289_v5 = vld [vmem:[%s13966_s21 + $0x684] ss:$16 sps:$4 sm:$0xff]  }
 0x519   : > { %5260 = vmatpush1.bf16.msra.mxu0 %v12257_v7  ;;  %v12292_v7 = vld [vmem:[%s13966_s21 + $0x68c] ss:$16 sps:$4 sm:$0xff]  }
 0x51a   : > { %5282 = vmatprep.subr.bf16.mxu0 %v12265_v8 }
 0x51b   : > { %5366 = vmatpush1.bf16.msra.mxu1 %v12260_v4 }
 0x51c   : > { %5388 = vmatprep.subr.bf16.mxu1 %v12268_v9 }
 0x58f   : > { %v3844_v10 = vpop.f32.mrb[0].mxu0  ;;  %v3933_v16 = vpop.f32.mrb[0].mxu1 }
 0x590   : > { %v3846_v11 = vpop.f32.mrb[1].mxu0  ;;  %v3935_v17 = vpop.f32.mrb[1].mxu1 }
 0x593   : > { %v3850_v12 = vpop.f32.mrb[2].mxu0 }
 0x594   : > { %v14143_v14 = vpack.c.bf16 %v3850_v12, %v3844_v10  ;;  %v3852_v15 = vpop.f32.mrb[3].mxu0  ;;  %v3939_v20 = vpop.f32.mrb[2].mxu1  ;;  %v12287_v10 = vld [vmem:[%s13966_s21 + $0x680] ss:$16 sps:$4 sm:$0xff]   ;;  %v12295_v12 = vld [vmem:[%s13966_s21 + $0x6a4] ss:$16 sps:$4 sm:$0xff]  }
 0x595   : > { %v14145_v13 = vpack.c.bf16 %v3852_v15, %v3846_v11  ;;  %v14147_v21 = vpack.c.bf16 %v3939_v20, %v3933_v16  ;;  %v3941_v22 = vpop.f32.mrb[3].mxu1  ;;  %v12290_v11 = vld [vmem:[%s13966_s21 + $0x688] ss:$16 sps:$4 sm:$0xff]   ;;  %v12298_v15 = vld [vmem:[%s13966_s21 + $0x6ac] ss:$16 sps:$4 sm:$0xff]  }
 0x596   : > { %v14149_v23 = vpack.c.bf16 %v3941_v22, %v3935_v17  ;;  %v12293_v16 = vld [vmem:[%s13966_s21 + $0x6a0] ss:$16 sps:$4 sm:$0xff]   ;;  %v12296_v17 = vld [vmem:[%s13966_s21 + $0x6a8] ss:$16 sps:$4 sm:$0xff]  }
 0x597   : > { %v3856_v18 = vpop.f32.mrb[4].mxu0  ;;  %v12299_v20 = vld [vmem:[%s13966_s21 + $0x6c0] ss:$16 sps:$4 sm:$0xff]   ;;  %v12302_v22 = vld [vmem:[%s13966_s21 + $0x6c8] ss:$16 sps:$4 sm:$0xff]  }
 0x598   : > { %v3858_v19 = vpop.f32.mrb[5].mxu0  ;;  %v3945_v27 = vpop.f32.mrb[4].mxu1 }
 0x599   : > { %v3947_v29 = vpop.f32.mrb[5].mxu1 }
 0x59b   : > { %v3862_v24 = vpop.f32.mrb[6].mxu0 }
 0x59c   : > { %v14151_v25 = vpack.c.bf16 %v3862_v24, %v3856_v18  ;;  %v3864_v26 = vpop.f32.mrb[7].mxu0  ;;  %v3951_v32 = vpop.f32.mrb[6].mxu1  ;;  %v12301_v18 = vld [vmem:[%s13966_s21 + $0x6c4] ss:$16 sps:$4 sm:$0xff]  }
 0x59d   : > { %v14153_v28 = vpack.c.bf16 %v3864_v26, %v3858_v19  ;;  %v14155_v33 = vpack.c.bf16 %v3951_v32, %v3945_v27  ;;  %v3953_v34 = vpop.f32.mrb[7].mxu1  ;;  %v12304_v19 = vld [vmem:[%s13966_s21 + $0x6cc] ss:$16 sps:$4 sm:$0xff]   ;;  %v12307_v27 = vld [vmem:[%s13966_s21 + $0x6e4] ss:$16 sps:$4 sm:$0xff]  }
 0x59e   : > { %v14157_v35 = vpack.c.bf16 %v3953_v34, %v3947_v29  ;;  %v12310_v29 = vld [vmem:[%s13966_s21 + $0x6ec] ss:$16 sps:$4 sm:$0xff]  }
 0x59f   : > { %v4047_v30 = vpop.f32.mrb[8].mxu0 }
 0x5a0   : > { %v4049_v31 = vpop.f32.mrb[9].mxu0 }
 0x5a1   : > { %v4136_v44 = vpop.f32.mrb[8].mxu1 }
 0x5a2   : > { %v4138_v46 = vpop.f32.mrb[9].mxu1 }
 0x5a3   : > { %v4053_v36 = vpop.f32.mrb[10].mxu0 }
 0x5a4   : > { %v4159_v40 = vpack.c.bf16 %v4053_v36, %v4047_v30  ;;  %v4055_v41 = vpop.f32.mrb[11].mxu0 }
 0x5a5   : > { %v4160_v45 = vpack.c.bf16 %v4055_v41, %v4049_v31  ;;  %v4142_v52 = vpop.f32.mrb[10].mxu1  ;;  %v12305_v41 = vld [vmem:[%s13966_s21 + $0x6e0] ss:$16 sps:$4 sm:$0xff]  }
 0x5a6   : > { %v14167_v53 = vpack.c.bf16 %v4142_v52, %v4136_v44  ;;  %v4144_v54 = vpop.f32.mrb[11].mxu1  ;;  %v12325_v52 = vld [vmem:[%s13966_s21 + $0x744] ss:$16 sps:$4 sm:$0xff]  }
 0x5a7   : > { %5261 = vmatprep.mubr.bf16.mxu0 %v4160_v45  ;;  %5367 = vmatprep.mubr.bf16.mxu1 %v4160_v45  ;;  %v4059_v49 = vpop.f32.mrb[12].mxu0  ;;  %v4162_v55 = vpack.c.bf16 %v4144_v54, %v4138_v46  ;;  %v12313_v45 = vld [vmem:[%s13966_s21 + $0x704] ss:$16 sps:$4 sm:$0xff]   ;;  %v12316_v46 = vld [vmem:[%s13966_s21 + $0x70c] ss:$16 sps:$4 sm:$0xff]  }
 0x5a8   : > { %5262 = vmatmul.mubr.bf16.vlgmr.msra.gmra.mrb[20].mxu0 %v4159_v40  ;;  %5368 = vmatmul.mubr.bf16.vlgmr.msra.gmra.mrb[20].mxu1 %v4159_v40  ;;  %v4061_v51 = vpop.f32.mrb[13].mxu0  ;;  %v12328_v54 = vld [vmem:[%s13966_s21 + $0x74c] ss:$16 sps:$4 sm:$0xff]  }
 0x5a9   : > { %5283 = vmatpush1.bf16.msra.mxu0 %v12263_v38  ;;  %5389 = vmatpush1.bf16.msra.mxu1 %v12266_v39  ;;  %v4148_v63 = vpop.f32.mrb[12].mxu1 }
 0x5aa   : > { %5284 = vmatprep.subr.bf16.mxu0 %v12271_v42  ;;  %5390 = vmatprep.subr.bf16.mxu1 %v12274_v43  ;;  %v4150_v1 = vpop.f32.mrb[13].mxu1  ;;  %v12308_v42 = vld [vmem:[%s13966_s21 + $0x6e8] ss:$16 sps:$4 sm:$0xff]  }
 0x5ab   : > { %v4065_v58 = vpop.f32.mrb[14].mxu0 }
 0x5ac   : > { %v4163_v61 = vpack.c.bf16 %v4065_v58, %v4059_v49  ;;  %v4067_v62 = vpop.f32.mrb[15].mxu0  ;;  %v12319_v49 = vld [vmem:[%s13966_s21 + $0x724] ss:$16 sps:$4 sm:$0xff]   ;;  %v12334_v58 = vld [vmem:[%s13966_s21 + $0x76c] ss:$16 sps:$4 sm:$0xff]  }
 0x5ad   : > { %5285 = vmatpush1.bf16.msra.mxu0 %v12269_v47  ;;  %5391 = vmatpush1.bf16.msra.mxu1 %v12272_v48  ;;  %v4164_v0 = vpack.c.bf16 %v4067_v62, %v4061_v51  ;;  %v4154_v3 = vpop.f32.mrb[14].mxu1  ;;  %v12311_v47 = vld [vmem:[%s13966_s21 + $0x700] ss:$16 sps:$4 sm:$0xff]   ;;  %v12314_v48 = vld [vmem:[%s13966_s21 + $0x708] ss:$16 sps:$4 sm:$0xff]  }
 0x5ae   : > { %5286 = vmatprep.subr.bf16.mxu0 %v12277_v6  ;;  %5392 = vmatprep.subr.bf16.mxu1 %v12280_v50  ;;  %v14177_v4 = vpack.c.bf16 %v4154_v3, %v4148_v63  ;;  %v4156_v8 = vpop.f32.mrb[15].mxu1  ;;  %v12322_v6 = vld [vmem:[%s13966_s21 + $0x72c] ss:$16 sps:$4 sm:$0xff]   ;;  %v12317_v50 = vld [vmem:[%s13966_s21 + $0x720] ss:$16 sps:$4 sm:$0xff]  }
 0x5af   : > { %5271 = vmatprep.mubr.bf16.mxu0 %v4164_v0  ;;  %5377 = vmatprep.mubr.bf16.mxu1 %v4164_v0  ;;  %v14179_v9 = vpack.c.bf16 %v4156_v8, %v4150_v1  ;;  %v4241_v24 = vpop.f32.mrb[16].mxu0  ;;  %v12320_v51 = vld [vmem:[%s13966_s21 + $0x728] ss:$16 sps:$4 sm:$0xff]   ;;  %v12340_v62 = vld [vmem:[%s13966_s21 + $0x78c] ss:$16 sps:$4 sm:$0xff]  }
 0x5b0   : > { %5272 = vmatmul.mubr.bf16.gmra.mrb[24].mxu0 %v4163_v61  ;;  %5378 = vmatmul.mubr.bf16.gmra.mrb[24].mxu1 %v4163_v61  ;;  %v4243_v30 = vpop.f32.mrb[17].mxu0  ;;  %v12337_v61 = vld [vmem:[%s13966_s21 + $0x784] ss:$16 sps:$4 sm:$0xff]   ;;  %v12335_v63 = vld [vmem:[%s13966_s21 + $0x780] ss:$16 sps:$4 sm:$0xff]  }
 0x5b1   : > { %5287 = vmatpush1.bf16.msra.mxu0 %v12275_v56  ;;  %5393 = vmatpush1.bf16.msra.mxu1 %v12278_v57  ;;  %v4318_v26 = vpop.f32.mrb[16].mxu1  ;;  %v12326_v56 = vld [vmem:[%s13966_s21 + $0x748] ss:$16 sps:$4 sm:$0xff]   ;;  %v12331_v57 = vld [vmem:[%s13966_s21 + $0x764] ss:$16 sps:$4 sm:$0xff]  }
 0x5b2   : > { %5288 = vmatprep.subr.bf16.mxu0 %v12283_v59  ;;  %5394 = vmatprep.subr.bf16.mxu1 %v12286_v60  ;;  %v4320_v31 = vpop.f32.mrb[17].mxu1  ;;  %v12329_v59 = vld [vmem:[%s13966_s21 + $0x760] ss:$16 sps:$4 sm:$0xff]   ;;  %v12332_v60 = vld [vmem:[%s13966_s21 + $0x768] ss:$16 sps:$4 sm:$0xff]  }
 0x5b3   : > { %5314 = vmatprep.mubr.bf16.mxu0 %v4162_v55  ;;  %5420 = vmatprep.mubr.bf16.mxu1 %v4162_v55  ;;  %v4247_v32 = vpop.f32.mrb[18].mxu0  ;;  %v12323_v55 = vld [vmem:[%s13966_s21 + $0x740] ss:$16 sps:$4 sm:$0xff]   ;;  %v12338_v0 = vld [vmem:[%s13966_s21 + $0x788] ss:$16 sps:$4 sm:$0xff]  }
 0x5b4   : > { %v14193_v36 = vpack.c.bf16 %v4247_v32, %v4241_v24  ;;  %v4249_v39 = vpop.f32.mrb[19].mxu0  ;;  %v12343_v1 = vld [vmem:[%s13966_s21 + $0x7a4] ss:$16 sps:$4 sm:$0xff]   ;;  %v12344_v3 = vld [vmem:[%s13966_s21 + $0x7a8] ss:$16 sps:$4 sm:$0xff]  }
 0x5b5   : > { %5289 = vmatpush1.bf16.msra.mxu0 %v12281_v37  ;;  %5395 = vmatpush1.bf16.msra.mxu1 %v12284_v2  ;;  %v4324_v34 = vpop.f32.mrb[18].mxu1  ;;  %v14199_v43 = vpack.c.bf16 %v4249_v39, %v4243_v30  ;;  %v12346_v37 = vld [vmem:[%s13966_s21 + $0x7ac] ss:$16 sps:$4 sm:$0xff]   ;;  %v12341_v2 = vld [vmem:[%s13966_s21 + $0x7a0] ss:$16 sps:$4 sm:$0xff]  }
 0x5b6   : > { %5290 = vmatprep.subr.bf16.mxu0 %v12289_v5  ;;  %5396 = vmatprep.subr.bf16.mxu1 %v12292_v7  ;;  %v14195_v38 = vpack.c.bf16 %v4324_v34, %v4318_v26  ;;  %v4326_v40 = vpop.f32.mrb[19].mxu1  ;;  %v12349_v5 = vld [vmem:[%s13966_s21 + $0x7c4] ss:$16 sps:$4 sm:$0xff]   ;;  %v12352_v7 = vld [vmem:[%s13966_s21 + $0x7cc] ss:$16 sps:$4 sm:$0xff]  }
 0x5b7   : > { %v14201_v44 = vpack.c.bf16 %v4326_v40, %v4320_v31  ;;  %v12347_v8 = vld [vmem:[%s13966_s21 + $0x7c0] ss:$16 sps:$4 sm:$0xff]   ;;  %v12370_v24 = vld [vmem:[%s13966_s21 + $0x2c] ss:$16 sps:$4 sm:$0xff]   ;;  %v12374_v31 = vld [vmem:[%s13966_s21 + $0x48] ss:$16 sps:$4 sm:$0xff]  }
 0x5b8   : > { %v12365_v26 = vld [vmem:[%s13966_s21 + $0x20] ss:$16 sps:$4 sm:$0xff]   ;;  %v12376_v30 = vld [vmem:[%s13966_s21 + $0x4c] ss:$16 sps:$4 sm:$0xff]   ;;  %v12379_v32 = vld [vmem:[%s13966_s21 + $0x64] ss:$16 sps:$4 sm:$0xff]  }
 0x5b9   : > { %5291 = vmatpush1.bf16.msra.mxu0 %v12287_v10  ;;  %5397 = vmatpush1.bf16.msra.mxu1 %v12290_v11  ;;  %v12350_v10 = vld [vmem:[%s13966_s21 + $0x7c8] ss:$16 sps:$4 sm:$0xff]   ;;  %v12355_v11 = vld [vmem:[%s13966_s21 + $0x7e4] ss:$16 sps:$4 sm:$0xff]   ;;  %v12382_v34 = vld [vmem:[%s13966_s21 + $0x6c] ss:$16 sps:$4 sm:$0xff]  }
 0x5ba   : > { %5292 = vmatprep.subr.bf16.mxu0 %v12295_v12  ;;  %5398 = vmatprep.subr.bf16.mxu1 %v12298_v15  ;;  %v12358_v12 = vld [vmem:[%s13966_s21 + $0x7ec] ss:$16 sps:$4 sm:$0xff]   ;;  %v12353_v15 = vld [vmem:[%s13966_s21 + $0x7e0] ss:$16 sps:$4 sm:$0xff]   ;;  %v12380_v39 = vld [vmem:[%s13966_s21 + $0x68] ss:$16 sps:$4 sm:$0xff]  }
 0x5bb   : > { %v12385_v40 = vld [vmem:[%s13966_s21 + $0x84] ss:$16 sps:$4 sm:$0xff]  }
 0x5bd   : > { %5293 = vmatpush1.bf16.msra.mxu0 %v12293_v16  ;;  %5399 = vmatpush1.bf16.msra.mxu1 %v12296_v17  ;;  %v12356_v16 = vld [vmem:[%s13966_s21 + $0x7e8] ss:$16 sps:$4 sm:$0xff]   ;;  %v12361_v17 = vld [vmem:[%s13966_s21 + $0x4] ss:$16 sps:$4 sm:$0xff]  }
 0x5be   : > { %5294 = vmatprep.subr.bf16.mxu0 %v12301_v18  ;;  %5400 = vmatprep.subr.bf16.mxu1 %v12304_v19  ;;  %v12364_v18 = vld [vmem:[%s13966_s21 + $0xc] ss:$16 sps:$4 sm:$0xff]   ;;  %v12359_v19 = vld [vmem:[%s13966_s21] ss:$16 sps:$4 sm:$0xff]  }
 0x5c1   : > { %5295 = vmatpush1.bf16.msra.mxu0 %v12299_v20  ;;  %5401 = vmatpush1.bf16.msra.mxu1 %v12302_v22  ;;  %v12362_v20 = vld [vmem:[%s13966_s21 + $0x8] ss:$16 sps:$4 sm:$0xff]   ;;  %v12367_v22 = vld [vmem:[%s13966_s21 + $0x24] ss:$16 sps:$4 sm:$0xff]  }
 0x5c2   : > { %5296 = vmatprep.subr.bf16.mxu0 %v12307_v27  ;;  %5402 = vmatprep.subr.bf16.mxu1 %v12310_v29  ;;  %v12368_v27 = vld [vmem:[%s13966_s21 + $0x28] ss:$16 sps:$4 sm:$0xff]   ;;  %v12373_v29 = vld [vmem:[%s13966_s21 + $0x44] ss:$16 sps:$4 sm:$0xff]  }
 0x5c5   : > { %5297 = vmatpush1.bf16.msra.mxu0 %v12305_v41  ;;  %5403 = vmatpush1.bf16.msra.mxu1 %v12308_v42  ;;  %v12388_v41 = vld [vmem:[%s13966_s21 + $0x8c] ss:$16 sps:$4 sm:$0xff]   ;;  %v12386_v42 = vld [vmem:[%s13966_s21 + $0x88] ss:$16 sps:$4 sm:$0xff]  }
 0x5c6   : > { %5298 = vmatprep.subr.bf16.mxu0 %v12313_v45  ;;  %5404 = vmatprep.subr.bf16.mxu1 %v12316_v46  ;;  %v12391_v45 = vld [vmem:[%s13966_s21 + $0xa4] ss:$16 sps:$4 sm:$0xff]   ;;  %v12394_v46 = vld [vmem:[%s13966_s21 + $0xac] ss:$16 sps:$4 sm:$0xff]  }
 0x5c9   : > { %5299 = vmatpush1.bf16.msra.mxu0 %v12311_v47  ;;  %5405 = vmatpush1.bf16.msra.mxu1 %v12314_v48  ;;  %v12392_v47 = vld [vmem:[%s13966_s21 + $0xa8] ss:$16 sps:$4 sm:$0xff]   ;;  %v12397_v48 = vld [vmem:[%s13966_s21 + $0xc4] ss:$16 sps:$4 sm:$0xff]  }
 0x5ca   : > { %5300 = vmatprep.subr.bf16.mxu0 %v12319_v49  ;;  %5406 = vmatprep.subr.bf16.mxu1 %v12322_v6  ;;  %v12400_v49 = vld [vmem:[%s13966_s21 + $0xcc] ss:$16 sps:$4 sm:$0xff]   ;;  %v12395_v6 = vld [vmem:[%s13966_s21 + $0xc0] ss:$16 sps:$4 sm:$0xff]  }
 0x5cd   : > { %5301 = vmatpush1.bf16.msra.mxu0 %v12317_v50  ;;  %5407 = vmatpush1.bf16.msra.mxu1 %v12320_v51  ;;  %v12398_v50 = vld [vmem:[%s13966_s21 + $0xc8] ss:$16 sps:$4 sm:$0xff]   ;;  %v12403_v51 = vld [vmem:[%s13966_s21 + $0xe4] ss:$16 sps:$4 sm:$0xff]  }
 0x5ce   : > { %5302 = vmatprep.subr.bf16.mxu0 %v12325_v52  ;;  %5408 = vmatprep.subr.bf16.mxu1 %v12328_v54  ;;  %v12406_v52 = vld [vmem:[%s13966_s21 + $0xec] ss:$16 sps:$4 sm:$0xff]   ;;  %v12401_v54 = vld [vmem:[%s13966_s21 + $0xe0] ss:$16 sps:$4 sm:$0xff]  }
 0x5d1   : > { %5303 = vmatpush1.bf16.msra.mxu0 %v12323_v55  ;;  %5409 = vmatpush1.bf16.msra.mxu1 %v12326_v56  ;;  %v12404_v55 = vld [vmem:[%s13966_s21 + $0xe8] ss:$16 sps:$4 sm:$0xff]   ;;  %v12409_v56 = vld [vmem:[%s13966_s21 + $0x104] ss:$16 sps:$4 sm:$0xff]  }
 0x5d2   : > { %5304 = vmatprep.subr.bf16.mxu0 %v12331_v57  ;;  %5410 = vmatprep.subr.bf16.mxu1 %v12334_v58  ;;  %v12412_v57 = vld [vmem:[%s13966_s21 + $0x10c] ss:$16 sps:$4 sm:$0xff]   ;;  %v12407_v58 = vld [vmem:[%s13966_s21 + $0x100] ss:$16 sps:$4 sm:$0xff]  }
 0x5d5   : > { %5305 = vmatpush1.bf16.msra.mxu0 %v12329_v59  ;;  %5411 = vmatpush1.bf16.msra.mxu1 %v12332_v60  ;;  %v12410_v59 = vld [vmem:[%s13966_s21 + $0x108] ss:$16 sps:$4 sm:$0xff]   ;;  %v12415_v60 = vld [vmem:[%s13966_s21 + $0x124] ss:$16 sps:$4 sm:$0xff]  }
 0x5d6   : > { %5306 = vmatprep.subr.bf16.mxu0 %v12337_v61  ;;  %5412 = vmatprep.subr.bf16.mxu1 %v12340_v62  ;;  %v12418_v61 = vld [vmem:[%s13966_s21 + $0x12c] ss:$16 sps:$4 sm:$0xff]   ;;  %v12413_v62 = vld [vmem:[%s13966_s21 + $0x120] ss:$16 sps:$4 sm:$0xff]  }
 0x5d9   : > { %5307 = vmatpush1.bf16.msra.mxu0 %v12335_v63  ;;  %5413 = vmatpush1.bf16.msra.mxu1 %v12338_v0  ;;  %v12416_v63 = vld [vmem:[%s13966_s21 + $0x128] ss:$16 sps:$4 sm:$0xff]   ;;  %v12421_v0 = vld [vmem:[%s13966_s21 + $0x144] ss:$16 sps:$4 sm:$0xff]  }
 0x5da   : > { %5308 = vmatprep.subr.bf16.mxu0 %v12343_v1  ;;  %5414 = vmatprep.subr.bf16.mxu1 %v12346_v37  ;;  %v12424_v1 = vld [vmem:[%s13966_s21 + $0x14c] ss:$16 sps:$4 sm:$0xff]   ;;  %v12419_v37 = vld [vmem:[%s13966_s21 + $0x140] ss:$16 sps:$4 sm:$0xff]  }
 0x5dd   : > { %5309 = vmatpush1.bf16.msra.mxu0 %v12341_v2  ;;  %5415 = vmatpush1.bf16.msra.mxu1 %v12344_v3  ;;  %v12422_v2 = vld [vmem:[%s13966_s21 + $0x148] ss:$16 sps:$4 sm:$0xff]   ;;  %v12427_v3 = vld [vmem:[%s13966_s21 + $0x164] ss:$16 sps:$4 sm:$0xff]  }
 0x5de   : > { %5310 = vmatprep.subr.bf16.mxu0 %v12349_v5  ;;  %5416 = vmatprep.subr.bf16.mxu1 %v12352_v7  ;;  %v12430_v5 = vld [vmem:[%s13966_s21 + $0x16c] ss:$16 sps:$4 sm:$0xff]   ;;  %v12425_v7 = vld [vmem:[%s13966_s21 + $0x160] ss:$16 sps:$4 sm:$0xff]  }
 0x5e1   : > { %5311 = vmatpush1.bf16.msra.mxu0 %v12347_v8  ;;  %5417 = vmatpush1.bf16.msra.mxu1 %v12350_v10  ;;  %v12428_v8 = vld [vmem:[%s13966_s21 + $0x168] ss:$16 sps:$4 sm:$0xff]   ;;  %v12433_v10 = vld [vmem:[%s13966_s21 + $0x184] ss:$16 sps:$4 sm:$0xff]  }
 0x5e2   : > { %5312 = vmatprep.subr.bf16.mxu0 %v12355_v11  ;;  %5418 = vmatprep.subr.bf16.mxu1 %v12358_v12  ;;  %v12436_v11 = vld [vmem:[%s13966_s21 + $0x18c] ss:$16 sps:$4 sm:$0xff]   ;;  %v12431_v12 = vld [vmem:[%s13966_s21 + $0x180] ss:$16 sps:$4 sm:$0xff]  }
 0x5e5   : > { %5313 = vmatpush1.bf16.msra.mxu0 %v12353_v15  ;;  %5419 = vmatpush1.bf16.msra.mxu1 %v12356_v16  ;;  %v12434_v15 = vld [vmem:[%s13966_s21 + $0x188] ss:$16 sps:$4 sm:$0xff]   ;;  %v12439_v16 = vld [vmem:[%s13966_s21 + $0x1a4] ss:$16 sps:$4 sm:$0xff]  }
 0x5e6   : > { %6081 = vmatprep.subr.bf16.mxu0 %v12361_v17  ;;  %6187 = vmatprep.subr.bf16.mxu1 %v12364_v18  ;;  %v12442_v17 = vld [vmem:[%s13966_s21 + $0x1ac] ss:$16 sps:$4 sm:$0xff]   ;;  %v12437_v18 = vld [vmem:[%s13966_s21 + $0x1a0] ss:$16 sps:$4 sm:$0xff]  }
 0x5e8   : > { %5315 = vmatmul.mubr.bf16.vlgmr.msra.gmra.mrb[20].mxu0 %v14167_v53  ;;  %5421 = vmatmul.mubr.bf16.vlgmr.msra.gmra.mrb[20].mxu1 %v14167_v53  ;;  %v12371_v53 = vld [vmem:[%s13966_s21 + $0x40] ss:$16 sps:$4 sm:$0xff]  }
 0x5e9   : > { %6082 = vmatpush1.bf16.msra.mxu0 %v12359_v19  ;;  %6188 = vmatpush1.bf16.msra.mxu1 %v12362_v20  ;;  %v12440_v19 = vld [vmem:[%s13966_s21 + $0x1a8] ss:$16 sps:$4 sm:$0xff]   ;;  %v12445_v20 = vld [vmem:[%s13966_s21 + $0x1c4] ss:$16 sps:$4 sm:$0xff]  }
 0x5ea   : > { %6083 = vmatprep.subr.bf16.mxu0 %v12367_v22  ;;  %6189 = vmatprep.subr.bf16.mxu1 %v12370_v24  ;;  %v12448_v22 = vld [vmem:[%s13966_s21 + $0x1cc] ss:$16 sps:$4 sm:$0xff]   ;;  %v12443_v24 = vld [vmem:[%s13966_s21 + $0x1c0] ss:$16 sps:$4 sm:$0xff]  }
 0x5eb   : > { %5324 = vmatprep.mubr.bf16.mxu0 %v14179_v9  ;;  %5430 = vmatprep.mubr.bf16.mxu1 %v14179_v9  ;;  %v12377_v9 = vld [vmem:[%s13966_s21 + $0x60] ss:$16 sps:$4 sm:$0xff]  }
 0x5ed   : > { %6084 = vmatpush1.bf16.msra.mxu0 %v12365_v26  ;;  %6190 = vmatpush1.bf16.msra.mxu1 %v12368_v27  ;;  %v12446_v26 = vld [vmem:[%s13966_s21 + $0x1c8] ss:$16 sps:$4 sm:$0xff]   ;;  %v12451_v27 = vld [vmem:[%s13966_s21 + $0x1e4] ss:$16 sps:$4 sm:$0xff]  }
 0x5ee   : > { %6085 = vmatprep.subr.bf16.mxu0 %v12373_v29  ;;  %6191 = vmatprep.subr.bf16.mxu1 %v12376_v30  ;;  %v12454_v29 = vld [vmem:[%s13966_s21 + $0x1ec] ss:$16 sps:$4 sm:$0xff]   ;;  %v12449_v30 = vld [vmem:[%s13966_s21 + $0x1e0] ss:$16 sps:$4 sm:$0xff]  }
 0x5f0   : > { %5325 = vmatmul.mubr.bf16.gmra.mrb[24].mxu0 %v14177_v4  ;;  %5431 = vmatmul.mubr.bf16.gmra.mrb[24].mxu1 %v14177_v4  ;;  %v12383_v4 = vld [vmem:[%s13966_s21 + $0x80] ss:$16 sps:$4 sm:$0xff]  }
 0x5f1   : > { %6086 = vmatpush1.bf16.msra.mxu0 %v12371_v53  ;;  %6113 = vmatprep.mubr.bf16.mxu0 %v14145_v13  ;;  %v12452_v53 = vld [vmem:[%s13966_s21 + $0x1e8] ss:$16 sps:$4 sm:$0xff]  }
 0x5f2   : > { %6192 = vmatpush1.bf16.msra.mxu1 %v12374_v31  ;;  %6219 = vmatprep.mubr.bf16.mxu1 %v14145_v13  ;;  %v12389_v13 = vld [vmem:[%s13966_s21 + $0xa0] ss:$16 sps:$4 sm:$0xff]   ;;  %v12457_v31 = vld [vmem:[%s13966_s21 + $0x204] ss:$16 sps:$4 sm:$0xff]  }
 0x5f3   : > { %6087 = vmatprep.subr.bf16.mxu0 %v12379_v32  ;;  %6193 = vmatprep.subr.bf16.mxu1 %v12382_v34  ;;  %v12460_v32 = vld [vmem:[%s13966_s21 + $0x20c] ss:$16 sps:$4 sm:$0xff]   ;;  %v12455_v34 = vld [vmem:[%s13966_s21 + $0x200] ss:$16 sps:$4 sm:$0xff]  }
 0x5f5   : > { %6088 = vmatpush1.bf16.msra.mxu0 %v12377_v9  ;;  %v12458_v9 = vld [vmem:[%s13966_s21 + $0x208] ss:$16 sps:$4 sm:$0xff]  }
 0x5f6   : > { %6194 = vmatpush1.bf16.msra.mxu1 %v12380_v39  ;;  %6089 = vmatprep.subr.bf16.mxu0 %v12385_v40  ;;  %v12463_v39 = vld [vmem:[%s13966_s21 + $0x224] ss:$16 sps:$4 sm:$0xff]   ;;  %v12466_v40 = vld [vmem:[%s13966_s21 + $0x22c] ss:$16 sps:$4 sm:$0xff]  }
 0x5f7   : > { %6195 = vmatprep.subr.bf16.mxu1 %v12388_v41  ;;  %v12461_v41 = vld [vmem:[%s13966_s21 + $0x220] ss:$16 sps:$4 sm:$0xff]  }
 0x5f9   : > { %6090 = vmatpush1.bf16.msra.mxu0 %v12383_v4  ;;  %v12464_v4 = vld [vmem:[%s13966_s21 + $0x228] ss:$16 sps:$4 sm:$0xff]  }
 0x5fa   : > { %6196 = vmatpush1.bf16.msra.mxu1 %v12386_v42  ;;  %6091 = vmatprep.subr.bf16.mxu0 %v12391_v45  ;;  %v12469_v42 = vld [vmem:[%s13966_s21 + $0x244] ss:$16 sps:$4 sm:$0xff]   ;;  %v12472_v45 = vld [vmem:[%s13966_s21 + $0x24c] ss:$16 sps:$4 sm:$0xff]  }
 0x5fb   : > { %6197 = vmatprep.subr.bf16.mxu1 %v12394_v46  ;;  %v12467_v46 = vld [vmem:[%s13966_s21 + $0x240] ss:$16 sps:$4 sm:$0xff]  }
 0x5fd   : > { %6092 = vmatpush1.bf16.msra.mxu0 %v12389_v13  ;;  %v12475_v13 = vld [vmem:[%s13966_s21 + $0x264] ss:$16 sps:$4 sm:$0xff]  }
 0x5fe   : > { %6198 = vmatpush1.bf16.msra.mxu1 %v12392_v47  ;;  %6093 = vmatprep.subr.bf16.mxu0 %v12397_v48  ;;  %v12473_v47 = vld [vmem:[%s13966_s21 + $0x260] ss:$16 sps:$4 sm:$0xff]   ;;  %v12476_v48 = vld [vmem:[%s13966_s21 + $0x268] ss:$16 sps:$4 sm:$0xff]  }
 0x5ff   : > { %6199 = vmatprep.subr.bf16.mxu1 %v12400_v49  ;;  %v12481_v49 = vld [vmem:[%s13966_s21 + $0x284] ss:$16 sps:$4 sm:$0xff]  }
 0x601   : > { %6094 = vmatpush1.bf16.msra.mxu0 %v12395_v6  ;;  %v12484_v6 = vld [vmem:[%s13966_s21 + $0x28c] ss:$16 sps:$4 sm:$0xff]  }
 0x602   : > { %6200 = vmatpush1.bf16.msra.mxu1 %v12398_v50  ;;  %6095 = vmatprep.subr.bf16.mxu0 %v12403_v51  ;;  %v12482_v50 = vld [vmem:[%s13966_s21 + $0x288] ss:$16 sps:$4 sm:$0xff]   ;;  %v12487_v51 = vld [vmem:[%s13966_s21 + $0x2a4] ss:$16 sps:$4 sm:$0xff]  }
 0x603   : > { %6201 = vmatprep.subr.bf16.mxu1 %v12406_v52  ;;  %v12485_v52 = vld [vmem:[%s13966_s21 + $0x2a0] ss:$16 sps:$4 sm:$0xff]  }
 0x605   : > { %6096 = vmatpush1.bf16.msra.mxu0 %v12401_v54  ;;  %v12488_v54 = vld [vmem:[%s13966_s21 + $0x2a8] ss:$16 sps:$4 sm:$0xff]  }
 0x606   : > { %6202 = vmatpush1.bf16.msra.mxu1 %v12404_v55  ;;  %6097 = vmatprep.subr.bf16.mxu0 %v12409_v56  ;;  %v12493_v55 = vld [vmem:[%s13966_s21 + $0x2c4] ss:$16 sps:$4 sm:$0xff]   ;;  %v12496_v56 = vld [vmem:[%s13966_s21 + $0x2cc] ss:$16 sps:$4 sm:$0xff]  }
 0x607   : > { %6203 = vmatprep.subr.bf16.mxu1 %v12412_v57  ;;  %v12491_v57 = vld [vmem:[%s13966_s21 + $0x2c0] ss:$16 sps:$4 sm:$0xff]  }
 0x609   : > { %6098 = vmatpush1.bf16.msra.mxu0 %v12407_v58  ;;  %v12494_v58 = vld [vmem:[%s13966_s21 + $0x2c8] ss:$16 sps:$4 sm:$0xff]  }
 0x60a   : > { %6204 = vmatpush1.bf16.msra.mxu1 %v12410_v59  ;;  %6099 = vmatprep.subr.bf16.mxu0 %v12415_v60  ;;  %v12499_v59 = vld [vmem:[%s13966_s21 + $0x2e4] ss:$16 sps:$4 sm:$0xff]   ;;  %v12502_v60 = vld [vmem:[%s13966_s21 + $0x2ec] ss:$16 sps:$4 sm:$0xff]  }
 0x60b   : > { %6205 = vmatprep.subr.bf16.mxu1 %v12418_v61  ;;  %v12497_v61 = vld [vmem:[%s13966_s21 + $0x2e0] ss:$16 sps:$4 sm:$0xff]  }
 0x60d   : > { %6100 = vmatpush1.bf16.msra.mxu0 %v12413_v62  ;;  %v12500_v62 = vld [vmem:[%s13966_s21 + $0x2e8] ss:$16 sps:$4 sm:$0xff]  }
 0x60e   : > { %6206 = vmatpush1.bf16.msra.mxu1 %v12416_v63  ;;  %6101 = vmatprep.subr.bf16.mxu0 %v12421_v0  ;;  %v12505_v63 = vld [vmem:[%s13966_s21 + $0x304] ss:$16 sps:$4 sm:$0xff]   ;;  %v12508_v0 = vld [vmem:[%s13966_s21 + $0x30c] ss:$16 sps:$4 sm:$0xff]  }
 0x60f   : > { %6207 = vmatprep.subr.bf16.mxu1 %v12424_v1  ;;  %v12503_v1 = vld [vmem:[%s13966_s21 + $0x300] ss:$16 sps:$4 sm:$0xff]  }
 0x611   : > { %6102 = vmatpush1.bf16.msra.mxu0 %v12419_v37  ;;  %v12506_v37 = vld [vmem:[%s13966_s21 + $0x308] ss:$16 sps:$4 sm:$0xff]  }
 0x612   : > { %6208 = vmatpush1.bf16.msra.mxu1 %v12422_v2  ;;  %6103 = vmatprep.subr.bf16.mxu0 %v12427_v3  ;;  %v12511_v2 = vld [vmem:[%s13966_s21 + $0x324] ss:$16 sps:$4 sm:$0xff]   ;;  %v12514_v3 = vld [vmem:[%s13966_s21 + $0x32c] ss:$16 sps:$4 sm:$0xff]  }
 0x613   : > { %6209 = vmatprep.subr.bf16.mxu1 %v12430_v5  ;;  %v12509_v5 = vld [vmem:[%s13966_s21 + $0x320] ss:$16 sps:$4 sm:$0xff]  }
 0x615   : > { %6104 = vmatpush1.bf16.msra.mxu0 %v12425_v7  ;;  %v12512_v7 = vld [vmem:[%s13966_s21 + $0x328] ss:$16 sps:$4 sm:$0xff]  }
 0x616   : > { %6210 = vmatpush1.bf16.msra.mxu1 %v12428_v8  ;;  %6105 = vmatprep.subr.bf16.mxu0 %v12433_v10  ;;  %v12517_v8 = vld [vmem:[%s13966_s21 + $0x344] ss:$16 sps:$4 sm:$0xff]   ;;  %v12520_v10 = vld [vmem:[%s13966_s21 + $0x34c] ss:$16 sps:$4 sm:$0xff]  }
 0x617   : > { %6211 = vmatprep.subr.bf16.mxu1 %v12436_v11  ;;  %v12515_v11 = vld [vmem:[%s13966_s21 + $0x340] ss:$16 sps:$4 sm:$0xff]  }
 0x619   : > { %6106 = vmatpush1.bf16.msra.mxu0 %v12431_v12  ;;  %v12518_v12 = vld [vmem:[%s13966_s21 + $0x348] ss:$16 sps:$4 sm:$0xff]  }
 0x61a   : > { %6212 = vmatpush1.bf16.msra.mxu1 %v12434_v15  ;;  %6107 = vmatprep.subr.bf16.mxu0 %v12439_v16  ;;  %v12523_v15 = vld [vmem:[%s13966_s21 + $0x364] ss:$16 sps:$4 sm:$0xff]   ;;  %v12526_v16 = vld [vmem:[%s13966_s21 + $0x36c] ss:$16 sps:$4 sm:$0xff]  }
 0x61b   : > { %6213 = vmatprep.subr.bf16.mxu1 %v12442_v17  ;;  %v12521_v17 = vld [vmem:[%s13966_s21 + $0x360] ss:$16 sps:$4 sm:$0xff]  }
 0x61d   : > { %6108 = vmatpush1.bf16.msra.mxu0 %v12437_v18  ;;  %v12524_v18 = vld [vmem:[%s13966_s21 + $0x368] ss:$16 sps:$4 sm:$0xff]  }
 0x61e   : > { %6214 = vmatpush1.bf16.msra.mxu1 %v12440_v19  ;;  %6109 = vmatprep.subr.bf16.mxu0 %v12445_v20  ;;  %v12529_v19 = vld [vmem:[%s13966_s21 + $0x384] ss:$16 sps:$4 sm:$0xff]   ;;  %v12532_v20 = vld [vmem:[%s13966_s21 + $0x38c] ss:$16 sps:$4 sm:$0xff]  }
 0x61f   : > { %6215 = vmatprep.subr.bf16.mxu1 %v12448_v22  ;;  %v12527_v22 = vld [vmem:[%s13966_s21 + $0x380] ss:$16 sps:$4 sm:$0xff]  }
 0x621   : > { %6110 = vmatpush1.bf16.msra.mxu0 %v12443_v24  ;;  %v12530_v24 = vld [vmem:[%s13966_s21 + $0x388] ss:$16 sps:$4 sm:$0xff]  }
 0x622   : > { %6216 = vmatpush1.bf16.msra.mxu1 %v12446_v26  ;;  %6111 = vmatprep.subr.bf16.mxu0 %v12451_v27  ;;  %v12535_v26 = vld [vmem:[%s13966_s21 + $0x3a4] ss:$16 sps:$4 sm:$0xff]   ;;  %v12538_v27 = vld [vmem:[%s13966_s21 + $0x3ac] ss:$16 sps:$4 sm:$0xff]  }
 0x623   : > { %6217 = vmatprep.subr.bf16.mxu1 %v12454_v29  ;;  %v12533_v29 = vld [vmem:[%s13966_s21 + $0x3a0] ss:$16 sps:$4 sm:$0xff]  }
 0x625   : > { %6112 = vmatpush1.bf16.msra.mxu0 %v12449_v30  ;;  %v12536_v30 = vld [vmem:[%s13966_s21 + $0x3a8] ss:$16 sps:$4 sm:$0xff]  }
 0x626   : > { %6218 = vmatpush1.bf16.msra.mxu1 %v12452_v53  ;;  %6134 = vmatprep.subr.bf16.mxu0 %v12457_v31  ;;  %v12541_v53 = vld [vmem:[%s13966_s21 + $0x3c4] ss:$16 sps:$4 sm:$0xff]   ;;  %v12544_v31 = vld [vmem:[%s13966_s21 + $0x3cc] ss:$16 sps:$4 sm:$0xff]  }
 0x627   : > { %6240 = vmatprep.subr.bf16.mxu1 %v12460_v32  ;;  %v12539_v32 = vld [vmem:[%s13966_s21 + $0x3c0] ss:$16 sps:$4 sm:$0xff]  }
 0x628   : > { %6114 = vmatmul.mubr.bf16.vlgmr.msra.gmra.mrb[20].mxu0 %v14143_v14 }
 0x629   : > { %6220 = vmatmul.mubr.bf16.vlgmr.msra.gmra.mrb[20].mxu1 %v14143_v14  ;;  %6123 = vmatprep.mubr.bf16.mxu0 %v14153_v28  ;;  %v12470_v14 = vld [vmem:[%s13966_s21 + $0x248] ss:$16 sps:$4 sm:$0xff]  }
 0x62a   : > { %6135 = vmatpush1.bf16.msra.mxu0 %v12455_v34  ;;  %6229 = vmatprep.mubr.bf16.mxu1 %v14153_v28  ;;  %v12478_v28 = vld [vmem:[%s13966_s21 + $0x26c] ss:$16 sps:$4 sm:$0xff]   ;;  %v12542_v34 = vld [vmem:[%s13966_s21 + $0x3c8] ss:$16 sps:$4 sm:$0xff]  }
 0x62b   : > { %6241 = vmatpush1.bf16.msra.mxu1 %v12458_v9  ;;  %6136 = vmatprep.subr.bf16.mxu0 %v12463_v39  ;;  %v12547_v9 = vld [vmem:[%s13966_s21 + $0x3e4] ss:$16 sps:$4 sm:$0xff]   ;;  %v12550_v39 = vld [vmem:[%s13966_s21 + $0x3ec] ss:$16 sps:$4 sm:$0xff]  }
 0x62c   : > { %6242 = vmatprep.subr.bf16.mxu1 %v12466_v40  ;;  %v12545_v40 = vld [vmem:[%s13966_s21 + $0x3e0] ss:$16 sps:$4 sm:$0xff]  }
 0x62e   : > { %6137 = vmatpush1.bf16.msra.mxu0 %v12461_v41  ;;  %v12548_v41 = vld [vmem:[%s13966_s21 + $0x3e8] ss:$16 sps:$4 sm:$0xff]  }
 0x62f   : > { %6243 = vmatpush1.bf16.msra.mxu1 %v12464_v4  ;;  %6138 = vmatprep.subr.bf16.mxu0 %v12469_v42  ;;  %v12553_v4 = vld [vmem:[%s13966_s21 + $0x804] ss:$16 sps:$4 sm:$0xff]   ;;  %v12556_v42 = vld [vmem:[%s13966_s21 + $0x80c] ss:$16 sps:$4 sm:$0xff]  }
 0x630   : > { %6124 = vmatmul.mubr.bf16.gmra.mrb[24].mxu0 %v14151_v25  ;;  %6244 = vmatprep.subr.bf16.mxu1 %v12472_v45  ;;  %v12551_v45 = vld [vmem:[%s13966_s21 + $0x800] ss:$16 sps:$4 sm:$0xff]  }
 0x631   : > { %6230 = vmatmul.mubr.bf16.gmra.mrb[24].mxu1 %v14151_v25  ;;  %6166 = vmatprep.mubr.bf16.mxu0 %v14149_v23  ;;  %v12479_v25 = vld [vmem:[%s13966_s21 + $0x280] ss:$16 sps:$4 sm:$0xff]  }
 0x632   : > { %6139 = vmatpush1.bf16.msra.mxu0 %v12467_v46  ;;  %6272 = vmatprep.mubr.bf16.mxu1 %v14149_v23  ;;  %v12490_v23 = vld [vmem:[%s13966_s21 + $0x2ac] ss:$16 sps:$4 sm:$0xff]   ;;  %v12554_v46 = vld [vmem:[%s13966_s21 + $0x808] ss:$16 sps:$4 sm:$0xff]  }
 0x633   : > { %6245 = vmatpush1.bf16.msra.mxu1 %v12470_v14  ;;  %6140 = vmatprep.subr.bf16.mxu0 %v12475_v13  ;;  %v12559_v14 = vld [vmem:[%s13966_s21 + $0x824] ss:$16 sps:$4 sm:$0xff]   ;;  %v12562_v13 = vld [vmem:[%s13966_s21 + $0x82c] ss:$16 sps:$4 sm:$0xff]  }
 0x634   : > { %6246 = vmatprep.subr.bf16.mxu1 %v12478_v28  ;;  %v12557_v28 = vld [vmem:[%s13966_s21 + $0x820] ss:$16 sps:$4 sm:$0xff]  }
 0x636   : > { %6141 = vmatpush1.bf16.msra.mxu0 %v12473_v47  ;;  %v12560_v47 = vld [vmem:[%s13966_s21 + $0x828] ss:$16 sps:$4 sm:$0xff]  }
 0x637   : > { %6247 = vmatpush1.bf16.msra.mxu1 %v12476_v48  ;;  %6142 = vmatprep.subr.bf16.mxu0 %v12481_v49  ;;  %v12565_v48 = vld [vmem:[%s13966_s21 + $0x844] ss:$16 sps:$4 sm:$0xff]   ;;  %v12568_v49 = vld [vmem:[%s13966_s21 + $0x84c] ss:$16 sps:$4 sm:$0xff]  }
 0x638   : > { %6248 = vmatprep.subr.bf16.mxu1 %v12484_v6  ;;  %v12563_v6 = vld [vmem:[%s13966_s21 + $0x840] ss:$16 sps:$4 sm:$0xff]  }
 0x63a   : > { %6143 = vmatpush1.bf16.msra.mxu0 %v12479_v25  ;;  %v12571_v25 = vld [vmem:[%s13966_s21 + $0x864] ss:$16 sps:$4 sm:$0xff]  }
 0x63b   : > { %6249 = vmatpush1.bf16.msra.mxu1 %v12482_v50  ;;  %6144 = vmatprep.subr.bf16.mxu0 %v12487_v51  ;;  %v13127_v50 = vld [vmem:[#allocation3 + $0x8] sm:$0xff]  ;;  %v12569_v51 = vld [vmem:[%s13966_s21 + $0x860] ss:$16 sps:$4 sm:$0xff]  }
 0x63c   : > { %6250 = vmatprep.subr.bf16.mxu1 %v12490_v23  ;;  %v12572_v23 = vld [vmem:[%s13966_s21 + $0x868] ss:$16 sps:$4 sm:$0xff]  }
 0x63e   : > { %6145 = vmatpush1.bf16.msra.mxu0 %v12485_v52  ;;  %v12577_v52 = vld [vmem:[%s13966_s21 + $0x884] ss:$16 sps:$4 sm:$0xff]  }
 0x63f   : > { %6251 = vmatpush1.bf16.msra.mxu1 %v12488_v54  ;;  %6146 = vmatprep.subr.bf16.mxu0 %v12493_v55  ;;  %v12580_v54 = vld [vmem:[%s13966_s21 + $0x88c] ss:$16 sps:$4 sm:$0xff]   ;;  %v12578_v55 = vld [vmem:[%s13966_s21 + $0x888] ss:$16 sps:$4 sm:$0xff]  }
 0x640   : > { %6252 = vmatprep.subr.bf16.mxu1 %v12496_v56  ;;  %v12583_v56 = vld [vmem:[%s13966_s21 + $0x8a4] ss:$16 sps:$4 sm:$0xff]  }
 0x642   : > { %6147 = vmatpush1.bf16.msra.mxu0 %v12491_v57  ;;  %v12586_v57 = vld [vmem:[%s13966_s21 + $0x8ac] ss:$16 sps:$4 sm:$0xff]  }
 0x643   : > { %6253 = vmatpush1.bf16.msra.mxu1 %v12494_v58  ;;  %6148 = vmatprep.subr.bf16.mxu0 %v12499_v59  ;;  %v12581_v58 = vld [vmem:[%s13966_s21 + $0x8a0] ss:$16 sps:$4 sm:$0xff]   ;;  %v12584_v59 = vld [vmem:[%s13966_s21 + $0x8a8] ss:$16 sps:$4 sm:$0xff]  }
 0x644   : > { %6254 = vmatprep.subr.bf16.mxu1 %v12502_v60  ;;  %v12589_v60 = vld [vmem:[%s13966_s21 + $0x8c4] ss:$16 sps:$4 sm:$0xff]  }
 0x646   : > { %6149 = vmatpush1.bf16.msra.mxu0 %v12497_v61  ;;  %v12592_v61 = vld [vmem:[%s13966_s21 + $0x8cc] ss:$16 sps:$4 sm:$0xff]  }
 0x647   : > { %6255 = vmatpush1.bf16.msra.mxu1 %v12500_v62  ;;  %6150 = vmatprep.subr.bf16.mxu0 %v12505_v63  ;;  %v12587_v62 = vld [vmem:[%s13966_s21 + $0x8c0] ss:$16 sps:$4 sm:$0xff]   ;;  %v12590_v63 = vld [vmem:[%s13966_s21 + $0x8c8] ss:$16 sps:$4 sm:$0xff]  }
 0x648   : > { %6256 = vmatprep.subr.bf16.mxu1 %v12508_v0  ;;  %v12595_v0 = vld [vmem:[%s13966_s21 + $0x8e4] ss:$16 sps:$4 sm:$0xff]  }
 0x64a   : > { %6151 = vmatpush1.bf16.msra.mxu0 %v12503_v1  ;;  %v12598_v1 = vld [vmem:[%s13966_s21 + $0x8ec] ss:$16 sps:$4 sm:$0xff]  }
 0x64b   : > { %6257 = vmatpush1.bf16.msra.mxu1 %v12506_v37  ;;  %6152 = vmatprep.subr.bf16.mxu0 %v12511_v2  ;;  %v12593_v37 = vld [vmem:[%s13966_s21 + $0x8e0] ss:$16 sps:$4 sm:$0xff]   ;;  %v12596_v2 = vld [vmem:[%s13966_s21 + $0x8e8] ss:$16 sps:$4 sm:$0xff]  }
 0x64c   : > { %6258 = vmatprep.subr.bf16.mxu1 %v12514_v3  ;;  %v12601_v3 = vld [vmem:[%s13966_s21 + $0x904] ss:$16 sps:$4 sm:$0xff]  }
 0x64e   : > { %6153 = vmatpush1.bf16.msra.mxu0 %v12509_v5  ;;  %v12604_v5 = vld [vmem:[%s13966_s21 + $0x90c] ss:$16 sps:$4 sm:$0xff]  }
 0x64f   : > { %6259 = vmatpush1.bf16.msra.mxu1 %v12512_v7  ;;  %6154 = vmatprep.subr.bf16.mxu0 %v12517_v8  ;;  %v12599_v7 = vld [vmem:[%s13966_s21 + $0x900] ss:$16 sps:$4 sm:$0xff]   ;;  %v12602_v8 = vld [vmem:[%s13966_s21 + $0x908] ss:$16 sps:$4 sm:$0xff]  }
 0x650   : > { %6260 = vmatprep.subr.bf16.mxu1 %v12520_v10  ;;  %v12607_v10 = vld [vmem:[%s13966_s21 + $0x924] ss:$16 sps:$4 sm:$0xff]  }
 0x652   : > { %6155 = vmatpush1.bf16.msra.mxu0 %v12515_v11  ;;  %v12610_v11 = vld [vmem:[%s13966_s21 + $0x92c] ss:$16 sps:$4 sm:$0xff]  }
 0x653   : > { %6261 = vmatpush1.bf16.msra.mxu1 %v12518_v12  ;;  %6156 = vmatprep.subr.bf16.mxu0 %v12523_v15  ;;  %v12605_v12 = vld [vmem:[%s13966_s21 + $0x920] ss:$16 sps:$4 sm:$0xff]   ;;  %v12608_v15 = vld [vmem:[%s13966_s21 + $0x928] ss:$16 sps:$4 sm:$0xff]  }
 0x654   : > { %6262 = vmatprep.subr.bf16.mxu1 %v12526_v16  ;;  %v12613_v16 = vld [vmem:[%s13966_s21 + $0x944] ss:$16 sps:$4 sm:$0xff]  }
 0x656   : > { %6157 = vmatpush1.bf16.msra.mxu0 %v12521_v17  ;;  %v12616_v17 = vld [vmem:[%s13966_s21 + $0x94c] ss:$16 sps:$4 sm:$0xff]  }
 0x657   : > { %6263 = vmatpush1.bf16.msra.mxu1 %v12524_v18  ;;  %6158 = vmatprep.subr.bf16.mxu0 %v12529_v19  ;;  %v12611_v18 = vld [vmem:[%s13966_s21 + $0x940] ss:$16 sps:$4 sm:$0xff]   ;;  %v12614_v19 = vld [vmem:[%s13966_s21 + $0x948] ss:$16 sps:$4 sm:$0xff]  }
 0x658   : > { %6264 = vmatprep.subr.bf16.mxu1 %v12532_v20  ;;  %v12619_v20 = vld [vmem:[%s13966_s21 + $0x964] ss:$16 sps:$4 sm:$0xff]  }
 0x65a   : > { %6159 = vmatpush1.bf16.msra.mxu0 %v12527_v22  ;;  %v12622_v22 = vld [vmem:[%s13966_s21 + $0x96c] ss:$16 sps:$4 sm:$0xff]  }
 0x65b   : > { %6265 = vmatpush1.bf16.msra.mxu1 %v12530_v24  ;;  %6160 = vmatprep.subr.bf16.mxu0 %v12535_v26  ;;  %v12617_v24 = vld [vmem:[%s13966_s21 + $0x960] ss:$16 sps:$4 sm:$0xff]   ;;  %v12620_v26 = vld [vmem:[%s13966_s21 + $0x968] ss:$16 sps:$4 sm:$0xff]  }
 0x65c   : > { %6266 = vmatprep.subr.bf16.mxu1 %v12538_v27  ;;  %v12625_v27 = vld [vmem:[%s13966_s21 + $0x984] ss:$16 sps:$4 sm:$0xff]  }
 0x65e   : > { %6161 = vmatpush1.bf16.msra.mxu0 %v12533_v29  ;;  %v12628_v29 = vld [vmem:[%s13966_s21 + $0x98c] ss:$16 sps:$4 sm:$0xff]  }
 0x65f   : > { %6267 = vmatpush1.bf16.msra.mxu1 %v12536_v30  ;;  %6162 = vmatprep.subr.bf16.mxu0 %v12541_v53  ;;  %v12623_v30 = vld [vmem:[%s13966_s21 + $0x980] ss:$16 sps:$4 sm:$0xff]   ;;  %v12626_v53 = vld [vmem:[%s13966_s21 + $0x988] ss:$16 sps:$4 sm:$0xff]  }
 0x660   : > { %6268 = vmatprep.subr.bf16.mxu1 %v12544_v31  ;;  %v12631_v31 = vld [vmem:[%s13966_s21 + $0x9a4] ss:$16 sps:$4 sm:$0xff]  }
 0x662   : > { %6163 = vmatpush1.bf16.msra.mxu0 %v12539_v32  ;;  %v12634_v32 = vld [vmem:[%s13966_s21 + $0x9ac] ss:$16 sps:$4 sm:$0xff]  }
 0x663   : > { %6269 = vmatpush1.bf16.msra.mxu1 %v12542_v34  ;;  %6164 = vmatprep.subr.bf16.mxu0 %v12547_v9  ;;  %v12629_v34 = vld [vmem:[%s13966_s21 + $0x9a0] ss:$16 sps:$4 sm:$0xff]   ;;  %v12632_v9 = vld [vmem:[%s13966_s21 + $0x9a8] ss:$16 sps:$4 sm:$0xff]  }
 0x664   : > { %6270 = vmatprep.subr.bf16.mxu1 %v12550_v39  ;;  %v12637_v39 = vld [vmem:[%s13966_s21 + $0x9c4] ss:$16 sps:$4 sm:$0xff]  }
 0x666   : > { %6165 = vmatpush1.bf16.msra.mxu0 %v12545_v40  ;;  %v12640_v40 = vld [vmem:[%s13966_s21 + $0x9cc] ss:$16 sps:$4 sm:$0xff]  }
 0x667   : > { %6271 = vmatpush1.bf16.msra.mxu1 %v12548_v41  ;;  %7061 = vmatprep.subr.bf16.mxu0 %v12553_v4  ;;  %v12635_v41 = vld [vmem:[%s13966_s21 + $0x9c0] ss:$16 sps:$4 sm:$0xff]   ;;  %v12638_v4 = vld [vmem:[%s13966_s21 + $0x9c8] ss:$16 sps:$4 sm:$0xff]  }
 0x668   : > { %7167 = vmatprep.subr.bf16.mxu1 %v12556_v42  ;;  %v12643_v42 = vld [vmem:[%s13966_s21 + $0x9e4] ss:$16 sps:$4 sm:$0xff]  }
 0x669   : > { %6167 = vmatmul.mubr.bf16.vlgmr.msra.gmra.mrb[20].mxu0 %v14147_v21 }
 0x66a   : > { %6273 = vmatmul.mubr.bf16.vlgmr.msra.gmra.mrb[20].mxu1 %v14147_v21  ;;  %6176 = vmatprep.mubr.bf16.mxu0 %v14157_v35  ;;  %v12566_v21 = vld [vmem:[%s13966_s21 + $0x848] ss:$16 sps:$4 sm:$0xff]  }
 0x66b   : > { %6282 = vmatprep.mubr.bf16.mxu1 %v14157_v35  ;;  %7062 = vmatpush1.bf16.msra.mxu0 %v12551_v45  ;;  %v12574_v35 = vld [vmem:[%s13966_s21 + $0x86c] ss:$16 sps:$4 sm:$0xff]  }
 0x66c   : > { %7168 = vmatpush1.bf16.msra.mxu1 %v12554_v46  ;;  %7063 = vmatprep.subr.bf16.mxu0 %v12559_v14  ;;  %v12646_v45 = vld [vmem:[%s13966_s21 + $0x9ec] ss:$16 sps:$4 sm:$0xff]   ;;  %v12641_v46 = vld [vmem:[%s13966_s21 + $0x9e0] ss:$16 sps:$4 sm:$0xff]   ;;  %v12644_v14 = vld [vmem:[%s13966_s21 + $0x9e8] ss:$16 sps:$4 sm:$0xff]  }
 0x66d   : > { %7169 = vmatprep.subr.bf16.mxu1 %v12562_v13  ;;  %v12649_v13 = vld [vmem:[%s13966_s21 + $0xa04] ss:$16 sps:$4 sm:$0xff]  }
 0x66f   : > { %7064 = vmatpush1.bf16.msra.mxu0 %v12557_v28  ;;  %v12652_v28 = vld [vmem:[%s13966_s21 + $0xa0c] ss:$16 sps:$4 sm:$0xff]  }
 0x670   : > { %7170 = vmatpush1.bf16.msra.mxu1 %v12560_v47  ;;  %7065 = vmatprep.subr.bf16.mxu0 %v12565_v48  ;;  %v12647_v47 = vld [vmem:[%s13966_s21 + $0xa00] ss:$16 sps:$4 sm:$0xff]   ;;  %v12650_v48 = vld [vmem:[%s13966_s21 + $0xa08] ss:$16 sps:$4 sm:$0xff]  }
 0x671   : > { %6177 = vmatmul.mubr.bf16.gmra.mrb[24].mxu0 %v14155_v33  ;;  %7171 = vmatprep.subr.bf16.mxu1 %v12568_v49  ;;  %v12655_v49 = vld [vmem:[%s13966_s21 + $0xa24] ss:$16 sps:$4 sm:$0xff]  }
 0x672   : > { %6283 = vmatmul.mubr.bf16.gmra.mrb[24].mxu1 %v14155_v33  ;;  %7093 = vmatprep.mubr.bf16.mxu0 %v13127_v50  ;;  %v12575_v33 = vld [vmem:[%s13966_s21 + $0x880] ss:$16 sps:$4 sm:$0xff]  }
 0x673   : > { %7066 = vmatpush1.bf16.msra.mxu0 %v12563_v6  ;;  %7199 = vmatprep.mubr.bf16.mxu1 %v13127_v50  ;;  %v12658_v6 = vld [vmem:[%s13966_s21 + $0xa2c] ss:$16 sps:$4 sm:$0xff]   ;;  %v12661_v50 = vld [vmem:[%s13966_s21 + $0xa44] ss:$16 sps:$4 sm:$0xff]  }
 0x674   : > { %7172 = vmatpush1.bf16.msra.mxu1 %v12566_v21  ;;  %7067 = vmatprep.subr.bf16.mxu0 %v12571_v25  ;;  %v13128_v21 = vld [vmem:[#allocation3] sm:$0xff] }
 0x675   : > { %7173 = vmatprep.subr.bf16.mxu1 %v12574_v35  ;;  %v12653_v25 = vld [vmem:[%s13966_s21 + $0xa20] ss:$16 sps:$4 sm:$0xff]   ;;  %v12656_v35 = vld [vmem:[%s13966_s21 + $0xa28] ss:$16 sps:$4 sm:$0xff]  }
 0x677   : > { %7068 = vmatpush1.bf16.msra.mxu0 %v12569_v51  ;;  %v12664_v51 = vld [vmem:[%s13966_s21 + $0xa4c] ss:$16 sps:$4 sm:$0xff]  }
 0x678   : > { %7174 = vmatpush1.bf16.msra.mxu1 %v12572_v23  ;;  %7069 = vmatprep.subr.bf16.mxu0 %v12577_v52  ;;  %v13129_v23 = vld [vmem:[#allocation3 + $0x28] sm:$0xff]  ;;  %v12659_v52 = vld [vmem:[%s13966_s21 + $0xa40] ss:$16 sps:$4 sm:$0xff]  }
 0x679   : > { %7175 = vmatprep.subr.bf16.mxu1 %v12580_v54  ;;  %v12662_v54 = vld [vmem:[%s13966_s21 + $0xa48] ss:$16 sps:$4 sm:$0xff]  }
 0x67b   : > { %7070 = vmatpush1.bf16.msra.mxu0 %v12575_v33  ;;  %v12667_v33 = vld [vmem:[%s13966_s21 + $0xa64] ss:$16 sps:$4 sm:$0xff]  }
 0x67c   : > { %7176 = vmatpush1.bf16.msra.mxu1 %v12578_v55  ;;  %7071 = vmatprep.subr.bf16.mxu0 %v12583_v56  ;;  %v12670_v55 = vld [vmem:[%s13966_s21 + $0xa6c] ss:$16 sps:$4 sm:$0xff]   ;;  %v13130_v56 = vld [vmem:[#allocation3 + $0x20] sm:$0xff] }
 0x67d   : > { %7177 = vmatprep.subr.bf16.mxu1 %v12586_v57  ;;  %v12665_v57 = vld [vmem:[%s13966_s21 + $0xa60] ss:$16 sps:$4 sm:$0xff]  }
 0x67f   : > { %7072 = vmatpush1.bf16.msra.mxu0 %v12581_v58  ;;  %v12668_v58 = vld [vmem:[%s13966_s21 + $0xa68] ss:$16 sps:$4 sm:$0xff]  }
 0x680   : > { %7178 = vmatpush1.bf16.msra.mxu1 %v12584_v59  ;;  %7073 = vmatprep.subr.bf16.mxu0 %v12589_v60  ;;  %v12673_v59 = vld [vmem:[%s13966_s21 + $0xa84] ss:$16 sps:$4 sm:$0xff]   ;;  %v12676_v60 = vld [vmem:[%s13966_s21 + $0xa8c] ss:$16 sps:$4 sm:$0xff]  }
 0x681   : > { %7179 = vmatprep.subr.bf16.mxu1 %v12592_v61  ;;  %v13131_v61 = vld [vmem:[#allocation3 + $0x18] sm:$0xff] }
 0x683   : > { %7074 = vmatpush1.bf16.msra.mxu0 %v12587_v62  ;;  %v12671_v62 = vld [vmem:[%s13966_s21 + $0xa80] ss:$16 sps:$4 sm:$0xff]  }
 0x684   : > { %7180 = vmatpush1.bf16.msra.mxu1 %v12590_v63  ;;  %7075 = vmatprep.subr.bf16.mxu0 %v12595_v0  ;;  %v12674_v63 = vld [vmem:[%s13966_s21 + $0xa88] ss:$16 sps:$4 sm:$0xff]   ;;  %v12679_v0 = vld [vmem:[%s13966_s21 + $0xaa4] ss:$16 sps:$4 sm:$0xff]  }
 0x685   : > { %7181 = vmatprep.subr.bf16.mxu1 %v12598_v1  ;;  %v12682_v1 = vld [vmem:[%s13966_s21 + $0xaac] ss:$16 sps:$4 sm:$0xff]  }
 0x687   : > { %7076 = vmatpush1.bf16.msra.mxu0 %v12593_v37  ;;  %v12677_v37 = vld [vmem:[%s13966_s21 + $0xaa0] ss:$16 sps:$4 sm:$0xff]  }
 0x688   : > { %7182 = vmatpush1.bf16.msra.mxu1 %v12596_v2  ;;  %7077 = vmatprep.subr.bf16.mxu0 %v12601_v3  ;;  %v12680_v2 = vld [vmem:[%s13966_s21 + $0xaa8] ss:$16 sps:$4 sm:$0xff]   ;;  %v12685_v3 = vld [vmem:[%s13966_s21 + $0xac4] ss:$16 sps:$4 sm:$0xff]  }
 0x689   : > { %7183 = vmatprep.subr.bf16.mxu1 %v12604_v5  ;;  %v12688_v5 = vld [vmem:[%s13966_s21 + $0xacc] ss:$16 sps:$4 sm:$0xff]  }
 0x68b   : > { %7078 = vmatpush1.bf16.msra.mxu0 %v12599_v7  ;;  %v12683_v7 = vld [vmem:[%s13966_s21 + $0xac0] ss:$16 sps:$4 sm:$0xff]  }
 0x68c   : > { %7184 = vmatpush1.bf16.msra.mxu1 %v12602_v8  ;;  %7079 = vmatprep.subr.bf16.mxu0 %v12607_v10  ;;  %v12686_v8 = vld [vmem:[%s13966_s21 + $0xac8] ss:$16 sps:$4 sm:$0xff]   ;;  %v12691_v10 = vld [vmem:[%s13966_s21 + $0xae4] ss:$16 sps:$4 sm:$0xff]  }
 0x68d   : > { %7185 = vmatprep.subr.bf16.mxu1 %v12610_v11  ;;  %v12694_v11 = vld [vmem:[%s13966_s21 + $0xaec] ss:$16 sps:$4 sm:$0xff]  }
 0x68f   : > { %7080 = vmatpush1.bf16.msra.mxu0 %v12605_v12  ;;  %v12689_v12 = vld [vmem:[%s13966_s21 + $0xae0] ss:$16 sps:$4 sm:$0xff]  }
 0x690   : > { %7186 = vmatpush1.bf16.msra.mxu1 %v12608_v15  ;;  %7081 = vmatprep.subr.bf16.mxu0 %v12613_v16  ;;  %v12692_v15 = vld [vmem:[%s13966_s21 + $0xae8] ss:$16 sps:$4 sm:$0xff]   ;;  %v12697_v16 = vld [vmem:[%s13966_s21 + $0xb04] ss:$16 sps:$4 sm:$0xff]  }
 0x691   : > { %7187 = vmatprep.subr.bf16.mxu1 %v12616_v17  ;;  %v12700_v17 = vld [vmem:[%s13966_s21 + $0xb0c] ss:$16 sps:$4 sm:$0xff]  }
 0x693   : > { %7082 = vmatpush1.bf16.msra.mxu0 %v12611_v18  ;;  %v12695_v18 = vld [vmem:[%s13966_s21 + $0xb00] ss:$16 sps:$4 sm:$0xff]  }
 0x694   : > { %7188 = vmatpush1.bf16.msra.mxu1 %v12614_v19  ;;  %7083 = vmatprep.subr.bf16.mxu0 %v12619_v20  ;;  %v12698_v19 = vld [vmem:[%s13966_s21 + $0xb08] ss:$16 sps:$4 sm:$0xff]   ;;  %v12703_v20 = vld [vmem:[%s13966_s21 + $0xb24] ss:$16 sps:$4 sm:$0xff]  }
 0x695   : > { %7189 = vmatprep.subr.bf16.mxu1 %v12622_v22  ;;  %v12706_v22 = vld [vmem:[%s13966_s21 + $0xb2c] ss:$16 sps:$4 sm:$0xff]  }
 0x697   : > { %7084 = vmatpush1.bf16.msra.mxu0 %v12617_v24  ;;  %v12701_v24 = vld [vmem:[%s13966_s21 + $0xb20] ss:$16 sps:$4 sm:$0xff]  }
 0x698   : > { %7190 = vmatpush1.bf16.msra.mxu1 %v12620_v26  ;;  %7085 = vmatprep.subr.bf16.mxu0 %v12625_v27  ;;  %v12704_v26 = vld [vmem:[%s13966_s21 + $0xb28] ss:$16 sps:$4 sm:$0xff]   ;;  %v12709_v27 = vld [vmem:[%s13966_s21 + $0xb44] ss:$16 sps:$4 sm:$0xff]  }
 0x699   : > { %7191 = vmatprep.subr.bf16.mxu1 %v12628_v29  ;;  %v12712_v29 = vld [vmem:[%s13966_s21 + $0xb4c] ss:$16 sps:$4 sm:$0xff]  }
 0x69b   : > { %7086 = vmatpush1.bf16.msra.mxu0 %v12623_v30  ;;  %v12707_v30 = vld [vmem:[%s13966_s21 + $0xb40] ss:$16 sps:$4 sm:$0xff]  }
 0x69c   : > { %7192 = vmatpush1.bf16.msra.mxu1 %v12626_v53  ;;  %7087 = vmatprep.subr.bf16.mxu0 %v12631_v31  ;;  %v12710_v53 = vld [vmem:[%s13966_s21 + $0xb48] ss:$16 sps:$4 sm:$0xff]   ;;  %v12715_v31 = vld [vmem:[%s13966_s21 + $0xb64] ss:$16 sps:$4 sm:$0xff]  }
 0x69d   : > { %7193 = vmatprep.subr.bf16.mxu1 %v12634_v32  ;;  %v12718_v32 = vld [vmem:[%s13966_s21 + $0xb6c] ss:$16 sps:$4 sm:$0xff]  }
 0x69f   : > { %7088 = vmatpush1.bf16.msra.mxu0 %v12629_v34  ;;  %v12713_v34 = vld [vmem:[%s13966_s21 + $0xb60] ss:$16 sps:$4 sm:$0xff]  }
 0x6a0   : > { %7194 = vmatpush1.bf16.msra.mxu1 %v12632_v9  ;;  %7089 = vmatprep.subr.bf16.mxu0 %v12637_v39  ;;  %v12716_v9 = vld [vmem:[%s13966_s21 + $0xb68] ss:$16 sps:$4 sm:$0xff]   ;;  %v12721_v39 = vld [vmem:[%s13966_s21 + $0xb84] ss:$16 sps:$4 sm:$0xff]  }
 0x6a1   : > { %7195 = vmatprep.subr.bf16.mxu1 %v12640_v40  ;;  %v12724_v40 = vld [vmem:[%s13966_s21 + $0xb8c] ss:$16 sps:$4 sm:$0xff]  }
 0x6a3   : > { %7090 = vmatpush1.bf16.msra.mxu0 %v12635_v41  ;;  %v12719_v41 = vld [vmem:[%s13966_s21 + $0xb80] ss:$16 sps:$4 sm:$0xff]  }
 0x6a4   : > { %7196 = vmatpush1.bf16.msra.mxu1 %v12638_v4  ;;  %7091 = vmatprep.subr.bf16.mxu0 %v12643_v42  ;;  %v12722_v4 = vld [vmem:[%s13966_s21 + $0xb88] ss:$16 sps:$4 sm:$0xff]   ;;  %v12727_v42 = vld [vmem:[%s13966_s21 + $0xba4] ss:$16 sps:$4 sm:$0xff]  }
 0x6a5   : > { %7197 = vmatprep.subr.bf16.mxu1 %v12646_v45  ;;  %v12730_v45 = vld [vmem:[%s13966_s21 + $0xbac] ss:$16 sps:$4 sm:$0xff]  }
 0x6a7   : > { %7092 = vmatpush1.bf16.msra.mxu0 %v12641_v46  ;;  %v12725_v46 = vld [vmem:[%s13966_s21 + $0xba0] ss:$16 sps:$4 sm:$0xff]  }
 0x6a8   : > { %7198 = vmatpush1.bf16.msra.mxu1 %v12644_v14  ;;  %7114 = vmatprep.subr.bf16.mxu0 %v12649_v13  ;;  %v12728_v14 = vld [vmem:[%s13966_s21 + $0xba8] ss:$16 sps:$4 sm:$0xff]   ;;  %v12733_v13 = vld [vmem:[%s13966_s21 + $0xbc4] ss:$16 sps:$4 sm:$0xff]  }
 0x6a9   : > { %7220 = vmatprep.subr.bf16.mxu1 %v12652_v28  ;;  %v12736_v28 = vld [vmem:[%s13966_s21 + $0xbcc] ss:$16 sps:$4 sm:$0xff]  }
 0x6aa   : > { %7094 = vmatmul.mubr.bf16.vlgmr.msra.gmra.mrb[20].mxu0 %v13128_v21 }
 0x6ab   : > { %7115 = vmatpush1.bf16.msra.mxu0 %v12647_v47  ;;  %7200 = vmatmul.mubr.bf16.vlgmr.msra.gmra.mrb[20].mxu1 %v13128_v21  ;;  %v12731_v47 = vld [vmem:[%s13966_s21 + $0xbc0] ss:$16 sps:$4 sm:$0xff]  }
 0x6ac   : > { %7221 = vmatpush1.bf16.msra.mxu1 %v12650_v48  ;;  %7116 = vmatprep.subr.bf16.mxu0 %v12655_v49  ;;  %v12734_v48 = vld [vmem:[%s13966_s21 + $0xbc8] ss:$16 sps:$4 sm:$0xff]   ;;  %v12739_v49 = vld [vmem:[%s13966_s21 + $0xbe4] ss:$16 sps:$4 sm:$0xff]   ;;  %v12737_v21 = vld [vmem:[%s13966_s21 + $0xbe0] ss:$16 sps:$4 sm:$0xff]  }
 0x6ad   : > { %7222 = vmatprep.subr.bf16.mxu1 %v12658_v6  ;;  %7103 = vmatprep.mubr.bf16.mxu0 %v13129_v23  ;;  %v12742_v6 = vld [vmem:[%s13966_s21 + $0xbec] ss:$16 sps:$4 sm:$0xff]  }
 0x6ae   : > { %7209 = vmatprep.mubr.bf16.mxu1 %v13129_v23  ;;  %v12746_v23 = vld [vmem:[%s13966_s21 + $0x1008] ss:$16 sps:$4 sm:$0xff]  }
 0x6af   : > { %7117 = vmatpush1.bf16.msra.mxu0 %v12653_v25  ;;  %v12740_v25 = vld [vmem:[%s13966_s21 + $0xbe8] ss:$16 sps:$4 sm:$0xff]  }
 0x6b0   : > { %7223 = vmatpush1.bf16.msra.mxu1 %v12656_v35  ;;  %7118 = vmatprep.subr.bf16.mxu0 %v12661_v50  ;;  %v12745_v35 = vld [vmem:[%s13966_s21 + $0x1004] ss:$16 sps:$4 sm:$0xff]   ;;  %v12748_v50 = vld [vmem:[%s13966_s21 + $0x100c] ss:$16 sps:$4 sm:$0xff]  }
 0x6b1   : > { %7224 = vmatprep.subr.bf16.mxu1 %v12664_v51  ;;  %v12743_v51 = vld [vmem:[%s13966_s21 + $0x1000] ss:$16 sps:$4 sm:$0xff]  }
 0x6b2   : > { %7104 = vmatmul.mubr.bf16.gmra.mrb[24].mxu0 %v13130_v56 }
 0x6b3   : > { %7119 = vmatpush1.bf16.msra.mxu0 %v12659_v52  ;;  %7210 = vmatmul.mubr.bf16.gmra.mrb[24].mxu1 %v13130_v56  ;;  %v12751_v52 = vld [vmem:[%s13966_s21 + $0x1024] ss:$16 sps:$4 sm:$0xff]   ;;  %v12752_v56 = vld [vmem:[%s13966_s21 + $0x1028] ss:$16 sps:$4 sm:$0xff]  }
 0x6b4   : > { %7225 = vmatpush1.bf16.msra.mxu1 %v12662_v54  ;;  %7120 = vmatprep.subr.bf16.mxu0 %v12667_v33  ;;  %v12754_v54 = vld [vmem:[%s13966_s21 + $0x102c] ss:$16 sps:$4 sm:$0xff]   ;;  %v13132_v33 = vld [vmem:[#allocation3 + $0x10] sm:$0xff] }
 0x6b5   : > { %7226 = vmatprep.subr.bf16.mxu1 %v12670_v55  ;;  %7146 = vmatprep.mubr.bf16.mxu0 %v13131_v61  ;;  %v12749_v55 = vld [vmem:[%s13966_s21 + $0x1020] ss:$16 sps:$4 sm:$0xff]  }
 0x6b6   : > { %7252 = vmatprep.mubr.bf16.mxu1 %v13131_v61  ;;  %v12758_v61 = vld [vmem:[%s13966_s21 + $0x1048] ss:$16 sps:$4 sm:$0xff]  }
 0x6b7   : > { %7121 = vmatpush1.bf16.msra.mxu0 %v12665_v57  ;;  %v12757_v57 = vld [vmem:[%s13966_s21 + $0x1044] ss:$16 sps:$4 sm:$0xff]  }
 0x6b8   : > { %7227 = vmatpush1.bf16.msra.mxu1 %v12668_v58  ;;  %7122 = vmatprep.subr.bf16.mxu0 %v12673_v59  ;;  %v13133_v58 = vld [vmem:[#allocation3 + $0x38] sm:$0xff] }
 0x6b9   : > { %7228 = vmatprep.subr.bf16.mxu1 %v12676_v60  ;;  %v12760_v59 = vld [vmem:[%s13966_s21 + $0x104c] ss:$16 sps:$4 sm:$0xff]   ;;  %v12755_v60 = vld [vmem:[%s13966_s21 + $0x1040] ss:$16 sps:$4 sm:$0xff]  }
 0x6bb   : > { %7123 = vmatpush1.bf16.msra.mxu0 %v12671_v62  ;;  %v12763_v62 = vld [vmem:[%s13966_s21 + $0x1064] ss:$16 sps:$4 sm:$0xff]  }
 0x6bc   : > { %7229 = vmatpush1.bf16.msra.mxu1 %v12674_v63  ;;  %7124 = vmatprep.subr.bf16.mxu0 %v12679_v0  ;;  %v12766_v63 = vld [vmem:[%s13966_s21 + $0x106c] ss:$16 sps:$4 sm:$0xff]   ;;  %v13134_v0 = vld [vmem:[#allocation3 + $0x30] sm:$0xff] }
 0x6bd   : > { %7230 = vmatprep.subr.bf16.mxu1 %v12682_v1  ;;  %v12761_v1 = vld [vmem:[%s13966_s21 + $0x1060] ss:$16 sps:$4 sm:$0xff]  }
 0x6bf   : > { %7125 = vmatpush1.bf16.msra.mxu0 %v12677_v37  ;;  %v12764_v37 = vld [vmem:[%s13966_s21 + $0x1068] ss:$16 sps:$4 sm:$0xff]  }
 0x6c0   : > { %7231 = vmatpush1.bf16.msra.mxu1 %v12680_v2  ;;  %7126 = vmatprep.subr.bf16.mxu0 %v12685_v3  ;;  %v12769_v2 = vld [vmem:[%s13966_s21 + $0x1084] ss:$16 sps:$4 sm:$0xff]   ;;  %v12772_v3 = vld [vmem:[%s13966_s21 + $0x108c] ss:$16 sps:$4 sm:$0xff]  }
 0x6c1   : > { %7232 = vmatprep.subr.bf16.mxu1 %v12688_v5  ;;  %v13135_v5 = vld [vmem:[#allocation2 + $0x8] sm:$0xff] }
 0x6c3   : > { %7127 = vmatpush1.bf16.msra.mxu0 %v12683_v7  ;;  %v12767_v7 = vld [vmem:[%s13966_s21 + $0x1080] ss:$16 sps:$4 sm:$0xff]  }
 0x6c4   : > { %7233 = vmatpush1.bf16.msra.mxu1 %v12686_v8  ;;  %7128 = vmatprep.subr.bf16.mxu0 %v12691_v10  ;;  %v12770_v8 = vld [vmem:[%s13966_s21 + $0x1088] ss:$16 sps:$4 sm:$0xff]   ;;  %v12775_v10 = vld [vmem:[%s13966_s21 + $0x10a4] ss:$16 sps:$4 sm:$0xff]  }
 0x6c5   : > { %7234 = vmatprep.subr.bf16.mxu1 %v12694_v11  ;;  %v12778_v11 = vld [vmem:[%s13966_s21 + $0x10ac] ss:$16 sps:$4 sm:$0xff]  }
 0x6c7   : > { %7129 = vmatpush1.bf16.msra.mxu0 %v12689_v12  ;;  %v12773_v12 = vld [vmem:[%s13966_s21 + $0x10a0] ss:$16 sps:$4 sm:$0xff]  }
 0x6c8   : > { %7235 = vmatpush1.bf16.msra.mxu1 %v12692_v15  ;;  %7130 = vmatprep.subr.bf16.mxu0 %v12697_v16  ;;  %v12776_v15 = vld [vmem:[%s13966_s21 + $0x10a8] ss:$16 sps:$4 sm:$0xff]   ;;  %v12781_v16 = vld [vmem:[%s13966_s21 + $0x10c4] ss:$16 sps:$4 sm:$0xff]  }
 0x6c9   : > { %7236 = vmatprep.subr.bf16.mxu1 %v12700_v17  ;;  %v12784_v17 = vld [vmem:[%s13966_s21 + $0x10cc] ss:$16 sps:$4 sm:$0xff]  }
 0x6cb   : > { %7131 = vmatpush1.bf16.msra.mxu0 %v12695_v18  ;;  %v12779_v18 = vld [vmem:[%s13966_s21 + $0x10c0] ss:$16 sps:$4 sm:$0xff]  }
 0x6cc   : > { %7237 = vmatpush1.bf16.msra.mxu1 %v12698_v19  ;;  %7132 = vmatprep.subr.bf16.mxu0 %v12703_v20  ;;  %v12782_v19 = vld [vmem:[%s13966_s21 + $0x10c8] ss:$16 sps:$4 sm:$0xff]   ;;  %v12787_v20 = vld [vmem:[%s13966_s21 + $0x10e4] ss:$16 sps:$4 sm:$0xff]  }
 0x6cd   : > { %7238 = vmatprep.subr.bf16.mxu1 %v12706_v22  ;;  %v12790_v22 = vld [vmem:[%s13966_s21 + $0x10ec] ss:$16 sps:$4 sm:$0xff]  }
 0x6cf   : > { %7133 = vmatpush1.bf16.msra.mxu0 %v12701_v24  ;;  %v12785_v24 = vld [vmem:[%s13966_s21 + $0x10e0] ss:$16 sps:$4 sm:$0xff]  }
 0x6d0   : > { %7239 = vmatpush1.bf16.msra.mxu1 %v12704_v26  ;;  %7134 = vmatprep.subr.bf16.mxu0 %v12709_v27  ;;  %v12788_v26 = vld [vmem:[%s13966_s21 + $0x10e8] ss:$16 sps:$4 sm:$0xff]   ;;  %v12793_v27 = vld [vmem:[%s13966_s21 + $0x1104] ss:$16 sps:$4 sm:$0xff]  }
 0x6d1   : > { %7240 = vmatprep.subr.bf16.mxu1 %v12712_v29  ;;  %v12796_v29 = vld [vmem:[%s13966_s21 + $0x110c] ss:$16 sps:$4 sm:$0xff]  }
 0x6d3   : > { %7135 = vmatpush1.bf16.msra.mxu0 %v12707_v30  ;;  %v12791_v30 = vld [vmem:[%s13966_s21 + $0x1100] ss:$16 sps:$4 sm:$0xff]  }
 0x6d4   : > { %7241 = vmatpush1.bf16.msra.mxu1 %v12710_v53  ;;  %7136 = vmatprep.subr.bf16.mxu0 %v12715_v31  ;;  %v12794_v53 = vld [vmem:[%s13966_s21 + $0x1108] ss:$16 sps:$4 sm:$0xff]   ;;  %v12799_v31 = vld [vmem:[%s13966_s21 + $0x1124] ss:$16 sps:$4 sm:$0xff]  }
 0x6d5   : > { %7242 = vmatprep.subr.bf16.mxu1 %v12718_v32  ;;  %v12802_v32 = vld [vmem:[%s13966_s21 + $0x112c] ss:$16 sps:$4 sm:$0xff]  }
 0x6d7   : > { %7137 = vmatpush1.bf16.msra.mxu0 %v12713_v34  ;;  %v12797_v34 = vld [vmem:[%s13966_s21 + $0x1120] ss:$16 sps:$4 sm:$0xff]  }
 0x6d8   : > { %7243 = vmatpush1.bf16.msra.mxu1 %v12716_v9  ;;  %7138 = vmatprep.subr.bf16.mxu0 %v12721_v39  ;;  %v12800_v9 = vld [vmem:[%s13966_s21 + $0x1128] ss:$16 sps:$4 sm:$0xff]   ;;  %v12805_v39 = vld [vmem:[%s13966_s21 + $0x1144] ss:$16 sps:$4 sm:$0xff]  }
 0x6d9   : > { %7244 = vmatprep.subr.bf16.mxu1 %v12724_v40  ;;  %v12808_v40 = vld [vmem:[%s13966_s21 + $0x114c] ss:$16 sps:$4 sm:$0xff]  }
 0x6db   : > { %7139 = vmatpush1.bf16.msra.mxu0 %v12719_v41  ;;  %v12803_v41 = vld [vmem:[%s13966_s21 + $0x1140] ss:$16 sps:$4 sm:$0xff]  }
 0x6dc   : > { %7245 = vmatpush1.bf16.msra.mxu1 %v12722_v4  ;;  %7140 = vmatprep.subr.bf16.mxu0 %v12727_v42  ;;  %v12806_v4 = vld [vmem:[%s13966_s21 + $0x1148] ss:$16 sps:$4 sm:$0xff]   ;;  %v12811_v42 = vld [vmem:[%s13966_s21 + $0x1164] ss:$16 sps:$4 sm:$0xff]  }
 0x6dd   : > { %7246 = vmatprep.subr.bf16.mxu1 %v12730_v45  ;;  %v12814_v45 = vld [vmem:[%s13966_s21 + $0x116c] ss:$16 sps:$4 sm:$0xff]  }
 0x6df   : > { %7141 = vmatpush1.bf16.msra.mxu0 %v12725_v46  ;;  %v12809_v46 = vld [vmem:[%s13966_s21 + $0x1160] ss:$16 sps:$4 sm:$0xff]  }
 0x6e0   : > { %7247 = vmatpush1.bf16.msra.mxu1 %v12728_v14  ;;  %7142 = vmatprep.subr.bf16.mxu0 %v12733_v13  ;;  %v12812_v14 = vld [vmem:[%s13966_s21 + $0x1168] ss:$16 sps:$4 sm:$0xff]   ;;  %v12817_v13 = vld [vmem:[%s13966_s21 + $0x1184] ss:$16 sps:$4 sm:$0xff]  }
 0x6e1   : > { %7248 = vmatprep.subr.bf16.mxu1 %v12736_v28  ;;  %v12820_v28 = vld [vmem:[%s13966_s21 + $0x118c] ss:$16 sps:$4 sm:$0xff]  }
 0x6e3   : > { %7143 = vmatpush1.bf16.msra.mxu0 %v12731_v47  ;;  %v12815_v47 = vld [vmem:[%s13966_s21 + $0x1180] ss:$16 sps:$4 sm:$0xff]  }
 0x6e4   : > { %7249 = vmatpush1.bf16.msra.mxu1 %v12734_v48  ;;  %7144 = vmatprep.subr.bf16.mxu0 %v12739_v49  ;;  %v12818_v48 = vld [vmem:[%s13966_s21 + $0x1188] ss:$16 sps:$4 sm:$0xff]   ;;  %v12823_v49 = vld [vmem:[%s13966_s21 + $0x11a4] ss:$16 sps:$4 sm:$0xff]  }
 0x6e5   : > { %7250 = vmatprep.subr.bf16.mxu1 %v12742_v6  ;;  %v12826_v6 = vld [vmem:[%s13966_s21 + $0x11ac] ss:$16 sps:$4 sm:$0xff]  }
 0x6e7   : > { %7145 = vmatpush1.bf16.msra.mxu0 %v12737_v21  ;;  %v12821_v21 = vld [vmem:[%s13966_s21 + $0x11a0] ss:$16 sps:$4 sm:$0xff]  }
 0x6e8   : > { %7251 = vmatpush1.bf16.msra.mxu1 %v12740_v25  ;;  %8238 = vmatprep.subr.bf16.mxu0 %v12745_v35  ;;  %v12824_v25 = vld [vmem:[%s13966_s21 + $0x11a8] ss:$16 sps:$4 sm:$0xff]   ;;  %v12829_v35 = vld [vmem:[%s13966_s21 + $0x11c4] ss:$16 sps:$4 sm:$0xff]  }
 0x6e9   : > { %8324 = vmatprep.subr.bf16.mxu1 %v12748_v50  ;;  %v12832_v50 = vld [vmem:[%s13966_s21 + $0x11cc] ss:$16 sps:$4 sm:$0xff]  }
 0x6ea   : > { %7147 = vmatmul.mubr.bf16.vlgmr.msra.gmra.mrb[20].mxu0 %v13132_v33 }
 0x6eb   : > { %7253 = vmatmul.mubr.bf16.vlgmr.msra.gmra.mrb[20].mxu1 %v13132_v33  ;;  %8239 = vmatpush1.bf16.msra.mxu0 %v12743_v51  ;;  %v12827_v51 = vld [vmem:[%s13966_s21 + $0x11c0] ss:$16 sps:$4 sm:$0xff]  }
 0x6ec   : > { %8325 = vmatpush1.bf16.msra.mxu1 %v12746_v23  ;;  %8240 = vmatprep.subr.bf16.mxu0 %v12751_v52  ;;  %v12830_v23 = vld [vmem:[%s13966_s21 + $0x11c8] ss:$16 sps:$4 sm:$0xff]   ;;  %v12835_v52 = vld [vmem:[%s13966_s21 + $0x11e4] ss:$16 sps:$4 sm:$0xff]   ;;  %v12833_v33 = vld [vmem:[%s13966_s21 + $0x11e0] ss:$16 sps:$4 sm:$0xff]  }
 0x6ed   : > { %8326 = vmatprep.subr.bf16.mxu1 %v12754_v54  ;;  %7156 = vmatprep.mubr.bf16.mxu0 %v13133_v58  ;;  %v12838_v54 = vld [vmem:[%s13966_s21 + $0x11ec] ss:$16 sps:$4 sm:$0xff]  }
 0x6ee   : > { %7262 = vmatprep.mubr.bf16.mxu1 %v13133_v58  ;;  %v12839_v58 = vld [vmem:[%s13966_s21 + $0x1200] ss:$16 sps:$4 sm:$0xff]  }
 0x6ef   : > { %8241 = vmatpush1.bf16.msra.mxu0 %v12749_v55  ;;  %v12836_v55 = vld [vmem:[%s13966_s21 + $0x11e8] ss:$16 sps:$4 sm:$0xff]  }
 0x6f0   : > { %8327 = vmatpush1.bf16.msra.mxu1 %v12752_v56  ;;  %8242 = vmatprep.subr.bf16.mxu0 %v12757_v57  ;;  %v12841_v56 = vld [vmem:[%s13966_s21 + $0x1204] ss:$16 sps:$4 sm:$0xff]   ;;  %v12844_v57 = vld [vmem:[%s13966_s21 + $0x120c] ss:$16 sps:$4 sm:$0xff]  }
 0x6f1   : > { %8328 = vmatprep.subr.bf16.mxu1 %v12760_v59  ;;  %v12842_v59 = vld [vmem:[%s13966_s21 + $0x1208] ss:$16 sps:$4 sm:$0xff]  }
 0x6f2   : > { %7157 = vmatmul.mubr.bf16.gmra.mrb[24].mxu0 %v13134_v0 }
 0x6f3   : > { %7263 = vmatmul.mubr.bf16.gmra.mrb[24].mxu1 %v13134_v0  ;;  %8243 = vmatpush1.bf16.msra.mxu0 %v12755_v60  ;;  %v12847_v60 = vld [vmem:[%s13966_s21 + $0x1224] ss:$16 sps:$4 sm:$0xff]   ;;  %v12848_v0 = vld [vmem:[%s13966_s21 + $0x1228] ss:$16 sps:$4 sm:$0xff]  }
 0x6f4   : > { %8329 = vmatpush1.bf16.msra.mxu1 %v12758_v61  ;;  %8244 = vmatprep.subr.bf16.mxu0 %v12763_v62  ;;  %v12850_v61 = vld [vmem:[%s13966_s21 + $0x122c] ss:$16 sps:$4 sm:$0xff]   ;;  %v13136_v62 = vld [vmem:[#allocation2] sm:$0xff] }
 0x6f5   : > { %8330 = vmatprep.subr.bf16.mxu1 %v12766_v63  ;;  %8270 = vmatprep.mubr.bf16.mxu0 %v13135_v5  ;;  %v12845_v63 = vld [vmem:[%s13966_s21 + $0x1220] ss:$16 sps:$4 sm:$0xff]  }
 0x6f6   : > { %8356 = vmatprep.mubr.bf16.mxu1 %v13135_v5  ;;  %v12854_v5 = vld [vmem:[%s13966_s21 + $0x1248] ss:$16 sps:$4 sm:$0xff]  }
 0x6f7   : > { %8245 = vmatpush1.bf16.msra.mxu0 %v12761_v1  ;;  %v12853_v1 = vld [vmem:[%s13966_s21 + $0x1244] ss:$16 sps:$4 sm:$0xff]  }
 0x6f8   : > { %8331 = vmatpush1.bf16.msra.mxu1 %v12764_v37  ;;  %8246 = vmatprep.subr.bf16.mxu0 %v12769_v2  ;;  %v12856_v37 = vld [vmem:[%s13966_s21 + $0x124c] ss:$16 sps:$4 sm:$0xff]  }
 0x6f9   : > { %8332 = vmatprep.subr.bf16.mxu1 %v12772_v3  ;;  %v13137_v2 = vld [vmem:[#allocation2 + $0x18] sm:$0xff]  ;;  %v12851_v3 = vld [vmem:[%s13966_s21 + $0x1240] ss:$16 sps:$4 sm:$0xff]  }
 0x6fb   : > { %8247 = vmatpush1.bf16.msra.mxu0 %v12767_v7  ;;  %v12859_v7 = vld [vmem:[%s13966_s21 + $0x1264] ss:$16 sps:$4 sm:$0xff]  }
 0x6fc   : > { %8333 = vmatpush1.bf16.msra.mxu1 %v12770_v8  ;;  %8248 = vmatprep.subr.bf16.mxu0 %v12775_v10  ;;  %v12862_v8 = vld [vmem:[%s13966_s21 + $0x126c] ss:$16 sps:$4 sm:$0xff]   ;;  %v12857_v10 = vld [vmem:[%s13966_s21 + $0x1260] ss:$16 sps:$4 sm:$0xff]  }
 0x6fd   : > { %8334 = vmatprep.subr.bf16.mxu1 %v12778_v11  ;;  %v12860_v11 = vld [vmem:[%s13966_s21 + $0x1268] ss:$16 sps:$4 sm:$0xff]  }
 0x6ff   : > { %8249 = vmatpush1.bf16.msra.mxu0 %v12773_v12  ;;  %v12865_v12 = vld [vmem:[%s13966_s21 + $0x1284] ss:$16 sps:$4 sm:$0xff]  }
 0x700   : > { %8335 = vmatpush1.bf16.msra.mxu1 %v12776_v15  ;;  %8250 = vmatprep.subr.bf16.mxu0 %v12781_v16  ;;  %v12868_v15 = vld [vmem:[%s13966_s21 + $0x128c] ss:$16 sps:$4 sm:$0xff]   ;;  %v12863_v16 = vld [vmem:[%s13966_s21 + $0x1280] ss:$16 sps:$4 sm:$0xff]  }
 0x701   : > { %8336 = vmatprep.subr.bf16.mxu1 %v12784_v17  ;;  %v12866_v17 = vld [vmem:[%s13966_s21 + $0x1288] ss:$16 sps:$4 sm:$0xff]  }
 0x703   : > { %8251 = vmatpush1.bf16.msra.mxu0 %v12779_v18  ;;  %v12871_v18 = vld [vmem:[%s13966_s21 + $0x12a4] ss:$16 sps:$4 sm:$0xff]  }
 0x704   : > { %8337 = vmatpush1.bf16.msra.mxu1 %v12782_v19  ;;  %8252 = vmatprep.subr.bf16.mxu0 %v12787_v20  ;;  %v12874_v19 = vld [vmem:[%s13966_s21 + $0x12ac] ss:$16 sps:$4 sm:$0xff]   ;;  %v12869_v20 = vld [vmem:[%s13966_s21 + $0x12a0] ss:$16 sps:$4 sm:$0xff]  }
 0x705   : > { %8338 = vmatprep.subr.bf16.mxu1 %v12790_v22  ;;  %v12872_v22 = vld [vmem:[%s13966_s21 + $0x12a8] ss:$16 sps:$4 sm:$0xff]  }
 0x707   : > { %8253 = vmatpush1.bf16.msra.mxu0 %v12785_v24  ;;  %v12877_v24 = vld [vmem:[%s13966_s21 + $0x12c4] ss:$16 sps:$4 sm:$0xff]  }
 0x708   : > { %8339 = vmatpush1.bf16.msra.mxu1 %v12788_v26  ;;  %8254 = vmatprep.subr.bf16.mxu0 %v12793_v27  ;;  %v12880_v26 = vld [vmem:[%s13966_s21 + $0x12cc] ss:$16 sps:$4 sm:$0xff]   ;;  %v12875_v27 = vld [vmem:[%s13966_s21 + $0x12c0] ss:$16 sps:$4 sm:$0xff]  }
 0x709   : > { %8340 = vmatprep.subr.bf16.mxu1 %v12796_v29  ;;  %v12878_v29 = vld [vmem:[%s13966_s21 + $0x12c8] ss:$16 sps:$4 sm:$0xff]  }
 0x70b   : > { %8255 = vmatpush1.bf16.msra.mxu0 %v12791_v30  ;;  %v12883_v30 = vld [vmem:[%s13966_s21 + $0x12e4] ss:$16 sps:$4 sm:$0xff]  }
 0x70c   : > { %8341 = vmatpush1.bf16.msra.mxu1 %v12794_v53  ;;  %8256 = vmatprep.subr.bf16.mxu0 %v12799_v31  ;;  %v12886_v53 = vld [vmem:[%s13966_s21 + $0x12ec] ss:$16 sps:$4 sm:$0xff]   ;;  %v12881_v31 = vld [vmem:[%s13966_s21 + $0x12e0] ss:$16 sps:$4 sm:$0xff]  }
 0x70d   : > { %8342 = vmatprep.subr.bf16.mxu1 %v12802_v32  ;;  %v12884_v32 = vld [vmem:[%s13966_s21 + $0x12e8] ss:$16 sps:$4 sm:$0xff]  }
 0x70f   : > { %8257 = vmatpush1.bf16.msra.mxu0 %v12797_v34  ;;  %v12889_v34 = vld [vmem:[%s13966_s21 + $0x1304] ss:$16 sps:$4 sm:$0xff]  }
 0x710   : > { %8343 = vmatpush1.bf16.msra.mxu1 %v12800_v9  ;;  %8258 = vmatprep.subr.bf16.mxu0 %v12805_v39  ;;  %v12892_v9 = vld [vmem:[%s13966_s21 + $0x130c] ss:$16 sps:$4 sm:$0xff]   ;;  %v12887_v39 = vld [vmem:[%s13966_s21 + $0x1300] ss:$16 sps:$4 sm:$0xff]  }
 0x711   : > { %8344 = vmatprep.subr.bf16.mxu1 %v12808_v40  ;;  %v12890_v40 = vld [vmem:[%s13966_s21 + $0x1308] ss:$16 sps:$4 sm:$0xff]  }
 0x713   : > { %8259 = vmatpush1.bf16.msra.mxu0 %v12803_v41  ;;  %v12895_v41 = vld [vmem:[%s13966_s21 + $0x1324] ss:$16 sps:$4 sm:$0xff]  }
 0x714   : > { %8345 = vmatpush1.bf16.msra.mxu1 %v12806_v4  ;;  %8260 = vmatprep.subr.bf16.mxu0 %v12811_v42  ;;  %v12898_v4 = vld [vmem:[%s13966_s21 + $0x132c] ss:$16 sps:$4 sm:$0xff]   ;;  %v12893_v42 = vld [vmem:[%s13966_s21 + $0x1320] ss:$16 sps:$4 sm:$0xff]  }
 0x715   : > { %8346 = vmatprep.subr.bf16.mxu1 %v12814_v45  ;;  %v12896_v45 = vld [vmem:[%s13966_s21 + $0x1328] ss:$16 sps:$4 sm:$0xff]  }
 0x717   : > { %8261 = vmatpush1.bf16.msra.mxu0 %v12809_v46  ;;  %v12901_v46 = vld [vmem:[%s13966_s21 + $0x1344] ss:$16 sps:$4 sm:$0xff]  }
 0x718   : > { %8347 = vmatpush1.bf16.msra.mxu1 %v12812_v14  ;;  %8262 = vmatprep.subr.bf16.mxu0 %v12817_v13  ;;  %v12904_v14 = vld [vmem:[%s13966_s21 + $0x134c] ss:$16 sps:$4 sm:$0xff]   ;;  %v12899_v13 = vld [vmem:[%s13966_s21 + $0x1340] ss:$16 sps:$4 sm:$0xff]  }
 0x719   : > { %8348 = vmatprep.subr.bf16.mxu1 %v12820_v28  ;;  %v12902_v28 = vld [vmem:[%s13966_s21 + $0x1348] ss:$16 sps:$4 sm:$0xff]  }
 0x71b   : > { %8263 = vmatpush1.bf16.msra.mxu0 %v12815_v47  ;;  %v12907_v47 = vld [vmem:[%s13966_s21 + $0x1364] ss:$16 sps:$4 sm:$0xff]  }
 0x71c   : > { %8349 = vmatpush1.bf16.msra.mxu1 %v12818_v48  ;;  %8264 = vmatprep.subr.bf16.mxu0 %v12823_v49  ;;  %v12910_v48 = vld [vmem:[%s13966_s21 + $0x136c] ss:$16 sps:$4 sm:$0xff]   ;;  %v12905_v49 = vld [vmem:[%s13966_s21 + $0x1360] ss:$16 sps:$4 sm:$0xff]  }
 0x71d   : > { %8350 = vmatprep.subr.bf16.mxu1 %v12826_v6  ;;  %v12908_v6 = vld [vmem:[%s13966_s21 + $0x1368] ss:$16 sps:$4 sm:$0xff]  }
 0x71f   : > { %8265 = vmatpush1.bf16.msra.mxu0 %v12821_v21  ;;  %v12913_v21 = vld [vmem:[%s13966_s21 + $0x1384] ss:$16 sps:$4 sm:$0xff]  }
 0x720   : > { %8351 = vmatpush1.bf16.msra.mxu1 %v12824_v25  ;;  %8266 = vmatprep.subr.bf16.mxu0 %v12829_v35  ;;  %v12916_v25 = vld [vmem:[%s13966_s21 + $0x138c] ss:$16 sps:$4 sm:$0xff]   ;;  %v12911_v35 = vld [vmem:[%s13966_s21 + $0x1380] ss:$16 sps:$4 sm:$0xff]  }
 0x721   : > { %8352 = vmatprep.subr.bf16.mxu1 %v12832_v50  ;;  %v12914_v50 = vld [vmem:[%s13966_s21 + $0x1388] ss:$16 sps:$4 sm:$0xff]  }
 0x723   : > { %8267 = vmatpush1.bf16.msra.mxu0 %v12827_v51  ;;  %v12919_v51 = vld [vmem:[%s13966_s21 + $0x13a4] ss:$16 sps:$4 sm:$0xff]  }
 0x724   : > { %8353 = vmatpush1.bf16.msra.mxu1 %v12830_v23  ;;  %8268 = vmatprep.subr.bf16.mxu0 %v12835_v52  ;;  %v12922_v23 = vld [vmem:[%s13966_s21 + $0x13ac] ss:$16 sps:$4 sm:$0xff]   ;;  %v12917_v52 = vld [vmem:[%s13966_s21 + $0x13a0] ss:$16 sps:$4 sm:$0xff]  }
 0x725   : > { %8354 = vmatprep.subr.bf16.mxu1 %v12838_v54  ;;  %v12920_v54 = vld [vmem:[%s13966_s21 + $0x13a8] ss:$16 sps:$4 sm:$0xff]  }
 0x727   : > { %8269 = vmatpush1.bf16.msra.mxu0 %v12833_v33  ;;  %v12925_v33 = vld [vmem:[%s13966_s21 + $0x13c4] ss:$16 sps:$4 sm:$0xff]  }
 0x728   : > { %8355 = vmatpush1.bf16.msra.mxu1 %v12836_v55  ;;  %8281 = vmatprep.subr.bf16.mxu0 %v12841_v56  ;;  %v12928_v55 = vld [vmem:[%s13966_s21 + $0x13cc] ss:$16 sps:$4 sm:$0xff]   ;;  %v12923_v56 = vld [vmem:[%s13966_s21 + $0x13c0] ss:$16 sps:$4 sm:$0xff]  }
 0x729   : > { %8367 = vmatprep.subr.bf16.mxu1 %v12844_v57  ;;  %v12926_v57 = vld [vmem:[%s13966_s21 + $0x13c8] ss:$16 sps:$4 sm:$0xff]  }
 0x72a   : > { %8271 = vmatmul.mubr.bf16.vlgmr.msra.gmra.mrb[28].mxu0 %v13136_v62 }
 0x72b   : > { %8282 = vmatpush1.bf16.msra.mxu0 %v12839_v58  ;;  %8357 = vmatmul.mubr.bf16.vlgmr.msra.gmra.mrb[28].mxu1 %v13136_v62  ;;  %v12931_v58 = vld [vmem:[%s13966_s21 + $0x13e4] ss:$16 sps:$4 sm:$0xff]  }
 0x72c   : > { %8368 = vmatpush1.bf16.msra.mxu1 %v12842_v59  ;;  %8283 = vmatprep.subr.bf16.mxu0 %v12847_v60  ;;  %v12934_v59 = vld [vmem:[%s13966_s21 + $0x13ec] ss:$16 sps:$4 sm:$0xff]   ;;  %v12929_v60 = vld [vmem:[%s13966_s21 + $0x13e0] ss:$16 sps:$4 sm:$0xff]   ;;  %v12937_v62 = vld [vmem:[%s13966_s21 + $0xc04] ss:$16 sps:$4 sm:$0xff]  }
 0x72d   : > { %8369 = vmatprep.subr.bf16.mxu1 %v12850_v61  ;;  %8313 = vmatprep.mubr.bf16.mxu0 %v13137_v2  ;;  %v12932_v61 = vld [vmem:[%s13966_s21 + $0x13e8] ss:$16 sps:$4 sm:$0xff]  }
 0x72e   : > { %8399 = vmatprep.mubr.bf16.mxu1 %v13137_v2  ;;  %v13138_v2 = vld [vmem:[#allocation2 + $0x10] sm:$0xff] }
 0x72f   : > { %8284 = vmatpush1.bf16.msra.mxu0 %v12845_v63  ;;  %v12940_v63 = vld [vmem:[%s13966_s21 + $0xc0c] ss:$16 sps:$4 sm:$0xff]  }
 0x730   : > { %8370 = vmatpush1.bf16.msra.mxu1 %v12848_v0  ;;  %8285 = vmatprep.subr.bf16.mxu0 %v12853_v1  ;;  %v12935_v0 = vld [vmem:[%s13966_s21 + $0xc00] ss:$16 sps:$4 sm:$0xff]   ;;  %v12938_v1 = vld [vmem:[%s13966_s21 + $0xc08] ss:$16 sps:$4 sm:$0xff]  }
 0x731   : > { %8371 = vmatprep.subr.bf16.mxu1 %v12856_v37  ;;  %v12943_v37 = vld [vmem:[%s13966_s21 + $0xc24] ss:$16 sps:$4 sm:$0xff]  }
 0x733   : > { %8286 = vmatpush1.bf16.msra.mxu0 %v12851_v3  ;;  %v12946_v3 = vld [vmem:[%s13966_s21 + $0xc2c] ss:$16 sps:$4 sm:$0xff]  }
 0x734   : > { %8372 = vmatpush1.bf16.msra.mxu1 %v12854_v5  ;;  %8287 = vmatprep.subr.bf16.mxu0 %v12859_v7  ;;  %v12941_v5 = vld [vmem:[%s13966_s21 + $0xc20] ss:$16 sps:$4 sm:$0xff]   ;;  %v12944_v7 = vld [vmem:[%s13966_s21 + $0xc28] ss:$16 sps:$4 sm:$0xff]  }
 0x735   : > { %8373 = vmatprep.subr.bf16.mxu1 %v12862_v8  ;;  %v12949_v8 = vld [vmem:[%s13966_s21 + $0xc44] ss:$16 sps:$4 sm:$0xff]  }
 0x737   : > { %8288 = vmatpush1.bf16.msra.mxu0 %v12857_v10  ;;  %v12952_v10 = vld [vmem:[%s13966_s21 + $0xc4c] ss:$16 sps:$4 sm:$0xff]  }
 0x738   : > { %8374 = vmatpush1.bf16.msra.mxu1 %v12860_v11  ;;  %8289 = vmatprep.subr.bf16.mxu0 %v12865_v12  ;;  %v12947_v11 = vld [vmem:[%s13966_s21 + $0xc40] ss:$16 sps:$4 sm:$0xff]   ;;  %v12950_v12 = vld [vmem:[%s13966_s21 + $0xc48] ss:$16 sps:$4 sm:$0xff]  }
 0x739   : > { %8375 = vmatprep.subr.bf16.mxu1 %v12868_v15  ;;  %v12955_v15 = vld [vmem:[%s13966_s21 + $0xc64] ss:$16 sps:$4 sm:$0xff]  }
 0x73b   : > { %8290 = vmatpush1.bf16.msra.mxu0 %v12863_v16  ;;  %v12958_v16 = vld [vmem:[%s13966_s21 + $0xc6c] ss:$16 sps:$4 sm:$0xff]  }
 0x73c   : > { %8376 = vmatpush1.bf16.msra.mxu1 %v12866_v17  ;;  %8291 = vmatprep.subr.bf16.mxu0 %v12871_v18  ;;  %v12956_v17 = vld [vmem:[%s13966_s21 + $0xc68] ss:$16 sps:$4 sm:$0xff]   ;;  %v12961_v18 = vld [vmem:[%s13966_s21 + $0xc84] ss:$16 sps:$4 sm:$0xff]  }
 0x73d   : > { %8377 = vmatprep.subr.bf16.mxu1 %v12874_v19  ;;  %v12964_v19 = vld [vmem:[%s13966_s21 + $0xc8c] ss:$16 sps:$4 sm:$0xff]  }
 0x73f   : > { %8292 = vmatpush1.bf16.msra.mxu0 %v12869_v20  ;;  %v12959_v20 = vld [vmem:[%s13966_s21 + $0xc80] ss:$16 sps:$4 sm:$0xff]  }
 0x740   : > { %8378 = vmatpush1.bf16.msra.mxu1 %v12872_v22  ;;  %8293 = vmatprep.subr.bf16.mxu0 %v12877_v24  ;;  %v12962_v22 = vld [vmem:[%s13966_s21 + $0xc88] ss:$16 sps:$4 sm:$0xff]   ;;  %v12967_v24 = vld [vmem:[%s13966_s21 + $0xca4] ss:$16 sps:$4 sm:$0xff]  }
 0x741   : > { %8379 = vmatprep.subr.bf16.mxu1 %v12880_v26  ;;  %v12970_v26 = vld [vmem:[%s13966_s21 + $0xcac] ss:$16 sps:$4 sm:$0xff]  }
 0x743   : > { %8294 = vmatpush1.bf16.msra.mxu0 %v12875_v27  ;;  %v12965_v27 = vld [vmem:[%s13966_s21 + $0xca0] ss:$16 sps:$4 sm:$0xff]  }
 0x744   : > { %8380 = vmatpush1.bf16.msra.mxu1 %v12878_v29  ;;  %8295 = vmatprep.subr.bf16.mxu0 %v12883_v30  ;;  %v12968_v29 = vld [vmem:[%s13966_s21 + $0xca8] ss:$16 sps:$4 sm:$0xff]   ;;  %v12973_v30 = vld [vmem:[%s13966_s21 + $0xcc4] ss:$16 sps:$4 sm:$0xff]  }
 0x745   : > { %8381 = vmatprep.subr.bf16.mxu1 %v12886_v53  ;;  %v12976_v53 = vld [vmem:[%s13966_s21 + $0xccc] ss:$16 sps:$4 sm:$0xff]  }
 0x747   : > { %8296 = vmatpush1.bf16.msra.mxu0 %v12881_v31  ;;  %v12971_v31 = vld [vmem:[%s13966_s21 + $0xcc0] ss:$16 sps:$4 sm:$0xff]  }
 0x748   : > { %8382 = vmatpush1.bf16.msra.mxu1 %v12884_v32  ;;  %8297 = vmatprep.subr.bf16.mxu0 %v12889_v34  ;;  %v12974_v32 = vld [vmem:[%s13966_s21 + $0xcc8] ss:$16 sps:$4 sm:$0xff]   ;;  %v12979_v34 = vld [vmem:[%s13966_s21 + $0xce4] ss:$16 sps:$4 sm:$0xff]  }
 0x749   : > { %8383 = vmatprep.subr.bf16.mxu1 %v12892_v9  ;;  %v12982_v9 = vld [vmem:[%s13966_s21 + $0xcec] ss:$16 sps:$4 sm:$0xff]  }
 0x74b   : > { %8298 = vmatpush1.bf16.msra.mxu0 %v12887_v39  ;;  %v12977_v39 = vld [vmem:[%s13966_s21 + $0xce0] ss:$16 sps:$4 sm:$0xff]  }
 0x74c   : > { %8384 = vmatpush1.bf16.msra.mxu1 %v12890_v40  ;;  %8299 = vmatprep.subr.bf16.mxu0 %v12895_v41  ;;  %v12980_v40 = vld [vmem:[%s13966_s21 + $0xce8] ss:$16 sps:$4 sm:$0xff]   ;;  %v12985_v41 = vld [vmem:[%s13966_s21 + $0xd04] ss:$16 sps:$4 sm:$0xff]  }
 0x74d   : > { %8385 = vmatprep.subr.bf16.mxu1 %v12898_v4  ;;  %v12988_v4 = vld [vmem:[%s13966_s21 + $0xd0c] ss:$16 sps:$4 sm:$0xff]  }
 0x74f   : > { %8300 = vmatpush1.bf16.msra.mxu0 %v12893_v42  ;;  %v12983_v42 = vld [vmem:[%s13966_s21 + $0xd00] ss:$16 sps:$4 sm:$0xff]  }
 0x750   : > { %8386 = vmatpush1.bf16.msra.mxu1 %v12896_v45  ;;  %8301 = vmatprep.subr.bf16.mxu0 %v12901_v46  ;;  %v12986_v45 = vld [vmem:[%s13966_s21 + $0xd08] ss:$16 sps:$4 sm:$0xff]   ;;  %v12991_v46 = vld [vmem:[%s13966_s21 + $0xd24] ss:$16 sps:$4 sm:$0xff]  }
 0x751   : > { %8387 = vmatprep.subr.bf16.mxu1 %v12904_v14  ;;  %v12994_v14 = vld [vmem:[%s13966_s21 + $0xd2c] ss:$16 sps:$4 sm:$0xff]  }
 0x753   : > { %8302 = vmatpush1.bf16.msra.mxu0 %v12899_v13  ;;  %v12989_v13 = vld [vmem:[%s13966_s21 + $0xd20] ss:$16 sps:$4 sm:$0xff]  }
 0x754   : > { %8388 = vmatpush1.bf16.msra.mxu1 %v12902_v28  ;;  %8303 = vmatprep.subr.bf16.mxu0 %v12907_v47  ;;  %v12992_v28 = vld [vmem:[%s13966_s21 + $0xd28] ss:$16 sps:$4 sm:$0xff]   ;;  %v12997_v47 = vld [vmem:[%s13966_s21 + $0xd44] ss:$16 sps:$4 sm:$0xff]  }
 0x755   : > { %8389 = vmatprep.subr.bf16.mxu1 %v12910_v48  ;;  %v13000_v48 = vld [vmem:[%s13966_s21 + $0xd4c] ss:$16 sps:$4 sm:$0xff]  }
 0x757   : > { %8304 = vmatpush1.bf16.msra.mxu0 %v12905_v49  ;;  %v12995_v49 = vld [vmem:[%s13966_s21 + $0xd40] ss:$16 sps:$4 sm:$0xff]  }
 0x758   : > { %8390 = vmatpush1.bf16.msra.mxu1 %v12908_v6  ;;  %8305 = vmatprep.subr.bf16.mxu0 %v12913_v21  ;;  %v12998_v6 = vld [vmem:[%s13966_s21 + $0xd48] ss:$16 sps:$4 sm:$0xff]   ;;  %v13003_v21 = vld [vmem:[%s13966_s21 + $0xd64] ss:$16 sps:$4 sm:$0xff]  }
 0x759   : > { %8391 = vmatprep.subr.bf16.mxu1 %v12916_v25  ;;  %v13006_v25 = vld [vmem:[%s13966_s21 + $0xd6c] ss:$16 sps:$4 sm:$0xff]  }
 0x75b   : > { %8306 = vmatpush1.bf16.msra.mxu0 %v12911_v35  ;;  %v13001_v35 = vld [vmem:[%s13966_s21 + $0xd60] ss:$16 sps:$4 sm:$0xff]  }
 0x75c   : > { %8392 = vmatpush1.bf16.msra.mxu1 %v12914_v50  ;;  %8307 = vmatprep.subr.bf16.mxu0 %v12919_v51  ;;  %v13004_v50 = vld [vmem:[%s13966_s21 + $0xd68] ss:$16 sps:$4 sm:$0xff]   ;;  %v13009_v51 = vld [vmem:[%s13966_s21 + $0xd84] ss:$16 sps:$4 sm:$0xff]  }
 0x75d   : > { %8393 = vmatprep.subr.bf16.mxu1 %v12922_v23  ;;  %v13012_v23 = vld [vmem:[%s13966_s21 + $0xd8c] ss:$16 sps:$4 sm:$0xff]  }
 0x75f   : > { %8308 = vmatpush1.bf16.msra.mxu0 %v12917_v52  ;;  %v13007_v52 = vld [vmem:[%s13966_s21 + $0xd80] ss:$16 sps:$4 sm:$0xff]  }
 0x760   : > { %8394 = vmatpush1.bf16.msra.mxu1 %v12920_v54  ;;  %8309 = vmatprep.subr.bf16.mxu0 %v12925_v33  ;;  %v13010_v54 = vld [vmem:[%s13966_s21 + $0xd88] ss:$16 sps:$4 sm:$0xff]   ;;  %v13015_v33 = vld [vmem:[%s13966_s21 + $0xda4] ss:$16 sps:$4 sm:$0xff]  }
 0x761   : > { %8395 = vmatprep.subr.bf16.mxu1 %v12928_v55  ;;  %v13018_v55 = vld [vmem:[%s13966_s21 + $0xdac] ss:$16 sps:$4 sm:$0xff]  }
 0x763   : > { %8310 = vmatpush1.bf16.msra.mxu0 %v12923_v56  ;;  %v13013_v56 = vld [vmem:[%s13966_s21 + $0xda0] ss:$16 sps:$4 sm:$0xff]  }
 0x764   : > { %8396 = vmatpush1.bf16.msra.mxu1 %v12926_v57  ;;  %8311 = vmatprep.subr.bf16.mxu0 %v12931_v58  ;;  %v13016_v57 = vld [vmem:[%s13966_s21 + $0xda8] ss:$16 sps:$4 sm:$0xff]   ;;  %v13021_v58 = vld [vmem:[%s13966_s21 + $0xdc4] ss:$16 sps:$4 sm:$0xff]  }
 0x765   : > { %8397 = vmatprep.subr.bf16.mxu1 %v12934_v59  ;;  %v13024_v59 = vld [vmem:[%s13966_s21 + $0xdcc] ss:$16 sps:$4 sm:$0xff]  }
 0x767   : > { %8312 = vmatpush1.bf16.msra.mxu0 %v12929_v60  ;;  %v13019_v60 = vld [vmem:[%s13966_s21 + $0xdc0] ss:$16 sps:$4 sm:$0xff]  }
 0x768   : > { %8398 = vmatpush1.bf16.msra.mxu1 %v12932_v61  ;;  %9050 = vmatprep.subr.bf16.mxu0 %v12937_v62  ;;  %v13022_v61 = vld [vmem:[%s13966_s21 + $0xdc8] ss:$16 sps:$4 sm:$0xff]   ;;  %v13027_v62 = vld [vmem:[%s13966_s21 + $0xde4] ss:$16 sps:$4 sm:$0xff]  }
 0x769   : > { %9136 = vmatprep.subr.bf16.mxu1 %v12940_v63  ;;  %v13030_v63 = vld [vmem:[%s13966_s21 + $0xdec] ss:$16 sps:$4 sm:$0xff]  }
 0x76a   : > { %8314 = vmatmul.mubr.bf16.vlgmr.msra.gmra.mrb[28].mxu0 %v13138_v2 }
 0x76b   : > { %8400 = vmatmul.mubr.bf16.vlgmr.msra.gmra.mrb[28].mxu1 %v13138_v2  ;;  %9051 = vmatpush1.bf16.msra.mxu0 %v12935_v0  ;;  %v13025_v0 = vld [vmem:[%s13966_s21 + $0xde0] ss:$16 sps:$4 sm:$0xff]   ;;  %v13036_v2 = vld [vmem:[%s13966_s21 + $0xe0c] ss:$16 sps:$4 sm:$0xff]  }
 0x76c   : > { %9082 = vmatprep.mubr.bf16.mxu0 %v14199_v43  ;;  %9137 = vmatpush1.bf16.msra.mxu1 %v12938_v1  ;;  %v13028_v1 = vld [vmem:[%s13966_s21 + $0xde8] ss:$16 sps:$4 sm:$0xff]  }
 0x76d   : > { %9168 = vmatprep.mubr.bf16.mxu1 %v14199_v43  ;;  %9052 = vmatprep.subr.bf16.mxu0 %v12943_v37  ;;  %v12953_v43 = vld [vmem:[%s13966_s21 + $0xc60] ss:$16 sps:$4 sm:$0xff]   ;;  %v13033_v37 = vld [vmem:[%s13966_s21 + $0xe04] ss:$16 sps:$4 sm:$0xff]  }
 0x76e   : > { %9138 = vmatprep.subr.bf16.mxu1 %v12946_v3  ;;  %v13031_v3 = vld [vmem:[%s13966_s21 + $0xe00] ss:$16 sps:$4 sm:$0xff]  }
 0x76f   : > { %9053 = vmatpush1.bf16.msra.mxu0 %v12941_v5  ;;  %v13034_v5 = vld [vmem:[%s13966_s21 + $0xe08] ss:$16 sps:$4 sm:$0xff]  }
 0x770   : > { %9139 = vmatpush1.bf16.msra.mxu1 %v12944_v7  ;;  %9054 = vmatprep.subr.bf16.mxu0 %v12949_v8  ;;  %v13039_v7 = vld [vmem:[%s13966_s21 + $0xe24] ss:$16 sps:$4 sm:$0xff]   ;;  %v13042_v8 = vld [vmem:[%s13966_s21 + $0xe2c] ss:$16 sps:$4 sm:$0xff]  }
 0x771   : > { %9140 = vmatprep.subr.bf16.mxu1 %v12952_v10  ;;  %v7290_v10 = vlaneseq }
 0x773   : > { %9055 = vmatpush1.bf16.msra.mxu0 %v12947_v11  ;;  %v13037_v11 = vld [vmem:[%s13966_s21 + $0xe20] ss:$16 sps:$4 sm:$0xff]  }
 0x774   : > { %9141 = vmatpush1.bf16.msra.mxu1 %v12950_v12  ;;  %9056 = vmatprep.subr.bf16.mxu0 %v12955_v15  ;;  %v13040_v12 = vld [vmem:[%s13966_s21 + $0xe28] ss:$16 sps:$4 sm:$0xff]   ;;  %v13045_v15 = vld [vmem:[%s13966_s21 + $0xe44] ss:$16 sps:$4 sm:$0xff]  }
 0x775   : > { %9142 = vmatprep.subr.bf16.mxu1 %v12958_v16  ;;  %v13048_v16 = vld [vmem:[%s13966_s21 + $0xe4c] ss:$16 sps:$4 sm:$0xff]  }
 0x777   : > { %9057 = vmatpush1.bf16.msra.mxu0 %v12953_v43  ;;  %v14723_v43 = vshrl.u32 %v7290_v10, 7 }
 0x778   : > { %9143 = vmatpush1.bf16.msra.mxu1 %v12956_v17  ;;  %9058 = vmatprep.subr.bf16.mxu0 %v12961_v18  ;;  %v13046_v17 = vld [vmem:[%s13966_s21 + $0xe48] ss:$16 sps:$4 sm:$0xff]   ;;  %v13051_v18 = vld [vmem:[%s13966_s21 + $0xe64] ss:$16 sps:$4 sm:$0xff]  }
 0x779   : > { %9144 = vmatprep.subr.bf16.mxu1 %v12964_v19  ;;  %v13054_v19 = vld [vmem:[%s13966_s21 + $0xe6c] ss:$16 sps:$4 sm:$0xff]  }
 0x77b   : > { %9059 = vmatpush1.bf16.msra.mxu0 %v12959_v20  ;;  %v13049_v20 = vld [vmem:[%s13966_s21 + $0xe60] ss:$16 sps:$4 sm:$0xff]  }
 0x77c   : > { %9145 = vmatpush1.bf16.msra.mxu1 %v12962_v22  ;;  %9060 = vmatprep.subr.bf16.mxu0 %v12967_v24  ;;  %v14733_v22 = vld [vmem:[%s3735_s29] sm:$0xff]  ;;  %v7300_v24 = vsub.s32 4, %v14723_v43 }
 0x77d   : > { %9146 = vmatprep.subr.bf16.mxu1 %v12970_v26  ;;  %v7296_v26 = vsub.s32 2, %v14723_v43 }
 0x77f   : > { %9061 = vmatpush1.bf16.msra.mxu0 %v12965_v27  ;;  %v13052_v27 = vld [vmem:[%s13966_s21 + $0xe68] ss:$16 sps:$4 sm:$0xff]  }
 0x780   : > { %9147 = vmatpush1.bf16.msra.mxu1 %v12968_v29  ;;  %9062 = vmatprep.subr.bf16.mxu0 %v12973_v30  ;;  %v13057_v29 = vld [vmem:[%s13966_s21 + $0xe84] ss:$16 sps:$4 sm:$0xff]   ;;  %v7304_v30 = vsub.s32 6, %v14723_v43 }
 0x781   : > { %9148 = vmatprep.subr.bf16.mxu1 %v12976_v53  ;;  %v13060_v53 = vld [vmem:[%s13966_s21 + $0xe8c] ss:$16 sps:$4 sm:$0xff]  }
 0x783   : > { %9063 = vmatpush1.bf16.msra.mxu0 %v12971_v31 }
 0x784   : > { %9149 = vmatpush1.bf16.msra.mxu1 %v12974_v32  ;;  %9064 = vmatprep.subr.bf16.mxu0 %v12979_v34  ;;  %v13055_v32 = vld [vmem:[%s13966_s21 + $0xe80] ss:$16 sps:$4 sm:$0xff]   ;;  %v7301_v34 = vrot.slane %v14733_v22, %v7300_v24 }
 0x785   : > { %9150 = vmatprep.subr.bf16.mxu1 %v12982_v9  ;;  %v7297_v9 = vrot.slane %v14733_v22, %v7296_v26  ;;  %v13079_v24 = vld [vmem:[%s13966_s21 + $0xf00] ss:$16 sps:$4 sm:$0xff]  }
 0x787   : > { %9065 = vmatpush1.bf16.msra.mxu0 %v12977_v39  ;;  %v13058_v39 = vld [vmem:[%s13966_s21 + $0xe88] ss:$16 sps:$4 sm:$0xff]  }
 0x788   : > { %9151 = vmatpush1.bf16.msra.mxu1 %v12980_v40  ;;  %9066 = vmatprep.subr.bf16.mxu0 %v12985_v41  ;;  %v7305_v40 = vrot.slane %v14733_v22, %v7304_v30  ;;  %v13063_v41 = vld [vmem:[%s13966_s21 + $0xea4] ss:$16 sps:$4 sm:$0xff]  }
 0x789   : > { %9152 = vmatprep.subr.bf16.mxu1 %v12988_v4  ;;  %v13066_v4 = vld [vmem:[%s13966_s21 + $0xeac] ss:$16 sps:$4 sm:$0xff]  }
 0x78b   : > { %9067 = vmatpush1.bf16.msra.mxu0 %v12983_v42 }
 0x78c   : > { %9153 = vmatpush1.bf16.msra.mxu1 %v12986_v45  ;;  %9068 = vmatprep.subr.bf16.mxu0 %v12991_v46 }
 0x78d   : > { %9154 = vmatprep.subr.bf16.mxu1 %v12994_v14  ;;  %v13061_v14 = vld [vmem:[%s13966_s21 + $0xea0] ss:$16 sps:$4 sm:$0xff]  }
 0x78f   : > { %9069 = vmatpush1.bf16.msra.mxu0 %v12989_v13 }
 0x790   : > { %9155 = vmatpush1.bf16.msra.mxu1 %v12992_v28  ;;  %9070 = vmatprep.subr.bf16.mxu0 %v12997_v47  ;;  %v13064_v28 = vld [vmem:[%s13966_s21 + $0xea8] ss:$16 sps:$4 sm:$0xff]   ;;  %v13069_v47 = vld [vmem:[%s13966_s21 + $0xec4] ss:$16 sps:$4 sm:$0xff]  }
 0x791   : > { %9156 = vmatprep.subr.bf16.mxu1 %v13000_v48 }
 0x793   : > { %9071 = vmatpush1.bf16.msra.mxu0 %v12995_v49  ;;  %v13072_v49 = vld [vmem:[%s13966_s21 + $0xecc] ss:$16 sps:$4 sm:$0xff]  }
 0x794   : > { %9157 = vmatpush1.bf16.msra.mxu1 %v12998_v6  ;;  %9072 = vmatprep.subr.bf16.mxu0 %v13003_v21 }
 0x795   : > { %9158 = vmatprep.subr.bf16.mxu1 %v13006_v25 }
 0x797   : > { %9073 = vmatpush1.bf16.msra.mxu0 %v13001_v35  ;;  %v13067_v35 = vld [vmem:[%s13966_s21 + $0xec0] ss:$16 sps:$4 sm:$0xff]  }
 0x798   : > { %9159 = vmatpush1.bf16.msra.mxu1 %v13004_v50  ;;  %9074 = vmatprep.subr.bf16.mxu0 %v13009_v51 }
 0x799   : > { %9160 = vmatprep.subr.bf16.mxu1 %v13012_v23 }
 0x79b   : > { %9075 = vmatpush1.bf16.msra.mxu0 %v13007_v52 }
 0x79c   : > { %9161 = vmatpush1.bf16.msra.mxu1 %v13010_v54  ;;  %9076 = vmatprep.subr.bf16.mxu0 %v13015_v33  ;;  %v13070_v54 = vld [vmem:[%s13966_s21 + $0xec8] ss:$16 sps:$4 sm:$0xff]   ;;  %v13075_v33 = vld [vmem:[%s13966_s21 + $0xee4] ss:$16 sps:$4 sm:$0xff]  }
 0x79d   : > { %9162 = vmatprep.subr.bf16.mxu1 %v13018_v55 }
 0x79f   : > { %9077 = vmatpush1.bf16.msra.mxu0 %v13013_v56 }
 0x7a0   : > { %9163 = vmatpush1.bf16.msra.mxu1 %v13016_v57  ;;  %9078 = vmatprep.subr.bf16.mxu0 %v13021_v58 }
 0x7a1   : > { %9164 = vmatprep.subr.bf16.mxu1 %v13024_v59 }
 0x7a3   : > { %9079 = vmatpush1.bf16.msra.mxu0 %v13019_v60  ;;  %v13078_v60 = vld [vmem:[%s13966_s21 + $0xeec] ss:$16 sps:$4 sm:$0xff]  }
 0x7a4   : > { %9165 = vmatpush1.bf16.msra.mxu1 %v13022_v61  ;;  %9080 = vmatprep.subr.bf16.mxu0 %v13027_v62 }
 0x7a5   : > { %9166 = vmatprep.subr.bf16.mxu1 %v13030_v63 }
 0x7a7   : > { %9081 = vmatpush1.bf16.msra.mxu0 %v13025_v0 }
 0x7a8   : > { %9167 = vmatpush1.bf16.msra.mxu1 %v13028_v1  ;;  %9093 = vmatprep.subr.bf16.mxu0 %v13033_v37  ;;  %v13073_v37 = vld [vmem:[%s13966_s21 + $0xee0] ss:$16 sps:$4 sm:$0xff]  }
 0x7a9   : > { %9179 = vmatprep.subr.bf16.mxu1 %v13036_v2 }
 0x7aa   : > { %9083 = vmatmul.mubr.bf16.vlgmr.msra.gmra.mrb[28].mxu0 %v14193_v36 }
 0x7ab   : > { %9169 = vmatmul.mubr.bf16.vlgmr.msra.gmra.mrb[28].mxu1 %v14193_v36  ;;  %9094 = vmatpush1.bf16.msra.mxu0 %v13031_v3  ;;  %v13043_v36 = vld [vmem:[%s13966_s21 + $0xe40] ss:$16 sps:$4 sm:$0xff]  }
 0x7ac   : > { %9125 = vmatprep.mubr.bf16.mxu0 %v14201_v44  ;;  %9180 = vmatpush1.bf16.msra.mxu1 %v13034_v5 }
 0x7ad   : > { %9211 = vmatprep.mubr.bf16.mxu1 %v14201_v44  ;;  %9095 = vmatprep.subr.bf16.mxu0 %v13039_v7  ;;  %v14730_v44 = vsub.s32 0, %v14723_v43  ;;  %v13076_v7 = vld [vmem:[%s13966_s21 + $0xee8] ss:$16 sps:$4 sm:$0xff]  }
 0x7ae   : > { %9181 = vmatprep.subr.bf16.mxu1 %v13042_v8 }
 0x7af   : > { %9096 = vmatpush1.bf16.msra.mxu0 %v13037_v11  ;;  %v7293_v31 = vrot.slane %v14733_v22, %v14730_v44  ;;  %v14754_v45 = vrot.slane %v7301_v34, %v14730_v44  ;;  %v14757_v46 = vrot.slane %v7297_v9, %v14730_v44  ;;  %v14761_v13 = vrot.slane %v7305_v40, %v14730_v44  ;;  %v13087_v34 = vld [vmem:[%s13966_s21 + $0xf24] ss:$16 sps:$4 sm:$0xff]  }
 0x7b0   : > { %9182 = vmatpush1.bf16.msra.mxu1 %v13040_v12  ;;  %9097 = vmatprep.subr.bf16.mxu0 %v13045_v15  ;;  %v13081_v15 = vld [vmem:[%s13966_s21 + $0xf04] ss:$16 sps:$4 sm:$0xff]  }
 0x7b1   : > { %9183 = vmatprep.subr.bf16.mxu1 %v13048_v16  ;;  %v14751_v42 = vrot.slane %v7293_v31, %v14730_v44  ;;  %v13084_v16 = vld [vmem:[%s13966_s21 + $0xf0c] ss:$16 sps:$4 sm:$0xff]  }
 0x7b3   : > { %9098 = vmatpush1.bf16.msra.mxu0 %v13043_v36 }
 0x7b4   : > { %9184 = vmatpush1.bf16.msra.mxu1 %v13046_v17  ;;  %9099 = vmatprep.subr.bf16.mxu0 %v13051_v18 }
 0x7b5   : > { %9185 = vmatprep.subr.bf16.mxu1 %v13054_v19 }
 0x7b7   : > { %9100 = vmatpush1.bf16.msra.mxu0 %v13049_v20 }
 0x7b8   : > { %9186 = vmatpush1.bf16.msra.mxu1 %v13052_v27  ;;  %9101 = vmatprep.subr.bf16.mxu0 %v13057_v29 }
 0x7b9   : > { %9187 = vmatprep.subr.bf16.mxu1 %v13060_v53 }
 0x7bb   : > { %9102 = vmatpush1.bf16.msra.mxu0 %v13055_v32  ;;  %v13082_v32 = vld [vmem:[%s13966_s21 + $0xf08] ss:$16 sps:$4 sm:$0xff]  }
 0x7bc   : > { %9188 = vmatpush1.bf16.msra.mxu1 %v13058_v39  ;;  %9103 = vmatprep.subr.bf16.mxu0 %v13063_v41 }
 0x7bd   : > { %v7148_v48 = vpop.f32.mrb[20].mxu0  ;;  %9189 = vmatprep.subr.bf16.mxu1 %v13066_v4 }
 0x7be   : > { %v7326_v6 = vadd.f32 %v14751_v42, %v7148_v48  ;;  %v7254_v21 = vpop.f32.mrb[20].mxu1  ;;  %v7150_v25 = vpop.f32.mrb[21].mxu0 }
 0x7bf   : > { %v7328_v50 = vadd.f32 %v14754_v45, %v7254_v21  ;;  %v7327_v51 = vadd.f32 %v14757_v46, %v7150_v25  ;;  %v7256_v23 = vpop.f32.mrb[21].mxu1  ;;  %v7152_v52 = vpop.f32.mrb[22].mxu0  ;;  %9104 = vmatpush1.bf16.msra.mxu0 %v13061_v14 }
 0x7c0   : > { %v9266_v55 = vmul.f32 0.5, %v7326_v6  ;;  %v7329_v56 = vadd.f32 %v14761_v13, %v7256_v23  ;;  %v7330_v57 = vadd.f32 %v14751_v42, %v7152_v52  ;;  %v7258_v58 = vpop.f32.mrb[22].mxu1  ;;  %9190 = vmatpush1.bf16.msra.mxu1 %v13064_v28  ;;  %v7154_v59 = vpop.f32.mrb[23].mxu0  ;;  %9105 = vmatprep.subr.bf16.mxu0 %v13069_v47 }
 0x7c1   : > { %v9268_v61 = vmul.f32 0.5, %v7328_v50  ;;  %v9267_v62 = vmul.f32 0.5, %v7327_v51  ;;  %v7332_v63 = vadd.f32 %v14754_v45, %v7258_v58  ;;  %v7331_v0 = vadd.f32 %v14757_v46, %v7154_v59  ;;  %v7260_v1 = vpop.f32.mrb[23].mxu1  ;;  %9191 = vmatprep.subr.bf16.mxu1 %v13072_v49  ;;  %v13090_v51 = vld [vmem:[%s13966_s21 + $0xf2c] ss:$16 sps:$4 sm:$0xff]  }
 0x7c2   : > { %vm9282_vm2 = vcmp.gt.f32.partialorder %v9266_v55, 0.0  ;;  %v9298_v2 = vmul.f32 0.2, %v9266_v55  ;;  %v9269_v3 = vmul.f32 0.5, %v7329_v56  ;;  %v9270_v5 = vmul.f32 0.5, %v7330_v57 }
 0x7c3   : > { %vm9284_vm3 = vcmp.gt.f32.partialorder %v9268_v61, 0.0  ;;  %v9300_v8 = vmul.f32 0.2, %v9268_v61  ;;  %vm9283_vm4 = vcmp.gt.f32.partialorder %v9267_v62, 0.0  ;;  %v9299_v11 = vmul.f32 0.2, %v9267_v62  ;;  %9106 = vmatpush1.bf16.msra.mxu0 %v13067_v35 }
 0x7c4   : > { %v9314_v12 = vsel %vm9282_vm2, %v9266_v55, %v9298_v2  ;;  %vm9285_vm5 = vcmp.gt.f32.partialorder %v9269_v3, 0.0  ;;  %vm9286_vm6 = vcmp.gt.f32.partialorder %v9270_v5, 0.0  ;;  %9192 = vmatpush1.bf16.msra.mxu1 %v13070_v54  ;;  %9107 = vmatprep.subr.bf16.mxu0 %v13075_v33  ;;  %v9301_v17 = vmul.f32 0.2, %v9269_v3  ;;  %v13085_v56 = vld [vmem:[%s13966_s21 + $0xf20] ss:$16 sps:$4 sm:$0xff]  }
 0x7c5   : > { %v9316_v36 = vsel %vm9284_vm3, %v9268_v61, %v9300_v8  ;;  %v9302_v18 = vmul.f32 0.2, %v9270_v5  ;;  %v9272_v19 = vmul.f32 0.5, %v7332_v63  ;;  %v7158_v20 = vpop.f32.mrb[24].mxu0  ;;  %9193 = vmatprep.subr.bf16.mxu1 %v13078_v60  ;;  %v9315_v26 = vsel %vm9283_vm4, %v9267_v62, %v9299_v11  ;;  %v13088_v57 = vld [vmem:[%s13966_s21 + $0xf28] ss:$16 sps:$4 sm:$0xff]  }
 0x7c6   : > { %v9271_v27 = vmul.f32 0.5, %v7331_v0  ;;  %v7333_v29 = vadd.f32 %v14761_v13, %v7260_v1  ;;  %v7334_v30 = vadd.f32 %v14751_v42, %v7158_v20  ;;  %v7264_v53 = vpop.f32.mrb[24].mxu1  ;;  %v7160_v31 = vpop.f32.mrb[25].mxu0  ;;  %v9317_v33 = vsel %vm9285_vm5, %v9269_v3, %v9301_v17  ;;  %v13093_v62 = vld [vmem:[%s13966_s21 + $0xf44] ss:$16 sps:$4 sm:$0xff]  }
 0x7c7   : > { %v9318_v9 = vsel %vm9286_vm6, %v9270_v5, %v9302_v18  ;;  %vm9288_vm7 = vcmp.gt.f32.partialorder %v9272_v19, 0.0  ;;  %v9304_v39 = vmul.f32 0.2, %v9272_v19  ;;  %v7336_v40 = vadd.f32 %v14754_v45, %v7264_v53  ;;  %v7266_v41 = vpop.f32.mrb[25].mxu1  ;;  %v7162_v4 = vpop.f32.mrb[26].mxu0  ;;  %9108 = vmatpush1.bf16.msra.mxu0 %v13073_v37 }
 0x7c8   : > { %v9330_v14 = vpack.c.bf16 %v9318_v9, %v9314_v12  ;;  %vm9287_vm8 = vcmp.gt.f32.partialorder %v9271_v27, 0.0  ;;  %v9303_v28 = vmul.f32 0.2, %v9271_v27  ;;  %v9273_v47 = vmul.f32 0.5, %v7333_v29  ;;  %v7268_v48 = vpop.f32.mrb[26].mxu1  ;;  %9194 = vmatpush1.bf16.msra.mxu1 %v13076_v7  ;;  %v7164_v49 = vpop.f32.mrb[27].mxu0  ;;  %9109 = vmatprep.subr.bf16.mxu0 %v13081_v15 }
 0x7c9   : > { %v9320_v6 = vsel %vm9288_vm7, %v9272_v19, %v9304_v39  ;;  %v9274_v21 = vmul.f32 0.5, %v7334_v30  ;;  %v9276_v25 = vmul.f32 0.5, %v7336_v40  ;;  %v7335_v35 = vadd.f32 %v14757_v46, %v7160_v31  ;;  %v7270_v50 = vpop.f32.mrb[27].mxu1  ;;  %9195 = vmatprep.subr.bf16.mxu1 %v13084_v16  ;;  %v13096_v37 = vld [vmem:[%s13966_s21 + $0xf4c] ss:$16 sps:$4 sm:$0xff]  }
 0x7ca   : > { %9338 = vst [vmem:[#allocation3] sm:$0xff] %v9330_v14  ;;  %v9332_v23 = vpack.c.bf16 %v9320_v6, %v9316_v36  ;;  %v9319_v52 = vsel %vm9287_vm8, %v9271_v27, %v9303_v28  ;;  %vm9289_vm9 = vcmp.gt.f32.partialorder %v9273_v47, 0.0  ;;  %v9305_v54 = vmul.f32 0.2, %v9273_v47  ;;  %v13091_v12 = vld [vmem:[%s13966_s21 + $0xf40] ss:$16 sps:$4 sm:$0xff]  }
 0x7cb   : > { %v9331_v55 = vpack.c.bf16 %v9319_v52, %v9315_v26  ;;  %vm9290_vm10 = vcmp.gt.f32.partialorder %v9274_v21, 0.0  ;;  %9110 = vmatpush1.bf16.msra.mxu0 %v13079_v24  ;;  %v9306_v59 = vmul.f32 0.2, %v9274_v21  ;;  %v9308_v60 = vmul.f32 0.2, %v9276_v25 }
 0x7cc   : > { %9340 = vst [vmem:[#allocation3 + $0x10] sm:$0xff] %v9332_v23  ;;  %v9321_v58 = vsel %vm9289_vm9, %v9273_v47, %v9305_v54  ;;  %v7337_v61 = vadd.f32 %v14761_v13, %v7266_v41  ;;  %9196 = vmatpush1.bf16.msra.mxu1 %v13082_v32  ;;  %9111 = vmatprep.subr.bf16.mxu0 %v13087_v34  ;;  %vm9292_vm11 = vcmp.gt.f32.partialorder %v9276_v25, 0.0  ;;  %v9275_v2 = vmul.f32 0.5, %v7335_v35  ;;  %v13094_v15 = vld [vmem:[%s13966_s21 + $0xf48] ss:$16 sps:$4 sm:$0xff]  }
 0x7cd   : > { %9339 = vst [vmem:[#allocation3 + $0x8] sm:$0xff] %v9331_v55  ;;  %v9333_v63 = vpack.c.bf16 %v9321_v58, %v9317_v33  ;;  %v7338_v0 = vadd.f32 %v14751_v42, %v7162_v4  ;;  %v7340_v1 = vadd.f32 %v14754_v45, %v7268_v48  ;;  %9197 = vmatprep.subr.bf16.mxu1 %v13090_v51  ;;  %v13099_v16 = vld [vmem:[%s13966_s21 + $0xf64] ss:$16 sps:$4 sm:$0xff]   ;;  %v13102_v36 = vld [vmem:[%s13966_s21 + $0xf6c] ss:$16 sps:$4 sm:$0xff]   ;;  %v9228_v58 = vsub.s32 3, %v14723_v43 }
 0x7ce   : > { %v9277_v3 = vmul.f32 0.5, %v7337_v61  ;;  %v7339_v8 = vadd.f32 %v14757_v46, %v7164_v49  ;;  %v7341_v11 = vadd.f32 %v14761_v13, %v7270_v50  ;;  %v9322_v42 = vsel %vm9290_vm10, %v9274_v21, %v9306_v59  ;;  %v13097_v46 = vld [vmem:[%s13966_s21 + $0xf60] ss:$16 sps:$4 sm:$0xff]   ;;  %v13100_v29 = vld [vmem:[%s13966_s21 + $0xf68] ss:$16 sps:$4 sm:$0xff]  }
 0x7cf   : > { %9341 = vst [vmem:[#allocation3 + $0x18] sm:$0xff] %v9333_v63  ;;  %v9278_v5 = vmul.f32 0.5, %v7338_v0  ;;  %v9280_v7 = vmul.f32 0.5, %v7340_v1  ;;  %9112 = vmatpush1.bf16.msra.mxu0 %v13085_v56  ;;  %v9324_v45 = vsel %vm9292_vm11, %v9276_v25, %v9308_v60  ;;  %vm9291_vm14 = vcmp.gt.f32.partialorder %v9275_v2, 0.0  ;;  %v13105_v32 = vld [vmem:[%s13966_s21 + $0xf84] ss:$16 sps:$4 sm:$0xff]  }
 0x7d0   : > { %9198 = vmatpush1.bf16.msra.mxu1 %v13088_v57  ;;  %9113 = vmatprep.subr.bf16.mxu0 %v13093_v62  ;;  %v9307_v13 = vmul.f32 0.2, %v9275_v2  ;;  %v9279_v19 = vmul.f32 0.5, %v7339_v8  ;;  %v9281_v20 = vmul.f32 0.5, %v7341_v11  ;;  %vm9293_vm15 = vcmp.gt.f32.partialorder %v9277_v3, 0.0 }
 0x7d1   : > { %vm9294_vm12 = vcmp.gt.f32.partialorder %v9278_v5, 0.0  ;;  %v9310_v17 = vmul.f32 0.2, %v9278_v5  ;;  %vm9296_vm13 = vcmp.gt.f32.partialorder %v9280_v7, 0.0  ;;  %v9312_v18 = vmul.f32 0.2, %v9280_v7  ;;  %9199 = vmatprep.subr.bf16.mxu1 %v13096_v37 }
 0x7d2   : > { %v9309_v24 = vmul.f32 0.2, %v9277_v3  ;;  %vm9295_vm0 = vcmp.gt.f32.partialorder %v9279_v19, 0.0  ;;  %v9311_v31 = vmul.f32 0.2, %v9279_v19  ;;  %vm9297_vm1 = vcmp.gt.f32.partialorder %v9281_v20, 0.0 }
 0x7d3   : > { %v9326_v26 = vsel %vm9294_vm12, %v9278_v5, %v9310_v17  ;;  %v9328_v27 = vsel %vm9296_vm13, %v9280_v7, %v9312_v18  ;;  %9114 = vmatpush1.bf16.msra.mxu0 %v13091_v12  ;;  %v9313_v34 = vmul.f32 0.2, %v9281_v20  ;;  %v13108_v9 = vld [vmem:[%s13966_s21 + $0xf8c] ss:$16 sps:$4 sm:$0xff]   ;;  %v9323_v39 = vsel %vm9291_vm14, %v9275_v2, %v9307_v13  ;;  %v13103_v28 = vld [vmem:[%s13966_s21 + $0xf80] ss:$16 sps:$4 sm:$0xff]  }
 0x7d4   : > { %v9334_v30 = vpack.c.bf16 %v9326_v26, %v9322_v42  ;;  %v9336_v53 = vpack.c.bf16 %v9328_v27, %v9324_v45  ;;  %9200 = vmatpush1.bf16.msra.mxu1 %v13094_v15  ;;  %9115 = vmatprep.subr.bf16.mxu0 %v13099_v16  ;;  %v9327_v40 = vsel %vm9295_vm0, %v9279_v19, %v9311_v31  ;;  %v13106_v48 = vld [vmem:[%s13966_s21 + $0xf88] ss:$16 sps:$4 sm:$0xff]   ;;  %v13111_v49 = vld [vmem:[%s13966_s21 + $0xfa4] ss:$16 sps:$4 sm:$0xff]   ;;  %v13114_v6 = vld [vmem:[%s13966_s21 + $0xfac] ss:$16 sps:$4 sm:$0xff]  }
 0x7d5   : > { %9201 = vmatprep.subr.bf16.mxu1 %v13102_v36  ;;  %v9325_v41 = vsel %vm9293_vm15, %v9277_v3, %v9309_v24  ;;  %v9335_v4 = vpack.c.bf16 %v9327_v40, %v9323_v39  ;;  %v9329_v14 = vsel %vm9297_vm1, %v9281_v20, %v9313_v34  ;;  %v13109_v21 = vld [vmem:[%s13966_s21 + $0xfa0] ss:$16 sps:$4 sm:$0xff]   ;;  %v13112_v25 = vld [vmem:[%s13966_s21 + $0xfa8] ss:$16 sps:$4 sm:$0xff]   ;;  %v13117_v35 = vld [vmem:[%s13966_s21 + $0xfc4] ss:$16 sps:$4 sm:$0xff]   ;;  %v9229_v62 = vrot.slane %v14733_v22, %v9228_v58 }
 0x7d6   : > { %9342 = vst [vmem:[#allocation3 + $0x20] sm:$0xff] %v9334_v30  ;;  %9344 = vst [vmem:[#allocation3 + $0x30] sm:$0xff] %v9336_v53  ;;  %v9337_v47 = vpack.c.bf16 %v9329_v14, %v9325_v41  ;;  %v13120_v50 = vld [vmem:[%s13966_s21 + $0xfcc] ss:$16 sps:$4 sm:$0xff]   ;;  %v13115_v51 = vld [vmem:[%s13966_s21 + $0xfc0] ss:$16 sps:$4 sm:$0xff]  }
 0x7d7   : > { %9116 = vmatpush1.bf16.msra.mxu0 %v13097_v46  ;;  %9343 = vst [vmem:[#allocation3 + $0x28] sm:$0xff] %v9335_v4  ;;  %v13118_v23 = vld [vmem:[%s13966_s21 + $0xfc8] ss:$16 sps:$4 sm:$0xff]   ;;  %v13123_v52 = vld [vmem:[%s13966_s21 + $0xfe4] ss:$16 sps:$4 sm:$0xff]   ;;  %v14830_v56 = vsub.s32 1, %v14723_v43 }
 0x7d8   : > { %9202 = vmatpush1.bf16.msra.mxu1 %v13100_v29  ;;  %9117 = vmatprep.subr.bf16.mxu0 %v13105_v32  ;;  %9345 = vst [vmem:[#allocation3 + $0x38] sm:$0xff] %v9337_v47  ;;  %v13126_v54 = vld [vmem:[%s13966_s21 + $0xfec] ss:$16 sps:$4 sm:$0xff]   ;;  %v13121_v33 = vld [vmem:[%s13966_s21 + $0xfe0] ss:$16 sps:$4 sm:$0xff]   ;;  %v9232_v57 = vsub.s32 5, %v14723_v43 }
 0x7d9   : > { %9203 = vmatprep.subr.bf16.mxu1 %v13108_v9  ;;  %v13124_v55 = vld [vmem:[%s13966_s21 + $0xfe8] ss:$16 sps:$4 sm:$0xff]   ;;  %v9236_v59 = vsub.s32 7, %v14723_v43  ;;  %v9225_v60 = vrot.slane %v14733_v22, %v14830_v56  ;;  %v9249_v1 = vrot.slane %v9229_v62, %v14830_v56  ;;  %vm9993_vm10 = vcmp.lt.s32.totalorder (!%p11206_p2), %v7290_v10, 256 }
 0x7da   : > { %v9233_v61 = vrot.slane %v14733_v22, %v9232_v57  ;;  %v13159_v57 = vld [vmem:[#allocation16 + $0x134] ss:$8 sps:$4 sm:$0xff] (!%p11206_p2)   ;;  %v13161_v58 = vld [vmem:[#allocation16 + $0x30] ss:$8 sps:$4 sm:$0xff] (!%p11206_p2)   ;;  %v13167_v62 = vld [vmem:[#allocation16 + $0x40] ss:$8 sps:$4 sm:$0xff] (!%p11206_p2)  }
 0x7db   : > { %9118 = vmatpush1.bf16.msra.mxu0 %v13103_v28  ;;  %v9237_v63 = vrot.slane %v14733_v22, %v9236_v59  ;;  %v13162_v59 = vld [vmem:[#allocation16 + $0x130] ss:$8 sps:$4 sm:$0xff] (!%p11206_p2)  }
 0x7dc   : > { %9204 = vmatpush1.bf16.msra.mxu1 %v13106_v48  ;;  %9119 = vmatprep.subr.bf16.mxu0 %v13111_v49  ;;  %v9253_v0 = vrot.slane %v9233_v61, %v14830_v56  ;;  %v13139_v48 = vld [vmem:[#allocation16 + $0x4] ss:$8 sps:$4 sm:$0xff] (!%p11206_p2)  }
 0x7dd   : > { %9205 = vmatprep.subr.bf16.mxu1 %v13114_v6  ;;  %v9257_v37 = vrot.slane %v9237_v63, %v14830_v56  ;;  %v13141_v49 = vld [vmem:[#allocation16 + $0x104] ss:$8 sps:$4 sm:$0xff] (!%p11206_p2)   ;;  %v13143_v6 = vld [vmem:[#allocation16] ss:$8 sps:$4 sm:$0xff] (!%p11206_p2)  }
 0x7de   : > { %v13165_v61 = vld [vmem:[#allocation16 + $0x144] ss:$8 sps:$4 sm:$0xff] (!%p11206_p2)   ;;  %v13168_v63 = vld [vmem:[#allocation16 + $0x140] ss:$8 sps:$4 sm:$0xff] (!%p11206_p2)  }
 0x7df   : > { %9120 = vmatpush1.bf16.msra.mxu0 %v13109_v21  ;;  %v13144_v21 = vld [vmem:[#allocation16 + $0x100] ss:$8 sps:$4 sm:$0xff] (!%p11206_p2)  }
 0x7e0   : > { %9206 = vmatpush1.bf16.msra.mxu1 %v13112_v25  ;;  %9121 = vmatprep.subr.bf16.mxu0 %v13117_v35  ;;  %v13145_v25 = vld [vmem:[#allocation16 + $0x14] ss:$8 sps:$4 sm:$0xff] (!%p11206_p2)  }
 0x7e1   : > { %9207 = vmatprep.subr.bf16.mxu1 %v13120_v50  ;;  %v13147_v35 = vld [vmem:[#allocation16 + $0x114] ss:$8 sps:$4 sm:$0xff] (!%p11206_p2)   ;;  %v13149_v50 = vld [vmem:[#allocation16 + $0x10] ss:$8 sps:$4 sm:$0xff] (!%p11206_p2)  }
 0x7e3   : > { %9122 = vmatpush1.bf16.msra.mxu0 %v13115_v51  ;;  %v13150_v51 = vld [vmem:[#allocation16 + $0x110] ss:$8 sps:$4 sm:$0xff] (!%p11206_p2)  }
 0x7e4   : > { %9208 = vmatpush1.bf16.msra.mxu1 %v13118_v23  ;;  %9123 = vmatprep.subr.bf16.mxu0 %v13123_v52  ;;  %v13151_v23 = vld [vmem:[#allocation16 + $0x24] ss:$8 sps:$4 sm:$0xff] (!%p11206_p2)  }
 0x7e5   : > { %9209 = vmatprep.subr.bf16.mxu1 %v13126_v54  ;;  %v13153_v52 = vld [vmem:[#allocation16 + $0x124] ss:$8 sps:$4 sm:$0xff] (!%p11206_p2)   ;;  %v13155_v54 = vld [vmem:[#allocation16 + $0x20] ss:$8 sps:$4 sm:$0xff] (!%p11206_p2)  }
 0x7e7   : > { %9124 = vmatpush1.bf16.msra.mxu0 %v13121_v33  ;;  %v13156_v33 = vld [vmem:[#allocation16 + $0x120] ss:$8 sps:$4 sm:$0xff] (!%p11206_p2)  }
 0x7e8   : > { %9210 = vmatpush1.bf16.msra.mxu1 %v13124_v55  ;;  %9932 = vmatprep.subr.bf16.mxu0 (!%p11206_p2), %v13141_v49  ;;  %v13157_v55 = vld [vmem:[#allocation16 + $0x34] ss:$8 sps:$4 sm:$0xff] (!%p11206_p2)   ;;  %v13213_v49 = vld [vmem:[#allocation16 + $0x1c4] ss:$8 sps:$4 sm:$0xff] (!%p11206_p2)  }
 0x7e9   : > { %9891 = vmatprep.subr.bf16.mxu1 (!%p11206_p2), %v13139_v48  ;;  %v13211_v48 = vld [vmem:[#allocation16 + $0xc4] ss:$8 sps:$4 sm:$0xff] (!%p11206_p2)  }
 0x7ea   : > { %9126 = vmatmul.mubr.bf16.vlgmr.msra.gmra.mrb[28].mxu0 %v14195_v38 }
 0x7eb   : > { %9212 = vmatmul.mubr.bf16.vlgmr.msra.gmra.mrb[28].mxu1 %v14195_v38  ;;  %v9245_v38 = vrot.slane %v9225_v60, %v14830_v56  ;;  %9933 = vmatpush1.bf16.msra.mxu0 (!%p11206_p2), %v13144_v21  ;;  %v13163_v60 = vld [vmem:[#allocation16 + $0x44] ss:$8 sps:$4 sm:$0xff] (!%p11206_p2)  }
 0x7ec   : > { %9892 = vmatpush1.bf16.msra.mxu1 (!%p11206_p2), %v13143_v6  ;;  %9934 = vmatprep.subr.bf16.mxu0 (!%p11206_p2), %v13147_v35 }
 0x7ed   : > { %9893 = vmatprep.subr.bf16.mxu1 (!%p11206_p2), %v13145_v25 }
 0x7ef   : > { %9935 = vmatpush1.bf16.msra.mxu0 (!%p11206_p2), %v13150_v51 }
 0x7f0   : > { %9894 = vmatpush1.bf16.msra.mxu1 (!%p11206_p2), %v13149_v50  ;;  %9936 = vmatprep.subr.bf16.mxu0 (!%p11206_p2), %v13153_v52  ;;  %v9384_v50 = vld [vmem:[#allocation3 + $0x10] sm:$0xff] (!%p11206_p2) }
 0x7f1   : > { %9895 = vmatprep.subr.bf16.mxu1 (!%p11206_p2), %v13151_v23 }
 0x7f3   : > { %9937 = vmatpush1.bf16.msra.mxu0 (!%p11206_p2), %v13156_v33 }
 0x7f4   : > { %9896 = vmatpush1.bf16.msra.mxu1 (!%p11206_p2), %v13155_v54  ;;  %9938 = vmatprep.subr.bf16.mxu0 (!%p11206_p2), %v13159_v57 }
 0x7f5   : > { %9897 = vmatprep.subr.bf16.mxu1 (!%p11206_p2), %v13157_v55 }
 0x7f7   : > { %9939 = vmatpush1.bf16.msra.mxu0 (!%p11206_p2), %v13162_v59  ;;  %v14848_v59 = vld [vmem:[#allocation3 + $0x30] sm:$0xff] (!%p11206_p2) }
 0x7f8   : > { %9898 = vmatpush1.bf16.msra.mxu1 (!%p11206_p2), %v13161_v58  ;;  %9940 = vmatprep.subr.bf16.mxu0 (!%p11206_p2), %v13165_v61  ;;  %v13216_v61 = vld [vmem:[#allocation16 + $0x1c0] ss:$8 sps:$4 sm:$0xff] (!%p11206_p2)  }
 0x7f9   : > { %9899 = vmatprep.subr.bf16.mxu1 (!%p11206_p2), %v13163_v60  ;;  %v13215_v60 = vld [vmem:[#allocation16 + $0xc0] ss:$8 sps:$4 sm:$0xff] (!%p11206_p2)  }
 0x7fb   : > { %9941 = vmatpush1.bf16.msra.mxu0 (!%p11206_p2), %v13168_v63 }
 0x7fc   : > { %9900 = vmatpush1.bf16.msra.mxu1 (!%p11206_p2), %v13167_v62 }
 0x8bd   : > { %v9127_v2 = vpop.f32.mrb[28].mxu0 }
 0x8be   : > { %v9258_v3 = vadd.f32 %v9245_v38, %v9127_v2  ;;  %v9213_v5 = vpop.f32.mrb[28].mxu1  ;;  %v9129_v7 = vpop.f32.mrb[29].mxu0  ;;  %v13175_v2 = vld [vmem:[#allocation16 + $0x64] ss:$8 sps:$4 sm:$0xff] (!%p11206_p2)  }
 0x8bf   : > { %v9260_v8 = vadd.f32 %v9253_v0, %v9213_v5  ;;  %v9259_v11 = vadd.f32 %v9249_v1, %v9129_v7  ;;  %v9215_v12 = vpop.f32.mrb[29].mxu1  ;;  %v9131_v42 = vpop.f32.mrb[30].mxu0  ;;  %v13179_v5 = vld [vmem:[#allocation16 + $0x60] ss:$8 sps:$4 sm:$0xff] (!%p11206_p2)  }
 0x8c0   : > { %v9354_v45 = vmul.f32 0.2, %v9258_v3  ;;  %v9261_v15 = vadd.f32 %v9257_v37, %v9215_v12  ;;  %v9262_v16 = vadd.f32 %v9245_v38, %v9131_v42  ;;  %v9217_v22 = vpop.f32.mrb[30].mxu1  ;;  %v9133_v36 = vpop.f32.mrb[31].mxu0  ;;  %vm9346_vm2 = vcmp.gt.f32.partialorder %v9258_v3, 0.0 }
 0x8c1   : > { %vm9348_vm3 = vcmp.gt.f32.partialorder %v9260_v8, 0.0  ;;  %v9356_v17 = vmul.f32 0.2, %v9260_v8  ;;  %v9219_v18 = vpop.f32.mrb[31].mxu1  ;;  %vm9347_vm5 = vcmp.gt.f32.partialorder %v9259_v11, 0.0  ;;  %v9264_v19 = vadd.f32 %v9253_v0, %v9217_v22 }
 0x8c2   : > { %vm9350_vm4 = vcmp.gt.f32.partialorder %v9262_v16, 0.0  ;;  %v9355_v46 = vmul.f32 0.2, %v9259_v11  ;;  %v9358_v13 = vmul.f32 0.2, %v9262_v16  ;;  %v9362_v20 = vsel %vm9346_vm2, %v9258_v3, %v9354_v45 }
 0x8c3   : > { %vm9349_vm6 = vcmp.gt.f32.partialorder %v9261_v15, 0.0  ;;  %v9263_v24 = vadd.f32 %v9249_v1, %v9133_v36  ;;  %v9265_v26 = vadd.f32 %v9257_v37, %v9219_v18  ;;  %v9357_v27 = vmul.f32 0.2, %v9261_v15  ;;  %v13169_v38 = vld [vmem:[#allocation16 + $0x54] ss:$8 sps:$4 sm:$0xff] (!%p11206_p2)  }
 0x8c4   : > { %v9366_v29 = vsel %vm9350_vm4, %v9262_v16, %v9358_v13  ;;  %vm9352_vm7 = vcmp.gt.f32.partialorder %v9264_v19, 0.0  ;;  %v9360_v30 = vmul.f32 0.2, %v9264_v19  ;;  %v9364_v32 = vsel %vm9348_vm3, %v9260_v8, %v9356_v17  ;;  %v13171_v0 = vld [vmem:[#allocation16 + $0x154] ss:$8 sps:$4 sm:$0xff] (!%p11206_p2)   ;;  %9901 = vmatprep.subr.bf16.mxu1 (!%p11206_p2), %v13169_v38 }
 0x8c5   : > { %v9370_v53 = vpack.c.bf16 %v9366_v29, %v9362_v20  ;;  %vm9351_vm8 = vcmp.gt.f32.partialorder %v9263_v24, 0.0  ;;  %v9359_v31 = vmul.f32 0.2, %v9263_v24  ;;  %vm9353_vm9 = vcmp.gt.f32.partialorder %v9265_v26, 0.0  ;;  %9381 = sbr.rel (%p11206_p2) target bundleno = 2515 (0x9d3), region = 112  ;;  %9942 = vmatprep.subr.bf16.mxu0 (!%p11206_p2), %v13171_v0 }
 0x8c6   : > { %v9368_v34 = vsel %vm9352_vm7, %v9264_v19, %v9360_v30  ;;  %v9361_v9 = vmul.f32 0.2, %v9265_v26  ;;  %v9363_v39 = vsel %vm9347_vm5, %v9259_v11, %v9355_v46  ;;  %v9365_v4 = vsel %vm9349_vm6, %v9261_v15, %v9357_v27  ;;  %v13173_v1 = vld [vmem:[#allocation16 + $0x50] ss:$8 sps:$4 sm:$0xff] (!%p11206_p2)   ;;  %v13177_v3 = vld [vmem:[#allocation16 + $0x164] ss:$8 sps:$4 sm:$0xff] (!%p11206_p2)  }
 0x8c7   : > { %9374 = vst [vmem:[#allocation2] sm:$0xff] %v9370_v53  ;;  %v9372_v40 = vpack.c.bf16 %v9368_v34, %v9364_v32  ;;  %v9367_v41 = vsel %vm9351_vm8, %v9263_v24, %v9359_v31  ;;  %v13174_v37 = vld [vmem:[#allocation16 + $0x150] ss:$8 sps:$4 sm:$0xff] (!%p11206_p2)   ;;  %v13180_v7 = vld [vmem:[#allocation16 + $0x160] ss:$8 sps:$4 sm:$0xff] (!%p11206_p2)   ;;  %9902 = vmatpush1.bf16.msra.mxu1 (!%p11206_p2), %v13173_v1  ;;  %v9392_v0 = vunpack.c.l.bf16 (!%p11206_p2), %v9384_v50 }
 0x8c8   : > { %v9371_v14 = vpack.c.bf16 %v9367_v41, %v9363_v39  ;;  %v9369_v28 = vsel %vm9353_vm9, %v9265_v26, %v9361_v9  ;;  %9943 = vmatpush1.bf16.msra.mxu0 (!%p11206_p2), %v13174_v37  ;;  %v13181_v8 = vld [vmem:[#allocation16 + $0x74] ss:$8 sps:$4 sm:$0xff] (!%p11206_p2)   ;;  %9903 = vmatprep.subr.bf16.mxu1 (!%p11206_p2), %v13175_v2  ;;  %v13185_v12 = vld [vmem:[#allocation16 + $0x70] ss:$8 sps:$4 sm:$0xff] (!%p11206_p2)   ;;  %v13187_v45 = vld [vmem:[#allocation16 + $0x84] ss:$8 sps:$4 sm:$0xff] (!%p11206_p2)  }
 0x8c9   : > { %9376 = vst [vmem:[#allocation2 + $0x10] sm:$0xff] %v9372_v40  ;;  %v9373_v47 = vpack.c.bf16 %v9369_v28, %v9365_v4  ;;  %9944 = vmatprep.subr.bf16.mxu0 (!%p11206_p2), %v13177_v3  ;;  %v13183_v11 = vld [vmem:[#allocation16 + $0x174] ss:$8 sps:$4 sm:$0xff] (!%p11206_p2)   ;;  %v13186_v42 = vld [vmem:[#allocation16 + $0x170] ss:$8 sps:$4 sm:$0xff] (!%p11206_p2)   ;;  %v9385_v34 = vld [vmem:[#allocation3 + $0x18] sm:$0xff] (!%p11206_p2) }
 0x8ca   : > { %9375 = vst [vmem:[#allocation2 + $0x8] sm:$0xff] %v9371_v14  ;;  %v13189_v15 = vld [vmem:[#allocation16 + $0x184] ss:$8 sps:$4 sm:$0xff] (!%p11206_p2)   ;;  %v13191_v16 = vld [vmem:[#allocation16 + $0x80] ss:$8 sps:$4 sm:$0xff] (!%p11206_p2)   ;;  %v9383_v30 = vld [vmem:[#allocation3 + $0x8] sm:$0xff] (!%p11206_p2)  ;;  %v9393_v4 = vunpack.c.l.bf16 (!%p11206_p2), %v9385_v34  ;;  %v9397_v14 = vunpack.c.h.bf16 (!%p11206_p2), %v9385_v34 }
 0x8cb   : > { %9377 = vst [vmem:[#allocation2 + $0x18] sm:$0xff] %v9373_v47  ;;  %9904 = vmatpush1.bf16.msra.mxu1 (!%p11206_p2), %v13179_v5  ;;  %v13192_v22 = vld [vmem:[#allocation16 + $0x180] ss:$8 sps:$4 sm:$0xff] (!%p11206_p2)   ;;  %v13193_v36 = vld [vmem:[#allocation16 + $0x94] ss:$8 sps:$4 sm:$0xff] (!%p11206_p2)   ;;  %v9391_v31 = vunpack.c.l.bf16 (!%p11206_p2), %v9383_v30  ;;  %v9395_v32 = vunpack.c.h.bf16 (!%p11206_p2), %v9383_v30 }
 0x8cc   : > { %9945 = vmatpush1.bf16.msra.mxu0 %v13180_v7  ;;  %9905 = vmatprep.subr.bf16.mxu1 %v13181_v8  ;;  %v13195_v17 = vld [vmem:[#allocation16 + $0x194] ss:$8 sps:$4 sm:$0xff]   ;;  %v13197_v18 = vld [vmem:[#allocation16 + $0x90] ss:$8 sps:$4 sm:$0xff]   ;;  %v13199_v13 = vld [vmem:[#allocation16 + $0xa4] ss:$8 sps:$4 sm:$0xff]   ;;  %v9433_v51 = vadd.f32 %v9397_v14, %v9393_v4  ;;  %v9474_v23 = vmax.f32 %v9393_v4, %v9397_v14  ;;  %v9396_v7 = vunpack.c.h.bf16 %v9384_v50 }
 0x8cd   : > { %9946 = vmatprep.subr.bf16.mxu0 %v13183_v11  ;;  %v13198_v46 = vld [vmem:[#allocation16 + $0x190] ss:$8 sps:$4 sm:$0xff]   ;;  %v13201_v19 = vld [vmem:[#allocation16 + $0x1a4] ss:$8 sps:$4 sm:$0xff]   ;;  %v13203_v20 = vld [vmem:[#allocation16 + $0xa0] ss:$8 sps:$4 sm:$0xff]   ;;  %v9415_v6 = vadd.f32 %v9395_v32, %v9391_v31  ;;  %v9456_v21 = vmax.f32 %v9391_v31, %v9395_v32 }
 0x8ce   : > { %v13204_v24 = vld [vmem:[#allocation16 + $0x1a0] ss:$8 sps:$4 sm:$0xff]   ;;  %v13205_v26 = vld [vmem:[#allocation16 + $0xb4] ss:$8 sps:$4 sm:$0xff]   ;;  %v13209_v29 = vld [vmem:[#allocation16 + $0xb0] ss:$8 sps:$4 sm:$0xff]  }
 0x8cf   : > { %9906 = vmatpush1.bf16.msra.mxu1 %v13185_v12  ;;  %v13207_v27 = vld [vmem:[#allocation16 + $0x1b4] ss:$8 sps:$4 sm:$0xff]   ;;  %v9389_v9 = vld [vmem:[#allocation3 + $0x38] sm:$0xff]  ;;  %v13210_v39 = vld [vmem:[#allocation16 + $0x1b0] ss:$8 sps:$4 sm:$0xff]  }
 0x8d0   : > { %9947 = vmatpush1.bf16.msra.mxu0 %v13186_v42  ;;  %9907 = vmatprep.subr.bf16.mxu1 %v13187_v45  ;;  %v9387_v53 = vld [vmem:[#allocation3 + $0x28] sm:$0xff]  ;;  %v9382_v28 = vld [vmem:[#allocation3] sm:$0xff]  ;;  %v9401_v25 = vunpack.c.l.bf16 %v9389_v9  ;;  %v9405_v35 = vunpack.c.h.bf16 %v9389_v9  ;;  %v9400_v42 = vunpack.c.l.bf16 %v14848_v59  ;;  %v13228_v4 = vld [vmem:[#allocation16 + $0x1e0] ss:$8 sps:$4 sm:$0xff]  }
 0x8d1   : > { %9948 = vmatprep.subr.bf16.mxu0 %v13189_v15  ;;  %v9399_v40 = vunpack.c.l.bf16 %v9387_v53  ;;  %v9403_v41 = vunpack.c.h.bf16 %v9387_v53  ;;  %v9386_v47 = vld [vmem:[#allocation3 + $0x20] sm:$0xff]  ;;  %v9390_v52 = vunpack.c.l.bf16 %v9382_v28  ;;  %v9394_v54 = vunpack.c.h.bf16 %v9382_v28 }
 0x8d2   : > { %v9398_v57 = vunpack.c.l.bf16 %v9386_v47  ;;  %v9402_v58 = vunpack.c.h.bf16 %v9386_v47  ;;  %v9434_v62 = vadd.f32 %v9433_v51, %v9401_v25  ;;  %v9475_v63 = vmax.f32 %v9474_v23, %v9401_v25  ;;  %v13217_v1 = vld [vmem:[#allocation16 + $0xd4] ss:$8 sps:$4 sm:$0xff]  }
 0x8d3   : > { %9908 = vmatpush1.bf16.msra.mxu1 %v13191_v16  ;;  %v9416_v33 = vadd.f32 %v9415_v6, %v9399_v40  ;;  %v9457_v55 = vmax.f32 %v9456_v21, %v9399_v40  ;;  %v9406_v38 = vadd.f32 %v9394_v54, %v9390_v52  ;;  %v13219_v37 = vld [vmem:[#allocation16 + $0x1d4] ss:$8 sps:$4 sm:$0xff]   ;;  %v9447_v5 = vmax.f32 %v9390_v52, %v9394_v54 }
 0x8d4   : > { %9949 = vmatpush1.bf16.msra.mxu0 %v13192_v22  ;;  %9909 = vmatprep.subr.bf16.mxu1 %v13193_v36  ;;  %v9435_v8 = vadd.f32 %v9434_v62, %v9405_v35  ;;  %v9476_v11 = vmax.f32 %v9475_v63, %v9405_v35  ;;  %v9404_v22 = vunpack.c.h.bf16 %v14848_v59  ;;  %v13221_v36 = vld [vmem:[#allocation16 + $0xd0] ss:$8 sps:$4 sm:$0xff]   ;;  %v9465_v40 = vmax.f32 %v9392_v0, %v9396_v7  ;;  %v13231_v6 = vld [vmem:[#allocation16 + $0x1f4] ss:$8 sps:$4 sm:$0xff]  }
 0x8d5   : > { %9950 = vmatprep.subr.bf16.mxu0 %v13195_v17  ;;  %v9417_v2 = vadd.f32 %v9416_v33, %v9403_v41  ;;  %v9458_v3 = vmax.f32 %v9457_v55, %v9403_v41  ;;  %v9407_v12 = vadd.f32 %v9406_v38, %v9398_v57  ;;  %v9448_v16 = vmax.f32 %v9447_v5, %v9398_v57  ;;  %v13222_v17 = vld [vmem:[#allocation16 + $0x1d0] ss:$8 sps:$4 sm:$0xff]   ;;  %v13227_v41 = vld [vmem:[#allocation16 + $0xe0] ss:$8 sps:$4 sm:$0xff]  }
 0x8d6   : > { %v9466_v57 = vmax.f32 %v9465_v40, %v9400_v42 }
 0x8d7   : > { %9910 = vmatpush1.bf16.msra.mxu1 %v13197_v18  ;;  %v9418_v45 = vrot.slane %v9417_v2, 4  ;;  %v9459_v15 = vrot.slane %v9458_v3, 4  ;;  %v9436_v18 = vrot.slane %v9435_v8, 4 }
 0x8d8   : > { %9951 = vmatpush1.bf16.msra.mxu0 %v13198_v46  ;;  %9911 = vmatprep.subr.bf16.mxu1 %v13199_v13  ;;  %v9477_v46 = vrot.slane %v9476_v11, 4  ;;  %v9408_v13 = vadd.f32 %v9407_v12, %v9402_v58 }
 0x8d9   : > { %9952 = vmatprep.subr.bf16.mxu0 %v13201_v19  ;;  %v9424_v19 = vadd.f32 %v9396_v7, %v9392_v0  ;;  %v9437_v30 = vadd.f32 %v9436_v18, %v9435_v8 }
 0x8da   : > { %v9478_v53 = vmax.f32 %v9476_v11, %v9477_v46  ;;  %v9409_v31 = vrot.slane %v9408_v13, 4 }
 0x8db   : > { %9912 = vmatpush1.bf16.msra.mxu1 %v13203_v20  ;;  %v13223_v20 = vld [vmem:[#allocation16 + $0xe4] ss:$8 sps:$4 sm:$0xff]   ;;  %v9425_v32 = vadd.f32 %v9424_v19, %v9400_v42  ;;  %v9438_v14 = vrot.slane %v9437_v30, 2  ;;  %v9467_v42 = vmax.f32 %v9466_v57, %v9404_v22 }
 0x8dc   : > { %9953 = vmatpush1.bf16.msra.mxu0 %v13204_v24  ;;  %9913 = vmatprep.subr.bf16.mxu1 %v13205_v26  ;;  %v13225_v24 = vld [vmem:[#allocation16 + $0x1e4] ss:$8 sps:$4 sm:$0xff]   ;;  %v9419_v26 = vadd.f32 %v9418_v45, %v9417_v2  ;;  %v9479_v28 = vrot.slane %v9478_v53, 2  ;;  %v9410_v47 = vadd.f32 %v9409_v31, %v9408_v13 }
 0x8dd   : > { %9954 = vmatprep.subr.bf16.mxu0 %v13207_v27  ;;  %v9460_v27 = vmax.f32 %v9458_v3, %v9459_v15  ;;  %v9439_v50 = vadd.f32 %v9438_v14, %v9437_v30  ;;  %v9468_v46 = vrot.slane %v9467_v42, 4 }
 0x8de   : > { %v9420_v34 = vrot.slane %v9419_v26, 2  ;;  %v9480_v51 = vmax.f32 %v9478_v53, %v9479_v28  ;;  %v9411_v23 = vrot.slane %v9410_v47, 2 }
 0x8df   : > { %9914 = vmatpush1.bf16.msra.mxu1 %v13209_v29  ;;  %v9449_v29 = vmax.f32 %v9448_v16, %v9402_v58  ;;  %v9461_v9 = vrot.slane %v9460_v27, 2  ;;  %v13233_v58 = vld [vmem:[#allocation16 + $0xf0] ss:$8 sps:$4 sm:$0xff]  }
 0x8e0   : > { %9955 = vmatpush1.bf16.msra.mxu0 %v13210_v39  ;;  %9915 = vmatprep.subr.bf16.mxu1 %v13211_v48  ;;  %v9426_v48 = vadd.f32 %v9425_v32, %v9404_v22  ;;  %v9421_v21 = vadd.f32 %v9420_v34, %v9419_v26  ;;  %v9481_v62 = vrot.slane %v9480_v51, 1  ;;  %v9412_v63 = vadd.f32 %v9411_v23, %v9410_v47 }
 0x8e1   : > { %9956 = vmatprep.subr.bf16.mxu0 %v13213_v49  ;;  %v9450_v39 = vrot.slane %v9449_v29, 4  ;;  %v13229_v49 = vld [vmem:[#allocation16 + $0xf4] ss:$8 sps:$4 sm:$0xff]   ;;  %v9462_v25 = vmax.f32 %v9460_v27, %v9461_v9  ;;  %v9469_v27 = vmax.f32 %v9467_v42, %v9468_v46 }
 0x8e2   : > { %v9427_v52 = vrot.slane %v9426_v48, 4  ;;  %v9422_v54 = vrot.slane %v9421_v21, 1  ;;  %v9482_v3 = vmax.f32 %v9480_v51, %v9481_v62  ;;  %v9413_v5 = vrot.slane %v9412_v63, 1 }
 0x8e3   : > { %9916 = vmatpush1.bf16.msra.mxu1 %v13215_v60  ;;  %v9451_v35 = vmax.f32 %v9449_v29, %v9450_v39  ;;  %v9463_v33 = vrot.slane %v9462_v25, 1  ;;  %v13234_v60 = vld [vmem:[#allocation16 + $0x1f0] ss:$8 sps:$4 sm:$0xff]   ;;  %v9470_v59 = vrot.slane %v9469_v27, 2 }
 0x8e4   : > { %9957 = vmatpush1.bf16.msra.mxu0 %v13216_v61  ;;  %9917 = vmatprep.subr.bf16.mxu1 %v13217_v1  ;;  %v9440_v61 = vrot.slane %v9439_v50, 1  ;;  %v9428_v38 = vadd.f32 %v9427_v52, %v9426_v48  ;;  %v9423_v0 = vadd.f32 %v9422_v54, %v9421_v21  ;;  %v9486_v15 = vmul.f32 0.1, %v9482_v3 }
 0x8e5   : > { %9958 = vmatprep.subr.bf16.mxu0 %v13219_v37  ;;  %v9452_v55 = vrot.slane %v9451_v35, 2  ;;  %v9464_v1 = vmax.f32 %v9462_v25, %v9463_v33  ;;  %v9414_v16 = vadd.f32 %v9413_v5, %v9412_v63  ;;  %v9471_v31 = vmax.f32 %v9469_v27, %v9470_v59 }
 0x8e6   : > { %v9441_v2 = vadd.f32 %v9440_v61, %v9439_v50  ;;  %v9429_v7 = vrot.slane %v9428_v38, 2  ;;  %v9444_v8 = vmul.f32 0.03125, %v9423_v0  ;;  %v13590_v21 = vmov 1966171168  }
 0x8e7   : > { %9918 = vmatpush1.bf16.msra.mxu1 %v13221_v36  ;;  %v9453_v37 = vmax.f32 %v9451_v35, %v9452_v55  ;;  %v9484_v11 = vmul.f32 0.1, %v9464_v1  ;;  %v9443_v19 = vmul.f32 0.03125, %v9414_v16  ;;  %v9472_v32 = vrot.slane %v9471_v31, 1 }
 0x8e8   : > { %9959 = vmatpush1.bf16.msra.mxu0 %v13222_v17  ;;  %9919 = vmatprep.subr.bf16.mxu1 %v13223_v20  ;;  %v9446_v45 = vmul.f32 0.03125, %v9441_v2  ;;  %v9430_v36 = vadd.f32 %v9429_v7, %v9428_v38  ;;  %v9977_v25 = vunpack.c.l.s4 %v13590_v21 }
 0x8e9   : > { %9960 = vmatprep.subr.bf16.mxu0 %v13225_v24  ;;  %v9454_v12 = vrot.slane %v9453_v37, 1  ;;  %v9488_v17 = vadd.f32 %v9484_v11, %v9444_v8  ;;  %v9473_v9 = vmax.f32 %v9471_v31, %v9472_v32 }
 0x8ea   : > { %v9490_v13 = vadd.f32 %v9486_v15, %v9446_v45  ;;  %v9431_v26 = vrot.slane %v9430_v36, 1  ;;  %v9978_v51 = vunpack.c.0.s8 %v9977_v25 }
 0x8eb   : > { %9920 = vmatpush1.bf16.msra.mxu1 %v13227_v41  ;;  %v9455_v18 = vmax.f32 %v9453_v37, %v9454_v12  ;;  %v9492_v20 = vpack.c.bf16 %v9488_v17, %v9488_v17  ;;  %v9485_v39 = vmul.f32 0.1, %v9473_v9 }
 0x8ec   : > { %9961 = vmatpush1.bf16.msra.mxu0 %v13228_v4  ;;  %9921 = vmatprep.subr.bf16.mxu1 %v13229_v49  ;;  %v9494_v29 = vpack.c.bf16 %v9490_v13, %v9490_v13  ;;  %v9432_v53 = vadd.f32 %v9431_v26, %v9430_v36  ;;  %v9559_v4 = vld [vmem:[#allocation18] sm:$0x3]  ;;  %v9981_v55 = vsub.s32 %v9978_v51, %v14723_v43 }
 0x8ed   : > { %9962 = vmatprep.subr.bf16.mxu0 %v13231_v6  ;;  %v9483_v24 = vmul.f32 0.1, %v9455_v18  ;;  %9923 = vmatprep.mubr.bf16.mxu1 %v9492_v20  ;;  %v9884_v48 = vrot.slane %v9559_v4, %v14730_v44  ;;  %v9888_v6 = vrot.slane %v9559_v4, %v14830_v56 }
 0x8ee   : > { %9964 = vmatprep.mubr.bf16.mxu0 %v9494_v29  ;;  %v9445_v34 = vmul.f32 0.03125, %v9432_v53 }
 0x8ef   : > { %9922 = vmatpush1.bf16.msra.mxu1 %v13233_v58  ;;  %v9487_v30 = vadd.f32 %v9483_v24, %v9443_v19 }
 0x8f0   : > { %9963 = vmatpush1.bf16.msra.mxu0 %v13234_v60  ;;  %v9489_v40 = vadd.f32 %v9485_v39, %v9445_v34 }
 0x8f1   : > { %v9491_v22 = vpack.c.bf16 %v9487_v30, %v9487_v30 }
 0x8f2   : > { %v9493_v41 = vpack.c.bf16 %v9489_v40, %v9489_v40 }
 0x8f3   : > { %9924 = vmatmul.mubr.bf16.vlgmr.msra.gmra.mrb[0].mxu1 %v9491_v22 }
 0x8f4   : > { %9965 = vmatmul.mubr.bf16.vlgmr.msra.gmra.mrb[0].mxu0 %v9493_v41 }
 0x9c6   : > { %v9925_v14 = vpop.f32.mrb[0].mxu1 }
 0x9c7   : > { %v9927_v28 = vpop.f32.mrb[1].mxu1  ;;  %v9926_v35 = vadd.f32 %v9925_v14, %v9884_v48  ;;  %v9966_v23 = vpop.f32.mrb[0].mxu0 }
 0x9c8   : > { %v9929_v47 = vpop.f32.mrb[2].mxu1  ;;  %v9928_v50 = vadd.f32 %v9927_v28, %v9888_v6  ;;  %v9968_v54 = vpop.f32.mrb[1].mxu0 }
 0x9c9   : > { %v9930_v49 = vpop.f32.mrb[3].mxu1  ;;  %v9967_v52 = vadd.f32 %v9966_v23, %v9926_v35  ;;  %v9970_v57 = vpop.f32.mrb[2].mxu0 }
 0x9ca   : > { %v9969_v33 = vadd.f32 %v9968_v54, %v9928_v50  ;;  %v9971_v58 = vpop.f32.mrb[3].mxu0 }
 0x9cc   : > { %v9975_v60 = vcombine.low %v9967_v52, %v9969_v33 }
 0x9ce   : > { %v9982_v61 = vrot.slane %v9975_v60, %v9981_v55 }
 0x9d0   : > { %v9989_v44 = vrot.slane %v9982_v61, %v9981_v55 }
 0x9d2   : > { %9995 = vst.msk [vmem:[#allocation19] sm:$0x3] %vm9993_vm10, %v9989_v44 }
 0x9d3 PF: > { %p11535_p1 = scmp.eq.s32.totalorder %s13678_s25, 3  ;;  %s13591_s21 = smov [#allocation19]  }
 0x9d4   : > { %s10003_s13 = sshll.u32 %s13591_s21, 4  ;;  %s10004_s13 = int_to_ptr.vmem [resolvable:$true] %s10003_s13 }
 0x9d5   : > { %s13489_s27 = scalar_lea.vmem %s10004_s13, 32  ;;  %p13496_p11 = scmp.lt.s32.totalorder %s10004_s13, %s10004_s13 }
 0x9d6   : > { %p13490_p7 = scmp.ne.s32.totalorder %s10004_s13, %s13489_s27  ;;  %p13497_p12 = scmp.lt.s32.totalorder %s13489_s27, %s13489_s27 }
 0x9d8   : > { %p13491_p3 = pnand %p13490_p7, %p11535_p1  ;;  %p13498_p13 = por %p13497_p12, %p13496_p11 }
 0x9da   : > { %p13492_p4 = pneg %p13491_p3 }
 0x9dc   : > { %p13499_p6 = pnand %p13498_p13, %p13492_p4 }
 0x9de   : > { %13502 = shalt.err (!%p13499_p6)
}
 0x9df   : > { %s14954_s20 = sld [smem:[#allocation32_spill]] }
 0x9e5   : > { %s13503_s1 = scalar_lea.hbm %s14954_s20, 32 }
 0x9e6   : > { %p13504_p0 = scmp.ne.s32.totalorder %s14954_s20, %s13503_s1  ;;  %p13509_p10 = scmp.lt.u32.totalorder %s13503_s1, %s14954_s20 }
 0x9e8   : > { %p13505_p5 = pnand %p13504_p0, %p11535_p1 }
 0x9ea   : > { %p13506_p9 = pneg %p13505_p5 }
 0x9ec   : > { %p13511_p8 = pnand %p13509_p10, %p13506_p9 }
 0x9ee   : > { %13514 = shalt.err (!%p13511_p8)
}
 0x9ef   : > { %11486 = dma.vmem_to_hbm [thread:$0]  (%p11535_p1), %s10004_s13, 32, %s14954_s20, [#allocation6]  }
 0x9f0   : > { %13556 = dma.done.wait (%p11535_p1), [#allocation6], 32  }
 0x9f1   : > { %13558 = vsyncadd (%p11535_p1), [#allocation6], 4294967264 }
 0x9f2 PF: > { %p27_p2 = scmp.ge.s32.totalorder %s13885_s2, 6   ;;  %s14955_s21 = smov %s13565_s22 }
 0x9f3   : > { %s14956_s22 = smov %s13569_s23  ;;  %s14957_s23 = smov %s13897_s7 }
 0x9f4   : > { %s14958_s24 = smov %s13885_s2  ;;  %29 = sbr.rel (!%p27_p2) target bundleno = 15 (0xf), region = 147 }
 0x9fb   :  { %10016 = vsyncpa [#allocation5], 1 }
 0x9fc   :  { %10018 = vsyncpa [#allocation5 + $0x1], 1 }
 0x9fd   :  { %10019 = vsyncpa [#allocation8], 1 }
 0x9fe   :  { %10020 = vsyncpa [#allocation11], 1 }
 0x9ff   :  { %10021 = vsyncpa [#allocation14], 1 }
 0xa00   :  { %10023 = vsyncpa [#allocation14 + $0x1], 1 }
 0xa01   :  { %10024 = vsyncpa [#allocation17], 1 }
 0xa02   :  { %10025 = vsyncpa [#allocation6], 1 }
 0xa03   :  { %10027 = vsyncpa [#allocation6 + $0x1], 1 }

</bundles_post_ra>
